<compile_context>
chip_gen: v7x
topology: tpu7x:2x2x1
jax: 0.10.0
libtpu: 0.0.40
codegen_flags: <defaults>
</compile_context>

<pallas_src>
import functools

import jax
import jax.numpy as jnp
import numpy as np
from jax.experimental import pallas as pl
from jax.experimental.pallas import tpu as pltpu

DILATIONS = (1, 6, 12, 18)
BN_EPS = 1e-5
LANES = 128
PAD = max(DILATIONS)


def _round_up(x, m):
    return (x + m - 1) // m * m


def _vmem_limit_bytes():
    cap = 64 << 20
    try:
        info = pltpu.get_tpu_info()
        cap = int(getattr(info, "vmem_capacity_bytes", cap) or cap)
    except Exception:
        pass
    return max(32 << 20, cap - (8 << 20))


def _pick_band(H, W, max_rows):
    """Band height TH: divides H, TH*W % 8 == 0, TH*W <= max_rows (prefer >=2 bands)."""
    cands = [th for th in range(1, H + 1) if H % th == 0 and (th * W) % 8 == 0]
    if not cands:
        # TODO(synk): support odd spatial sizes (e.g. 33x33) by padding W up to a
        # sublane-friendly size and masking the pad columns out of the BN stats.
        raise NotImplementedError(
            f"need a band height dividing H with TH*W % 8 == 0 (H={H}, W={W})")
    fit = [th for th in cands if th * W <= max_rows] or [min(cands)]
    sub = [th for th in fit if th < H] or fit          # prefer >=2 bands (megacore)
    big = [th for th in sub if th * W >= 128] or sub   # keep the MXU M dim filled
    return max(big)


def _pick_row_tile(n, target):
    """Largest multiple-of-8 divisor of n <= target, preferring a proper divisor
    so passes 2/3 have >=2 grid steps to pipeline / split across cores."""
    best = None
    for t in range(min(n, max(8, target)), 7, -1):
        if n % t == 0 and t % 8 == 0:
            if t < n:
                return t
            best = t
    return best if best is not None else 8


def _spec(shape, index_map, single_buffer=False):
    """BlockSpec; constant-index operands are single-buffered when supported."""
    if single_buffer:
        try:
            return pl.BlockSpec(shape, index_map, pipeline_mode=pl.Buffered(1))
        except Exception:
            pass
    return pl.BlockSpec(shape, index_map)


# --------------------------------------------------------------------------
# Pass 1: per (image, H-band) raw (pre-BN) outputs of the 5 branches + partials
# --------------------------------------------------------------------------
def _branch_conv_kernel(xp_ref, w1_ref, w3_ref, y_ref, st_ref, *, TH, W):
    """xp_ref: (1, H+2*PAD, W, CinP) bf16  input, zero-padded along H only
    w1_ref: (CinP, CoutP)            bf16  1x1 conv weight
    w3_ref: (12*CinP, 3*CoutP)       bf16  rows (i*3+ky)*CinP..+CinP hold the 3
                                           kx taps side by side in the lane dim
    y_ref : (5, TH*W, CoutP)         bf16  raw branch outputs for this band
    st_ref: (1, 1, 10, CoutP)        f32   rows 0..4 per-branch sum,
                                           rows 5..9 per-branch centered M2
    """
    CinP = xp_ref.shape[-1]
    CoutP = y_ref.shape[-1]
    t = pl.program_id(1)
    rows = TH * W
    f32 = jnp.float32

    def row_slab(dy):
        # Input rows feeding output rows [t*TH, t*TH+TH) at vertical tap offset dy.
        h0 = t * TH + (dy + PAD)
        return xp_ref[0, pl.ds(h0, TH), :, :].reshape(rows, CinP)      # bf16

    x_c = row_slab(0)          # shared by the 1x1 branch and every ky == 1 tap

    sums, m2s = [], []

    def emit(idx, acc):        # acc: (rows, CoutP) f32
        y_ref[idx] = acc.astype(y_ref.dtype)            # bf16 writeback
        s = jnp.sum(acc, axis=0, keepdims=True)
        d = acc - s * (1.0 / rows)
        sums.append(s)
        m2s.append(jnp.sum(d * d, axis=0, keepdims=True))

    # branch 0: 1x1 conv
    emit(0, jnp.dot(x_c, w1_ref[...], preferred_element_type=f32))

    # branches 1..4: dilated 3x3 convs.  One K=CinP matmul per (dilation, ky)
    # produces all three kx taps; the kx shift is applied to the CoutP-wide
    # product (much cheaper than shifting CinP-wide inputs when Cin >> Cout).
    for i, d in enumerate(DILATIONS):
        acc = jnp.zeros((TH, W, CoutP), f32)
        for ky in range(3):
            off = (i * 3 + ky) * CinP
            xk = x_c if ky == 1 else row_slab((ky - 1) * d)
            p = jnp.dot(xk, w3_ref[off:off + CinP, :],
                        preferred_element_type=f32).reshape(TH, W, 3 * CoutP)
            for kx in range(3):
                dx = (kx - 1) * d
                if abs(dx) >= W:                 # tap entirely outside the image
                    continue
                blk = p[:, :, kx * CoutP:(kx + 1) * CoutP]
                if dx == 0:
                    acc = acc + blk
                elif dx > 0:
                    acc = acc + jnp.concatenate(
                        [blk[:, dx:, :], jnp.zeros((TH, dx, CoutP), f32)], axis=1)
                else:
                    acc = acc + jnp.concatenate(
                        [jnp.zeros((TH, -dx, CoutP), f32), blk[:, :W + dx, :]],
                        axis=1)
        emit(i + 1, acc.reshape(rows, CoutP))

    st_ref[0, 0] = jnp.concatenate(sums + m2s, axis=0)   # (10, CoutP)


# --------------------------------------------------------------------------
# Pass 2: per row tile: branch BN+ReLU, final 1x1 conv, centered partials
# --------------------------------------------------------------------------
def _fuse_final_kernel(y_ref, bn1_ref, wf_ref, fin_ref, st_ref):
    """y_ref  : (5, TN, CoutP) bf16   raw branch outputs for this row tile
    bn1_ref: (10, CoutP)       f32    rows 0..4 per-branch scale, 5..9 shift
    wf_ref : (5*CoutP, CoutP)  bf16   final 1x1 weight, per-branch row blocks
    fin_ref: (TN, CoutP)       f32    pre-BN final conv output
    st_ref : (1, 2, CoutP)     f32    (sum, centered M2) of fin for this tile
    """
    TN, CoutP = fin_ref.shape
    acc = jnp.zeros((TN, CoutP), jnp.float32)
    for i in range(5):
        # One branch live at a time: BN+ReLU then immediately fold into acc.
        a = jnp.maximum(
            y_ref[i].astype(jnp.float32) * bn1_ref[i:i + 1, :]
            + bn1_ref[5 + i:6 + i, :], 0.0)
        acc = acc + jnp.dot(a.astype(jnp.bfloat16),
                            wf_ref[i * CoutP:(i + 1) * CoutP, :],
                            preferred_element_type=jnp.float32)
    fin_ref[...] = acc
    s = jnp.sum(acc, axis=0, keepdims=True)
    d = acc - s * (1.0 / TN)
    st_ref[0] = jnp.concatenate([s, jnp.sum(d * d, axis=0, keepdims=True)], axis=0)


# --------------------------------------------------------------------------
# Pass 3: final BN + ReLU (per row tile, elementwise, in place on fin)
# --------------------------------------------------------------------------
def _bn_relu_kernel(fin_ref, bnf_ref, out_ref):
    out_ref[...] = jnp.maximum(
        fin_ref[...] * bnf_ref[0:1, :] + bnf_ref[1:2, :], 0.0)


def _bn_affine_from_tiles(tile_sum, tile_m2, n_tile, n_total, gamma, beta):
    """Chan's parallel-variance combine over equal-size tiles -> BN affine."""
    tot = jnp.sum(tile_sum, axis=0)
    mean = tot / n_total
    var = (jnp.sum(tile_m2, axis=0)
           + n_tile * jnp.sum(jnp.square(tile_sum / n_tile - mean), axis=0)) / n_total
    scale = gamma * jax.lax.rsqrt(jnp.maximum(var, 0.0) + BN_EPS)
    return scale, beta - mean * scale


@jax.jit
def aspp_forward(x_nhwc, params):
    """x_nhwc: (B, H, W, Cin) f32 -> (B, H, W, Cout) f32 (train-mode BN stats)."""
    B, H, W, Cin = x_nhwc.shape
    Cout = params["w1"].shape[1]
    CinP, CoutP = _round_up(Cin, LANES), _round_up(Cout, LANES)
    Hp = H + 2 * PAD
    N = B * H * W
    f32, bf16 = jnp.float32, jnp.bfloat16

    vlim = _vmem_limit_bytes()
    budget = int(vlim * 0.6)

    # ---- generation-aware tile sizes (v5e/v6e: big tiles, v7x: smaller) ------
    fixed1 = (Hp * W * CinP * 2            # resident padded image (1 buffer)
              + 12 * CinP * 3 * CoutP * 2  # w3 slab (1 buffer)
              + CinP * CoutP * 2)          # w1
    per_row1 = CoutP * (2 * 5 * 2 + 32) + 4 * CinP
    TH = _pick_band(H, W, max(8, (budget - fixed1) // per_row1))
    NB = H // TH

    per_row2 = CoutP * (2 * 5 * 2 + 2 * 4 + 16)
    fixed2 = 5 * CoutP * CoutP * 2 + 10 * CoutP * 4
    TN = _pick_row_tile(N, min(4096, max(8, (budget - fixed2) // per_row2)))
    nt = N // TN

    def cpad(a, axis, new):
        widths = [(0, 0)] * a.ndim
        widths[axis] = (0, new - a.shape[axis])
        return jnp.pad(a, widths)

    # ---- lane-dense, channel-padded weights (bf16 MXU operands) -------------
    w1 = cpad(cpad(params["w1"], 0, CinP), 1, CoutP).astype(bf16)
    # (4,3,3,Cin,Cout) -> (4,3,CinP,3,CoutP) -> (12*CinP, 3*CoutP): the 3 kx taps
    # of each (dilation, ky) are side by side in the lane dim.
    w3 = jnp.transpose(cpad(cpad(params["w3"], 3, CinP), 4, CoutP),
                       (0, 1, 3, 2, 4)).reshape(12 * CinP, 3 * CoutP).astype(bf16)
    wf = cpad(cpad(params["wf"], 1, CoutP), 2, CoutP) \
        .reshape(5 * CoutP, CoutP).astype(bf16)
    gamma_b = cpad(params["gb"][:, 0, :], 1, CoutP)          # (5, CoutP)
    beta_b = cpad(params["gb"][:, 1, :], 1, CoutP)
    gamma_f = cpad(params["gbf"][0], 0, CoutP)               # (CoutP,)
    beta_f = cpad(params["gbf"][1], 0, CoutP)

    # ---- input: channel-padded bf16, zero-padded along H only ---------------
    xp = jnp.pad(x_nhwc, ((0, 0), (PAD, PAD), (0, 0), (0, CinP - Cin))).astype(bf16)

    cp1 = pltpu.CompilerParams(dimension_semantics=("parallel", "parallel"),
                               vmem_limit_bytes=vlim)
    cp2 = pltpu.CompilerParams(dimension_semantics=("parallel",),
                               vmem_limit_bytes=vlim)

    # ---- pass 1: branch convs (bf16 out) + per-band centered BN partials ----
    y, st1 = pl.pallas_call(
        functools.partial(_branch_conv_kernel, TH=TH, W=W),
        grid=(B, NB),
        in_specs=[
            _spec((1, Hp, W, CinP), lambda b, t: (b, 0, 0, 0), single_buffer=True),
            _spec((CinP, CoutP), lambda b, t: (0, 0), single_buffer=True),
            _spec((12 * CinP, 3 * CoutP), lambda b, t: (0, 0), single_buffer=True),
        ],
        out_specs=[
            pl.BlockSpec((5, TH * W, CoutP), lambda b, t: (0, b * NB + t, 0)),
            pl.BlockSpec((1, 1, 10, CoutP), lambda b, t: (b, t, 0, 0)),
        ],
        out_shape=[
            jax.ShapeDtypeStruct((5, N, CoutP), bf16),
            jax.ShapeDtypeStruct((B, NB, 10, CoutP), f32),
        ],
        compiler_params=cp1,
    )(xp, w1, w3)

    st1 = st1.reshape(B * NB, 10, CoutP)
    scale_b, shift_b = _bn_affine_from_tiles(st1[:, 0:5], st1[:, 5:10],
                                             TH * W, N, gamma_b, beta_b)
    bn1 = jnp.concatenate([scale_b, shift_b], axis=0).astype(f32)   # (10, CoutP)

    # ---- pass 2: branch BN+ReLU, final 1x1 conv, centered partials ----------
    fin, st2 = pl.pallas_call(
        _fuse_final_kernel,
        grid=(nt,),
        in_specs=[
            pl.BlockSpec((5, TN, CoutP), lambda t: (0, t, 0)),
            _spec((10, CoutP), lambda t: (0, 0), single_buffer=True),
            _spec((5 * CoutP, CoutP), lambda t: (0, 0), single_buffer=True),
        ],
        out_specs=[
            pl.BlockSpec((TN, CoutP), lambda t: (t, 0)),
            pl.BlockSpec((1, 2, CoutP), lambda t: (t, 0, 0)),
        ],
        out_shape=[
            jax.ShapeDtypeStruct((N, CoutP), f32),
            jax.ShapeDtypeStruct((nt, 2, CoutP), f32),
        ],
        compiler_params=cp2,
    )(y, bn1, wf)

    scale_f, shift_f = _bn_affine_from_tiles(st2[:, 0], st2[:, 1],
                                             TN, N, gamma_f, beta_f)
    bnf = jnp.stack([scale_f, shift_f], axis=0).astype(f32)          # (2, CoutP)

    # ---- pass 3: final BN + ReLU, in place on fin via aliasing --------------
    out = pl.pallas_call(
        _bn_relu_kernel,
        grid=(nt,),
        in_specs=[
            pl.BlockSpec((TN, CoutP), lambda t: (t, 0)),
            _spec((2, CoutP), lambda t: (0, 0), single_buffer=True),
        ],
        out_specs=pl.BlockSpec((TN, CoutP), lambda t: (t, 0)),
        out_shape=jax.ShapeDtypeStruct((N, CoutP), f32),
        input_output_aliases={0: 0},
        compiler_params=cp2,
    )(fin, bnf)

    return out.reshape(B, H, W, CoutP)[..., :Cout]


# --------------------------------------------------------------------------
# Pure-JAX reference (lax conv) with identical semantics, f32 throughout.
# --------------------------------------------------------------------------
def aspp_reference(x_nhwc, params):
    Cin = x_nhwc.shape[-1]
    Cout = params["w1"].shape[1]

    def bn_relu(y, gamma, beta):
        mean = jnp.mean(y, axis=(0, 1, 2), keepdims=True)
        var = jnp.mean(jnp.square(y - mean), axis=(0, 1, 2), keepdims=True)
        return jnp.maximum((y - mean) * jax.lax.rsqrt(var + BN_EPS) * gamma + beta,
                           0.0)

    def conv(x, w, d, p):
        return jax.lax.conv_general_dilated(
            x, w, window_strides=(1, 1), padding=[(p, p), (p, p)],
            rhs_dilation=(d, d), dimension_numbers=("NHWC", "HWIO", "NHWC"))

    feats = [bn_relu(conv(x_nhwc, params["w1"].reshape(1, 1, Cin, Cout), 1, 0),
                     params["gb"][0, 0], params["gb"][0, 1])]
    for i, d in enumerate(DILATIONS):
        feats.append(bn_relu(conv(x_nhwc, params["w3"][i], d, d),
                             params["gb"][i + 1, 0], params["gb"][i + 1, 1]))

    cat = jnp.concatenate(feats, axis=-1)
    wf = params["wf"].reshape(5 * Cout, Cout)
    fin = conv(cat, wf.reshape(1, 1, 5 * Cout, Cout), 1, 0)
    return bn_relu(fin, params["gbf"][0], params["gbf"][1])


def init_params(key, cin, cout):
    ks = jax.random.split(key, 6)
    w1 = 0.2 * jax.random.normal(ks[0], (cin, cout), jnp.float32)
    w3 = 0.1 * jax.random.normal(ks[1], (4, 3, 3, cin, cout), jnp.float32)
    wf = 0.2 * jax.random.normal(ks[2], (5, cout, cout), jnp.float32)
    gamma = 1.0 + 0.1 * jax.random.normal(ks[3], (5, cout), jnp.float32)
    beta = 0.1 * jax.random.normal(ks[4], (5, cout), jnp.float32)
    gb = jnp.stack([gamma, beta], axis=1)                       # (5, 2, cout)
    gbf = jnp.stack([1.0 + 0.1 * jax.random.normal(ks[5], (cout,), jnp.float32),
                     jnp.zeros((cout,), jnp.float32)], axis=0)  # (2, cout)
    return {"w1": w1, "w3": w3, "wf": wf, "gb": gb, "gbf": gbf}


if __name__ == "__main__":
    key = jax.random.PRNGKey(0)
    B, Cin, H, W, Cout = 2, 4, 16, 16, 8

    kx, kp = jax.random.split(key)
    # PyTorch-style NCHW input, transposed to the kernel's NHWC layout.
    x_nchw = jax.random.normal(kx, (B, Cin, H, W), jnp.float32)
    x_nhwc = jnp.transpose(x_nchw, (0, 2, 3, 1))

    params = init_params(kp, Cin, Cout)

    out_nhwc = jax.block_until_ready(aspp_forward(x_nhwc, params))

    ref = aspp_reference(x_nhwc, params)
    # Tolerance accounts for bf16 matmul operands and the bf16 y intermediate
    # (all accumulation and BN statistics stay f32).
    np.testing.assert_allclose(np.asarray(out_nhwc), np.asarray(ref),
                               rtol=5e-2, atol=5e-2)

    out_nchw = jnp.transpose(out_nhwc, (0, 3, 1, 2))  # back to PyTorch layout
    assert out_nchw.shape == (B, Cout, H, W)
    print("KERNEL_OK")
</pallas_src>

<mosaic_0001>
module attributes {stable_mosaic.version = 11 : i64} {
  func.func @_fuse_final_kernel(%arg0: i32, %arg1: memref<5x256x128xbf16, #tpu.memory_space<vmem>>, %arg2: memref<10x128xf32, #tpu.memory_space<vmem>>, %arg3: memref<640x128xbf16, #tpu.memory_space<vmem>>, %arg4: memref<256x128xf32, #tpu.memory_space<vmem>>, %arg5: memref<1x2x128xf32, #tpu.memory_space<vmem>>) attributes {dimension_semantics = [#tpu.dimension_semantics<parallel>], iteration_bounds = array<i64: 2>, scalar_prefetch = 0 : i64, scratch_operands = 0 : i64, tpu.core_type = #tpu.core_type<tc>, window_params = [{transform_indices = @transform_0, window_bounds = array<i64: 5, 256, 128>}, {pipeline_mode = #tpu.pipeline_mode<synchronous>, transform_indices = @transform_1, window_bounds = array<i64: 10, 128>}, {pipeline_mode = #tpu.pipeline_mode<synchronous>, transform_indices = @transform_2, window_bounds = array<i64: 640, 128>}, {transform_indices = @transform_3, window_bounds = array<i64: 256, 128>}, {transform_indices = @transform_4, window_bounds = array<i64: 1, 2, 128>}]} {
    %cst = arith.constant 0.000000e+00 : f32
    %0 = vector.broadcast %cst : f32 to vector<256x128xf32>
    %c0 = arith.constant 0 : index
    %c0_0 = arith.constant 0 : index
    %c0_1 = arith.constant 0 : index
    %1 = vector.load %arg1[%c0, %c0_0, %c0_1] : memref<5x256x128xbf16, #tpu.memory_space<vmem>>, vector<1x256x128xbf16>
    %2 = vector.shape_cast %1 : vector<1x256x128xbf16> to vector<256x128xbf16>
    %3 = arith.extf %2 : vector<256x128xbf16> to vector<256x128xf32>
    %c0_2 = arith.constant 0 : index
    %c0_3 = arith.constant 0 : index
    %4 = vector.load %arg2[%c0_2, %c0_3] : memref<10x128xf32, #tpu.memory_space<vmem>>, vector<1x128xf32>
    %5 = vector.broadcast %4 : vector<1x128xf32> to vector<256x128xf32>
    %6 = arith.mulf %3, %5 : vector<256x128xf32>
    %c5 = arith.constant 5 : index
    %c0_4 = arith.constant 0 : index
    %7 = vector.load %arg2[%c5, %c0_4] : memref<10x128xf32, #tpu.memory_space<vmem>>, vector<1x128xf32>
    %8 = vector.broadcast %7 : vector<1x128xf32> to vector<256x128xf32>
    %9 = arith.addf %6, %8 : vector<256x128xf32>
    %cst_5 = arith.constant 0.000000e+00 : f32
    %10 = vector.broadcast %cst_5 : f32 to vector<256x128xf32>
    %11 = arith.maximumf %9, %10 : vector<256x128xf32>
    %12 = arith.truncf %11 : vector<256x128xf32> to vector<256x128xbf16>
    %c0_6 = arith.constant 0 : index
    %c0_7 = arith.constant 0 : index
    %13 = vector.load %arg3[%c0_6, %c0_7] : memref<640x128xbf16, #tpu.memory_space<vmem>>, vector<128x128xbf16>
    %cst_8 = arith.constant dense<0.000000e+00> : vector<256x128xf32>
    %14 = tpu.matmul %12, %13, %cst_8 {dimension_numbers = #tpu.dot_dimension_numbers<[1], [0], [0], [1], [0, 0, 1, 1], [], []>} : vector<256x128xbf16>, vector<128x128xbf16>, vector<256x128xf32> -> vector<256x128xf32>
    %15 = arith.addf %0, %14 : vector<256x128xf32>
    %c1 = arith.constant 1 : index
    %c0_9 = arith.constant 0 : index
    %c0_10 = arith.constant 0 : index
    %16 = vector.load %arg1[%c1, %c0_9, %c0_10] : memref<5x256x128xbf16, #tpu.memory_space<vmem>>, vector<1x256x128xbf16>
    %17 = vector.shape_cast %16 : vector<1x256x128xbf16> to vector<256x128xbf16>
    %18 = arith.extf %17 : vector<256x128xbf16> to vector<256x128xf32>
    %c1_11 = arith.constant 1 : index
    %c0_12 = arith.constant 0 : index
    %19 = vector.load %arg2[%c1_11, %c0_12] : memref<10x128xf32, #tpu.memory_space<vmem>>, vector<1x128xf32>
    %20 = vector.broadcast %19 : vector<1x128xf32> to vector<256x128xf32>
    %21 = arith.mulf %18, %20 : vector<256x128xf32>
    %c6 = arith.constant 6 : index
    %c0_13 = arith.constant 0 : index
    %22 = vector.load %arg2[%c6, %c0_13] : memref<10x128xf32, #tpu.memory_space<vmem>>, vector<1x128xf32>
    %23 = vector.broadcast %22 : vector<1x128xf32> to vector<256x128xf32>
    %24 = arith.addf %21, %23 : vector<256x128xf32>
    %cst_14 = arith.constant 0.000000e+00 : f32
    %25 = vector.broadcast %cst_14 : f32 to vector<256x128xf32>
    %26 = arith.maximumf %24, %25 : vector<256x128xf32>
    %27 = arith.truncf %26 : vector<256x128xf32> to vector<256x128xbf16>
    %c128 = arith.constant 128 : index
    %c0_15 = arith.constant 0 : index
    %28 = vector.load %arg3[%c128, %c0_15] : memref<640x128xbf16, #tpu.memory_space<vmem>>, vector<128x128xbf16>
    %cst_16 = arith.constant dense<0.000000e+00> : vector<256x128xf32>
    %29 = tpu.matmul %27, %28, %cst_16 {dimension_numbers = #tpu.dot_dimension_numbers<[1], [0], [0], [1], [0, 0, 1, 1], [], []>} : vector<256x128xbf16>, vector<128x128xbf16>, vector<256x128xf32> -> vector<256x128xf32>
    %30 = arith.addf %15, %29 : vector<256x128xf32>
    %c2 = arith.constant 2 : index
    %c0_17 = arith.constant 0 : index
    %c0_18 = arith.constant 0 : index
    %31 = vector.load %arg1[%c2, %c0_17, %c0_18] : memref<5x256x128xbf16, #tpu.memory_space<vmem>>, vector<1x256x128xbf16>
    %32 = vector.shape_cast %31 : vector<1x256x128xbf16> to vector<256x128xbf16>
    %33 = arith.extf %32 : vector<256x128xbf16> to vector<256x128xf32>
    %c2_19 = arith.constant 2 : index
    %c0_20 = arith.constant 0 : index
    %34 = vector.load %arg2[%c2_19, %c0_20] : memref<10x128xf32, #tpu.memory_space<vmem>>, vector<1x128xf32>
    %35 = vector.broadcast %34 : vector<1x128xf32> to vector<256x128xf32>
    %36 = arith.mulf %33, %35 : vector<256x128xf32>
    %c7 = arith.constant 7 : index
    %c0_21 = arith.constant 0 : index
    %37 = vector.load %arg2[%c7, %c0_21] : memref<10x128xf32, #tpu.memory_space<vmem>>, vector<1x128xf32>
    %38 = vector.broadcast %37 : vector<1x128xf32> to vector<256x128xf32>
    %39 = arith.addf %36, %38 : vector<256x128xf32>
    %cst_22 = arith.constant 0.000000e+00 : f32
    %40 = vector.broadcast %cst_22 : f32 to vector<256x128xf32>
    %41 = arith.maximumf %39, %40 : vector<256x128xf32>
    %42 = arith.truncf %41 : vector<256x128xf32> to vector<256x128xbf16>
    %c256 = arith.constant 256 : index
    %c0_23 = arith.constant 0 : index
    %43 = vector.load %arg3[%c256, %c0_23] : memref<640x128xbf16, #tpu.memory_space<vmem>>, vector<128x128xbf16>
    %cst_24 = arith.constant dense<0.000000e+00> : vector<256x128xf32>
    %44 = tpu.matmul %42, %43, %cst_24 {dimension_numbers = #tpu.dot_dimension_numbers<[1], [0], [0], [1], [0, 0, 1, 1], [], []>} : vector<256x128xbf16>, vector<128x128xbf16>, vector<256x128xf32> -> vector<256x128xf32>
    %45 = arith.addf %30, %44 : vector<256x128xf32>
    %c3 = arith.constant 3 : index
    %c0_25 = arith.constant 0 : index
    %c0_26 = arith.constant 0 : index
    %46 = vector.load %arg1[%c3, %c0_25, %c0_26] : memref<5x256x128xbf16, #tpu.memory_space<vmem>>, vector<1x256x128xbf16>
    %47 = vector.shape_cast %46 : vector<1x256x128xbf16> to vector<256x128xbf16>
    %48 = arith.extf %47 : vector<256x128xbf16> to vector<256x128xf32>
    %c3_27 = arith.constant 3 : index
    %c0_28 = arith.constant 0 : index
    %49 = vector.load %arg2[%c3_27, %c0_28] : memref<10x128xf32, #tpu.memory_space<vmem>>, vector<1x128xf32>
    %50 = vector.broadcast %49 : vector<1x128xf32> to vector<256x128xf32>
    %51 = arith.mulf %48, %50 : vector<256x128xf32>
    %c8 = arith.constant 8 : index
    %c0_29 = arith.constant 0 : index
    %52 = vector.load %arg2[%c8, %c0_29] : memref<10x128xf32, #tpu.memory_space<vmem>>, vector<1x128xf32>
    %53 = vector.broadcast %52 : vector<1x128xf32> to vector<256x128xf32>
    %54 = arith.addf %51, %53 : vector<256x128xf32>
    %cst_30 = arith.constant 0.000000e+00 : f32
    %55 = vector.broadcast %cst_30 : f32 to vector<256x128xf32>
    %56 = arith.maximumf %54, %55 : vector<256x128xf32>
    %57 = arith.truncf %56 : vector<256x128xf32> to vector<256x128xbf16>
    %c384 = arith.constant 384 : index
    %c0_31 = arith.constant 0 : index
    %58 = vector.load %arg3[%c384, %c0_31] : memref<640x128xbf16, #tpu.memory_space<vmem>>, vector<128x128xbf16>
    %cst_32 = arith.constant dense<0.000000e+00> : vector<256x128xf32>
    %59 = tpu.matmul %57, %58, %cst_32 {dimension_numbers = #tpu.dot_dimension_numbers<[1], [0], [0], [1], [0, 0, 1, 1], [], []>} : vector<256x128xbf16>, vector<128x128xbf16>, vector<256x128xf32> -> vector<256x128xf32>
    %60 = arith.addf %45, %59 : vector<256x128xf32>
    %c4 = arith.constant 4 : index
    %c0_33 = arith.constant 0 : index
    %c0_34 = arith.constant 0 : index
    %61 = vector.load %arg1[%c4, %c0_33, %c0_34] : memref<5x256x128xbf16, #tpu.memory_space<vmem>>, vector<1x256x128xbf16>
    %62 = vector.shape_cast %61 : vector<1x256x128xbf16> to vector<256x128xbf16>
    %63 = arith.extf %62 : vector<256x128xbf16> to vector<256x128xf32>
    %c4_35 = arith.constant 4 : index
    %c0_36 = arith.constant 0 : index
    %64 = vector.load %arg2[%c4_35, %c0_36] : memref<10x128xf32, #tpu.memory_space<vmem>>, vector<1x128xf32>
    %65 = vector.broadcast %64 : vector<1x128xf32> to vector<256x128xf32>
    %66 = arith.mulf %63, %65 : vector<256x128xf32>
    %c9 = arith.constant 9 : index
    %c0_37 = arith.constant 0 : index
    %67 = vector.load %arg2[%c9, %c0_37] : memref<10x128xf32, #tpu.memory_space<vmem>>, vector<1x128xf32>
    %68 = vector.broadcast %67 : vector<1x128xf32> to vector<256x128xf32>
    %69 = arith.addf %66, %68 : vector<256x128xf32>
    %cst_38 = arith.constant 0.000000e+00 : f32
    %70 = vector.broadcast %cst_38 : f32 to vector<256x128xf32>
    %71 = arith.maximumf %69, %70 : vector<256x128xf32>
    %72 = arith.truncf %71 : vector<256x128xf32> to vector<256x128xbf16>
    %c512 = arith.constant 512 : index
    %c0_39 = arith.constant 0 : index
    %73 = vector.load %arg3[%c512, %c0_39] : memref<640x128xbf16, #tpu.memory_space<vmem>>, vector<128x128xbf16>
    %cst_40 = arith.constant dense<0.000000e+00> : vector<256x128xf32>
    %74 = tpu.matmul %72, %73, %cst_40 {dimension_numbers = #tpu.dot_dimension_numbers<[1], [0], [0], [1], [0, 0, 1, 1], [], []>} : vector<256x128xbf16>, vector<128x128xbf16>, vector<256x128xf32> -> vector<256x128xf32>
    %75 = arith.addf %60, %74 : vector<256x128xf32>
    %c0_41 = arith.constant 0 : index
    %c0_42 = arith.constant 0 : index
    %76 = vector.load %arg4[%c0_41, %c0_42] : memref<256x128xf32, #tpu.memory_space<vmem>>, vector<256x128xf32>
    tpu.vector_store %arg4[%c0_41, %c0_42], %75 {strides = array<i32>} : memref<256x128xf32, #tpu.memory_space<vmem>>, vector<256x128xf32>,
    %cst_43 = arith.constant dense<0.000000e+00> : vector<128xf32>
    %77 = vector.multi_reduction <add>, %75, %cst_43 [0] : vector<256x128xf32> to vector<128xf32>
    %78 = vector.shape_cast %77 : vector<128xf32> to vector<1x128xf32>
    %cst_44 = arith.constant 3.906250e-03 : f32
    %79 = vector.broadcast %cst_44 : f32 to vector<1x128xf32>
    %80 = arith.mulf %78, %79 : vector<1x128xf32>
    %81 = vector.broadcast %80 : vector<1x128xf32> to vector<256x128xf32>
    %82 = arith.subf %75, %81 : vector<256x128xf32>
    %83 = arith.mulf %82, %82 : vector<256x128xf32>
    %cst_45 = arith.constant dense<0.000000e+00> : vector<128xf32>
    %84 = vector.multi_reduction <add>, %83, %cst_45 [0] : vector<256x128xf32> to vector<128xf32>
    %85 = vector.shape_cast %84 : vector<128xf32> to vector<1x128xf32>
    %86 = tpu.concatenate %78, %85 in 0 : vector<1x128xf32>, vector<1x128xf32> -> vector<2x128xf32>
    %c0_46 = arith.constant 0 : index
    %c0_47 = arith.constant 0 : index
    %c0_48 = arith.constant 0 : index
    %87 = vector.load %arg5[%c0_46, %c0_47, %c0_48] : memref<1x2x128xf32, #tpu.memory_space<vmem>>, vector<1x2x128xf32>
    %88 = vector.shape_cast %87 : vector<1x2x128xf32> to vector<2x128xf32>
    %89 = vector.shape_cast %86 : vector<2x128xf32> to vector<1x2x128xf32>
    tpu.vector_store %arg5[%c0_46, %c0_47, %c0_48], %89 {strides = array<i32>} : memref<1x2x128xf32, #tpu.memory_space<vmem>>, vector<1x2x128xf32>,
    return
  }
  func.func @transform_0(%arg0: i32) -> (i32, i32, i32) {
    %c0_i32 = arith.constant 0 : i32
    %c0_i32_0 = arith.constant 0 : i32
    %c0_i32_1 = arith.constant 0 : i32
    return %c0_i32, %arg0, %c0_i32_0 : i32, i32, i32
  }
  func.func @transform_1(%arg0: i32) -> (i32, i32) {
    %c0_i32 = arith.constant 0 : i32
    %c0_i32_0 = arith.constant 0 : i32
    %c0_i32_1 = arith.constant 0 : i32
    return %c0_i32, %c0_i32_0 : i32, i32
  }
  func.func @transform_2(%arg0: i32) -> (i32, i32) {
    %c0_i32 = arith.constant 0 : i32
    %c0_i32_0 = arith.constant 0 : i32
    %c0_i32_1 = arith.constant 0 : i32
    return %c0_i32, %c0_i32_0 : i32, i32
  }
  func.func @transform_3(%arg0: i32) -> (i32, i32) {
    %c0_i32 = arith.constant 0 : i32
    %c0_i32_0 = arith.constant 0 : i32
    return %arg0, %c0_i32 : i32, i32
  }
  func.func @transform_4(%arg0: i32) -> (i32, i32, i32) {
    %c0_i32 = arith.constant 0 : i32
    %c0_i32_0 = arith.constant 0 : i32
    %c0_i32_1 = arith.constant 0 : i32
    return %arg0, %c0_i32, %c0_i32_0 : i32, i32, i32
  }
}

module attributes {stable_mosaic.version = 11 : i64} {
  func.func @_bn_relu_kernel(%arg0: i32, %arg1: memref<256x128xf32, #tpu.memory_space<vmem>>, %arg2: memref<2x128xf32, #tpu.memory_space<vmem>>, %arg3: memref<256x128xf32, #tpu.memory_space<vmem>>) attributes {dimension_semantics = [#tpu.dimension_semantics<parallel>], iteration_bounds = array<i64: 2>, scalar_prefetch = 0 : i64, scratch_operands = 0 : i64, tpu.core_type = #tpu.core_type<tc>, window_params = [{transform_indices = @transform_0, window_bounds = array<i64: 256, 128>}, {pipeline_mode = #tpu.pipeline_mode<synchronous>, transform_indices = @transform_1, window_bounds = array<i64: 2, 128>}, {transform_indices = @transform_2, window_bounds = array<i64: 256, 128>}]} {
    %c0 = arith.constant 0 : index
    %c0_0 = arith.constant 0 : index
    %0 = vector.load %arg1[%c0, %c0_0] : memref<256x128xf32, #tpu.memory_space<vmem>>, vector<256x128xf32>
    %c0_1 = arith.constant 0 : index
    %c0_2 = arith.constant 0 : index
    %1 = vector.load %arg2[%c0_1, %c0_2] : memref<2x128xf32, #tpu.memory_space<vmem>>, vector<1x128xf32>
    %2 = vector.broadcast %1 : vector<1x128xf32> to vector<256x128xf32>
    %3 = arith.mulf %0, %2 : vector<256x128xf32>
    %c1 = arith.constant 1 : index
    %c0_3 = arith.constant 0 : index
    %4 = vector.load %arg2[%c1, %c0_3] : memref<2x128xf32, #tpu.memory_space<vmem>>, vector<1x128xf32>
    %5 = vector.broadcast %4 : vector<1x128xf32> to vector<256x128xf32>
    %6 = arith.addf %3, %5 : vector<256x128xf32>
    %cst = arith.constant 0.000000e+00 : f32
    %7 = vector.broadcast %cst : f32 to vector<256x128xf32>
    %8 = arith.maximumf %6, %7 : vector<256x128xf32>
    %c0_4 = arith.constant 0 : index
    %c0_5 = arith.constant 0 : index
    %9 = vector.load %arg3[%c0_4, %c0_5] : memref<256x128xf32, #tpu.memory_space<vmem>>, vector<256x128xf32>
    tpu.vector_store %arg3[%c0_4, %c0_5], %8 {strides = array<i32>} : memref<256x128xf32, #tpu.memory_space<vmem>>, vector<256x128xf32>,
    return
  }
  func.func @transform_0(%arg0: i32) -> (i32, i32) {
    %c0_i32 = arith.constant 0 : i32
    %c0_i32_0 = arith.constant 0 : i32
    return %arg0, %c0_i32 : i32, i32
  }
  func.func @transform_1(%arg0: i32) -> (i32, i32) {
    %c0_i32 = arith.constant 0 : i32
    %c0_i32_0 = arith.constant 0 : i32
    %c0_i32_1 = arith.constant 0 : i32
    return %c0_i32, %c0_i32_0 : i32, i32
  }
  func.func @transform_2(%arg0: i32) -> (i32, i32) {
    %c0_i32 = arith.constant 0 : i32
    %c0_i32_0 = arith.constant 0 : i32
    return %arg0, %c0_i32 : i32, i32
  }
}

module attributes {stable_mosaic.version = 11 : i64} {
  func.func @_branch_conv_kernel(%arg0: i32, %arg1: i32, %arg2: memref<1x52x16x128xbf16, #tpu.memory_space<vmem>>, %arg3: memref<128x128xbf16, #tpu.memory_space<vmem>>, %arg4: memref<1536x384xbf16, #tpu.memory_space<vmem>>, %arg5: memref<5x128x128xbf16, #tpu.memory_space<vmem>>, %arg6: memref<1x1x10x128xf32, #tpu.memory_space<vmem>>) attributes {dimension_semantics = [#tpu.dimension_semantics<parallel>, #tpu.dimension_semantics<parallel>], iteration_bounds = array<i64: 2, 2>, scalar_prefetch = 0 : i64, scratch_operands = 0 : i64, tpu.core_type = #tpu.core_type<tc>, window_params = [{pipeline_mode = #tpu.pipeline_mode<synchronous>, transform_indices = @transform_0, window_bounds = array<i64: 1, 52, 16, 128>}, {pipeline_mode = #tpu.pipeline_mode<synchronous>, transform_indices = @transform_1, window_bounds = array<i64: 128, 128>}, {pipeline_mode = #tpu.pipeline_mode<synchronous>, transform_indices = @transform_2, window_bounds = array<i64: 1536, 384>}, {transform_indices = @transform_3, window_bounds = array<i64: 5, 128, 128>}, {transform_indices = @transform_4, window_bounds = array<i64: 1, 1, 10, 128>}]} {
    %c8_i32 = arith.constant 8 : i32
    %0 = arith.muli %arg1, %c8_i32 : i32
    %c18_i32 = arith.constant 18 : i32
    %1 = arith.addi %0, %c18_i32 : i32
    %c0 = arith.constant 0 : index
    %2 = arith.index_cast %1 : i32 to index
    %c0_0 = arith.constant 0 : index
    %c0_1 = arith.constant 0 : index
    %3 = vector.load %arg2[%c0, %2, %c0_0, %c0_1] : memref<1x52x16x128xbf16, #tpu.memory_space<vmem>>, vector<1x8x16x128xbf16>
    %4 = vector.shape_cast %3 : vector<1x8x16x128xbf16> to vector<8x16x128xbf16>
    %5 = vector.shape_cast %4 : vector<8x16x128xbf16> to vector<128x128xbf16>
    %c0_2 = arith.constant 0 : index
    %c0_3 = arith.constant 0 : index
    %6 = vector.load %arg3[%c0_2, %c0_3] : memref<128x128xbf16, #tpu.memory_space<vmem>>, vector<128x128xbf16>
    %cst = arith.constant dense<0.000000e+00> : vector<128x128xf32>
    %7 = tpu.matmul %5, %6, %cst {dimension_numbers = #tpu.dot_dimension_numbers<[1], [0], [0], [1], [0, 0, 1, 1], [], []>} : vector<128x128xbf16>, vector<128x128xbf16>, vector<128x128xf32> -> vector<128x128xf32>
    %8 = arith.truncf %7 : vector<128x128xf32> to vector<128x128xbf16>
    %c0_4 = arith.constant 0 : index
    %c0_5 = arith.constant 0 : index
    %c0_6 = arith.constant 0 : index
    %9 = vector.load %arg5[%c0_4, %c0_5, %c0_6] : memref<5x128x128xbf16, #tpu.memory_space<vmem>>, vector<1x128x128xbf16>
    %10 = vector.shape_cast %9 : vector<1x128x128xbf16> to vector<128x128xbf16>
    %11 = vector.shape_cast %8 : vector<128x128xbf16> to vector<1x128x128xbf16>
    tpu.vector_store %arg5[%c0_4, %c0_5, %c0_6], %11 {strides = array<i32>} : memref<5x128x128xbf16, #tpu.memory_space<vmem>>, vector<1x128x128xbf16>,
    %cst_7 = arith.constant dense<0.000000e+00> : vector<128xf32>
    %12 = vector.multi_reduction <add>, %7, %cst_7 [0] : vector<128x128xf32> to vector<128xf32>
    %13 = vector.shape_cast %12 : vector<128xf32> to vector<1x128xf32>
    %cst_8 = arith.constant 7.812500e-03 : f32
    %14 = vector.broadcast %cst_8 : f32 to vector<1x128xf32>
    %15 = arith.mulf %13, %14 : vector<1x128xf32>
    %16 = vector.broadcast %15 : vector<1x128xf32> to vector<128x128xf32>
    %17 = arith.subf %7, %16 : vector<128x128xf32>
    %18 = arith.mulf %17, %17 : vector<128x128xf32>
    %cst_9 = arith.constant dense<0.000000e+00> : vector<128xf32>
    %19 = vector.multi_reduction <add>, %18, %cst_9 [0] : vector<128x128xf32> to vector<128xf32>
    %20 = vector.shape_cast %19 : vector<128xf32> to vector<1x128xf32>
    %cst_10 = arith.constant 0.000000e+00 : f32
    %21 = vector.broadcast %cst_10 : f32 to vector<8x16x128xf32>
    %c8_i32_11 = arith.constant 8 : i32
    %22 = arith.muli %arg1, %c8_i32_11 : i32
    %c17_i32 = arith.constant 17 : i32
    %23 = arith.addi %22, %c17_i32 : i32
    %c0_12 = arith.constant 0 : index
    %24 = arith.index_cast %23 : i32 to index
    %c0_13 = arith.constant 0 : index
    %c0_14 = arith.constant 0 : index
    %25 = vector.load %arg2[%c0_12, %24, %c0_13, %c0_14] : memref<1x52x16x128xbf16, #tpu.memory_space<vmem>>, vector<1x8x16x128xbf16>
    %26 = vector.shape_cast %25 : vector<1x8x16x128xbf16> to vector<8x16x128xbf16>
    %27 = vector.shape_cast %26 : vector<8x16x128xbf16> to vector<128x128xbf16>
    %c0_15 = arith.constant 0 : index
    %c0_16 = arith.constant 0 : index
    %28 = vector.load %arg4[%c0_15, %c0_16] : memref<1536x384xbf16, #tpu.memory_space<vmem>>, vector<128x384xbf16>
    %cst_17 = arith.constant dense<0.000000e+00> : vector<128x384xf32>
    %29 = tpu.matmul %27, %28, %cst_17 {dimension_numbers = #tpu.dot_dimension_numbers<[1], [0], [0], [1], [0, 0, 1, 1], [], []>} : vector<128x128xbf16>, vector<128x384xbf16>, vector<128x384xf32> -> vector<128x384xf32>
    %30 = vector.shape_cast %29 : vector<128x384xf32> to vector<8x16x384xf32>
    %31 = vector.extract_strided_slice %30 {offsets = [0, 0, 0], sizes = [8, 16, 128], strides = [1, 1, 1]} : vector<8x16x384xf32> to vector<8x16x128xf32>
    %cst_18 = arith.constant 0.000000e+00 : f32
    %32 = vector.broadcast %cst_18 : f32 to vector<8x1x128xf32>
    %33 = vector.extract_strided_slice %31 {offsets = [0, 0, 0], sizes = [8, 15, 128], strides = [1, 1, 1]} : vector<8x16x128xf32> to vector<8x15x128xf32>
    %34 = tpu.concatenate %32, %33 in 1 : vector<8x1x128xf32>, vector<8x15x128xf32> -> vector<8x16x128xf32>
    %35 = arith.addf %21, %34 : vector<8x16x128xf32>
    %36 = vector.extract_strided_slice %30 {offsets = [0, 0, 128], sizes = [8, 16, 128], strides = [1, 1, 1]} : vector<8x16x384xf32> to vector<8x16x128xf32>
    %37 = arith.addf %35, %36 : vector<8x16x128xf32>
    %38 = vector.extract_strided_slice %30 {offsets = [0, 0, 256], sizes = [8, 16, 128], strides = [1, 1, 1]} : vector<8x16x384xf32> to vector<8x16x128xf32>
    %39 = vector.extract_strided_slice %38 {offsets = [0, 1, 0], sizes = [8, 15, 128], strides = [1, 1, 1]} : vector<8x16x128xf32> to vector<8x15x128xf32>
    %cst_19 = arith.constant 0.000000e+00 : f32
    %40 = vector.broadcast %cst_19 : f32 to vector<8x1x128xf32>
    %41 = tpu.concatenate %39, %40 in 1 : vector<8x15x128xf32>, vector<8x1x128xf32> -> vector<8x16x128xf32>
    %42 = arith.addf %37, %41 : vector<8x16x128xf32>
    %c128 = arith.constant 128 : index
    %c0_20 = arith.constant 0 : index
    %43 = vector.load %arg4[%c128, %c0_20] : memref<1536x384xbf16, #tpu.memory_space<vmem>>, vector<128x384xbf16>
    %cst_21 = arith.constant dense<0.000000e+00> : vector<128x384xf32>
    %44 = tpu.matmul %5, %43, %cst_21 {dimension_numbers = #tpu.dot_dimension_numbers<[1], [0], [0], [1], [0, 0, 1, 1], [], []>} : vector<128x128xbf16>, vector<128x384xbf16>, vector<128x384xf32> -> vector<128x384xf32>
    %45 = vector.shape_cast %44 : vector<128x384xf32> to vector<8x16x384xf32>
    %46 = vector.extract_strided_slice %45 {offsets = [0, 0, 0], sizes = [8, 16, 128], strides = [1, 1, 1]} : vector<8x16x384xf32> to vector<8x16x128xf32>
    %cst_22 = arith.constant 0.000000e+00 : f32
    %47 = vector.broadcast %cst_22 : f32 to vector<8x1x128xf32>
    %48 = vector.extract_strided_slice %46 {offsets = [0, 0, 0], sizes = [8, 15, 128], strides = [1, 1, 1]} : vector<8x16x128xf32> to vector<8x15x128xf32>
    %49 = tpu.concatenate %47, %48 in 1 : vector<8x1x128xf32>, vector<8x15x128xf32> -> vector<8x16x128xf32>
    %50 = arith.addf %42, %49 : vector<8x16x128xf32>
    %51 = vector.extract_strided_slice %45 {offsets = [0, 0, 128], sizes = [8, 16, 128], strides = [1, 1, 1]} : vector<8x16x384xf32> to vector<8x16x128xf32>
    %52 = arith.addf %50, %51 : vector<8x16x128xf32>
    %53 = vector.extract_strided_slice %45 {offsets = [0, 0, 256], sizes = [8, 16, 128], strides = [1, 1, 1]} : vector<8x16x384xf32> to vector<8x16x128xf32>
    %54 = vector.extract_strided_slice %53 {offsets = [0, 1, 0], sizes = [8, 15, 128], strides = [1, 1, 1]} : vector<8x16x128xf32> to vector<8x15x128xf32>
    %cst_23 = arith.constant 0.000000e+00 : f32
    %55 = vector.broadcast %cst_23 : f32 to vector<8x1x128xf32>
    %56 = tpu.concatenate %54, %55 in 1 : vector<8x15x128xf32>, vector<8x1x128xf32> -> vector<8x16x128xf32>
    %57 = arith.addf %52, %56 : vector<8x16x128xf32>
    %c8_i32_24 = arith.constant 8 : i32
    %58 = arith.muli %arg1, %c8_i32_24 : i32
    %c19_i32 = arith.constant 19 : i32
    %59 = arith.addi %58, %c19_i32 : i32
    %c0_25 = arith.constant 0 : index
    %60 = arith.index_cast %59 : i32 to index
    %c0_26 = arith.constant 0 : index
    %c0_27 = arith.constant 0 : index
    %61 = vector.load %arg2[%c0_25, %60, %c0_26, %c0_27] : memref<1x52x16x128xbf16, #tpu.memory_space<vmem>>, vector<1x8x16x128xbf16>
    %62 = vector.shape_cast %61 : vector<1x8x16x128xbf16> to vector<8x16x128xbf16>
    %63 = vector.shape_cast %62 : vector<8x16x128xbf16> to vector<128x128xbf16>
    %c256 = arith.constant 256 : index
    %c0_28 = arith.constant 0 : index
    %64 = vector.load %arg4[%c256, %c0_28] : memref<1536x384xbf16, #tpu.memory_space<vmem>>, vector<128x384xbf16>
    %cst_29 = arith.constant dense<0.000000e+00> : vector<128x384xf32>
    %65 = tpu.matmul %63, %64, %cst_29 {dimension_numbers = #tpu.dot_dimension_numbers<[1], [0], [0], [1], [0, 0, 1, 1], [], []>} : vector<128x128xbf16>, vector<128x384xbf16>, vector<128x384xf32> -> vector<128x384xf32>
    %66 = vector.shape_cast %65 : vector<128x384xf32> to vector<8x16x384xf32>
    %67 = vector.extract_strided_slice %66 {offsets = [0, 0, 0], sizes = [8, 16, 128], strides = [1, 1, 1]} : vector<8x16x384xf32> to vector<8x16x128xf32>
    %cst_30 = arith.constant 0.000000e+00 : f32
    %68 = vector.broadcast %cst_30 : f32 to vector<8x1x128xf32>
    %69 = vector.extract_strided_slice %67 {offsets = [0, 0, 0], sizes = [8, 15, 128], strides = [1, 1, 1]} : vector<8x16x128xf32> to vector<8x15x128xf32>
    %70 = tpu.concatenate %68, %69 in 1 : vector<8x1x128xf32>, vector<8x15x128xf32> -> vector<8x16x128xf32>
    %71 = arith.addf %57, %70 : vector<8x16x128xf32>
    %72 = vector.extract_strided_slice %66 {offsets = [0, 0, 128], sizes = [8, 16, 128], strides = [1, 1, 1]} : vector<8x16x384xf32> to vector<8x16x128xf32>
    %73 = arith.addf %71, %72 : vector<8x16x128xf32>
    %74 = vector.extract_strided_slice %66 {offsets = [0, 0, 256], sizes = [8, 16, 128], strides = [1, 1, 1]} : vector<8x16x384xf32> to vector<8x16x128xf32>
    %75 = vector.extract_strided_slice %74 {offsets = [0, 1, 0], sizes = [8, 15, 128], strides = [1, 1, 1]} : vector<8x16x128xf32> to vector<8x15x128xf32>
    %cst_31 = arith.constant 0.000000e+00 : f32
    %76 = vector.broadcast %cst_31 : f32 to vector<8x1x128xf32>
    %77 = tpu.concatenate %75, %76 in 1 : vector<8x15x128xf32>, vector<8x1x128xf32> -> vector<8x16x128xf32>
    %78 = arith.addf %73, %77 : vector<8x16x128xf32>
    %79 = vector.shape_cast %78 : vector<8x16x128xf32> to vector<128x128xf32>
    %80 = arith.truncf %79 : vector<128x128xf32> to vector<128x128xbf16>
    %c1 = arith.constant 1 : index
    %c0_32 = arith.constant 0 : index
    %c0_33 = arith.constant 0 : index
    %81 = vector.load %arg5[%c1, %c0_32, %c0_33] : memref<5x128x128xbf16, #tpu.memory_space<vmem>>, vector<1x128x128xbf16>
    %82 = vector.shape_cast %81 : vector<1x128x128xbf16> to vector<128x128xbf16>
    %83 = vector.shape_cast %80 : vector<128x128xbf16> to vector<1x128x128xbf16>
    tpu.vector_store %arg5[%c1, %c0_32, %c0_33], %83 {strides = array<i32>} : memref<5x128x128xbf16, #tpu.memory_space<vmem>>, vector<1x128x128xbf16>,
    %cst_34 = arith.constant dense<0.000000e+00> : vector<128xf32>
    %84 = vector.multi_reduction <add>, %79, %cst_34 [0] : vector<128x128xf32> to vector<128xf32>
    %85 = vector.shape_cast %84 : vector<128xf32> to vector<1x128xf32>
    %cst_35 = arith.constant 7.812500e-03 : f32
    %86 = vector.broadcast %cst_35 : f32 to vector<1x128xf32>
    %87 = arith.mulf %85, %86 : vector<1x128xf32>
    %88 = vector.broadcast %87 : vector<1x128xf32> to vector<128x128xf32>
    %89 = arith.subf %79, %88 : vector<128x128xf32>
    %90 = arith.mulf %89, %89 : vector<128x128xf32>
    %cst_36 = arith.constant dense<0.000000e+00> : vector<128xf32>
    %91 = vector.multi_reduction <add>, %90, %cst_36 [0] : vector<128x128xf32> to vector<128xf32>
    %92 = vector.shape_cast %91 : vector<128xf32> to vector<1x128xf32>
    %cst_37 = arith.constant 0.000000e+00 : f32
    %93 = vector.broadcast %cst_37 : f32 to vector<8x16x128xf32>
    %c8_i32_38 = arith.constant 8 : i32
    %94 = arith.muli %arg1, %c8_i32_38 : i32
    %c12_i32 = arith.constant 12 : i32
    %95 = arith.addi %94, %c12_i32 : i32
    %c0_39 = arith.constant 0 : index
    %96 = arith.index_cast %95 : i32 to index
    %c0_40 = arith.constant 0 : index
    %c0_41 = arith.constant 0 : index
    %97 = vector.load %arg2[%c0_39, %96, %c0_40, %c0_41] : memref<1x52x16x128xbf16, #tpu.memory_space<vmem>>, vector<1x8x16x128xbf16>
    %98 = vector.shape_cast %97 : vector<1x8x16x128xbf16> to vector<8x16x128xbf16>
    %99 = vector.shape_cast %98 : vector<8x16x128xbf16> to vector<128x128xbf16>
    %c384 = arith.constant 384 : index
    %c0_42 = arith.constant 0 : index
    %100 = vector.load %arg4[%c384, %c0_42] : memref<1536x384xbf16, #tpu.memory_space<vmem>>, vector<128x384xbf16>
    %cst_43 = arith.constant dense<0.000000e+00> : vector<128x384xf32>
    %101 = tpu.matmul %99, %100, %cst_43 {dimension_numbers = #tpu.dot_dimension_numbers<[1], [0], [0], [1], [0, 0, 1, 1], [], []>} : vector<128x128xbf16>, vector<128x384xbf16>, vector<128x384xf32> -> vector<128x384xf32>
    %102 = vector.shape_cast %101 : vector<128x384xf32> to vector<8x16x384xf32>
    %103 = vector.extract_strided_slice %102 {offsets = [0, 0, 0], sizes = [8, 16, 128], strides = [1, 1, 1]} : vector<8x16x384xf32> to vector<8x16x128xf32>
    %cst_44 = arith.constant 0.000000e+00 : f32
    %104 = vector.broadcast %cst_44 : f32 to vector<8x6x128xf32>
    %105 = vector.extract_strided_slice %103 {offsets = [0, 0, 0], sizes = [8, 10, 128], strides = [1, 1, 1]} : vector<8x16x128xf32> to vector<8x10x128xf32>
    %106 = tpu.concatenate %104, %105 in 1 : vector<8x6x128xf32>, vector<8x10x128xf32> -> vector<8x16x128xf32>
    %107 = arith.addf %93, %106 : vector<8x16x128xf32>
    %108 = vector.extract_strided_slice %102 {offsets = [0, 0, 128], sizes = [8, 16, 128], strides = [1, 1, 1]} : vector<8x16x384xf32> to vector<8x16x128xf32>
    %109 = arith.addf %107, %108 : vector<8x16x128xf32>
    %110 = vector.extract_strided_slice %102 {offsets = [0, 0, 256], sizes = [8, 16, 128], strides = [1, 1, 1]} : vector<8x16x384xf32> to vector<8x16x128xf32>
    %111 = vector.extract_strided_slice %110 {offsets = [0, 6, 0], sizes = [8, 10, 128], strides = [1, 1, 1]} : vector<8x16x128xf32> to vector<8x10x128xf32>
    %cst_45 = arith.constant 0.000000e+00 : f32
    %112 = vector.broadcast %cst_45 : f32 to vector<8x6x128xf32>
    %113 = tpu.concatenate %111, %112 in 1 : vector<8x10x128xf32>, vector<8x6x128xf32> -> vector<8x16x128xf32>
    %114 = arith.addf %109, %113 : vector<8x16x128xf32>
    %c512 = arith.constant 512 : index
    %c0_46 = arith.constant 0 : index
    %115 = vector.load %arg4[%c512, %c0_46] : memref<1536x384xbf16, #tpu.memory_space<vmem>>, vector<128x384xbf16>
    %cst_47 = arith.constant dense<0.000000e+00> : vector<128x384xf32>
    %116 = tpu.matmul %5, %115, %cst_47 {dimension_numbers = #tpu.dot_dimension_numbers<[1], [0], [0], [1], [0, 0, 1, 1], [], []>} : vector<128x128xbf16>, vector<128x384xbf16>, vector<128x384xf32> -> vector<128x384xf32>
    %117 = vector.shape_cast %116 : vector<128x384xf32> to vector<8x16x384xf32>
    %118 = vector.extract_strided_slice %117 {offsets = [0, 0, 0], sizes = [8, 16, 128], strides = [1, 1, 1]} : vector<8x16x384xf32> to vector<8x16x128xf32>
    %cst_48 = arith.constant 0.000000e+00 : f32
    %119 = vector.broadcast %cst_48 : f32 to vector<8x6x128xf32>
    %120 = vector.extract_strided_slice %118 {offsets = [0, 0, 0], sizes = [8, 10, 128], strides = [1, 1, 1]} : vector<8x16x128xf32> to vector<8x10x128xf32>
    %121 = tpu.concatenate %119, %120 in 1 : vector<8x6x128xf32>, vector<8x10x128xf32> -> vector<8x16x128xf32>
    %122 = arith.addf %114, %121 : vector<8x16x128xf32>
    %123 = vector.extract_strided_slice %117 {offsets = [0, 0, 128], sizes = [8, 16, 128], strides = [1, 1, 1]} : vector<8x16x384xf32> to vector<8x16x128xf32>
    %124 = arith.addf %122, %123 : vector<8x16x128xf32>
    %125 = vector.extract_strided_slice %117 {offsets = [0, 0, 256], sizes = [8, 16, 128], strides = [1, 1, 1]} : vector<8x16x384xf32> to vector<8x16x128xf32>
    %126 = vector.extract_strided_slice %125 {offsets = [0, 6, 0], sizes = [8, 10, 128], strides = [1, 1, 1]} : vector<8x16x128xf32> to vector<8x10x128xf32>
    %cst_49 = arith.constant 0.000000e+00 : f32
    %127 = vector.broadcast %cst_49 : f32 to vector<8x6x128xf32>
    %128 = tpu.concatenate %126, %127 in 1 : vector<8x10x128xf32>, vector<8x6x128xf32> -> vector<8x16x128xf32>
    %129 = arith.addf %124, %128 : vector<8x16x128xf32>
    %c8_i32_50 = arith.constant 8 : i32
    %130 = arith.muli %arg1, %c8_i32_50 : i32
    %c24_i32 = arith.constant 24 : i32
    %131 = arith.addi %130, %c24_i32 : i32
    %c0_51 = arith.constant 0 : index
    %132 = arith.index_cast %131 : i32 to index
    %c0_52 = arith.constant 0 : index
    %c0_53 = arith.constant 0 : index
    %133 = vector.load %arg2[%c0_51, %132, %c0_52, %c0_53] : memref<1x52x16x128xbf16, #tpu.memory_space<vmem>>, vector<1x8x16x128xbf16>
    %134 = vector.shape_cast %133 : vector<1x8x16x128xbf16> to vector<8x16x128xbf16>
    %135 = vector.shape_cast %134 : vector<8x16x128xbf16> to vector<128x128xbf16>
    %c640 = arith.constant 640 : index
    %c0_54 = arith.constant 0 : index
    %136 = vector.load %arg4[%c640, %c0_54] : memref<1536x384xbf16, #tpu.memory_space<vmem>>, vector<128x384xbf16>
    %cst_55 = arith.constant dense<0.000000e+00> : vector<128x384xf32>
    %137 = tpu.matmul %135, %136, %cst_55 {dimension_numbers = #tpu.dot_dimension_numbers<[1], [0], [0], [1], [0, 0, 1, 1], [], []>} : vector<128x128xbf16>, vector<128x384xbf16>, vector<128x384xf32> -> vector<128x384xf32>
    %138 = vector.shape_cast %137 : vector<128x384xf32> to vector<8x16x384xf32>
    %139 = vector.extract_strided_slice %138 {offsets = [0, 0, 0], sizes = [8, 16, 128], strides = [1, 1, 1]} : vector<8x16x384xf32> to vector<8x16x128xf32>
    %cst_56 = arith.constant 0.000000e+00 : f32
    %140 = vector.broadcast %cst_56 : f32 to vector<8x6x128xf32>
    %141 = vector.extract_strided_slice %139 {offsets = [0, 0, 0], sizes = [8, 10, 128], strides = [1, 1, 1]} : vector<8x16x128xf32> to vector<8x10x128xf32>
    %142 = tpu.concatenate %140, %141 in 1 : vector<8x6x128xf32>, vector<8x10x128xf32> -> vector<8x16x128xf32>
    %143 = arith.addf %129, %142 : vector<8x16x128xf32>
    %144 = vector.extract_strided_slice %138 {offsets = [0, 0, 128], sizes = [8, 16, 128], strides = [1, 1, 1]} : vector<8x16x384xf32> to vector<8x16x128xf32>
    %145 = arith.addf %143, %144 : vector<8x16x128xf32>
    %146 = vector.extract_strided_slice %138 {offsets = [0, 0, 256], sizes = [8, 16, 128], strides = [1, 1, 1]} : vector<8x16x384xf32> to vector<8x16x128xf32>
    %147 = vector.extract_strided_slice %146 {offsets = [0, 6, 0], sizes = [8, 10, 128], strides = [1, 1, 1]} : vector<8x16x128xf32> to vector<8x10x128xf32>
    %cst_57 = arith.constant 0.000000e+00 : f32
    %148 = vector.broadcast %cst_57 : f32 to vector<8x6x128xf32>
    %149 = tpu.concatenate %147, %148 in 1 : vector<8x10x128xf32>, vector<8x6x128xf32> -> vector<8x16x128xf32>
    %150 = arith.addf %145, %149 : vector<8x16x128xf32>
    %151 = vector.shape_cast %150 : vector<8x16x128xf32> to vector<128x128xf32>
    %152 = arith.truncf %151 : vector<128x128xf32> to vector<128x128xbf16>
    %c2 = arith.constant 2 : index
    %c0_58 = arith.constant 0 : index
    %c0_59 = arith.constant 0 : index
    %153 = vector.load %arg5[%c2, %c0_58, %c0_59] : memref<5x128x128xbf16, #tpu.memory_space<vmem>>, vector<1x128x128xbf16>
    %154 = vector.shape_cast %153 : vector<1x128x128xbf16> to vector<128x128xbf16>
    %155 = vector.shape_cast %152 : vector<128x128xbf16> to vector<1x128x128xbf16>
    tpu.vector_store %arg5[%c2, %c0_58, %c0_59], %155 {strides = array<i32>} : memref<5x128x128xbf16, #tpu.memory_space<vmem>>, vector<1x128x128xbf16>,
    %cst_60 = arith.constant dense<0.000000e+00> : vector<128xf32>
    %156 = vector.multi_reduction <add>, %151, %cst_60 [0] : vector<128x128xf32> to vector<128xf32>
    %157 = vector.shape_cast %156 : vector<128xf32> to vector<1x128xf32>
    %cst_61 = arith.constant 7.812500e-03 : f32
    %158 = vector.broadcast %cst_61 : f32 to vector<1x128xf32>
    %159 = arith.mulf %157, %158 : vector<1x128xf32>
    %160 = vector.broadcast %159 : vector<1x128xf32> to vector<128x128xf32>
    %161 = arith.subf %151, %160 : vector<128x128xf32>
    %162 = arith.mulf %161, %161 : vector<128x128xf32>
    %cst_62 = arith.constant dense<0.000000e+00> : vector<128xf32>
    %163 = vector.multi_reduction <add>, %162, %cst_62 [0] : vector<128x128xf32> to vector<128xf32>
    %164 = vector.shape_cast %163 : vector<128xf32> to vector<1x128xf32>
    %cst_63 = arith.constant 0.000000e+00 : f32
    %165 = vector.broadcast %cst_63 : f32 to vector<8x16x128xf32>
    %c8_i32_64 = arith.constant 8 : i32
    %166 = arith.muli %arg1, %c8_i32_64 : i32
    %c6_i32 = arith.constant 6 : i32
    %167 = arith.addi %166, %c6_i32 : i32
    %c0_65 = arith.constant 0 : index
    %168 = arith.index_cast %167 : i32 to index
    %c0_66 = arith.constant 0 : index
    %c0_67 = arith.constant 0 : index
    %169 = vector.load %arg2[%c0_65, %168, %c0_66, %c0_67] : memref<1x52x16x128xbf16, #tpu.memory_space<vmem>>, vector<1x8x16x128xbf16>
    %170 = vector.shape_cast %169 : vector<1x8x16x128xbf16> to vector<8x16x128xbf16>
    %171 = vector.shape_cast %170 : vector<8x16x128xbf16> to vector<128x128xbf16>
    %c768 = arith.constant 768 : index
    %c0_68 = arith.constant 0 : index
    %172 = vector.load %arg4[%c768, %c0_68] : memref<1536x384xbf16, #tpu.memory_space<vmem>>, vector<128x384xbf16>
    %cst_69 = arith.constant dense<0.000000e+00> : vector<128x384xf32>
    %173 = tpu.matmul %171, %172, %cst_69 {dimension_numbers = #tpu.dot_dimension_numbers<[1], [0], [0], [1], [0, 0, 1, 1], [], []>} : vector<128x128xbf16>, vector<128x384xbf16>, vector<128x384xf32> -> vector<128x384xf32>
    %174 = vector.shape_cast %173 : vector<128x384xf32> to vector<8x16x384xf32>
    %175 = vector.extract_strided_slice %174 {offsets = [0, 0, 0], sizes = [8, 16, 128], strides = [1, 1, 1]} : vector<8x16x384xf32> to vector<8x16x128xf32>
    %cst_70 = arith.constant 0.000000e+00 : f32
    %176 = vector.broadcast %cst_70 : f32 to vector<8x12x128xf32>
    %177 = vector.extract_strided_slice %175 {offsets = [0, 0, 0], sizes = [8, 4, 128], strides = [1, 1, 1]} : vector<8x16x128xf32> to vector<8x4x128xf32>
    %178 = tpu.concatenate %176, %177 in 1 : vector<8x12x128xf32>, vector<8x4x128xf32> -> vector<8x16x128xf32>
    %179 = arith.addf %165, %178 : vector<8x16x128xf32>
    %180 = vector.extract_strided_slice %174 {offsets = [0, 0, 128], sizes = [8, 16, 128], strides = [1, 1, 1]} : vector<8x16x384xf32> to vector<8x16x128xf32>
    %181 = arith.addf %179, %180 : vector<8x16x128xf32>
    %182 = vector.extract_strided_slice %174 {offsets = [0, 0, 256], sizes = [8, 16, 128], strides = [1, 1, 1]} : vector<8x16x384xf32> to vector<8x16x128xf32>
    %183 = vector.extract_strided_slice %182 {offsets = [0, 12, 0], sizes = [8, 4, 128], strides = [1, 1, 1]} : vector<8x16x128xf32> to vector<8x4x128xf32>
    %cst_71 = arith.constant 0.000000e+00 : f32
    %184 = vector.broadcast %cst_71 : f32 to vector<8x12x128xf32>
    %185 = tpu.concatenate %183, %184 in 1 : vector<8x4x128xf32>, vector<8x12x128xf32> -> vector<8x16x128xf32>
    %186 = arith.addf %181, %185 : vector<8x16x128xf32>
    %c896 = arith.constant 896 : index
    %c0_72 = arith.constant 0 : index
    %187 = vector.load %arg4[%c896, %c0_72] : memref<1536x384xbf16, #tpu.memory_space<vmem>>, vector<128x384xbf16>
    %cst_73 = arith.constant dense<0.000000e+00> : vector<128x384xf32>
    %188 = tpu.matmul %5, %187, %cst_73 {dimension_numbers = #tpu.dot_dimension_numbers<[1], [0], [0], [1], [0, 0, 1, 1], [], []>} : vector<128x128xbf16>, vector<128x384xbf16>, vector<128x384xf32> -> vector<128x384xf32>
    %189 = vector.shape_cast %188 : vector<128x384xf32> to vector<8x16x384xf32>
    %190 = vector.extract_strided_slice %189 {offsets = [0, 0, 0], sizes = [8, 16, 128], strides = [1, 1, 1]} : vector<8x16x384xf32> to vector<8x16x128xf32>
    %cst_74 = arith.constant 0.000000e+00 : f32
    %191 = vector.broadcast %cst_74 : f32 to vector<8x12x128xf32>
    %192 = vector.extract_strided_slice %190 {offsets = [0, 0, 0], sizes = [8, 4, 128], strides = [1, 1, 1]} : vector<8x16x128xf32> to vector<8x4x128xf32>
    %193 = tpu.concatenate %191, %192 in 1 : vector<8x12x128xf32>, vector<8x4x128xf32> -> vector<8x16x128xf32>
    %194 = arith.addf %186, %193 : vector<8x16x128xf32>
    %195 = vector.extract_strided_slice %189 {offsets = [0, 0, 128], sizes = [8, 16, 128], strides = [1, 1, 1]} : vector<8x16x384xf32> to vector<8x16x128xf32>
    %196 = arith.addf %194, %195 : vector<8x16x128xf32>
    %197 = vector.extract_strided_slice %189 {offsets = [0, 0, 256], sizes = [8, 16, 128], strides = [1, 1, 1]} : vector<8x16x384xf32> to vector<8x16x128xf32>
    %198 = vector.extract_strided_slice %197 {offsets = [0, 12, 0], sizes = [8, 4, 128], strides = [1, 1, 1]} : vector<8x16x128xf32> to vector<8x4x128xf32>
    %cst_75 = arith.constant 0.000000e+00 : f32
    %199 = vector.broadcast %cst_75 : f32 to vector<8x12x128xf32>
    %200 = tpu.concatenate %198, %199 in 1 : vector<8x4x128xf32>, vector<8x12x128xf32> -> vector<8x16x128xf32>
    %201 = arith.addf %196, %200 : vector<8x16x128xf32>
    %c8_i32_76 = arith.constant 8 : i32
    %202 = arith.muli %arg1, %c8_i32_76 : i32
    %c30_i32 = arith.constant 30 : i32
    %203 = arith.addi %202, %c30_i32 : i32
    %c0_77 = arith.constant 0 : index
    %204 = arith.index_cast %203 : i32 to index
    %c0_78 = arith.constant 0 : index
    %c0_79 = arith.constant 0 : index
    %205 = vector.load %arg2[%c0_77, %204, %c0_78, %c0_79] : memref<1x52x16x128xbf16, #tpu.memory_space<vmem>>, vector<1x8x16x128xbf16>
    %206 = vector.shape_cast %205 : vector<1x8x16x128xbf16> to vector<8x16x128xbf16>
    %207 = vector.shape_cast %206 : vector<8x16x128xbf16> to vector<128x128xbf16>
    %c1024 = arith.constant 1024 : index
    %c0_80 = arith.constant 0 : index
    %208 = vector.load %arg4[%c1024, %c0_80] : memref<1536x384xbf16, #tpu.memory_space<vmem>>, vector<128x384xbf16>
    %cst_81 = arith.constant dense<0.000000e+00> : vector<128x384xf32>
    %209 = tpu.matmul %207, %208, %cst_81 {dimension_numbers = #tpu.dot_dimension_numbers<[1], [0], [0], [1], [0, 0, 1, 1], [], []>} : vector<128x128xbf16>, vector<128x384xbf16>, vector<128x384xf32> -> vector<128x384xf32>
    %210 = vector.shape_cast %209 : vector<128x384xf32> to vector<8x16x384xf32>
    %211 = vector.extract_strided_slice %210 {offsets = [0, 0, 0], sizes = [8, 16, 128], strides = [1, 1, 1]} : vector<8x16x384xf32> to vector<8x16x128xf32>
    %cst_82 = arith.constant 0.000000e+00 : f32
    %212 = vector.broadcast %cst_82 : f32 to vector<8x12x128xf32>
    %213 = vector.extract_strided_slice %211 {offsets = [0, 0, 0], sizes = [8, 4, 128], strides = [1, 1, 1]} : vector<8x16x128xf32> to vector<8x4x128xf32>
    %214 = tpu.concatenate %212, %213 in 1 : vector<8x12x128xf32>, vector<8x4x128xf32> -> vector<8x16x128xf32>
    %215 = arith.addf %201, %214 : vector<8x16x128xf32>
    %216 = vector.extract_strided_slice %210 {offsets = [0, 0, 128], sizes = [8, 16, 128], strides = [1, 1, 1]} : vector<8x16x384xf32> to vector<8x16x128xf32>
    %217 = arith.addf %215, %216 : vector<8x16x128xf32>
    %218 = vector.extract_strided_slice %210 {offsets = [0, 0, 256], sizes = [8, 16, 128], strides = [1, 1, 1]} : vector<8x16x384xf32> to vector<8x16x128xf32>
    %219 = vector.extract_strided_slice %218 {offsets = [0, 12, 0], sizes = [8, 4, 128], strides = [1, 1, 1]} : vector<8x16x128xf32> to vector<8x4x128xf32>
    %cst_83 = arith.constant 0.000000e+00 : f32
    %220 = vector.broadcast %cst_83 : f32 to vector<8x12x128xf32>
    %221 = tpu.concatenate %219, %220 in 1 : vector<8x4x128xf32>, vector<8x12x128xf32> -> vector<8x16x128xf32>
    %222 = arith.addf %217, %221 : vector<8x16x128xf32>
    %223 = vector.shape_cast %222 : vector<8x16x128xf32> to vector<128x128xf32>
    %224 = arith.truncf %223 : vector<128x128xf32> to vector<128x128xbf16>
    %c3 = arith.constant 3 : index
    %c0_84 = arith.constant 0 : index
    %c0_85 = arith.constant 0 : index
    %225 = vector.load %arg5[%c3, %c0_84, %c0_85] : memref<5x128x128xbf16, #tpu.memory_space<vmem>>, vector<1x128x128xbf16>
    %226 = vector.shape_cast %225 : vector<1x128x128xbf16> to vector<128x128xbf16>
    %227 = vector.shape_cast %224 : vector<128x128xbf16> to vector<1x128x128xbf16>
    tpu.vector_store %arg5[%c3, %c0_84, %c0_85], %227 {strides = array<i32>} : memref<5x128x128xbf16, #tpu.memory_space<vmem>>, vector<1x128x128xbf16>,
    %cst_86 = arith.constant dense<0.000000e+00> : vector<128xf32>
    %228 = vector.multi_reduction <add>, %223, %cst_86 [0] : vector<128x128xf32> to vector<128xf32>
    %229 = vector.shape_cast %228 : vector<128xf32> to vector<1x128xf32>
    %cst_87 = arith.constant 7.812500e-03 : f32
    %230 = vector.broadcast %cst_87 : f32 to vector<1x128xf32>
    %231 = arith.mulf %229, %230 : vector<1x128xf32>
    %232 = vector.broadcast %231 : vector<1x128xf32> to vector<128x128xf32>
    %233 = arith.subf %223, %232 : vector<128x128xf32>
    %234 = arith.mulf %233, %233 : vector<128x128xf32>
    %cst_88 = arith.constant dense<0.000000e+00> : vector<128xf32>
    %235 = vector.multi_reduction <add>, %234, %cst_88 [0] : vector<128x128xf32> to vector<128xf32>
    %236 = vector.shape_cast %235 : vector<128xf32> to vector<1x128xf32>
    %cst_89 = arith.constant 0.000000e+00 : f32
    %237 = vector.broadcast %cst_89 : f32 to vector<8x16x128xf32>
    %c8_i32_90 = arith.constant 8 : i32
    %238 = arith.muli %arg1, %c8_i32_90 : i32
    %c0_i32 = arith.constant 0 : i32
    %239 = arith.addi %238, %c0_i32 : i32
    %c0_91 = arith.constant 0 : index
    %240 = arith.index_cast %239 : i32 to index
    %c0_92 = arith.constant 0 : index
    %c0_93 = arith.constant 0 : index
    %241 = vector.load %arg2[%c0_91, %240, %c0_92, %c0_93] : memref<1x52x16x128xbf16, #tpu.memory_space<vmem>>, vector<1x8x16x128xbf16>
    %242 = vector.shape_cast %241 : vector<1x8x16x128xbf16> to vector<8x16x128xbf16>
    %243 = vector.shape_cast %242 : vector<8x16x128xbf16> to vector<128x128xbf16>
    %c1152 = arith.constant 1152 : index
    %c0_94 = arith.constant 0 : index
    %244 = vector.load %arg4[%c1152, %c0_94] : memref<1536x384xbf16, #tpu.memory_space<vmem>>, vector<128x384xbf16>
    %cst_95 = arith.constant dense<0.000000e+00> : vector<128x384xf32>
    %245 = tpu.matmul %243, %244, %cst_95 {dimension_numbers = #tpu.dot_dimension_numbers<[1], [0], [0], [1], [0, 0, 1, 1], [], []>} : vector<128x128xbf16>, vector<128x384xbf16>, vector<128x384xf32> -> vector<128x384xf32>
    %246 = vector.shape_cast %245 : vector<128x384xf32> to vector<8x16x384xf32>
    %247 = vector.extract_strided_slice %246 {offsets = [0, 0, 128], sizes = [8, 16, 128], strides = [1, 1, 1]} : vector<8x16x384xf32> to vector<8x16x128xf32>
    %248 = arith.addf %237, %247 : vector<8x16x128xf32>
    %c1280 = arith.constant 1280 : index
    %c0_96 = arith.constant 0 : index
    %249 = vector.load %arg4[%c1280, %c0_96] : memref<1536x384xbf16, #tpu.memory_space<vmem>>, vector<128x384xbf16>
    %cst_97 = arith.constant dense<0.000000e+00> : vector<128x384xf32>
    %250 = tpu.matmul %5, %249, %cst_97 {dimension_numbers = #tpu.dot_dimension_numbers<[1], [0], [0], [1], [0, 0, 1, 1], [], []>} : vector<128x128xbf16>, vector<128x384xbf16>, vector<128x384xf32> -> vector<128x384xf32>
    %251 = vector.shape_cast %250 : vector<128x384xf32> to vector<8x16x384xf32>
    %252 = vector.extract_strided_slice %251 {offsets = [0, 0, 128], sizes = [8, 16, 128], strides = [1, 1, 1]} : vector<8x16x384xf32> to vector<8x16x128xf32>
    %253 = arith.addf %248, %252 : vector<8x16x128xf32>
    %c8_i32_98 = arith.constant 8 : i32
    %254 = arith.muli %arg1, %c8_i32_98 : i32
    %c36_i32 = arith.constant 36 : i32
    %255 = arith.addi %254, %c36_i32 : i32
    %c0_99 = arith.constant 0 : index
    %256 = arith.index_cast %255 : i32 to index
    %c0_100 = arith.constant 0 : index
    %c0_101 = arith.constant 0 : index
    %257 = vector.load %arg2[%c0_99, %256, %c0_100, %c0_101] : memref<1x52x16x128xbf16, #tpu.memory_space<vmem>>, vector<1x8x16x128xbf16>
    %258 = vector.shape_cast %257 : vector<1x8x16x128xbf16> to vector<8x16x128xbf16>
    %259 = vector.shape_cast %258 : vector<8x16x128xbf16> to vector<128x128xbf16>
    %c1408 = arith.constant 1408 : index
    %c0_102 = arith.constant 0 : index
    %260 = vector.load %arg4[%c1408, %c0_102] : memref<1536x384xbf16, #tpu.memory_space<vmem>>, vector<128x384xbf16>
    %cst_103 = arith.constant dense<0.000000e+00> : vector<128x384xf32>
    %261 = tpu.matmul %259, %260, %cst_103 {dimension_numbers = #tpu.dot_dimension_numbers<[1], [0], [0], [1], [0, 0, 1, 1], [], []>} : vector<128x128xbf16>, vector<128x384xbf16>, vector<128x384xf32> -> vector<128x384xf32>
    %262 = vector.shape_cast %261 : vector<128x384xf32> to vector<8x16x384xf32>
    %263 = vector.extract_strided_slice %262 {offsets = [0, 0, 128], sizes = [8, 16, 128], strides = [1, 1, 1]} : vector<8x16x384xf32> to vector<8x16x128xf32>
    %264 = arith.addf %253, %263 : vector<8x16x128xf32>
    %265 = vector.shape_cast %264 : vector<8x16x128xf32> to vector<128x128xf32>
    %266 = arith.truncf %265 : vector<128x128xf32> to vector<128x128xbf16>
    %c4 = arith.constant 4 : index
    %c0_104 = arith.constant 0 : index
    %c0_105 = arith.constant 0 : index
    %267 = vector.load %arg5[%c4, %c0_104, %c0_105] : memref<5x128x128xbf16, #tpu.memory_space<vmem>>, vector<1x128x128xbf16>
    %268 = vector.shape_cast %267 : vector<1x128x128xbf16> to vector<128x128xbf16>
    %269 = vector.shape_cast %266 : vector<128x128xbf16> to vector<1x128x128xbf16>
    tpu.vector_store %arg5[%c4, %c0_104, %c0_105], %269 {strides = array<i32>} : memref<5x128x128xbf16, #tpu.memory_space<vmem>>, vector<1x128x128xbf16>,
    %cst_106 = arith.constant dense<0.000000e+00> : vector<128xf32>
    %270 = vector.multi_reduction <add>, %265, %cst_106 [0] : vector<128x128xf32> to vector<128xf32>
    %271 = vector.shape_cast %270 : vector<128xf32> to vector<1x128xf32>
    %cst_107 = arith.constant 7.812500e-03 : f32
    %272 = vector.broadcast %cst_107 : f32 to vector<1x128xf32>
    %273 = arith.mulf %271, %272 : vector<1x128xf32>
    %274 = vector.broadcast %273 : vector<1x128xf32> to vector<128x128xf32>
    %275 = arith.subf %265, %274 : vector<128x128xf32>
    %276 = arith.mulf %275, %275 : vector<128x128xf32>
    %cst_108 = arith.constant dense<0.000000e+00> : vector<128xf32>
    %277 = vector.multi_reduction <add>, %276, %cst_108 [0] : vector<128x128xf32> to vector<128xf32>
    %278 = vector.shape_cast %277 : vector<128xf32> to vector<1x128xf32>
    %279 = tpu.concatenate %13, %85, %157, %229, %271, %20, %92, %164, %236, %278 in 0 : vector<1x128xf32>, vector<1x128xf32>, vector<1x128xf32>, vector<1x128xf32>, vector<1x128xf32>, vector<1x128xf32>, vector<1x128xf32>, vector<1x128xf32>, vector<1x128xf32>, vector<1x128xf32> -> vector<10x128xf32>
    %c0_109 = arith.constant 0 : index
    %c0_110 = arith.constant 0 : index
    %c0_111 = arith.constant 0 : index
    %c0_112 = arith.constant 0 : index
    %280 = vector.load %arg6[%c0_109, %c0_110, %c0_111, %c0_112] : memref<1x1x10x128xf32, #tpu.memory_space<vmem>>, vector<1x1x10x128xf32>
    %281 = vector.shape_cast %280 : vector<1x1x10x128xf32> to vector<10x128xf32>
    %282 = vector.shape_cast %279 : vector<10x128xf32> to vector<1x1x10x128xf32>
    tpu.vector_store %arg6[%c0_109, %c0_110, %c0_111, %c0_112], %282 {strides = array<i32>} : memref<1x1x10x128xf32, #tpu.memory_space<vmem>>, vector<1x1x10x128xf32>,
    return
  }
  func.func @transform_0(%arg0: i32, %arg1: i32) -> (i32, i32, i32, i32) {
    %c0_i32 = arith.constant 0 : i32
    %c0_i32_0 = arith.constant 0 : i32
    %c0_i32_1 = arith.constant 0 : i32
    %c0_i32_2 = arith.constant 0 : i32
    return %arg0, %c0_i32, %c0_i32_0, %c0_i32_1 : i32, i32, i32, i32
  }
  func.func @transform_1(%arg0: i32, %arg1: i32) -> (i32, i32) {
    %c0_i32 = arith.constant 0 : i32
    %c0_i32_0 = arith.constant 0 : i32
    %c0_i32_1 = arith.constant 0 : i32
    return %c0_i32, %c0_i32_0 : i32, i32
  }
  func.func @transform_2(%arg0: i32, %arg1: i32) -> (i32, i32) {
    %c0_i32 = arith.constant 0 : i32
    %c0_i32_0 = arith.constant 0 : i32
    %c0_i32_1 = arith.constant 0 : i32
    return %c0_i32, %c0_i32_0 : i32, i32
  }
  func.func @transform_3(%arg0: i32, %arg1: i32) -> (i32, i32, i32) {
    %c2_i32 = arith.constant 2 : i32
    %0 = arith.muli %arg0, %c2_i32 : i32
    %1 = arith.addi %0, %arg1 : i32
    %c0_i32 = arith.constant 0 : i32
    %c0_i32_0 = arith.constant 0 : i32
    %c0_i32_1 = arith.constant 0 : i32
    return %c0_i32, %1, %c0_i32_0 : i32, i32, i32
  }
  func.func @transform_4(%arg0: i32, %arg1: i32) -> (i32, i32, i32, i32) {
    %c0_i32 = arith.constant 0 : i32
    %c0_i32_0 = arith.constant 0 : i32
    %c0_i32_1 = arith.constant 0 : i32
    return %arg0, %arg1, %c0_i32, %c0_i32_0 : i32, i32, i32, i32
  }
}

</mosaic_0001>

<bundles_post_ra>
// kernel: aspp_forward.5
= control target key start
LH: loop header
LB: loop body
LE: loop exit
PB: predicated region body
PF: predicated region fallthrough
CT: control target
= control target key end

     0   :  { %s417_s9 = smov 0   ;;  %s607_s0 = inlined_call_operand.vmem [shape: f32[512,128], index: 0, kind: input, shape index: {}, may-alias: {0,2}]   ;;  %s608_s1 = inlined_call_operand.vmem [shape: f32[2,128], index: 1, kind: input, shape index: {}]   ;;  %s609_s2 = inlined_call_operand.vmem [shape: f32[512,128], index: 2, kind: output, shape index: {}, may-alias: {0,2}]  }
   0x1 LB: > { %s373_s10 = sadd.s32 4294967295, %s400_s9   ;;  %p377_p0 = scmp.ge.s32.totalorder %s400_s9, 1  ;;  %s400_s9 = sphi %s417_s9, %s12_s9  }
   0x2   : > { %p113_p1 = scmp.lt.s32.totalorder %s400_s9, 3 }
   0x4   : > { %p114_p2 = pnand %p377_p0, %p113_p1 }
   0x5   : > { %s378_s11 = sshll.u32 (!%p114_p2), %s373_s10, 5  ;;  %v431_v0 = vld [vmem:[%s608_s1] ss:$0 sm:$0xff] (!%p114_p2)  ;;  %v443_v1 = vld [vmem:[%s608_s1 + $0x1] ss:$0 sm:$0xff] (!%p114_p2) }
   0x6   : > { %117 = sbr.rel (%p114_p2) target bundleno = 46 (0x2e), region = 28  ;;  %p136_p3 = scmp.lt.s32.totalorder (!%p114_p2), %s378_s11, 63 }
   0xd   : > { %s611_s11 = smov (!%p136_p3, %s378_s11), 63 }
   0xe   : > { %s379_s12 = sshll.u32 %s611_s11, 3 }
   0xf   : > { %s438_s17 = scalar_lea.vmem %s607_s0, %s379_s12  ;;  %s485_s22 = scalar_lea.vmem %s609_s2, %s379_s12 }
  0x10   : > { %v147_v2 = vld [vmem:[%s438_s17] sm:$0xff]  ;;  %v148_v3 = vld [vmem:[%s438_s17 + $0x8] sm:$0xff]  ;;  %v149_v4 = vld [vmem:[%s438_s17 + $0x10] sm:$0xff] }
  0x11   : > { %v150_v5 = vld [vmem:[%s438_s17 + $0x18] sm:$0xff]  ;;  %v151_v6 = vld [vmem:[%s438_s17 + $0x20] sm:$0xff]  ;;  %v152_v7 = vld [vmem:[%s438_s17 + $0x28] sm:$0xff]  ;;  %v184_v8 = vmul.f32 %v431_v0, %v147_v2  ;;  %v185_v9 = vmul.f32 %v431_v0, %v148_v3  ;;  %v186_v10 = vmul.f32 %v431_v0, %v149_v4 }
  0x12   : > { %v153_v11 = vld [vmem:[%s438_s17 + $0x30] sm:$0xff]  ;;  %v154_v12 = vld [vmem:[%s438_s17 + $0x38] sm:$0xff]  ;;  %v187_v13 = vmul.f32 %v431_v0, %v150_v5  ;;  %v188_v14 = vmul.f32 %v431_v0, %v151_v6  ;;  %v189_v15 = vmul.f32 %v431_v0, %v152_v7  ;;  %v155_v20 = vld [vmem:[%s438_s17 + $0x40] sm:$0xff] }
  0x13   : > { %v221_v16 = vadd.f32 %v443_v1, %v184_v8  ;;  %v222_v17 = vadd.f32 %v443_v1, %v185_v9  ;;  %v223_v18 = vadd.f32 %v443_v1, %v186_v10  ;;  %v190_v19 = vmul.f32 %v431_v0, %v153_v11  ;;  %v156_v21 = vld [vmem:[%s438_s17 + $0x48] sm:$0xff]  ;;  %v157_v22 = vld [vmem:[%s438_s17 + $0x50] sm:$0xff]  ;;  %v158_v27 = vld [vmem:[%s438_s17 + $0x58] sm:$0xff] }
  0x14   : > { %v224_v23 = vadd.f32 %v443_v1, %v187_v13  ;;  %v225_v24 = vadd.f32 %v443_v1, %v188_v14  ;;  %v226_v25 = vadd.f32 %v443_v1, %v189_v15  ;;  %v191_v26 = vmul.f32 %v431_v0, %v154_v12  ;;  %v159_v28 = vld [vmem:[%s438_s17 + $0x60] sm:$0xff]  ;;  %v160_v29 = vld [vmem:[%s438_s17 + $0x68] sm:$0xff]  ;;  %v161_v34 = vld [vmem:[%s438_s17 + $0x70] sm:$0xff] }
  0x15   : > { %v253_v30 = vmax.f32 %v221_v16, 0.0  ;;  %v254_v31 = vmax.f32 %v222_v17, 0.0  ;;  %v255_v32 = vmax.f32 %v223_v18, 0.0  ;;  %v227_v33 = vadd.f32 %v443_v1, %v190_v19  ;;  %v162_v39 = vld [vmem:[%s438_s17 + $0x78] sm:$0xff]  ;;  %v163_v44 = vld [vmem:[%s438_s17 + $0x80] sm:$0xff]  ;;  %v164_v45 = vld [vmem:[%s438_s17 + $0x88] sm:$0xff] }
  0x16   : > { %v256_v35 = vmax.f32 %v224_v23, 0.0  ;;  %v257_v36 = vmax.f32 %v225_v24, 0.0  ;;  %v258_v37 = vmax.f32 %v226_v25, 0.0  ;;  %v228_v38 = vadd.f32 %v443_v1, %v191_v26  ;;  %v165_v46 = vld [vmem:[%s438_s17 + $0x90] sm:$0xff]  ;;  %v166_v47 = vld [vmem:[%s438_s17 + $0x98] sm:$0xff]  ;;  %v167_v48 = vld [vmem:[%s438_s17 + $0xa0] sm:$0xff] }
  0x17   : > { %v259_v40 = vmax.f32 %v227_v33, 0.0  ;;  %v192_v41 = vmul.f32 %v431_v0, %v155_v20  ;;  %v193_v42 = vmul.f32 %v431_v0, %v156_v21  ;;  %v194_v43 = vmul.f32 %v431_v0, %v157_v22  ;;  %v168_v49 = vld [vmem:[%s438_s17 + $0xa8] sm:$0xff]  ;;  %v169_v50 = vld [vmem:[%s438_s17 + $0xb0] sm:$0xff]  ;;  %v170_v51 = vld [vmem:[%s438_s17 + $0xb8] sm:$0xff] }
  0x18   : > { %v496_v52 = vld [vmem:[%s438_s17 + $0xc0] sm:$0xff]  ;;  %v499_v53 = vld [vmem:[%s438_s17 + $0xc8] sm:$0xff]  ;;  %v260_v54 = vmax.f32 %v228_v38, 0.0  ;;  %v195_v55 = vmul.f32 %v431_v0, %v158_v27  ;;  %v196_v56 = vmul.f32 %v431_v0, %v159_v28  ;;  %v197_v57 = vmul.f32 %v431_v0, %v160_v29  ;;  %v505_v58 = vld [vmem:[%s438_s17 + $0xd0] sm:$0xff] }
  0x19   : > { %v508_v59 = vld [vmem:[%s438_s17 + $0xd8] sm:$0xff]  ;;  %v511_v60 = vld [vmem:[%s438_s17 + $0xe0] sm:$0xff]  ;;  %v229_v61 = vadd.f32 %v443_v1, %v192_v41  ;;  %v230_v62 = vadd.f32 %v443_v1, %v193_v42  ;;  %v231_v63 = vadd.f32 %v443_v1, %v194_v43  ;;  %v198_v2 = vmul.f32 %v431_v0, %v161_v34  ;;  %v518_v3 = vld [vmem:[%s438_s17 + $0xe8] sm:$0xff] }
  0x1a   : > { %v521_v4 = vld [vmem:[%s438_s17 + $0xf0] sm:$0xff]  ;;  %v524_v5 = vld [vmem:[%s438_s17 + $0xf8] sm:$0xff]  ;;  %v232_v6 = vadd.f32 %v443_v1, %v195_v55  ;;  %v233_v7 = vadd.f32 %v443_v1, %v196_v56  ;;  %v234_v8 = vadd.f32 %v443_v1, %v197_v57  ;;  %v199_v9 = vmul.f32 %v431_v0, %v162_v39 }
  0x1b   : > { %285 = vst [vmem:[%s485_s22] sm:$0xff] %v253_v30  ;;  %286 = vst [vmem:[%s485_s22 + $0x8] sm:$0xff] %v254_v31  ;;  %v261_v10 = vmax.f32 %v229_v61, 0.0  ;;  %v262_v11 = vmax.f32 %v230_v62, 0.0  ;;  %v263_v12 = vmax.f32 %v231_v63, 0.0  ;;  %v235_v13 = vadd.f32 %v443_v1, %v198_v2 }
  0x1c   : > { %287 = vst [vmem:[%s485_s22 + $0x10] sm:$0xff] %v255_v32  ;;  %288 = vst [vmem:[%s485_s22 + $0x18] sm:$0xff] %v256_v35  ;;  %v264_v14 = vmax.f32 %v232_v6, 0.0  ;;  %v265_v15 = vmax.f32 %v233_v7, 0.0  ;;  %v266_v16 = vmax.f32 %v234_v8, 0.0  ;;  %v236_v17 = vadd.f32 %v443_v1, %v199_v9 }
  0x1d   : > { %289 = vst [vmem:[%s485_s22 + $0x20] sm:$0xff] %v257_v36  ;;  %290 = vst [vmem:[%s485_s22 + $0x28] sm:$0xff] %v258_v37  ;;  %v267_v18 = vmax.f32 %v235_v13, 0.0  ;;  %v200_v19 = vmul.f32 %v431_v0, %v163_v44  ;;  %v201_v20 = vmul.f32 %v431_v0, %v164_v45  ;;  %v202_v21 = vmul.f32 %v431_v0, %v165_v46 }
  0x1e   : > { %291 = vst [vmem:[%s485_s22 + $0x30] sm:$0xff] %v259_v40  ;;  %292 = vst [vmem:[%s485_s22 + $0x38] sm:$0xff] %v260_v54  ;;  %v268_v22 = vmax.f32 %v236_v17, 0.0  ;;  %v203_v23 = vmul.f32 %v431_v0, %v166_v47  ;;  %v204_v24 = vmul.f32 %v431_v0, %v167_v48  ;;  %v205_v25 = vmul.f32 %v431_v0, %v168_v49 }
  0x1f   : > { %293 = vst [vmem:[%s485_s22 + $0x40] sm:$0xff] %v261_v10  ;;  %294 = vst [vmem:[%s485_s22 + $0x48] sm:$0xff] %v262_v11  ;;  %v237_v26 = vadd.f32 %v443_v1, %v200_v19  ;;  %v238_v27 = vadd.f32 %v443_v1, %v201_v20  ;;  %v239_v28 = vadd.f32 %v443_v1, %v202_v21 }
  0x20   : > { %295 = vst [vmem:[%s485_s22 + $0x50] sm:$0xff] %v263_v12  ;;  %296 = vst [vmem:[%s485_s22 + $0x58] sm:$0xff] %v264_v14  ;;  %v206_v29 = vmul.f32 %v431_v0, %v169_v50  ;;  %v240_v30 = vadd.f32 %v443_v1, %v203_v23  ;;  %v241_v31 = vadd.f32 %v443_v1, %v204_v24 }
  0x21   : > { %297 = vst [vmem:[%s485_s22 + $0x60] sm:$0xff] %v265_v15  ;;  %298 = vst [vmem:[%s485_s22 + $0x68] sm:$0xff] %v266_v16  ;;  %v242_v32 = vadd.f32 %v443_v1, %v205_v25  ;;  %v207_v33 = vmul.f32 %v431_v0, %v170_v51  ;;  %v269_v34 = vmax.f32 %v237_v26, 0.0  ;;  %v270_v35 = vmax.f32 %v238_v27, 0.0 }
  0x22   : > { %299 = vst [vmem:[%s485_s22 + $0x70] sm:$0xff] %v267_v18  ;;  %300 = vst [vmem:[%s485_s22 + $0x78] sm:$0xff] %v268_v22  ;;  %v271_v36 = vmax.f32 %v239_v28, 0.0  ;;  %v243_v37 = vadd.f32 %v443_v1, %v206_v29  ;;  %v272_v38 = vmax.f32 %v240_v30, 0.0  ;;  %v273_v39 = vmax.f32 %v241_v31, 0.0 }
  0x23   : > { %v274_v40 = vmax.f32 %v242_v32, 0.0  ;;  %v244_v41 = vadd.f32 %v443_v1, %v207_v33  ;;  %301 = vst [vmem:[%s485_s22 + $0x80] sm:$0xff] %v269_v34  ;;  %302 = vst [vmem:[%s485_s22 + $0x88] sm:$0xff] %v270_v35  ;;  %v208_v43 = vmul.f32 %v431_v0, %v496_v52  ;;  %v209_v44 = vmul.f32 %v431_v0, %v499_v53 }
  0x24   : > { %303 = vst [vmem:[%s485_s22 + $0x90] sm:$0xff] %v271_v36  ;;  %v275_v42 = vmax.f32 %v243_v37, 0.0  ;;  %v210_v45 = vmul.f32 %v431_v0, %v505_v58  ;;  %304 = vst [vmem:[%s485_s22 + $0x98] sm:$0xff] %v272_v38  ;;  %v211_v47 = vmul.f32 %v431_v0, %v508_v59  ;;  %v212_v48 = vmul.f32 %v431_v0, %v511_v60 }
  0x25   : > { %305 = vst [vmem:[%s485_s22 + $0xa0] sm:$0xff] %v273_v39  ;;  %306 = vst [vmem:[%s485_s22 + $0xa8] sm:$0xff] %v274_v40  ;;  %v276_v46 = vmax.f32 %v244_v41, 0.0  ;;  %v213_v49 = vmul.f32 %v431_v0, %v518_v3  ;;  %v245_v50 = vadd.f32 %v443_v1, %v208_v43  ;;  %v246_v51 = vadd.f32 %v443_v1, %v209_v44 }
  0x26   : > { %307 = vst [vmem:[%s485_s22 + $0xb0] sm:$0xff] %v275_v42  ;;  %v247_v52 = vadd.f32 %v443_v1, %v210_v45  ;;  %v214_v53 = vmul.f32 %v431_v0, %v521_v4  ;;  %v248_v54 = vadd.f32 %v443_v1, %v211_v47  ;;  %v249_v55 = vadd.f32 %v443_v1, %v212_v48 }
  0x27   : > { %308 = vst [vmem:[%s485_s22 + $0xb8] sm:$0xff] %v276_v46  ;;  %v250_v56 = vadd.f32 %v443_v1, %v213_v49  ;;  %v215_v57 = vmul.f32 %v431_v0, %v524_v5  ;;  %v277_v58 = vmax.f32 %v245_v50, 0.0  ;;  %v278_v59 = vmax.f32 %v246_v51, 0.0 }
  0x28   : > { %v279_v60 = vmax.f32 %v247_v52, 0.0  ;;  %v251_v61 = vadd.f32 %v443_v1, %v214_v53  ;;  %v280_v62 = vmax.f32 %v248_v54, 0.0  ;;  %v281_v63 = vmax.f32 %v249_v55, 0.0 }
  0x29   : > { %v282_v2 = vmax.f32 %v250_v56, 0.0  ;;  %v252_v3 = vadd.f32 %v443_v1, %v215_v57  ;;  %309 = vst [vmem:[%s485_s22 + $0xc0] sm:$0xff] %v277_v58  ;;  %310 = vst [vmem:[%s485_s22 + $0xc8] sm:$0xff] %v278_v59 }
  0x2a   : > { %311 = vst [vmem:[%s485_s22 + $0xd0] sm:$0xff] %v279_v60  ;;  %v283_v4 = vmax.f32 %v251_v61, 0.0  ;;  %312 = vst [vmem:[%s485_s22 + $0xd8] sm:$0xff] %v280_v62 }
  0x2b   : > { %313 = vst [vmem:[%s485_s22 + $0xe0] sm:$0xff] %v281_v63  ;;  %314 = vst [vmem:[%s485_s22 + $0xe8] sm:$0xff] %v282_v2  ;;  %v284_v0 = vmax.f32 %v252_v3, 0.0 }
  0x2c   : > { %315 = vst [vmem:[%s485_s22 + $0xf0] sm:$0xff] %v283_v4 }
  0x2d   : > { %316 = vst [vmem:[%s485_s22 + $0xf8] sm:$0xff] %v284_v0 }
  0x2e PF: > { %s12_s9 = sadd.s32 1, %s400_s9  }
  0x2f   : > { %p9_p4 = scmp.ge.s32.totalorder %s12_s9, 4  }
  0x31   :  { %11 = sbr.rel (!%p9_p4) target bundleno = 1 (0x1), region = 58 }

// kernel: aspp_forward.4
= control target key start
LH: loop header
LB: loop body
LE: loop exit
PB: predicated region body
PF: predicated region fallthrough
CT: control target
= control target key end

     0   :  { %s4531_s15 = smov 0   ;;  %s4533_s16 = smov 0   ;;  %s5596_s0 = inlined_call_operand.vmem [shape: bf16[5,512,128], index: 0, kind: input, shape index: {}]   ;;  %s5597_s1 = inlined_call_operand.vmem [shape: f32[10,128], index: 1, kind: input, shape index: {}]   ;;  %s5598_s2 = inlined_call_operand.vmem [shape: bf16[640,128], index: 2, kind: input, shape index: {}]   ;;  %s5599_s3 = inlined_call_operand.vmem [shape: f32[512,128], index: 3, kind: output, shape index: {0}]   ;;  %s5600_s4 = inlined_call_operand.vmem [shape: f32[2,2,128], index: 4, kind: output, shape index: {1}]  }
   0x1   :  { %s4535_s17 = smov 0  }
   0x2 LB: > { %s4547_s18 = sadd.s32 4294967295, %s4504_s17   ;;  %s4550_s19 = sadd.s32 1, %s4504_s17   ;;  %s4504_s17 = sphi %s4535_s17, %s5603_s17   ;;  %s4500_s16 = sphi %s4533_s16, %s5602_s16   ;;  %s4496_s15 = sphi %s4531_s15, %s5601_s15  }
   0x3   : > { %s19_s20 = ssub.s32 %s4504_s17, %s4550_s19  ;;  %s22_s21 = sadd.s32 1, %s4500_s16 }
   0x4   : > { %p20_p0 = scmp.eq.s32.totalorder %s19_s20, 0  ;;  %p29_p1 = scmp.ne.s32.totalorder %s4500_s16, %s4496_s15 }
   0x5   : > { %p30_p2 = scmp.eq.s32.totalorder %s4504_s17, 0  ;;  %p3315_p4 = scmp.ge.s32.totalorder %s4504_s17, 2 }
   0x6   : > { %s4559_s22 = scalar_select %p20_p0, %s4500_s16, %s22_s21  }
   0x7   : > { %p31_p3 = por %p30_p2, %p29_p1  ;;  %155 = sbr.rel (%p3315_p4) target bundleno = 59 (0x3b), region = 24 }
   0xe   : > { %158 = sbr.rel (!%p31_p3) target bundleno = 59 (0x3b), region = 28  ;;  %s160_s23 = sand.u32 (%p31_p3), 1, %s4500_s16  }
   0xf   : > { %s3502_s24 = sshll.u32 (%p31_p3), %s4504_s17, 7  ;;  %s4406_s25 = smul.u32 (%p31_p3), 640, %s160_s23 }
  0x10   : > { %s4567_s28 = scalar_lea.vmem (%p31_p3), %s5596_s0, %s3502_s24 }
  0x11   : > { %v181_v0 = vld [vmem:[%s4567_s28] sm:$0xff] (%p31_p3)   ;;  %v185_v1 = vld [vmem:[%s4567_s28 + $0x8] sm:$0xff] (%p31_p3)   ;;  %v189_v2 = vld [vmem:[%s4567_s28 + $0x10] sm:$0xff] (%p31_p3)   ;;  %s4575_s29 = scalar_lea.vmem (%p31_p3), [#allocation2], %s4406_s25 }
  0x12   : > { %v193_v3 = vld [vmem:[%s4567_s28 + $0x18] sm:$0xff] (%p31_p3)   ;;  %v197_v4 = vld [vmem:[%s4567_s28 + $0x20] sm:$0xff] (%p31_p3)   ;;  %v201_v5 = vld [vmem:[%s4567_s28 + $0x28] sm:$0xff] (%p31_p3)   ;;  %182 = vst [vmem:[%s4575_s29] sm:$0xff] (%p31_p3), %v181_v0  }
  0x13   : > { %186 = vst [vmem:[%s4575_s29 + $0x8] sm:$0xff] (%p31_p3), %v185_v1   ;;  %190 = vst [vmem:[%s4575_s29 + $0x10] sm:$0xff] (%p31_p3), %v189_v2   ;;  %v205_v6 = vld [vmem:[%s4567_s28 + $0x30] sm:$0xff] (%p31_p3)   ;;  %v209_v7 = vld [vmem:[%s4567_s28 + $0x38] sm:$0xff] (%p31_p3)  }
  0x14   : > { %194 = vst [vmem:[%s4575_s29 + $0x18] sm:$0xff] (%p31_p3), %v193_v3   ;;  %198 = vst [vmem:[%s4575_s29 + $0x20] sm:$0xff] (%p31_p3), %v197_v4   ;;  %v213_v8 = vld [vmem:[%s4567_s28 + $0x40] sm:$0xff] (%p31_p3)   ;;  %v217_v9 = vld [vmem:[%s4567_s28 + $0x48] sm:$0xff] (%p31_p3)  }
  0x15   : > { %202 = vst [vmem:[%s4575_s29 + $0x28] sm:$0xff] %v201_v5   ;;  %206 = vst [vmem:[%s4575_s29 + $0x30] sm:$0xff] %v205_v6   ;;  %v221_v10 = vld [vmem:[%s4567_s28 + $0x50] sm:$0xff]   ;;  %v225_v11 = vld [vmem:[%s4567_s28 + $0x58] sm:$0xff]  }
  0x16   : > { %210 = vst [vmem:[%s4575_s29 + $0x38] sm:$0xff] %v209_v7   ;;  %214 = vst [vmem:[%s4575_s29 + $0x40] sm:$0xff] %v213_v8   ;;  %v229_v12 = vld [vmem:[%s4567_s28 + $0x60] sm:$0xff]   ;;  %v233_v13 = vld [vmem:[%s4567_s28 + $0x68] sm:$0xff]  }
  0x17   : > { %218 = vst [vmem:[%s4575_s29 + $0x48] sm:$0xff] %v217_v9   ;;  %222 = vst [vmem:[%s4575_s29 + $0x50] sm:$0xff] %v221_v10   ;;  %v237_v14 = vld [vmem:[%s4567_s28 + $0x70] sm:$0xff]   ;;  %v241_v15 = vld [vmem:[%s4567_s28 + $0x78] sm:$0xff]  }
  0x18   : > { %226 = vst [vmem:[%s4575_s29 + $0x58] sm:$0xff] %v225_v11   ;;  %230 = vst [vmem:[%s4575_s29 + $0x60] sm:$0xff] %v229_v12   ;;  %v245_v16 = vld [vmem:[%s4567_s28 + $0x100] sm:$0xff]   ;;  %v249_v17 = vld [vmem:[%s4567_s28 + $0x108] sm:$0xff]  }
  0x19   : > { %234 = vst [vmem:[%s4575_s29 + $0x68] sm:$0xff] %v233_v13   ;;  %238 = vst [vmem:[%s4575_s29 + $0x70] sm:$0xff] %v237_v14   ;;  %v253_v18 = vld [vmem:[%s4567_s28 + $0x110] sm:$0xff]   ;;  %v257_v19 = vld [vmem:[%s4567_s28 + $0x118] sm:$0xff]  }
  0x1a   : > { %242 = vst [vmem:[%s4575_s29 + $0x78] sm:$0xff] %v241_v15   ;;  %246 = vst [vmem:[%s4575_s29 + $0x80] sm:$0xff] %v245_v16   ;;  %v261_v20 = vld [vmem:[%s4567_s28 + $0x120] sm:$0xff]   ;;  %v265_v21 = vld [vmem:[%s4567_s28 + $0x128] sm:$0xff]  }
  0x1b   : > { %250 = vst [vmem:[%s4575_s29 + $0x88] sm:$0xff] %v249_v17   ;;  %254 = vst [vmem:[%s4575_s29 + $0x90] sm:$0xff] %v253_v18   ;;  %v269_v22 = vld [vmem:[%s4567_s28 + $0x130] sm:$0xff]   ;;  %v273_v23 = vld [vmem:[%s4567_s28 + $0x138] sm:$0xff]  }
  0x1c   : > { %258 = vst [vmem:[%s4575_s29 + $0x98] sm:$0xff] %v257_v19   ;;  %262 = vst [vmem:[%s4575_s29 + $0xa0] sm:$0xff] %v261_v20   ;;  %v277_v24 = vld [vmem:[%s4567_s28 + $0x140] sm:$0xff]   ;;  %v281_v25 = vld [vmem:[%s4567_s28 + $0x148] sm:$0xff]  }
  0x1d   : > { %266 = vst [vmem:[%s4575_s29 + $0xa8] sm:$0xff] %v265_v21   ;;  %270 = vst [vmem:[%s4575_s29 + $0xb0] sm:$0xff] %v269_v22   ;;  %v285_v26 = vld [vmem:[%s4567_s28 + $0x150] sm:$0xff]   ;;  %v289_v27 = vld [vmem:[%s4567_s28 + $0x158] sm:$0xff]  }
  0x1e   : > { %274 = vst [vmem:[%s4575_s29 + $0xb8] sm:$0xff] %v273_v23   ;;  %278 = vst [vmem:[%s4575_s29 + $0xc0] sm:$0xff] %v277_v24   ;;  %v293_v28 = vld [vmem:[%s4567_s28 + $0x160] sm:$0xff]   ;;  %v297_v29 = vld [vmem:[%s4567_s28 + $0x168] sm:$0xff]  }
  0x1f   : > { %282 = vst [vmem:[%s4575_s29 + $0xc8] sm:$0xff] %v281_v25   ;;  %286 = vst [vmem:[%s4575_s29 + $0xd0] sm:$0xff] %v285_v26   ;;  %v301_v30 = vld [vmem:[%s4567_s28 + $0x170] sm:$0xff]   ;;  %v305_v31 = vld [vmem:[%s4567_s28 + $0x178] sm:$0xff]  }
  0x20   : > { %290 = vst [vmem:[%s4575_s29 + $0xd8] sm:$0xff] %v289_v27   ;;  %294 = vst [vmem:[%s4575_s29 + $0xe0] sm:$0xff] %v293_v28   ;;  %v309_v32 = vld [vmem:[%s4567_s28 + $0x200] sm:$0xff]   ;;  %v313_v33 = vld [vmem:[%s4567_s28 + $0x208] sm:$0xff]  }
  0x21   : > { %298 = vst [vmem:[%s4575_s29 + $0xe8] sm:$0xff] %v297_v29   ;;  %302 = vst [vmem:[%s4575_s29 + $0xf0] sm:$0xff] %v301_v30   ;;  %v317_v34 = vld [vmem:[%s4567_s28 + $0x210] sm:$0xff]   ;;  %v321_v35 = vld [vmem:[%s4567_s28 + $0x218] sm:$0xff]  }
  0x22   : > { %306 = vst [vmem:[%s4575_s29 + $0xf8] sm:$0xff] %v305_v31   ;;  %310 = vst [vmem:[%s4575_s29 + $0x100] sm:$0xff] %v309_v32   ;;  %v325_v36 = vld [vmem:[%s4567_s28 + $0x220] sm:$0xff]   ;;  %v329_v37 = vld [vmem:[%s4567_s28 + $0x228] sm:$0xff]  }
  0x23   : > { %314 = vst [vmem:[%s4575_s29 + $0x108] sm:$0xff] %v313_v33   ;;  %318 = vst [vmem:[%s4575_s29 + $0x110] sm:$0xff] %v317_v34   ;;  %v333_v38 = vld [vmem:[%s4567_s28 + $0x230] sm:$0xff]   ;;  %v337_v39 = vld [vmem:[%s4567_s28 + $0x238] sm:$0xff]  }
  0x24   : > { %322 = vst [vmem:[%s4575_s29 + $0x118] sm:$0xff] %v321_v35   ;;  %326 = vst [vmem:[%s4575_s29 + $0x120] sm:$0xff] %v325_v36   ;;  %v341_v40 = vld [vmem:[%s4567_s28 + $0x240] sm:$0xff]   ;;  %v345_v41 = vld [vmem:[%s4567_s28 + $0x248] sm:$0xff]  }
  0x25   : > { %330 = vst [vmem:[%s4575_s29 + $0x128] sm:$0xff] %v329_v37   ;;  %334 = vst [vmem:[%s4575_s29 + $0x130] sm:$0xff] %v333_v38   ;;  %v349_v42 = vld [vmem:[%s4567_s28 + $0x250] sm:$0xff]   ;;  %v353_v43 = vld [vmem:[%s4567_s28 + $0x258] sm:$0xff]  }
  0x26   : > { %338 = vst [vmem:[%s4575_s29 + $0x138] sm:$0xff] %v337_v39   ;;  %342 = vst [vmem:[%s4575_s29 + $0x140] sm:$0xff] %v341_v40   ;;  %v357_v44 = vld [vmem:[%s4567_s28 + $0x260] sm:$0xff]   ;;  %v361_v45 = vld [vmem:[%s4567_s28 + $0x268] sm:$0xff]  }
  0x27   : > { %346 = vst [vmem:[%s4575_s29 + $0x148] sm:$0xff] %v345_v41   ;;  %350 = vst [vmem:[%s4575_s29 + $0x150] sm:$0xff] %v349_v42   ;;  %v365_v46 = vld [vmem:[%s4567_s28 + $0x270] sm:$0xff]   ;;  %v369_v47 = vld [vmem:[%s4567_s28 + $0x278] sm:$0xff]  }
  0x28   : > { %354 = vst [vmem:[%s4575_s29 + $0x158] sm:$0xff] %v353_v43   ;;  %358 = vst [vmem:[%s4575_s29 + $0x160] sm:$0xff] %v357_v44   ;;  %v373_v48 = vld [vmem:[%s4567_s28 + $0x300] sm:$0xff]   ;;  %v377_v49 = vld [vmem:[%s4567_s28 + $0x308] sm:$0xff]  }
  0x29   : > { %362 = vst [vmem:[%s4575_s29 + $0x168] sm:$0xff] %v361_v45   ;;  %366 = vst [vmem:[%s4575_s29 + $0x170] sm:$0xff] %v365_v46   ;;  %v381_v50 = vld [vmem:[%s4567_s28 + $0x310] sm:$0xff]   ;;  %v385_v51 = vld [vmem:[%s4567_s28 + $0x318] sm:$0xff]  }
  0x2a   : > { %370 = vst [vmem:[%s4575_s29 + $0x178] sm:$0xff] %v369_v47   ;;  %374 = vst [vmem:[%s4575_s29 + $0x180] sm:$0xff] %v373_v48   ;;  %v389_v52 = vld [vmem:[%s4567_s28 + $0x320] sm:$0xff]   ;;  %v393_v53 = vld [vmem:[%s4567_s28 + $0x328] sm:$0xff]  }
  0x2b   : > { %378 = vst [vmem:[%s4575_s29 + $0x188] sm:$0xff] %v377_v49   ;;  %382 = vst [vmem:[%s4575_s29 + $0x190] sm:$0xff] %v381_v50   ;;  %v397_v54 = vld [vmem:[%s4567_s28 + $0x330] sm:$0xff]   ;;  %v401_v55 = vld [vmem:[%s4567_s28 + $0x338] sm:$0xff]  }
  0x2c   : > { %386 = vst [vmem:[%s4575_s29 + $0x198] sm:$0xff] %v385_v51   ;;  %390 = vst [vmem:[%s4575_s29 + $0x1a0] sm:$0xff] %v389_v52   ;;  %v405_v56 = vld [vmem:[%s4567_s28 + $0x340] sm:$0xff]   ;;  %v409_v57 = vld [vmem:[%s4567_s28 + $0x348] sm:$0xff]  }
  0x2d   : > { %394 = vst [vmem:[%s4575_s29 + $0x1a8] sm:$0xff] %v393_v53   ;;  %398 = vst [vmem:[%s4575_s29 + $0x1b0] sm:$0xff] %v397_v54   ;;  %v413_v58 = vld [vmem:[%s4567_s28 + $0x350] sm:$0xff]   ;;  %v417_v59 = vld [vmem:[%s4567_s28 + $0x358] sm:$0xff]  }
  0x2e   : > { %402 = vst [vmem:[%s4575_s29 + $0x1b8] sm:$0xff] %v401_v55   ;;  %406 = vst [vmem:[%s4575_s29 + $0x1c0] sm:$0xff] %v405_v56   ;;  %v421_v60 = vld [vmem:[%s4567_s28 + $0x360] sm:$0xff]   ;;  %v425_v61 = vld [vmem:[%s4567_s28 + $0x368] sm:$0xff]  }
  0x2f   : > { %410 = vst [vmem:[%s4575_s29 + $0x1c8] sm:$0xff] %v409_v57   ;;  %414 = vst [vmem:[%s4575_s29 + $0x1d0] sm:$0xff] %v413_v58   ;;  %v429_v62 = vld [vmem:[%s4567_s28 + $0x370] sm:$0xff]   ;;  %v433_v63 = vld [vmem:[%s4567_s28 + $0x378] sm:$0xff]  }
  0x30   : > { %418 = vst [vmem:[%s4575_s29 + $0x1d8] sm:$0xff] %v417_v59   ;;  %422 = vst [vmem:[%s4575_s29 + $0x1e0] sm:$0xff] %v421_v60   ;;  %v437_v0 = vld [vmem:[%s4567_s28 + $0x400] sm:$0xff]   ;;  %v441_v1 = vld [vmem:[%s4567_s28 + $0x408] sm:$0xff]  }
  0x31   : > { %426 = vst [vmem:[%s4575_s29 + $0x1e8] sm:$0xff] %v425_v61   ;;  %430 = vst [vmem:[%s4575_s29 + $0x1f0] sm:$0xff] %v429_v62   ;;  %v445_v2 = vld [vmem:[%s4567_s28 + $0x410] sm:$0xff]   ;;  %v449_v3 = vld [vmem:[%s4567_s28 + $0x418] sm:$0xff]  }
  0x32   : > { %434 = vst [vmem:[%s4575_s29 + $0x1f8] sm:$0xff] %v433_v63   ;;  %438 = vst [vmem:[%s4575_s29 + $0x200] sm:$0xff] %v437_v0   ;;  %v453_v4 = vld [vmem:[%s4567_s28 + $0x420] sm:$0xff]   ;;  %v457_v5 = vld [vmem:[%s4567_s28 + $0x428] sm:$0xff]  }
  0x33   : > { %442 = vst [vmem:[%s4575_s29 + $0x208] sm:$0xff] %v441_v1   ;;  %446 = vst [vmem:[%s4575_s29 + $0x210] sm:$0xff] %v445_v2   ;;  %v461_v6 = vld [vmem:[%s4567_s28 + $0x430] sm:$0xff]   ;;  %v465_v7 = vld [vmem:[%s4567_s28 + $0x438] sm:$0xff]  }
  0x34   : > { %450 = vst [vmem:[%s4575_s29 + $0x218] sm:$0xff] %v449_v3   ;;  %454 = vst [vmem:[%s4575_s29 + $0x220] sm:$0xff] %v453_v4   ;;  %v469_v8 = vld [vmem:[%s4567_s28 + $0x440] sm:$0xff]   ;;  %v473_v9 = vld [vmem:[%s4567_s28 + $0x448] sm:$0xff]  }
  0x35   : > { %458 = vst [vmem:[%s4575_s29 + $0x228] sm:$0xff] %v457_v5   ;;  %462 = vst [vmem:[%s4575_s29 + $0x230] sm:$0xff] %v461_v6   ;;  %v477_v10 = vld [vmem:[%s4567_s28 + $0x450] sm:$0xff]   ;;  %v481_v11 = vld [vmem:[%s4567_s28 + $0x458] sm:$0xff]  }
  0x36   : > { %466 = vst [vmem:[%s4575_s29 + $0x238] sm:$0xff] %v465_v7   ;;  %470 = vst [vmem:[%s4575_s29 + $0x240] sm:$0xff] %v469_v8   ;;  %v485_v12 = vld [vmem:[%s4567_s28 + $0x460] sm:$0xff]   ;;  %v489_v13 = vld [vmem:[%s4567_s28 + $0x468] sm:$0xff]  }
  0x37   : > { %474 = vst [vmem:[%s4575_s29 + $0x248] sm:$0xff] %v473_v9   ;;  %478 = vst [vmem:[%s4575_s29 + $0x250] sm:$0xff] %v477_v10   ;;  %v493_v14 = vld [vmem:[%s4567_s28 + $0x470] sm:$0xff]   ;;  %v497_v15 = vld [vmem:[%s4567_s28 + $0x478] sm:$0xff]  }
  0x38   : > { %482 = vst [vmem:[%s4575_s29 + $0x258] sm:$0xff] %v481_v11   ;;  %486 = vst [vmem:[%s4575_s29 + $0x260] sm:$0xff] %v485_v12  }
  0x39   : > { %490 = vst [vmem:[%s4575_s29 + $0x268] sm:$0xff] %v489_v13   ;;  %494 = vst [vmem:[%s4575_s29 + $0x270] sm:$0xff] %v493_v14  }
  0x3a   : > { %498 = vst [vmem:[%s4575_s29 + $0x278] sm:$0xff] %v497_v15  }
  0x3b PF: > { %p3318_p5 = scmp.ge.s32.totalorder %s4504_s17, 1  ;;  %p842_p6 = scmp.lt.s32.totalorder %s4504_s17, 3 }
  0x3d   : > { %p843_p7 = pnand %p3318_p5, %p842_p6 }
  0x3e   : > { %v4432_v16 = vld [vmem:[%s5598_s2 + $0x40] sm:$0xff] (!%p843_p7)   ;;  %v4434_v18 = vld [vmem:[%s5598_s2 + $0x48] sm:$0xff] (!%p843_p7)   ;;  %v4436_v20 = vld [vmem:[%s5598_s2 + $0x50] sm:$0xff] (!%p843_p7)   ;;  %s849_s20 = sand.u32 (!%p843_p7), 1, %s4496_s15   ;;  %p885_p9 = scmp.lt.s32.totalorder (!%p843_p7), %s4547_s18, 1  ;;  %vm3216_vm0 = vcmask (!%p843_p7), 1040384  }
  0x3f   : > { %846 = sbr.rel (%p843_p7) target bundleno = 572 (0x23c), region = 69  ;;  %v4739_v17 = vld [vmem:[%s5598_s2 + $0x80] sm:$0xff] (!%p843_p7)   ;;  %4022 = vmatprep.subr.bf16.mxu1 (!%p843_p7), %v4432_v16  ;;  %v4435_v19 = vld [vmem:[%s5598_s2 + $0x88] sm:$0xff] (!%p843_p7)   ;;  %v4437_v21 = vld [vmem:[%s5598_s2 + $0x90] sm:$0xff] (!%p843_p7)  }
  0x40   : > { %4118 = vmatprep.subr.bf16.mxu0 (!%p843_p7), %v4739_v17  ;;  %4023 = vmatpush3.bf16.msra.mxu1 (!%p843_p7), %v4432_v16  ;;  %v4438_v22 = vld [vmem:[%s5598_s2 + $0x58] sm:$0xff] (!%p843_p7)   ;;  %s4407_s26 = smul.u32 (!%p843_p7), 640, %s849_s20  ;;  %v4440_v24 = vld [vmem:[%s5598_s2 + $0x60] sm:$0xff] (!%p843_p7)   ;;  %v4442_v26 = vld [vmem:[%s5598_s2 + $0x68] sm:$0xff] (!%p843_p7)  }
  0x41   : > { %4119 = vmatpush3.bf16.msra.mxu0 (!%p843_p7), %v4739_v17  ;;  %4024 = vmatprep.subr.bf16.mxu1 (!%p843_p7), %v4434_v18  ;;  %v4439_v23 = vld [vmem:[%s5598_s2 + $0x98] sm:$0xff] (!%p843_p7)   ;;  %v4441_v25 = vld [vmem:[%s5598_s2 + $0xa0] sm:$0xff] (!%p843_p7)   ;;  %v4443_v27 = vld [vmem:[%s5598_s2 + $0xa8] sm:$0xff] (!%p843_p7)  }
  0x42   : > { %4120 = vmatprep.subr.bf16.mxu0 (!%p843_p7), %v4435_v19  ;;  %s4774_s8 = scalar_lea.vmem (!%p843_p7), [#allocation2], %s4407_s26  ;;  %v4780_v29 = vld [vmem:[%s5597_s1 + $0x1] ss:$0 sm:$0xff] (!%p843_p7)  ;;  %v4785_v32 = vld [vmem:[%s5597_s1 + $0x6] ss:$0 sm:$0xff] (!%p843_p7)  ;;  %v4444_v44 = vld [vmem:[%s5598_s2 + $0x70] sm:$0xff] (!%p843_p7)  }
  0x43   : > { %v3838_v28 = vld [vmem:[%s4774_s8 + $0x80] sm:$0xff] (!%p843_p7)   ;;  %v3839_v37 = vld [vmem:[%s4774_s8 + $0x88] sm:$0xff] (!%p843_p7)   ;;  %v4445_v49 = vld [vmem:[%s5598_s2 + $0xb0] sm:$0xff] (!%p843_p7)  }
  0x44   : > { %4025 = vmatpush3.bf16.msra.mxu1 (!%p843_p7), %v4434_v18  ;;  %v3569_v30 = vunpack.c.l.bf16 (!%p843_p7), %v3838_v28  ;;  %v3570_v31 = vunpack.c.h.bf16 (!%p843_p7), %v3838_v28  ;;  %v3854_v33 = vld [vmem:[%s4774_s8 + $0x100] sm:$0xff] (!%p843_p7)   ;;  %v3573_v41 = vunpack.c.l.bf16 (!%p843_p7), %v3839_v37  ;;  %v3574_v42 = vunpack.c.h.bf16 (!%p843_p7), %v3839_v37  ;;  %v3855_v43 = vld [vmem:[%s4774_s8 + $0x108] sm:$0xff] (!%p843_p7)   ;;  %v3840_v58 = vld [vmem:[%s4774_s8 + $0x90] sm:$0xff] (!%p843_p7)  }
  0x45   : > { %4121 = vmatpush3.bf16.msra.mxu0 (!%p843_p7), %v4435_v19  ;;  %4026 = vmatprep.subr.bf16.mxu1 (!%p843_p7), %v4436_v20  ;;  %v4791_v34 = vld [vmem:[%s5597_s1 + $0x2] ss:$0 sm:$0xff] (!%p843_p7)  ;;  %v3633_v35 = vunpack.c.l.bf16 (!%p843_p7), %v3854_v33  ;;  %v3634_v36 = vunpack.c.h.bf16 (!%p843_p7), %v3854_v33  ;;  %v4799_v40 = vld [vmem:[%s5597_s1 + $0x7] ss:$0 sm:$0xff] (!%p843_p7)  ;;  %v3637_v47 = vunpack.c.l.bf16 (!%p843_p7), %v3855_v43  ;;  %v3638_v48 = vunpack.c.h.bf16 (!%p843_p7), %v3855_v43  ;;  %v4446_v59 = vld [vmem:[%s5598_s2 + $0x78] sm:$0xff] (!%p843_p7)  }
  0x46   : > { %4122 = vmatprep.subr.bf16.mxu0 %v4437_v21  ;;  %v1162_v38 = vmul.f32 %v3569_v30, %v4780_v29  ;;  %v1163_v39 = vmul.f32 %v3570_v31, %v4780_v29  ;;  %v1164_v52 = vmul.f32 %v3573_v41, %v4780_v29  ;;  %v1165_v53 = vmul.f32 %v3574_v42, %v4780_v29  ;;  %v3856_v0 = vld [vmem:[%s4774_s8 + $0x110] sm:$0xff]   ;;  %v4447_v5 = vld [vmem:[%s5598_s2 + $0xb8] sm:$0xff]  }
  0x47   : > { %v1783_v45 = vmul.f32 %v3633_v35, %v4791_v34  ;;  %v1784_v46 = vmul.f32 %v3634_v36, %v4791_v34  ;;  %v1785_v56 = vmul.f32 %v3637_v47, %v4791_v34  ;;  %v1786_v57 = vmul.f32 %v3638_v48, %v4791_v34  ;;  %v3841_v10 = vld [vmem:[%s4774_s8 + $0x98] sm:$0xff]  }
  0x48   : > { %4027 = vmatpush3.bf16.msra.mxu1 %v4436_v20  ;;  %v1199_v50 = vadd.f32 %v4785_v32, %v1162_v38  ;;  %v1200_v51 = vadd.f32 %v4785_v32, %v1163_v39  ;;  %v1201_v62 = vadd.f32 %v4785_v32, %v1164_v52  ;;  %v1202_v63 = vadd.f32 %v4785_v32, %v1165_v53  ;;  %v3857_v15 = vld [vmem:[%s4774_s8 + $0x118] sm:$0xff]   ;;  %v3842_v38 = vld [vmem:[%s4774_s8 + $0xa0] sm:$0xff]  }
  0x49   : > { %4123 = vmatpush3.bf16.msra.mxu0 %v4437_v21  ;;  %4028 = vmatprep.subr.bf16.mxu1 %v4438_v22  ;;  %v1820_v54 = vadd.f32 %v4799_v40, %v1783_v45  ;;  %v1821_v55 = vadd.f32 %v4799_v40, %v1784_v46  ;;  %v1822_v3 = vadd.f32 %v4799_v40, %v1785_v56  ;;  %v3577_v9 = vunpack.c.l.bf16 %v3840_v58  ;;  %v4448_v21 = vld [vmem:[%s5598_s2] sm:$0xff]  }
  0x4a   : > { %4124 = vmatprep.subr.bf16.mxu0 %v4439_v23  ;;  %v1231_v60 = vmax.f32 %v1199_v50, 0.0  ;;  %v1232_v61 = vmax.f32 %v1200_v51, 0.0  ;;  %v1823_v4 = vadd.f32 %v4799_v40, %v1786_v57  ;;  %v1233_v7 = vmax.f32 %v1201_v62, 0.0  ;;  %v4451_v57 = vld [vmem:[%s5598_s2 + $0x8] sm:$0xff]  }
  0x4b   : > { %v1852_v1 = vmax.f32 %v1820_v54, 0.0  ;;  %v1853_v2 = vmax.f32 %v1821_v55, 0.0  ;;  %v1234_v8 = vmax.f32 %v1202_v63, 0.0  ;;  %v1854_v12 = vmax.f32 %v1822_v3, 0.0 }
  0x4c   : > { %4029 = vmatpush3.bf16.msra.mxu1 %v4438_v22  ;;  %v1263_v6 = vpack.c.bf16 %v1232_v61, %v1231_v60  ;;  %v1855_v13 = vmax.f32 %v1823_v4, 0.0  ;;  %v3578_v14 = vunpack.c.h.bf16 %v3840_v58  ;;  %v1166_v18 = vmul.f32 %v3577_v9, %v4780_v29 }
  0x4d   : > { %4125 = vmatpush3.bf16.msra.mxu0 %v4439_v23  ;;  %4030 = vmatprep.subr.bf16.mxu1 %v4440_v24  ;;  %v1884_v11 = vpack.c.bf16 %v1853_v2, %v1852_v1  ;;  %v1264_v16 = vpack.c.bf16 %v1234_v8, %v1233_v7  ;;  %v3641_v19 = vunpack.c.l.bf16 %v3856_v0  ;;  %v3642_v20 = vunpack.c.h.bf16 %v3856_v0  ;;  %v3859_v0 = vld [vmem:[%s4774_s8 + $0x128] sm:$0xff]  }
  0x4e   : > { %4126 = vmatprep.subr.bf16.mxu0 %v4441_v25  ;;  %4038 = vmatprep.mubr.bf16.mxu1 %v1263_v6  ;;  %v1885_v22 = vpack.c.bf16 %v1855_v13, %v1854_v12  ;;  %v1167_v23 = vmul.f32 %v3578_v14, %v4780_v29  ;;  %v3645_v31 = vunpack.c.l.bf16 %v3857_v15  ;;  %v3646_v37 = vunpack.c.h.bf16 %v3857_v15  ;;  %v4452_v6 = vld [vmem:[%s5598_s2 + $0xd0] sm:$0xff]  }
  0x4f   : > { %4134 = vmatprep.mubr.bf16.mxu0 %v1884_v11  ;;  %v1787_v28 = vmul.f32 %v3641_v19, %v4791_v34  ;;  %v1788_v30 = vmul.f32 %v3642_v20, %v4791_v34  ;;  %v3585_v53 = vunpack.c.l.bf16 %v3842_v38  ;;  %v3586_v62 = vunpack.c.h.bf16 %v3842_v38  ;;  %v3844_v15 = vld [vmem:[%s4774_s8 + $0xb0] sm:$0xff]  }
  0x50   : > { %4031 = vmatpush3.bf16.msra.mxu1 %v4440_v24  ;;  %v3581_v24 = vunpack.c.l.bf16 %v3841_v10  ;;  %v1204_v33 = vadd.f32 %v4785_v32, %v1167_v23  ;;  %v1789_v43 = vmul.f32 %v3645_v31, %v4791_v34  ;;  %v1790_v48 = vmul.f32 %v3646_v37, %v4791_v34  ;;  %v3860_v38 = vld [vmem:[%s4774_s8 + $0x130] sm:$0xff]  }
  0x51   : > { %4127 = vmatpush3.bf16.msra.mxu0 %v4441_v25  ;;  %4032 = vmatprep.subr.bf16.mxu1 %v4442_v26  ;;  %v3582_v25 = vunpack.c.h.bf16 %v3841_v10  ;;  %v1824_v41 = vadd.f32 %v4799_v40, %v1787_v28  ;;  %v1825_v42 = vadd.f32 %v4799_v40, %v1788_v30  ;;  %v1170_v63 = vmul.f32 %v3585_v53, %v4780_v29 }
  0x52   : > { %4128 = vmatprep.subr.bf16.mxu0 %v4443_v27  ;;  %v1168_v35 = vmul.f32 %v3581_v24, %v4780_v29  ;;  %v1236_v45 = vmax.f32 %v1204_v33, 0.0  ;;  %v1826_v52 = vadd.f32 %v4799_v40, %v1789_v43  ;;  %v1827_v58 = vadd.f32 %v4799_v40, %v1790_v48 }
  0x53   : > { %v1169_v36 = vmul.f32 %v3582_v25, %v4780_v29  ;;  %v1856_v50 = vmax.f32 %v1824_v41, 0.0  ;;  %v1857_v51 = vmax.f32 %v1825_v42, 0.0  ;;  %v1171_v7 = vmul.f32 %v3586_v62, %v4780_v29  ;;  %v4457_v25 = vld [vmem:[%s5598_s2 + $0x18] sm:$0xff]  }
  0x54   : > { %4033 = vmatpush3.bf16.msra.mxu1 %v4442_v26  ;;  %v4449_v26 = vld [vmem:[%s5598_s2 + $0xc0] sm:$0xff]   ;;  %v1205_v46 = vadd.f32 %v4785_v32, %v1168_v35  ;;  %v1858_v61 = vmax.f32 %v1826_v52, 0.0  ;;  %v1859_v2 = vmax.f32 %v1827_v58, 0.0  ;;  %v1207_v8 = vadd.f32 %v4785_v32, %v1170_v63 }
  0x55   : > { %4129 = vmatpush3.bf16.msra.mxu0 %v4443_v27  ;;  %4034 = vmatprep.subr.bf16.mxu1 %v4444_v44  ;;  %v1203_v27 = vadd.f32 %v4785_v32, %v1166_v18  ;;  %v1206_v47 = vadd.f32 %v4785_v32, %v1169_v36  ;;  %v1886_v60 = vpack.c.bf16 %v1857_v51, %v1856_v50  ;;  %v3653_v14 = vunpack.c.l.bf16 %v3859_v0  ;;  %v4460_v50 = vld [vmem:[%s5598_s2 + $0x20] sm:$0xff]  }
  0x56   : > { %4130 = vmatprep.subr.bf16.mxu0 %v4445_v49  ;;  %v1237_v55 = vmax.f32 %v1205_v46, 0.0  ;;  %v1887_v11 = vpack.c.bf16 %v1859_v2, %v1858_v61  ;;  %v1239_v18 = vmax.f32 %v1207_v8, 0.0  ;;  %v3654_v23 = vunpack.c.h.bf16 %v3859_v0  ;;  %v4455_v52 = vld [vmem:[%s5598_s2 + $0xe0] sm:$0xff]  }
  0x57   : > { %v1235_v39 = vmax.f32 %v1203_v27, 0.0  ;;  %v1238_v56 = vmax.f32 %v1206_v47, 0.0  ;;  %v1793_v24 = vmul.f32 %v3653_v14, %v4791_v34  ;;  %v3593_v31 = vunpack.c.l.bf16 %v3844_v15  ;;  %v3846_v0 = vld [vmem:[%s4774_s8 + $0xc0] sm:$0xff]  }
  0x58   : > { %4035 = vmatpush3.bf16.msra.mxu1 %v4444_v44  ;;  %v4450_v44 = vld [vmem:[%s5598_s2 + $0xc8] sm:$0xff]   ;;  %v1794_v36 = vmul.f32 %v3654_v23, %v4791_v34  ;;  %v3594_v43 = vunpack.c.h.bf16 %v3844_v15  ;;  %v3601_v14 = vunpack.c.l.bf16 %v3846_v0  ;;  %v3870_v15 = vld [vmem:[%s4774_s8 + $0x180] sm:$0xff]  }
  0x59   : > { %4131 = vmatpush3.bf16.msra.mxu0 %v4445_v49  ;;  %4036 = vmatprep.subr.bf16.mxu1 %v4446_v59  ;;  %v3858_v49 = vld [vmem:[%s4774_s8 + $0x120] sm:$0xff]   ;;  %v1265_v54 = vpack.c.bf16 %v1236_v45, %v1235_v39  ;;  %v1266_v1 = vpack.c.bf16 %v1238_v56, %v1237_v55  ;;  %v1830_v37 = vadd.f32 %v4799_v40, %v1793_v24  ;;  %v3658_v55 = vunpack.c.h.bf16 %v3860_v38 }
  0x5a   : > { %4132 = vmatprep.subr.bf16.mxu0 %v4447_v5  ;;  %v3649_v3 = vunpack.c.l.bf16 %v3858_v49  ;;  %v3650_v4 = vunpack.c.h.bf16 %v3858_v49  ;;  %v1831_v46 = vadd.f32 %v4799_v40, %v1794_v36  ;;  %v1174_v48 = vmul.f32 %v3593_v31, %v4780_v29  ;;  %v3861_v49 = vld [vmem:[%s4774_s8 + $0x138] sm:$0xff]  }
  0x5b   : > { %v1862_v47 = vmax.f32 %v1830_v37, 0.0  ;;  %v1175_v53 = vmul.f32 %v3594_v43, %v4780_v29  ;;  %v1796_v62 = vmul.f32 %v3658_v55, %v4791_v34  ;;  %v3661_v63 = vunpack.c.l.bf16 %v3861_v49 }
  0x5c   : > { %4037 = vmatpush3.bf16.msra.mxu1 %v4446_v59  ;;  %v3843_v59 = vld [vmem:[%s4774_s8 + $0xa8] sm:$0xff]   ;;  %v1791_v12 = vmul.f32 %v3649_v3, %v4791_v34  ;;  %v1792_v13 = vmul.f32 %v3650_v4, %v4791_v34  ;;  %v1863_v56 = vmax.f32 %v1831_v46, 0.0  ;;  %v1178_v31 = vmul.f32 %v3601_v14, %v4780_v29 }
  0x5d   : > { %4133 = vmatpush3.bf16.msra.mxu0 %v4447_v5  ;;  %4070 = vmatprep.subr.bf16.mxu1 %v4448_v21  ;;  %v4454_v5 = vld [vmem:[%s5598_s2 + $0x10] sm:$0xff]   ;;  %v3589_v9 = vunpack.c.l.bf16 %v3843_v59  ;;  %v3590_v10 = vunpack.c.h.bf16 %v3843_v59 }
  0x5e   : > { %4166 = vmatprep.subr.bf16.mxu0 %v4449_v26 }
  0x5f   : > { %4039 = vmatmul.mubr.bf16.vlgmr.msra.gmra.mrb[0].mxu1 %v1264_v16  ;;  %v1208_v16 = vadd.f32 %v4785_v32, %v1171_v7  ;;  %v1172_v19 = vmul.f32 %v3589_v9, %v4780_v29  ;;  %v1173_v20 = vmul.f32 %v3590_v10, %v4780_v29  ;;  %v1833_v9 = vadd.f32 %v4799_v40, %v1796_v62 }
  0x60   : > { %4135 = vmatmul.mubr.bf16.vlgmr.msra.gmra.mrb[0].mxu0 %v1885_v22  ;;  %4071 = vmatpush3.bf16.msra.mxu1 %v4448_v21  ;;  %v1828_v21 = vadd.f32 %v4799_v40, %v1791_v12  ;;  %v1829_v22 = vadd.f32 %v4799_v40, %v1792_v13  ;;  %v3662_v10 = vunpack.c.h.bf16 %v3861_v49  ;;  %v1797_v13 = vmul.f32 %v3661_v63, %v4791_v34 }
  0x61   : > { %4167 = vmatpush3.bf16.msra.mxu0 %v4449_v26  ;;  %4042 = vmatprep.mubr.bf16.mxu1 %v1265_v54  ;;  %v4453_v26 = vld [vmem:[%s5598_s2 + $0xd8] sm:$0xff]   ;;  %v1240_v27 = vmax.f32 %v1208_v16, 0.0  ;;  %v1209_v28 = vadd.f32 %v4785_v32, %v1172_v19  ;;  %v1210_v30 = vadd.f32 %v4785_v32, %v1173_v20  ;;  %v3657_v54 = vunpack.c.l.bf16 %v3860_v38 }
  0x62   : > { %4168 = vmatprep.subr.bf16.mxu0 %v4450_v44  ;;  %4138 = vmatprep.mubr.bf16.mxu0 %v1886_v60  ;;  %v1860_v33 = vmax.f32 %v1828_v21, 0.0  ;;  %v1861_v35 = vmax.f32 %v1829_v22, 0.0  ;;  %v1212_v60 = vadd.f32 %v4785_v32, %v1175_v53  ;;  %v1865_v19 = vmax.f32 %v1833_v9, 0.0  ;;  %v4927_v21 = vld [vmem:[%s5597_s1 + $0x3] ss:$0 sm:$0xff] }
  0x63   : > { %4072 = vmatprep.subr.bf16.mxu1 %v4451_v57  ;;  %v1267_v39 = vpack.c.bf16 %v1240_v27, %v1239_v18  ;;  %v1241_v41 = vmax.f32 %v1209_v28, 0.0  ;;  %v1242_v42 = vmax.f32 %v1210_v30, 0.0  ;;  %v1795_v61 = vmul.f32 %v3657_v54, %v4791_v34  ;;  %v4464_v27 = vld [vmem:[%s5598_s2 + $0x30] sm:$0xff]  }
  0x64   : > { %4073 = vmatpush3.bf16.msra.mxu1 %v4451_v57  ;;  %v1888_v45 = vpack.c.bf16 %v1861_v35, %v1860_v33  ;;  %v1211_v57 = vadd.f32 %v4785_v32, %v1174_v48  ;;  %v1244_v7 = vmax.f32 %v1212_v60, 0.0  ;;  %v1798_v20 = vmul.f32 %v3662_v10, %v4791_v34  ;;  %v4458_v30 = vld [vmem:[%s5598_s2 + $0xf0] sm:$0xff]   ;;  %v3871_v35 = vld [vmem:[%s4774_s8 + $0x188] sm:$0xff]   ;;  %v3849_v10 = vld [vmem:[%s4774_s8 + $0xd8] sm:$0xff]  }
  0x65   : > { %4169 = vmatpush3.bf16.msra.mxu0 %v4450_v44  ;;  %4074 = vmatprep.subr.bf16.mxu1 %v4454_v5  ;;  %v3845_v44 = vld [vmem:[%s4774_s8 + $0xb8] sm:$0xff]   ;;  %v1268_v51 = vpack.c.bf16 %v1242_v42, %v1241_v41  ;;  %v1832_v8 = vadd.f32 %v4799_v40, %v1795_v61  ;;  %v1834_v24 = vadd.f32 %v4799_v40, %v1797_v13  ;;  %v3697_v33 = vunpack.c.l.bf16 %v3870_v15  ;;  %v4944_v41 = vld [vmem:[%s5597_s1 + $0x8] ss:$0 sm:$0xff] }
  0x66   : > { %4170 = vmatprep.subr.bf16.mxu0 %v4452_v6  ;;  %v3597_v58 = vunpack.c.l.bf16 %v3845_v44  ;;  %v3598_v59 = vunpack.c.h.bf16 %v3845_v44  ;;  %v1243_v2 = vmax.f32 %v1211_v57, 0.0  ;;  %v1835_v28 = vadd.f32 %v4799_v40, %v1798_v20  ;;  %v3873_v20 = vld [vmem:[%s4774_s8 + $0x198] sm:$0xff]  }
  0x67   : > { %4043 = vmatmul.mubr.bf16.gmra.mrb[4].mxu1 %v1266_v1  ;;  %v1889_v1 = vpack.c.bf16 %v1863_v56, %v1862_v47  ;;  %v1864_v18 = vmax.f32 %v1832_v8, 0.0  ;;  %v1866_v37 = vmax.f32 %v1834_v24, 0.0  ;;  %v1215_v42 = vadd.f32 %v4785_v32, %v1178_v31 }
  0x68   : > { %4139 = vmatmul.mubr.bf16.gmra.mrb[4].mxu0 %v1887_v11  ;;  %4075 = vmatpush3.bf16.msra.mxu1 %v4454_v5  ;;  %v1176_v3 = vmul.f32 %v3597_v58, %v4780_v29  ;;  %v1177_v4 = vmul.f32 %v3598_v59, %v4780_v29  ;;  %v4462_v5 = vld [vmem:[%s5598_s2 + $0x28] sm:$0xff]   ;;  %v1269_v16 = vpack.c.bf16 %v1244_v7, %v1243_v2  ;;  %v1867_v40 = vmax.f32 %v1835_v28, 0.0  ;;  %v4461_v7 = vld [vmem:[%s5598_s2 + $0x100] sm:$0xff]  }
  0x69   : > { %4171 = vmatpush3.bf16.msra.mxu0 %v4452_v6  ;;  %4076 = vmatprep.subr.bf16.mxu1 %v4457_v25  ;;  %v4456_v6 = vld [vmem:[%s5598_s2 + $0xe8] sm:$0xff]   ;;  %v1890_v34 = vpack.c.bf16 %v1865_v19, %v1864_v18  ;;  %v2227_v43 = vmul.f32 %v3697_v33, %v4927_v21  ;;  %v3701_v49 = vunpack.c.l.bf16 %v3871_v35  ;;  %v1247_v53 = vmax.f32 %v1215_v42, 0.0 }
  0x6a   : > { %4172 = vmatprep.subr.bf16.mxu0 %v4453_v26  ;;  %4046 = vmatprep.mubr.bf16.mxu1 %v1267_v39  ;;  %v1213_v11 = vadd.f32 %v4785_v32, %v1176_v3  ;;  %v1214_v12 = vadd.f32 %v4785_v32, %v1177_v4  ;;  %v3698_v39 = vunpack.c.h.bf16 %v3870_v15  ;;  %v3702_v59 = vunpack.c.h.bf16 %v3871_v35 }
  0x6b   : > { %4142 = vmatprep.mubr.bf16.mxu0 %v1888_v45  ;;  %v3848_v45 = vld [vmem:[%s4774_s8 + $0xd0] sm:$0xff]   ;;  %v2264_v54 = vadd.f32 %v4944_v41, %v2227_v43  ;;  %v2229_v62 = vmul.f32 %v3701_v49, %v4927_v21  ;;  %v3614_v28 = vunpack.c.h.bf16 %v3849_v10  ;;  %v3710_v42 = vunpack.c.h.bf16 %v3873_v20 }
  0x6c   : > { %4077 = vmatpush3.bf16.msra.mxu1 %v4457_v25  ;;  %v1245_v22 = vmax.f32 %v1213_v11, 0.0  ;;  %v1246_v23 = vmax.f32 %v1214_v12, 0.0  ;;  %v3602_v25 = vunpack.c.h.bf16 %v3846_v0  ;;  %v2228_v47 = vmul.f32 %v3698_v39, %v4927_v21  ;;  %v3872_v0 = vld [vmem:[%s4774_s8 + $0x190] sm:$0xff]  }
  0x6d   : > { %4173 = vmatpush3.bf16.msra.mxu0 %v4453_v26  ;;  %4078 = vmatprep.subr.bf16.mxu1 %v4460_v50  ;;  %v3847_v26 = vld [vmem:[%s4774_s8 + $0xc8] sm:$0xff]   ;;  %v2296_v60 = vmax.f32 %v2264_v54, 0.0  ;;  %v3609_v63 = vunpack.c.l.bf16 %v3848_v45  ;;  %v2230_v4 = vmul.f32 %v3702_v59, %v4927_v21  ;;  %v3610_v8 = vunpack.c.h.bf16 %v3848_v45 }
  0x6e   : > { %4174 = vmatprep.subr.bf16.mxu0 %v4455_v52  ;;  %v1270_v36 = vpack.c.bf16 %v1246_v23, %v1245_v22  ;;  %v1179_v38 = vmul.f32 %v3602_v25, %v4780_v29  ;;  %v3605_v44 = vunpack.c.l.bf16 %v3847_v26  ;;  %v3606_v48 = vunpack.c.h.bf16 %v3847_v26 }
  0x6f   : > { %4047 = vmatmul.mubr.bf16.gmra.mrb[8].mxu1 %v1268_v51  ;;  %v1891_v51 = vpack.c.bf16 %v1867_v40, %v1866_v37  ;;  %v2265_v57 = vadd.f32 %v4944_v41, %v2228_v47  ;;  %v1182_v9 = vmul.f32 %v3609_v63, %v4780_v29  ;;  %v2267_v13 = vadd.f32 %v4944_v41, %v2230_v4  ;;  %v4463_v37 = vld [vmem:[%s5598_s2 + $0x108] sm:$0xff]  }
  0x70   : > { %4143 = vmatmul.mubr.bf16.gmra.mrb[8].mxu0 %v1889_v1  ;;  %4079 = vmatpush3.bf16.msra.mxu1 %v4460_v50  ;;  %v1216_v46 = vadd.f32 %v4785_v32, %v1179_v38  ;;  %v4466_v50 = vld [vmem:[%s5598_s2 + $0x38] sm:$0xff]   ;;  %v1180_v55 = vmul.f32 %v3605_v44, %v4780_v29  ;;  %v1181_v58 = vmul.f32 %v3606_v48, %v4780_v29  ;;  %v3705_v14 = vunpack.c.l.bf16 %v3872_v0 }
  0x71   : > { %4175 = vmatpush3.bf16.msra.mxu0 %v4455_v52  ;;  %4080 = vmatprep.subr.bf16.mxu1 %v4462_v5  ;;  %v4459_v52 = vld [vmem:[%s5598_s2 + $0xf8] sm:$0xff]   ;;  %v2297_v2 = vmax.f32 %v2265_v57, 0.0  ;;  %v1219_v18 = vadd.f32 %v4785_v32, %v1182_v9  ;;  %v3706_v19 = vunpack.c.h.bf16 %v3872_v0  ;;  %v2299_v23 = vmax.f32 %v2267_v13, 0.0 }
  0x72   : > { %4176 = vmatprep.subr.bf16.mxu0 %v4456_v6  ;;  %4050 = vmatprep.mubr.bf16.mxu1 %v1269_v16  ;;  %v1248_v56 = vmax.f32 %v1216_v46, 0.0  ;;  %v1217_v61 = vadd.f32 %v4785_v32, %v1180_v55  ;;  %v1218_v3 = vadd.f32 %v4785_v32, %v1181_v58  ;;  %v1183_v16 = vmul.f32 %v3610_v8, %v4780_v29  ;;  %v3874_v46 = vld [vmem:[%s4774_s8 + $0x1a0] sm:$0xff]   ;;  %v3851_v55 = vld [vmem:[%s4774_s8 + $0xe8] sm:$0xff]  }
  0x73   : > { %4146 = vmatprep.mubr.bf16.mxu0 %v1890_v34  ;;  %v2328_v11 = vpack.c.bf16 %v2297_v2, %v2296_v60  ;;  %v2231_v24 = vmul.f32 %v3705_v14, %v4927_v21  ;;  %v3613_v25 = vunpack.c.l.bf16 %v3849_v10  ;;  %v2232_v34 = vmul.f32 %v3706_v19, %v4927_v21  ;;  %v3852_v10 = vld [vmem:[%s4774_s8 + $0xf0] sm:$0xff]  }
  0x74   : > { %4081 = vmatpush3.bf16.msra.mxu1 %v4462_v5  ;;  %v1271_v1 = vpack.c.bf16 %v1248_v56, %v1247_v53  ;;  %v1249_v5 = vmax.f32 %v1217_v61, 0.0  ;;  %v1250_v12 = vmax.f32 %v1218_v3, 0.0  ;;  %v1220_v26 = vadd.f32 %v4785_v32, %v1183_v16  ;;  %v4465_v56 = vld [vmem:[%s5598_s2 + $0x110] sm:$0xff]  }
  0x75   : > { %4177 = vmatpush3.bf16.msra.mxu0 %v4456_v6  ;;  %4082 = vmatprep.subr.bf16.mxu1 %v4464_v27  ;;  %v2266_v6 = vadd.f32 %v4944_v41, %v2229_v62  ;;  %v2268_v33 = vadd.f32 %v4944_v41, %v2231_v24  ;;  %v1184_v35 = vmul.f32 %v3613_v25, %v4780_v29  ;;  %v3713_v60 = vunpack.c.l.bf16 %v3874_v46 }
  0x76   : > { %4178 = vmatprep.subr.bf16.mxu0 %v4458_v30  ;;  %v1272_v22 = vpack.c.bf16 %v1250_v12, %v1249_v5  ;;  %v1252_v38 = vmax.f32 %v1220_v26, 0.0  ;;  %v2269_v39 = vadd.f32 %v4944_v41, %v2232_v34  ;;  %v1185_v40 = vmul.f32 %v3614_v28, %v4780_v29  ;;  %v3876_v26 = vld [vmem:[%s4774_s8 + $0x1b0] sm:$0xff]  }
  0x77   : > { %4051 = vmatmul.mubr.bf16.gmra.mrb[12].mxu1 %v1270_v36  ;;  %v2298_v15 = vmax.f32 %v2266_v6, 0.0  ;;  %v3709_v36 = vunpack.c.l.bf16 %v3873_v20  ;;  %v1221_v43 = vadd.f32 %v4785_v32, %v1184_v35  ;;  %v3714_v0 = vunpack.c.h.bf16 %v3874_v46 }
  0x78   : > { %4147 = vmatmul.mubr.bf16.gmra.mrb[12].mxu0 %v1891_v51  ;;  %4083 = vmatpush3.bf16.msra.mxu1 %v4464_v27  ;;  %v1251_v27 = vmax.f32 %v1219_v18, 0.0  ;;  %v2301_v48 = vmax.f32 %v2269_v39, 0.0  ;;  %v1222_v49 = vadd.f32 %v4785_v32, %v1185_v40  ;;  %v2235_v4 = vmul.f32 %v3713_v60, %v4927_v21 }
  0x79   : > { %4179 = vmatpush3.bf16.msra.mxu0 %v4458_v30  ;;  %4084 = vmatprep.subr.bf16.mxu1 %v4466_v50  ;;  %v3850_v30 = vld [vmem:[%s4774_s8 + $0xe0] sm:$0xff]   ;;  %v2329_v31 = vpack.c.bf16 %v2299_v23, %v2298_v15  ;;  %v2233_v44 = vmul.f32 %v3709_v36, %v4927_v21  ;;  %v1253_v51 = vmax.f32 %v1221_v43, 0.0  ;;  %v3621_v5 = vunpack.c.l.bf16 %v3851_v55  ;;  %v4467_v15 = vld [vmem:[%s5598_s2 + $0x118] sm:$0xff]  }
  0x7a   : > { %4180 = vmatprep.subr.bf16.mxu0 %v4459_v52  ;;  %4054 = vmatprep.mubr.bf16.mxu1 %v1271_v1  ;;  %v3617_v45 = vunpack.c.l.bf16 %v3850_v30  ;;  %v1273_v47 = vpack.c.bf16 %v1252_v38, %v1251_v27  ;;  %v3618_v53 = vunpack.c.h.bf16 %v3850_v30  ;;  %v1254_v58 = vmax.f32 %v1222_v49, 0.0  ;;  %v3875_v1 = vld [vmem:[%s4774_s8 + $0x1a8] sm:$0xff]   ;;  %v4468_v38 = vld [vmem:[%s5598_s2 + $0x120] sm:$0xff]  }
  0x7b   : > { %4182 = vmatprep.mubr.bf16.mxu0 %v2328_v11  ;;  %v2236_v8 = vmul.f32 %v3714_v0, %v4927_v21  ;;  %v3622_v9 = vunpack.c.h.bf16 %v3851_v55  ;;  %v2272_v12 = vadd.f32 %v4944_v41, %v2235_v4  ;;  %v1188_v13 = vmul.f32 %v3621_v5, %v4780_v29 }
  0x7c   : > { %4085 = vmatpush3.bf16.msra.mxu1 %v4466_v50  ;;  %v2234_v50 = vmul.f32 %v3710_v42, %v4927_v21  ;;  %v1186_v54 = vmul.f32 %v3617_v45, %v4780_v29  ;;  %v1187_v62 = vmul.f32 %v3618_v53, %v4780_v29  ;;  %v1274_v2 = vpack.c.bf16 %v1254_v58, %v1253_v51 }
  0x7d   : > { %4181 = vmatpush3.bf16.msra.mxu0 %v4459_v52  ;;  %4262 = vmatprep.subr.bf16.mxu1 %v4739_v17  ;;  %v2300_v17 = vmax.f32 %v2268_v33, 0.0  ;;  %v2270_v52 = vadd.f32 %v4944_v41, %v2233_v44  ;;  %v3717_v14 = vunpack.c.l.bf16 %v3875_v1  ;;  %v2273_v18 = vadd.f32 %v4944_v41, %v2236_v8 }
  0x7e   : > { %4214 = vmatprep.subr.bf16.mxu0 %v4461_v7  ;;  %v2271_v59 = vadd.f32 %v4944_v41, %v2234_v50  ;;  %v1223_v63 = vadd.f32 %v4785_v32, %v1186_v54  ;;  %v1224_v6 = vadd.f32 %v4785_v32, %v1187_v62  ;;  %v1189_v19 = vmul.f32 %v3622_v9, %v4780_v29 }
  0x7f   : > { %4055 = vmatmul.mubr.bf16.gmra.mrb[16].mxu1 %v1272_v22  ;;  %v2330_v57 = vpack.c.bf16 %v2301_v48, %v2300_v17  ;;  %v2302_v61 = vmax.f32 %v2270_v52, 0.0  ;;  %v3718_v20 = vunpack.c.h.bf16 %v3875_v1  ;;  %v2304_v22 = vmax.f32 %v2272_v12, 0.0 }
  0x80   : > { %4183 = vmatmul.mubr.bf16.vlgmr.msra.gmra.mrb[0].mxu0 %v2329_v31  ;;  %4058 = vmatprep.mubr.bf16.mxu1 %v1273_v47  ;;  %v2303_v3 = vmax.f32 %v2271_v59, 0.0  ;;  %v1256_v16 = vmax.f32 %v1224_v6, 0.0  ;;  %v1225_v23 = vadd.f32 %v4785_v32, %v1188_v13  ;;  %v2237_v24 = vmul.f32 %v3717_v14, %v4927_v21  ;;  %v3877_v47 = vld [vmem:[%s4774_s8 + $0x1b8] sm:$0xff]  }
  0x81   : > { %4215 = vmatpush3.bf16.msra.mxu0 %v4461_v7  ;;  %4186 = vmatprep.mubr.bf16.mxu0 %v2330_v57  ;;  %v1255_v7 = vmax.f32 %v1223_v63, 0.0  ;;  %v3625_v25 = vunpack.c.l.bf16 %v3852_v10  ;;  %v2305_v34 = vmax.f32 %v2273_v18, 0.0  ;;  %v1226_v28 = vadd.f32 %v4785_v32, %v1189_v19 }
  0x82   : > { %4216 = vmatprep.subr.bf16.mxu0 %v4463_v37  ;;  %v2331_v11 = vpack.c.bf16 %v2303_v3, %v2302_v61  ;;  %v2238_v30 = vmul.f32 %v3718_v20, %v4927_v21  ;;  %v1257_v31 = vmax.f32 %v1225_v23, 0.0  ;;  %v2274_v33 = vadd.f32 %v4944_v41, %v2237_v24  ;;  %v4469_v61 = vld [vmem:[%s5598_s2 + $0x128] sm:$0xff]  }
  0x83   : > { %v1275_v27 = vpack.c.bf16 %v1256_v16, %v1255_v7  ;;  %v3626_v35 = vunpack.c.h.bf16 %v3852_v10  ;;  %v1190_v36 = vmul.f32 %v3625_v25, %v4780_v29  ;;  %v2332_v39 = vpack.c.bf16 %v2305_v34, %v2304_v22  ;;  %v3878_v7 = vld [vmem:[%s4774_s8 + $0x1c0] sm:$0xff]   ;;  %v3823_v16 = vld [vmem:[%s4774_s8 + $0x8] sm:$0xff]  }
  0x84   : > { %v1258_v40 = vmax.f32 %v1226_v28, 0.0  ;;  %v2275_v42 = vadd.f32 %v4944_v41, %v2238_v30  ;;  %v3721_v17 = vunpack.c.l.bf16 %v3876_v26  ;;  %v2306_v43 = vmax.f32 %v2274_v33, 0.0 }
  0x85   : > { %4217 = vmatpush3.bf16.msra.mxu0 %v4463_v37  ;;  %v3853_v37 = vld [vmem:[%s4774_s8 + $0xf8] sm:$0xff]   ;;  %v1191_v44 = vmul.f32 %v3626_v35, %v4780_v29  ;;  %v1227_v45 = vadd.f32 %v4785_v32, %v1190_v36  ;;  %v3722_v46 = vunpack.c.h.bf16 %v3876_v26  ;;  %v3725_v60 = vunpack.c.l.bf16 %v3877_v47 }
  0x86   : > { %4218 = vmatprep.subr.bf16.mxu0 %v4465_v56  ;;  %v1276_v48 = vpack.c.bf16 %v1258_v40, %v1257_v31  ;;  %v2307_v49 = vmax.f32 %v2275_v42, 0.0  ;;  %v2239_v50 = vmul.f32 %v3721_v17, %v4927_v21  ;;  %v3629_v51 = vunpack.c.l.bf16 %v3853_v37 }
  0x87   : > { %4059 = vmatmul.mubr.bf16.gmra.mrb[20].mxu1 %v1274_v2  ;;  %v1228_v52 = vadd.f32 %v4785_v32, %v1191_v44  ;;  %v1259_v53 = vmax.f32 %v1227_v45, 0.0  ;;  %v2240_v54 = vmul.f32 %v3722_v46, %v4927_v21  ;;  %v3630_v55 = vunpack.c.h.bf16 %v3853_v37  ;;  %v5043_v2 = vld [vmem:[%s5597_s1] ss:$0 sm:$0xff] }
  0x88   : > { %4187 = vmatmul.mubr.bf16.gmra.mrb[4].mxu0 %v2331_v11  ;;  %4062 = vmatprep.mubr.bf16.mxu1 %v1275_v27  ;;  %v2333_v57 = vpack.c.bf16 %v2307_v49, %v2306_v43  ;;  %v2276_v58 = vadd.f32 %v4944_v41, %v2239_v50  ;;  %v1192_v59 = vmul.f32 %v3629_v51, %v4780_v29  ;;  %v3726_v1 = vunpack.c.h.bf16 %v3877_v47  ;;  %v5053_v11 = vld [vmem:[%s5597_s1 + $0x5] ss:$0 sm:$0xff]  ;;  %v3879_v27 = vld [vmem:[%s4774_s8 + $0x1c8] sm:$0xff]   ;;  %v4471_v43 = vld [vmem:[%s5598_s2 + $0x138] sm:$0xff]  }
  0x89   : > { %4219 = vmatpush3.bf16.msra.mxu0 %v4465_v56  ;;  %4190 = vmatprep.mubr.bf16.mxu0 %v2332_v39  ;;  %v3504_v56 = vld [vmem:[%s4774_s8] sm:$0xff]   ;;  %v1260_v62 = vmax.f32 %v1228_v52, 0.0  ;;  %v2277_v63 = vadd.f32 %v4944_v41, %v2240_v54  ;;  %v1193_v0 = vmul.f32 %v3630_v55, %v4780_v29  ;;  %v2241_v5 = vmul.f32 %v3725_v60, %v4927_v21  ;;  %v3880_v52 = vld [vmem:[%s4774_s8 + $0x1d0] sm:$0xff]  }
  0x8a   : > { %4220 = vmatprep.subr.bf16.mxu0 %v4467_v15  ;;  %v2308_v3 = vmax.f32 %v2276_v58, 0.0  ;;  %v1229_v4 = vadd.f32 %v4785_v32, %v1192_v59  ;;  %v3505_v6 = vunpack.c.l.bf16 %v3504_v56  ;;  %v2242_v29 = vmul.f32 %v3726_v1, %v4927_v21 }
  0x8b   : > { %v1277_v8 = vpack.c.bf16 %v1260_v62, %v1259_v53  ;;  %v2309_v9 = vmax.f32 %v2277_v63, 0.0  ;;  %v1230_v10 = vadd.f32 %v4785_v32, %v1193_v0  ;;  %v2278_v13 = vadd.f32 %v4944_v41, %v2241_v5  ;;  %v4470_v32 = vld [vmem:[%s5598_s2 + $0x130] sm:$0xff]  }
  0x8c   : > { %v1261_v12 = vmax.f32 %v1229_v4, 0.0  ;;  %v3506_v14 = vunpack.c.h.bf16 %v3504_v56  ;;  %v2279_v20 = vadd.f32 %v4944_v41, %v2242_v29  ;;  %v3729_v22 = vunpack.c.l.bf16 %v3878_v7 }
  0x8d   : > { %4221 = vmatpush3.bf16.msra.mxu0 %v4467_v15  ;;  %v959_v15 = vmul.f32 %v3505_v6, %v5043_v2  ;;  %v2334_v18 = vpack.c.bf16 %v2309_v9, %v2308_v3  ;;  %v1262_v19 = vmax.f32 %v1230_v10, 0.0  ;;  %v2310_v23 = vmax.f32 %v2278_v13, 0.0 }
  0x8e   : > { %4222 = vmatprep.subr.bf16.mxu0 %v4468_v38  ;;  %v960_v24 = vmul.f32 %v3506_v14, %v5043_v2  ;;  %v3730_v26 = vunpack.c.h.bf16 %v3878_v7  ;;  %v2311_v28 = vmax.f32 %v2279_v20, 0.0  ;;  %v2243_v30 = vmul.f32 %v3729_v22, %v4927_v21  ;;  %v3881_v7 = vld [vmem:[%s4774_s8 + $0x1d8] sm:$0xff]   ;;  %v4472_v22 = vld [vmem:[%s5598_s2 + $0x80] sm:$0xff]  }
  0x8f   : > { %4063 = vmatmul.mubr.bf16.gmra.mrb[24].mxu1 %v1276_v48  ;;  %v996_v25 = vadd.f32 %v5053_v11, %v959_v15  ;;  %v1278_v34 = vpack.c.bf16 %v1262_v19, %v1261_v12  ;;  %v3509_v31 = vunpack.c.l.bf16 %v3823_v16  ;;  %v3510_v37 = vunpack.c.h.bf16 %v3823_v16  ;;  %v3826_v16 = vld [vmem:[%s4774_s8 + $0x20] sm:$0xff]  }
  0x90   : > { %4191 = vmatmul.mubr.bf16.gmra.mrb[8].mxu0 %v2333_v57  ;;  %4066 = vmatprep.mubr.bf16.mxu1 %v1277_v8  ;;  %v997_v33 = vadd.f32 %v5053_v11, %v960_v24  ;;  %v2244_v36 = vmul.f32 %v3730_v26, %v4927_v21  ;;  %v2335_v39 = vpack.c.bf16 %v2311_v28, %v2310_v23  ;;  %v3733_v17 = vunpack.c.l.bf16 %v3879_v27  ;;  %v4473_v28 = vld [vmem:[%s5598_s2 + $0x88] sm:$0xff]  }
  0x91   : > { %4223 = vmatpush3.bf16.msra.mxu0 %v4468_v38  ;;  %4194 = vmatprep.mubr.bf16.mxu0 %v2334_v18  ;;  %v1028_v35 = vmax.f32 %v996_v25, 0.0  ;;  %v3824_v38 = vld [vmem:[%s4774_s8 + $0x10] sm:$0xff]   ;;  %v2280_v40 = vadd.f32 %v4944_v41, %v2243_v30  ;;  %v961_v42 = vmul.f32 %v3509_v31, %v5043_v2  ;;  %v962_v46 = vmul.f32 %v3510_v37, %v5043_v2 }
  0x92   : > { %4224 = vmatprep.subr.bf16.mxu0 %v4469_v61  ;;  %v1029_v44 = vmax.f32 %v997_v33, 0.0  ;;  %v2281_v45 = vadd.f32 %v4944_v41, %v2244_v36  ;;  %v3734_v47 = vunpack.c.h.bf16 %v3879_v27  ;;  %v2245_v50 = vmul.f32 %v3733_v17, %v4927_v21  ;;  %v3882_v33 = vld [vmem:[%s4774_s8 + $0x1e0] sm:$0xff]  }
  0x93   : > { %v2312_v48 = vmax.f32 %v2280_v40, 0.0  ;;  %v998_v49 = vadd.f32 %v5053_v11, %v961_v42  ;;  %v3513_v51 = vunpack.c.l.bf16 %v3824_v38  ;;  %v999_v55 = vadd.f32 %v5053_v11, %v962_v46 }
  0x94   : > { %v1060_v53 = vpack.c.bf16 %v1029_v44, %v1028_v35  ;;  %v2313_v54 = vmax.f32 %v2281_v45, 0.0  ;;  %v2246_v56 = vmul.f32 %v3734_v47, %v4927_v21  ;;  %v2282_v58 = vadd.f32 %v4944_v41, %v2245_v50 }
  0x95   : > { %4225 = vmatpush3.bf16.msra.mxu0 %v4469_v61  ;;  %v1030_v57 = vmax.f32 %v998_v49, 0.0  ;;  %v3514_v59 = vunpack.c.h.bf16 %v3824_v38  ;;  %v963_v60 = vmul.f32 %v3513_v51, %v5043_v2  ;;  %v3825_v61 = vld [vmem:[%s4774_s8 + $0x18] sm:$0xff]   ;;  %v1031_v63 = vmax.f32 %v999_v55, 0.0 }
  0x96   : > { %4226 = vmatprep.subr.bf16.mxu0 %v4470_v32  ;;  %v2336_v62 = vpack.c.bf16 %v2313_v54, %v2312_v48  ;;  %v2283_v0 = vadd.f32 %v4944_v41, %v2246_v56  ;;  %v3737_v1 = vunpack.c.l.bf16 %v3880_v52  ;;  %v2314_v3 = vmax.f32 %v2282_v58, 0.0 }
  0x97   : > { %4067 = vmatmul.mubr.bf16.gmra.mrb[28].mxu1 %v1278_v34  ;;  %v964_v4 = vmul.f32 %v3514_v59, %v5043_v2  ;;  %v1000_v5 = vadd.f32 %v5053_v11, %v963_v60  ;;  %v3738_v6 = vunpack.c.h.bf16 %v3880_v52  ;;  %v1061_v8 = vpack.c.bf16 %v1031_v63, %v1030_v57  ;;  %v4474_v52 = vld [vmem:[%s5598_s2 + $0x90] sm:$0xff]  }
  0x98   : > { %4195 = vmatmul.mubr.bf16.gmra.mrb[12].mxu0 %v2335_v39  ;;  %4086 = vmatprep.mubr.bf16.mxu1 %v1060_v53  ;;  %v2315_v9 = vmax.f32 %v2283_v0, 0.0  ;;  %v2247_v10 = vmul.f32 %v3737_v1, %v4927_v21  ;;  %v3517_v29 = vunpack.c.l.bf16 %v3825_v61  ;;  %v3518_v15 = vunpack.c.h.bf16 %v3825_v61  ;;  %v3883_v53 = vld [vmem:[%s4774_s8 + $0x1e8] sm:$0xff]  }
  0x99   : > { %4227 = vmatpush3.bf16.msra.mxu0 %v4470_v32  ;;  %4198 = vmatprep.mubr.bf16.mxu0 %v2336_v62  ;;  %v1001_v12 = vadd.f32 %v5053_v11, %v964_v4  ;;  %v1032_v13 = vmax.f32 %v1000_v5, 0.0  ;;  %v2248_v14 = vmul.f32 %v3738_v6, %v4927_v21  ;;  %v3741_v20 = vunpack.c.l.bf16 %v3881_v7  ;;  %v3828_v62 = vld [vmem:[%s4774_s8 + $0x30] sm:$0xff]  }
  0x9a   : > { %4228 = vmatprep.subr.bf16.mxu0 %v4471_v43  ;;  %v2337_v32 = vpack.c.bf16 %v2315_v9, %v2314_v3  ;;  %v2284_v18 = vadd.f32 %v4944_v41, %v2247_v10  ;;  %v965_v19 = vmul.f32 %v3517_v29, %v5043_v2  ;;  %v966_v25 = vmul.f32 %v3518_v15, %v5043_v2 }
  0x9b   : > { %v1033_v23 = vmax.f32 %v1001_v12, 0.0  ;;  %v2285_v24 = vadd.f32 %v4944_v41, %v2248_v14  ;;  %v3742_v26 = vunpack.c.h.bf16 %v3881_v7  ;;  %v2249_v30 = vmul.f32 %v3741_v20, %v4927_v21  ;;  %v3884_v12 = vld [vmem:[%s4774_s8 + $0x1f0] sm:$0xff]  }
  0x9c   : > { %v2316_v27 = vmax.f32 %v2284_v18, 0.0  ;;  %v1002_v34 = vadd.f32 %v5053_v11, %v965_v19  ;;  %v3521_v31 = vunpack.c.l.bf16 %v3826_v16  ;;  %v1003_v37 = vadd.f32 %v5053_v11, %v966_v25 }
  0x9d   : > { %4229 = vmatpush3.bf16.msra.mxu0 %v4471_v43  ;;  %v1062_v35 = vpack.c.bf16 %v1033_v23, %v1032_v13  ;;  %v2317_v36 = vmax.f32 %v2285_v24, 0.0  ;;  %v2250_v38 = vmul.f32 %v3742_v26, %v4927_v21  ;;  %v2286_v40 = vadd.f32 %v4944_v41, %v2249_v30  ;;  %v3827_v43 = vld [vmem:[%s4774_s8 + $0x28] sm:$0xff]   ;;  %v4475_v13 = vld [vmem:[%s5598_s2 + $0x98] sm:$0xff]  }
  0x9e   : > { %v1034_v39 = vmax.f32 %v1002_v34, 0.0  ;;  %v3522_v42 = vunpack.c.h.bf16 %v3826_v16  ;;  %v967_v17 = vmul.f32 %v3521_v31, %v5043_v2  ;;  %v1035_v45 = vmax.f32 %v1003_v37, 0.0  ;;  %v3829_v23 = vld [vmem:[%s4774_s8 + $0x38] sm:$0xff]  }
  0x9f   : > { %4087 = vmatmul.mubr.bf16.vlgmr.msra.gmra.mrb[0].mxu1 %v1061_v8  ;;  %v2338_v44 = vpack.c.bf16 %v2317_v36, %v2316_v27  ;;  %v2287_v46 = vadd.f32 %v4944_v41, %v2250_v38  ;;  %v3745_v47 = vunpack.c.l.bf16 %v3882_v33  ;;  %v2318_v48 = vmax.f32 %v2286_v40, 0.0 }
  0xa0   : > { %4270 = vmatpush3.bf16.msra.mxu1 %v4472_v22  ;;  %4199 = vmatmul.mubr.bf16.gmra.mrb[16].mxu0 %v2337_v32  ;;  %v968_v49 = vmul.f32 %v3522_v42, %v5043_v2  ;;  %v1004_v50 = vadd.f32 %v5053_v11, %v967_v17  ;;  %v3746_v51 = vunpack.c.h.bf16 %v3882_v33  ;;  %v1063_v54 = vpack.c.bf16 %v1035_v45, %v1034_v39  ;;  %v3885_v33 = vld [vmem:[%s4774_s8 + $0x1f8] sm:$0xff]  }
  0xa1   : > { %4263 = vmatprep.subr.bf16.mxu1 %v4473_v28  ;;  %4090 = vmatprep.mubr.bf16.mxu1 %v1062_v35  ;;  %v2319_v55 = vmax.f32 %v2287_v46, 0.0  ;;  %v2251_v56 = vmul.f32 %v3745_v47, %v4927_v21  ;;  %v3525_v57 = vunpack.c.l.bf16 %v3827_v43  ;;  %v3526_v61 = vunpack.c.h.bf16 %v3827_v43  ;;  %v4476_v35 = vld [vmem:[%s5598_s2 + $0xa0] sm:$0xff]  }
  0xa2   : > { %4202 = vmatprep.mubr.bf16.mxu0 %v2338_v44  ;;  %v1005_v58 = vadd.f32 %v5053_v11, %v968_v49  ;;  %v1036_v59 = vmax.f32 %v1004_v50, 0.0  ;;  %v2252_v60 = vmul.f32 %v3746_v51, %v4927_v21  ;;  %v3749_v3 = vunpack.c.l.bf16 %v3883_v53  ;;  %v3830_v44 = vld [vmem:[%s4774_s8 + $0x40] sm:$0xff]  }
  0xa3   : > { %v2339_v63 = vpack.c.bf16 %v2319_v55, %v2318_v48  ;;  %v2288_v0 = vadd.f32 %v4944_v41, %v2251_v56  ;;  %v969_v1 = vmul.f32 %v3525_v57, %v5043_v2  ;;  %v970_v6 = vmul.f32 %v3526_v61, %v5043_v2  ;;  %v3886_v57 = vld [vmem:[%s4774_s8 + $0x200] sm:$0xff]  }
  0xa4   : > { %4271 = vmatpush3.bf16.msra.mxu1 %v4473_v28  ;;  %v1037_v4 = vmax.f32 %v1005_v58, 0.0  ;;  %v2289_v5 = vadd.f32 %v4944_v41, %v2252_v60  ;;  %v3750_v7 = vunpack.c.h.bf16 %v3883_v53  ;;  %v2253_v10 = vmul.f32 %v3749_v3, %v4927_v21  ;;  %v4477_v58 = vld [vmem:[%s5598_s2 + $0xa8] sm:$0xff]  }
  0xa5   : > { %4264 = vmatprep.subr.bf16.mxu1 %v4474_v52  ;;  %v2320_v8 = vmax.f32 %v2288_v0, 0.0  ;;  %v1006_v9 = vadd.f32 %v5053_v11, %v969_v1  ;;  %v3529_v29 = vunpack.c.l.bf16 %v3828_v62  ;;  %v1007_v16 = vadd.f32 %v5053_v11, %v970_v6 }
  0xa6   : > { %v1064_v14 = vpack.c.bf16 %v1037_v4, %v1036_v59  ;;  %v2321_v15 = vmax.f32 %v2289_v5, 0.0  ;;  %v2254_v32 = vmul.f32 %v3750_v7, %v4927_v21  ;;  %v2290_v19 = vadd.f32 %v4944_v41, %v2253_v10  ;;  %v5164_v4 = vld [vmem:[%s5597_s1 + $0x4] ss:$0 sm:$0xff]  ;;  %v3831_v5 = vld [vmem:[%s4774_s8 + $0x48] sm:$0xff]  }
  0xa7   : > { %4091 = vmatmul.mubr.bf16.gmra.mrb[4].mxu1 %v1063_v54  ;;  %v1038_v18 = vmax.f32 %v1006_v9, 0.0  ;;  %v3530_v20 = vunpack.c.h.bf16 %v3828_v62  ;;  %v971_v22 = vmul.f32 %v3529_v29, %v5043_v2  ;;  %v1039_v25 = vmax.f32 %v1007_v16, 0.0 }
  0xa8   : > { %4272 = vmatpush3.bf16.msra.mxu1 %v4474_v52  ;;  %4203 = vmatmul.mubr.bf16.gmra.mrb[20].mxu0 %v2339_v63  ;;  %v2340_v24 = vpack.c.bf16 %v2321_v15, %v2320_v8  ;;  %v2291_v26 = vadd.f32 %v4944_v41, %v2254_v32  ;;  %v3753_v27 = vunpack.c.l.bf16 %v3884_v12  ;;  %v2322_v34 = vmax.f32 %v2290_v19, 0.0  ;;  %v4478_v15 = vld [vmem:[%s5598_s2 + $0xb0] sm:$0xff]  }
  0xa9   : > { %4265 = vmatprep.subr.bf16.mxu1 %v4475_v13  ;;  %4094 = vmatprep.mubr.bf16.mxu1 %v1064_v14  ;;  %v972_v28 = vmul.f32 %v3530_v20, %v5043_v2  ;;  %v1008_v30 = vadd.f32 %v5053_v11, %v971_v22  ;;  %v3754_v31 = vunpack.c.h.bf16 %v3884_v12  ;;  %v1065_v36 = vpack.c.bf16 %v1039_v25, %v1038_v18  ;;  %v3887_v14 = vld [vmem:[%s4774_s8 + $0x208] sm:$0xff]  }
  0xaa   : > { %4206 = vmatprep.mubr.bf16.mxu0 %v2340_v24  ;;  %v2323_v37 = vmax.f32 %v2291_v26, 0.0  ;;  %v2255_v38 = vmul.f32 %v3753_v27, %v4927_v21  ;;  %v3533_v39 = vunpack.c.l.bf16 %v3829_v23  ;;  %v3534_v43 = vunpack.c.h.bf16 %v3829_v23  ;;  %v3832_v24 = vld [vmem:[%s4774_s8 + $0x50] sm:$0xff]  }
  0xab   : > { %v1009_v40 = vadd.f32 %v5053_v11, %v972_v28  ;;  %v1040_v42 = vmax.f32 %v1008_v30, 0.0  ;;  %v2256_v17 = vmul.f32 %v3754_v31, %v4927_v21  ;;  %v3757_v48 = vunpack.c.l.bf16 %v3885_v33 }
  0xac   : > { %4273 = vmatpush3.bf16.msra.mxu1 %v4475_v13  ;;  %v2341_v45 = vpack.c.bf16 %v2323_v37, %v2322_v34  ;;  %v2292_v46 = vadd.f32 %v4944_v41, %v2255_v38  ;;  %v973_v47 = vmul.f32 %v3533_v39, %v5043_v2  ;;  %v974_v51 = vmul.f32 %v3534_v43, %v5043_v2  ;;  %v5173_v13 = vld [vmem:[%s5597_s1 + $0x9] ss:$0 sm:$0xff]  ;;  %v3888_v39 = vld [vmem:[%s4774_s8 + $0x210] sm:$0xff]  }
  0xad   : > { %4266 = vmatprep.subr.bf16.mxu1 %v4476_v35  ;;  %v1041_v49 = vmax.f32 %v1009_v40, 0.0  ;;  %v2293_v50 = vadd.f32 %v4944_v41, %v2256_v17  ;;  %v3758_v52 = vunpack.c.h.bf16 %v3885_v33  ;;  %v2257_v55 = vmul.f32 %v3757_v48, %v4927_v21  ;;  %v4479_v40 = vld [vmem:[%s5598_s2 + $0xb8] sm:$0xff]  }
  0xae   : > { %v2324_v53 = vmax.f32 %v2292_v46, 0.0  ;;  %v1010_v54 = vadd.f32 %v5053_v11, %v973_v47  ;;  %v3537_v56 = vunpack.c.l.bf16 %v3830_v44  ;;  %v1011_v61 = vadd.f32 %v5053_v11, %v974_v51 }
  0xaf   : > { %4095 = vmatmul.mubr.bf16.gmra.mrb[8].mxu1 %v1065_v36  ;;  %v1066_v59 = vpack.c.bf16 %v1041_v49, %v1040_v42  ;;  %v2325_v60 = vmax.f32 %v2293_v50, 0.0  ;;  %v2258_v62 = vmul.f32 %v3758_v52, %v4927_v21  ;;  %v2294_v0 = vadd.f32 %v4944_v41, %v2257_v55  ;;  %v3833_v49 = vld [vmem:[%s4774_s8 + $0x58] sm:$0xff]  }
  0xb0   : > { %4274 = vmatpush3.bf16.msra.mxu1 %v4476_v35  ;;  %4207 = vmatmul.mubr.bf16.gmra.mrb[24].mxu0 %v2341_v45  ;;  %v1042_v63 = vmax.f32 %v1010_v54, 0.0  ;;  %v3538_v1 = vunpack.c.h.bf16 %v3830_v44  ;;  %v975_v3 = vmul.f32 %v3537_v56, %v5043_v2  ;;  %v1043_v7 = vmax.f32 %v1011_v61, 0.0 }
  0xb1   : > { %4267 = vmatprep.subr.bf16.mxu1 %v4477_v58  ;;  %4098 = vmatprep.mubr.bf16.mxu1 %v1066_v59  ;;  %v2342_v6 = vpack.c.bf16 %v2325_v60, %v2324_v53  ;;  %v2295_v8 = vadd.f32 %v4944_v41, %v2258_v62  ;;  %v3761_v9 = vunpack.c.l.bf16 %v3886_v57  ;;  %v2326_v21 = vmax.f32 %v2294_v0, 0.0 }
  0xb2   : > { %v976_v10 = vmul.f32 %v3538_v1, %v5043_v2  ;;  %v1012_v29 = vadd.f32 %v5053_v11, %v975_v3  ;;  %v3762_v12 = vunpack.c.h.bf16 %v3886_v57  ;;  %v1067_v41 = vpack.c.bf16 %v1043_v7, %v1042_v63 }
  0xb3   : > { %4210 = vmatprep.mubr.bf16.mxu0 %v2342_v6  ;;  %v2327_v16 = vmax.f32 %v2295_v8, 0.0  ;;  %v2671_v32 = vmul.f32 %v3761_v9, %v5164_v4  ;;  %v3541_v18 = vunpack.c.l.bf16 %v3831_v5  ;;  %v3542_v23 = vunpack.c.h.bf16 %v3831_v5  ;;  %v3834_v5 = vld [vmem:[%s4774_s8 + $0x60] sm:$0xff]  }
  0xb4   : > { %4275 = vmatpush3.bf16.msra.mxu1 %v4477_v58  ;;  %v1013_v19 = vadd.f32 %v5053_v11, %v976_v10  ;;  %v1044_v20 = vmax.f32 %v1012_v29, 0.0  ;;  %v2672_v22 = vmul.f32 %v3762_v12, %v5164_v4  ;;  %v3765_v34 = vunpack.c.l.bf16 %v3887_v14  ;;  %v3889_v58 = vld [vmem:[%s4774_s8 + $0x218] sm:$0xff]  }
  0xb5   : > { %4268 = vmatprep.subr.bf16.mxu1 %v4478_v15  ;;  %v2343_v25 = vpack.c.bf16 %v2327_v16, %v2326_v21  ;;  %v2708_v26 = vadd.f32 %v5173_v13, %v2671_v32  ;;  %v977_v27 = vmul.f32 %v3541_v18, %v5043_v2  ;;  %v978_v31 = vmul.f32 %v3542_v23, %v5043_v2  ;;  %v3890_v32 = vld [vmem:[%s4774_s8 + $0x220] sm:$0xff]  }
  0xb6   : > { %v1045_v28 = vmax.f32 %v1013_v19, 0.0  ;;  %v2709_v30 = vadd.f32 %v5173_v13, %v2672_v22  ;;  %v3766_v33 = vunpack.c.h.bf16 %v3887_v14  ;;  %v2673_v37 = vmul.f32 %v3765_v34, %v5164_v4 }
  0xb7   : > { %4099 = vmatmul.mubr.bf16.gmra.mrb[12].mxu1 %v1067_v41  ;;  %v2740_v35 = vmax.f32 %v2708_v26, 0.0  ;;  %v1014_v36 = vadd.f32 %v5053_v11, %v977_v27  ;;  %v3545_v38 = vunpack.c.l.bf16 %v3832_v24  ;;  %v1015_v43 = vadd.f32 %v5053_v11, %v978_v31  ;;  %v3835_v27 = vld [vmem:[%s4774_s8 + $0x68] sm:$0xff]  }
  0xb8   : > { %4276 = vmatpush3.bf16.msra.mxu1 %v4478_v15  ;;  %4211 = vmatmul.mubr.bf16.gmra.mrb[28].mxu0 %v2343_v25  ;;  %v1068_v42 = vpack.c.bf16 %v1045_v28, %v1044_v20  ;;  %v2741_v17 = vmax.f32 %v2709_v30, 0.0  ;;  %v2674_v44 = vmul.f32 %v3766_v33, %v5164_v4  ;;  %v2710_v46 = vadd.f32 %v5173_v13, %v2673_v37 }
  0xb9   : > { %4269 = vmatprep.subr.bf16.mxu1 %v4479_v40  ;;  %v1046_v45 = vmax.f32 %v1014_v36, 0.0  ;;  %v3546_v47 = vunpack.c.h.bf16 %v3832_v24  ;;  %v979_v48 = vmul.f32 %v3545_v38, %v5043_v2  ;;  %v1047_v51 = vmax.f32 %v1015_v43, 0.0  ;;  %v3891_v38 = vld [vmem:[%s4774_s8 + $0x228] sm:$0xff]  }
  0xba   : > { %4102 = vmatprep.mubr.bf16.mxu1 %v1068_v42  ;;  %v2772_v50 = vpack.c.bf16 %v2741_v17, %v2740_v35  ;;  %v2711_v52 = vadd.f32 %v5173_v13, %v2674_v44  ;;  %v3769_v53 = vunpack.c.l.bf16 %v3888_v39  ;;  %v2742_v54 = vmax.f32 %v2710_v46, 0.0 }
  0xbb   : > { %v980_v55 = vmul.f32 %v3546_v47, %v5043_v2  ;;  %v1016_v56 = vadd.f32 %v5053_v11, %v979_v48  ;;  %v3770_v57 = vunpack.c.h.bf16 %v3888_v39  ;;  %v1069_v59 = vpack.c.bf16 %v1047_v51, %v1046_v45  ;;  %v3836_v47 = vld [vmem:[%s4774_s8 + $0x70] sm:$0xff]  }
  0xbc   : > { %4277 = vmatpush3.bf16.msra.mxu1 %v4479_v40  ;;  %4230 = vmatprep.mubr.bf16.mxu0 %v2772_v50  ;;  %v2743_v60 = vmax.f32 %v2711_v52, 0.0  ;;  %v2675_v61 = vmul.f32 %v3769_v53, %v5164_v4  ;;  %v3549_v62 = vunpack.c.l.bf16 %v3833_v49  ;;  %v3550_v3 = vunpack.c.h.bf16 %v3833_v49 }
  0xbd   : > { %v1017_v63 = vadd.f32 %v5053_v11, %v980_v55  ;;  %v1048_v0 = vmax.f32 %v1016_v56, 0.0  ;;  %v2676_v1 = vmul.f32 %v3770_v57, %v5164_v4  ;;  %v3773_v9 = vunpack.c.l.bf16 %v3889_v58 }
  0xbe   : > { %v2773_v6 = vpack.c.bf16 %v2743_v60, %v2742_v54  ;;  %v2712_v7 = vadd.f32 %v5173_v13, %v2675_v61  ;;  %v981_v8 = vmul.f32 %v3549_v62, %v5043_v2  ;;  %v982_v29 = vmul.f32 %v3550_v3, %v5043_v2  ;;  %v3892_v60 = vld [vmem:[%s4774_s8 + $0x230] sm:$0xff]  }
  0xbf   : > { %4103 = vmatmul.mubr.bf16.gmra.mrb[16].mxu1 %v1069_v59  ;;  %v1049_v21 = vmax.f32 %v1017_v63, 0.0  ;;  %v2713_v10 = vadd.f32 %v5173_v13, %v2676_v1  ;;  %v3774_v12 = vunpack.c.h.bf16 %v3889_v58  ;;  %v2677_v41 = vmul.f32 %v3773_v9, %v5164_v4 }
  0xc0   : > { %4231 = vmatmul.mubr.bf16.vlgmr.msra.gmra.mrb[0].mxu0 %v2773_v6  ;;  %v2744_v14 = vmax.f32 %v2712_v7, 0.0  ;;  %v1018_v15 = vadd.f32 %v5053_v11, %v981_v8  ;;  %v3553_v16 = vunpack.c.l.bf16 %v3834_v5  ;;  %v1019_v20 = vadd.f32 %v5053_v11, %v982_v29  ;;  %v3837_v7 = vld [vmem:[%s4774_s8 + $0x78] sm:$0xff]  }
  0xc1   : > { %v1070_v18 = vpack.c.bf16 %v1049_v21, %v1048_v0  ;;  %v2745_v19 = vmax.f32 %v2713_v10, 0.0  ;;  %v2678_v22 = vmul.f32 %v3774_v12, %v5164_v4  ;;  %v2714_v24 = vadd.f32 %v5173_v13, %v2677_v41  ;;  %v3893_v41 = vld [vmem:[%s4774_s8 + $0x238] sm:$0xff]  }
  0xc2   : > { %v1050_v23 = vmax.f32 %v1018_v15, 0.0  ;;  %v3554_v25 = vunpack.c.h.bf16 %v3834_v5  ;;  %v983_v26 = vmul.f32 %v3553_v16, %v5043_v2  ;;  %v1051_v28 = vmax.f32 %v1019_v20, 0.0 }
  0xc3   : > { %4106 = vmatprep.mubr.bf16.mxu1 %v1070_v18  ;;  %v2774_v34 = vpack.c.bf16 %v2745_v19, %v2744_v14  ;;  %v2715_v30 = vadd.f32 %v5173_v13, %v2678_v22  ;;  %v3777_v31 = vunpack.c.l.bf16 %v3890_v32  ;;  %v2746_v33 = vmax.f32 %v2714_v24, 0.0 }
  0xc4   : > { %v984_v35 = vmul.f32 %v3554_v25, %v5043_v2  ;;  %v1020_v36 = vadd.f32 %v5053_v11, %v983_v26  ;;  %v3778_v37 = vunpack.c.h.bf16 %v3890_v32  ;;  %v1071_v39 = vpack.c.bf16 %v1051_v28, %v1050_v23  ;;  %v3862_v25 = vld [vmem:[%s4774_s8 + $0x140] sm:$0xff]  }
  0xc5   : > { %4234 = vmatprep.mubr.bf16.mxu0 %v2774_v34  ;;  %v2747_v40 = vmax.f32 %v2715_v30, 0.0  ;;  %v2679_v42 = vmul.f32 %v3777_v31, %v5164_v4  ;;  %v3557_v17 = vunpack.c.l.bf16 %v3835_v27  ;;  %v3558_v46 = vunpack.c.h.bf16 %v3835_v27 }
  0xc6   : > { %v1021_v43 = vadd.f32 %v5053_v11, %v984_v35  ;;  %v1052_v44 = vmax.f32 %v1020_v36, 0.0  ;;  %v2680_v45 = vmul.f32 %v3778_v37, %v5164_v4  ;;  %v3781_v51 = vunpack.c.l.bf16 %v3891_v38 }
  0xc7   : > { %4107 = vmatmul.mubr.bf16.gmra.mrb[20].mxu1 %v1071_v39  ;;  %v2775_v48 = vpack.c.bf16 %v2747_v40, %v2746_v33  ;;  %v2716_v49 = vadd.f32 %v5173_v13, %v2679_v42  ;;  %v985_v50 = vmul.f32 %v3557_v17, %v5043_v2  ;;  %v986_v54 = vmul.f32 %v3558_v46, %v5043_v2  ;;  %v3894_v40 = vld [vmem:[%s4774_s8 + $0x240] sm:$0xff]  }
  0xc8   : > { %v1053_v52 = vmax.f32 %v1021_v43, 0.0  ;;  %v2717_v53 = vadd.f32 %v5173_v13, %v2680_v45  ;;  %v3782_v55 = vunpack.c.h.bf16 %v3891_v38  ;;  %v2681_v58 = vmul.f32 %v3781_v51, %v5164_v4 }
  0xc9   : > { %4235 = vmatmul.mubr.bf16.gmra.mrb[4].mxu0 %v2775_v48  ;;  %v2748_v56 = vmax.f32 %v2716_v49, 0.0  ;;  %v1022_v57 = vadd.f32 %v5053_v11, %v985_v50  ;;  %v3561_v59 = vunpack.c.l.bf16 %v3836_v47  ;;  %v1023_v63 = vadd.f32 %v5053_v11, %v986_v54  ;;  %v3863_v49 = vld [vmem:[%s4774_s8 + $0x148] sm:$0xff]  }
  0xca   : > { %v1072_v61 = vpack.c.bf16 %v1053_v52, %v1052_v44  ;;  %v2749_v62 = vmax.f32 %v2717_v53, 0.0  ;;  %v2682_v0 = vmul.f32 %v3782_v55, %v5164_v4  ;;  %v2718_v3 = vadd.f32 %v5173_v13, %v2681_v58  ;;  %v5268_v55 = vld [vmem:[%s5597_s1 + $0x7] ss:$0 sm:$0xff]  ;;  %v3895_v58 = vld [vmem:[%s4774_s8 + $0x248] sm:$0xff]  }
  0xcb   : > { %v1054_v1 = vmax.f32 %v1022_v57, 0.0  ;;  %v3562_v5 = vunpack.c.h.bf16 %v3836_v47  ;;  %v987_v6 = vmul.f32 %v3561_v59, %v5043_v2  ;;  %v1055_v9 = vmax.f32 %v1023_v63, 0.0  ;;  %v5259_v47 = vld [vmem:[%s5597_s1 + $0x2] ss:$0 sm:$0xff] }
  0xcc   : > { %4110 = vmatprep.mubr.bf16.mxu1 %v1072_v61  ;;  %v2776_v8 = vpack.c.bf16 %v2749_v62, %v2748_v56  ;;  %v2719_v21 = vadd.f32 %v5173_v13, %v2682_v0  ;;  %v3785_v10 = vunpack.c.l.bf16 %v3892_v60  ;;  %v2750_v29 = vmax.f32 %v2718_v3, 0.0 }
  0xcd   : > { %v988_v12 = vmul.f32 %v3562_v5, %v5043_v2  ;;  %v1024_v14 = vadd.f32 %v5053_v11, %v987_v6  ;;  %v3786_v15 = vunpack.c.h.bf16 %v3892_v60  ;;  %v1073_v16 = vpack.c.bf16 %v1055_v9, %v1054_v1  ;;  %v3864_v5 = vld [vmem:[%s4774_s8 + $0x150] sm:$0xff]  }
  0xce   : > { %4238 = vmatprep.mubr.bf16.mxu0 %v2776_v8  ;;  %v2751_v32 = vmax.f32 %v2719_v21, 0.0  ;;  %v2683_v18 = vmul.f32 %v3785_v10, %v5164_v4  ;;  %v3565_v19 = vunpack.c.l.bf16 %v3837_v7  ;;  %v3566_v24 = vunpack.c.h.bf16 %v3837_v7 }
  0xcf   : > { %v1025_v20 = vadd.f32 %v5053_v11, %v988_v12  ;;  %v1056_v22 = vmax.f32 %v1024_v14, 0.0  ;;  %v2684_v23 = vmul.f32 %v3786_v15, %v5164_v4  ;;  %4111 = vmatmul.mubr.bf16.gmra.mrb[24].mxu1 %v1073_v16  ;;  %v3789_v28 = vunpack.c.l.bf16 %v3893_v41 }
  0xd0   : > { %v2777_v26 = vpack.c.bf16 %v2751_v32, %v2750_v29  ;;  %v2720_v27 = vadd.f32 %v5173_v13, %v2683_v18  ;;  %v989_v34 = vmul.f32 %v3565_v19, %v5043_v2  ;;  %v990_v33 = vmul.f32 %v3566_v24, %v5043_v2  ;;  %v3896_v32 = vld [vmem:[%s4774_s8 + $0x250] sm:$0xff]  }
  0xd1   : > { %v1057_v30 = vmax.f32 %v1025_v20, 0.0  ;;  %v2721_v31 = vadd.f32 %v5173_v13, %v2684_v23  ;;  %v3790_v35 = vunpack.c.h.bf16 %v3893_v41  ;;  %v2685_v38 = vmul.f32 %v3789_v28, %v5164_v4 }
  0xd2   : > { %4239 = vmatmul.mubr.bf16.gmra.mrb[8].mxu0 %v2777_v26  ;;  %v2752_v36 = vmax.f32 %v2720_v27, 0.0  ;;  %v1026_v37 = vadd.f32 %v5053_v11, %v989_v34  ;;  %v3665_v39 = vunpack.c.l.bf16 %v3862_v25  ;;  %v1027_v43 = vadd.f32 %v5053_v11, %v990_v33  ;;  %v3865_v27 = vld [vmem:[%s4774_s8 + $0x158] sm:$0xff]  }
  0xd3   : > { %v1074_v42 = vpack.c.bf16 %v1057_v30, %v1056_v22  ;;  %v2753_v17 = vmax.f32 %v2721_v31, 0.0  ;;  %v2686_v44 = vmul.f32 %v3790_v35, %v5164_v4  ;;  %v2722_v2 = vadd.f32 %v5173_v13, %v2685_v38  ;;  %v3897_v38 = vld [vmem:[%s4774_s8 + $0x258] sm:$0xff]  }
  0xd4   : > { %v1058_v45 = vmax.f32 %v1026_v37, 0.0  ;;  %v3666_v46 = vunpack.c.h.bf16 %v3862_v25  ;;  %v1799_v48 = vmul.f32 %v5259_v47, %v3665_v39  ;;  %v1059_v51 = vmax.f32 %v1027_v43, 0.0 }
  0xd5   : > { %4114 = vmatprep.mubr.bf16.mxu1 %v1074_v42  ;;  %v2778_v50 = vpack.c.bf16 %v2753_v17, %v2752_v36  ;;  %v2723_v11 = vadd.f32 %v5173_v13, %v2686_v44  ;;  %v3793_v52 = vunpack.c.l.bf16 %v3894_v40  ;;  %v2754_v53 = vmax.f32 %v2722_v2, 0.0 }
  0xd6   : > { %v1800_v54 = vmul.f32 %v5259_v47, %v3666_v46  ;;  %v1836_v56 = vadd.f32 %v5268_v55, %v1799_v48  ;;  %v3794_v57 = vunpack.c.h.bf16 %v3894_v40  ;;  %v1075_v59 = vpack.c.bf16 %v1059_v51, %v1058_v45  ;;  %v3866_v46 = vld [vmem:[%s4774_s8 + $0x160] sm:$0xff]  }
  0xd7   : > { %4242 = vmatprep.mubr.bf16.mxu0 %v2778_v50  ;;  %v2755_v60 = vmax.f32 %v2723_v11, 0.0  ;;  %v2687_v61 = vmul.f32 %v3793_v52, %v5164_v4  ;;  %v3669_v62 = vunpack.c.l.bf16 %v3863_v49  ;;  %v3670_v3 = vunpack.c.h.bf16 %v3863_v49 }
  0xd8   : > { %v1837_v63 = vadd.f32 %v5268_v55, %v1800_v54  ;;  %v1868_v0 = vmax.f32 %v1836_v56, 0.0  ;;  %v2688_v1 = vmul.f32 %v3794_v57, %v5164_v4  ;;  %4115 = vmatmul.mubr.bf16.gmra.mrb[28].mxu1 %v1075_v59  ;;  %v3797_v9 = vunpack.c.l.bf16 %v3895_v58 }
  0xd9   : > { %v2779_v6 = vpack.c.bf16 %v2755_v60, %v2754_v53  ;;  %v2724_v7 = vadd.f32 %v5173_v13, %v2687_v61  ;;  %v1801_v8 = vmul.f32 %v5259_v47, %v3669_v62  ;;  %v1802_v29 = vmul.f32 %v5259_v47, %v3670_v3  ;;  %v3898_v60 = vld [vmem:[%s4774_s8 + $0x260] sm:$0xff]  }
  0xda   : > { %v1869_v21 = vmax.f32 %v1837_v63, 0.0  ;;  %v2725_v10 = vadd.f32 %v5173_v13, %v2688_v1  ;;  %v3798_v12 = vunpack.c.h.bf16 %v3895_v58  ;;  %v2689_v41 = vmul.f32 %v3797_v9, %v5164_v4 }
  0xdb   : > { %4243 = vmatmul.mubr.bf16.gmra.mrb[12].mxu0 %v2779_v6  ;;  %v2756_v14 = vmax.f32 %v2724_v7, 0.0  ;;  %v1838_v15 = vadd.f32 %v5268_v55, %v1801_v8  ;;  %v3673_v16 = vunpack.c.l.bf16 %v3864_v5  ;;  %v1839_v20 = vadd.f32 %v5268_v55, %v1802_v29  ;;  %v3867_v7 = vld [vmem:[%s4774_s8 + $0x168] sm:$0xff]  }
  0xdc   : > { %v1892_v18 = vpack.c.bf16 %v1869_v21, %v1868_v0  ;;  %v2757_v19 = vmax.f32 %v2725_v10, 0.0  ;;  %v2690_v22 = vmul.f32 %v3798_v12, %v5164_v4  ;;  %v2726_v24 = vadd.f32 %v5173_v13, %v2689_v41  ;;  %v3899_v41 = vld [vmem:[%s4774_s8 + $0x268] sm:$0xff]  }
  0xdd   : > { %v1870_v23 = vmax.f32 %v1838_v15, 0.0  ;;  %v3674_v25 = vunpack.c.h.bf16 %v3864_v5  ;;  %v1803_v26 = vmul.f32 %v5259_v47, %v3673_v16  ;;  %v1871_v28 = vmax.f32 %v1839_v20, 0.0 }
  0xde   : > { %4150 = vmatprep.mubr.bf16.mxu1 %v1892_v18  ;;  %v2780_v34 = vpack.c.bf16 %v2757_v19, %v2756_v14  ;;  %v2727_v30 = vadd.f32 %v5173_v13, %v2690_v22  ;;  %v3801_v31 = vunpack.c.l.bf16 %v3896_v32  ;;  %v2758_v33 = vmax.f32 %v2726_v24, 0.0 }
  0xdf   : > { %v1804_v35 = vmul.f32 %v5259_v47, %v3674_v25  ;;  %v1840_v36 = vadd.f32 %v5268_v55, %v1803_v26  ;;  %v3802_v37 = vunpack.c.h.bf16 %v3896_v32  ;;  %v1893_v39 = vpack.c.bf16 %v1871_v28, %v1870_v23  ;;  %v3868_v25 = vld [vmem:[%s4774_s8 + $0x170] sm:$0xff]  }
  0xe0   : > { %4246 = vmatprep.mubr.bf16.mxu0 %v2780_v34  ;;  %v2759_v40 = vmax.f32 %v2727_v30, 0.0  ;;  %v2691_v42 = vmul.f32 %v3801_v31, %v5164_v4  ;;  %v3677_v17 = vunpack.c.l.bf16 %v3865_v27  ;;  %v3678_v2 = vunpack.c.h.bf16 %v3865_v27 }
  0xe1   : > { %v1841_v43 = vadd.f32 %v5268_v55, %v1804_v35  ;;  %v1872_v44 = vmax.f32 %v1840_v36, 0.0  ;;  %v2692_v45 = vmul.f32 %v3802_v37, %v5164_v4  ;;  %4151 = vmatmul.mubr.bf16.vlgmr.msra.gmra.mrb[16].mxu1 %v1893_v39  ;;  %v3805_v51 = vunpack.c.l.bf16 %v3897_v38 }
  0xe2   : > { %v2781_v48 = vpack.c.bf16 %v2759_v40, %v2758_v33  ;;  %v2728_v49 = vadd.f32 %v5173_v13, %v2691_v42  ;;  %v1805_v50 = vmul.f32 %v5259_v47, %v3677_v17  ;;  %v1806_v53 = vmul.f32 %v5259_v47, %v3678_v2  ;;  %v3900_v40 = vld [vmem:[%s4774_s8 + $0x270] sm:$0xff]  }
  0xe3   : > { %v1873_v11 = vmax.f32 %v1841_v43, 0.0  ;;  %v2729_v52 = vadd.f32 %v5173_v13, %v2692_v45  ;;  %v3806_v54 = vunpack.c.h.bf16 %v3897_v38  ;;  %v2693_v58 = vmul.f32 %v3805_v51, %v5164_v4 }
  0xe4   : > { %4247 = vmatmul.mubr.bf16.gmra.mrb[16].mxu0 %v2781_v48  ;;  %v2760_v56 = vmax.f32 %v2728_v49, 0.0  ;;  %v1842_v57 = vadd.f32 %v5268_v55, %v1805_v50  ;;  %v3681_v59 = vunpack.c.l.bf16 %v3866_v46  ;;  %v1843_v63 = vadd.f32 %v5268_v55, %v1806_v53  ;;  %v3869_v49 = vld [vmem:[%s4774_s8 + $0x178] sm:$0xff]  }
  0xe5   : > { %v1894_v61 = vpack.c.bf16 %v1873_v11, %v1872_v44  ;;  %v2761_v62 = vmax.f32 %v2729_v52, 0.0  ;;  %v2694_v0 = vmul.f32 %v3806_v54, %v5164_v4  ;;  %v2730_v3 = vadd.f32 %v5173_v13, %v2693_v58  ;;  %v3901_v58 = vld [vmem:[%s4774_s8 + $0x278] sm:$0xff]   ;;  %s3319_s8 = sshll.u32 %s4547_s18, 5  ;;  %s5607_s18 = smov (!%p885_p9, %s4547_s18), 1 }
  0xe6   : > { %v1874_v1 = vmax.f32 %v1842_v57, 0.0  ;;  %v3682_v5 = vunpack.c.h.bf16 %v3866_v46  ;;  %v1807_v6 = vmul.f32 %v5259_v47, %v3681_v59  ;;  %v1875_v9 = vmax.f32 %v1843_v63, 0.0  ;;  %p880_p8 = scmp.lt.s32.totalorder %s3319_s8, 63  ;;  %s3321_s29 = sshll.u32 %s5607_s18, 1 }
  0xe7   : > { %4154 = vmatprep.mubr.bf16.mxu1 %v1894_v61  ;;  %v2782_v8 = vpack.c.bf16 %v2761_v62, %v2760_v56  ;;  %v2731_v21 = vadd.f32 %v5173_v13, %v2694_v0  ;;  %v3809_v10 = vunpack.c.l.bf16 %v3898_v60  ;;  %v2762_v29 = vmax.f32 %v2730_v3, 0.0  ;;  %s888_s6 = scalar_lea.vmem %s5600_s4, %s3321_s29 }
  0xe8   : > { %v1808_v12 = vmul.f32 %v5259_v47, %v3682_v5  ;;  %v1844_v14 = vadd.f32 %v5268_v55, %v1807_v6  ;;  %v3810_v15 = vunpack.c.h.bf16 %v3898_v60  ;;  %v1895_v16 = vpack.c.bf16 %v1875_v9, %v1874_v1  ;;  %s5605_s8 = smov (!%p880_p8, %s3319_s8), 63 }
  0xe9   : > { %4250 = vmatprep.mubr.bf16.mxu0 %v2782_v8  ;;  %v2763_v32 = vmax.f32 %v2731_v21, 0.0  ;;  %v2695_v18 = vmul.f32 %v3809_v10, %v5164_v4  ;;  %v3685_v19 = vunpack.c.l.bf16 %v3867_v7  ;;  %v3686_v24 = vunpack.c.h.bf16 %v3867_v7  ;;  %s3320_s26 = sshll.u32 %s5605_s8, 3 }
  0xea   : > { %v1845_v20 = vadd.f32 %v5268_v55, %v1808_v12  ;;  %v1876_v22 = vmax.f32 %v1844_v14, 0.0  ;;  %v2696_v23 = vmul.f32 %v3810_v15, %v5164_v4  ;;  %4155 = vmatmul.mubr.bf16.gmra.mrb[20].mxu1 %v1895_v16  ;;  %v3813_v28 = vunpack.c.l.bf16 %v3899_v41  ;;  %s5349_s15 = scalar_lea.vmem %s5599_s3, %s3320_s26 }
  0xeb   : > { %v2783_v26 = vpack.c.bf16 %v2763_v32, %v2762_v29  ;;  %v2732_v27 = vadd.f32 %v5173_v13, %v2695_v18  ;;  %v1809_v34 = vmul.f32 %v5259_v47, %v3685_v19  ;;  %v1810_v33 = vmul.f32 %v5259_v47, %v3686_v24 }
  0xec   : > { %v1877_v30 = vmax.f32 %v1845_v20, 0.0  ;;  %v2733_v31 = vadd.f32 %v5173_v13, %v2696_v23  ;;  %v3814_v35 = vunpack.c.h.bf16 %v3899_v41  ;;  %v2697_v38 = vmul.f32 %v3813_v28, %v5164_v4 }
  0xed   : > { %4251 = vmatmul.mubr.bf16.gmra.mrb[20].mxu0 %v2783_v26  ;;  %v2764_v36 = vmax.f32 %v2732_v27, 0.0  ;;  %v1846_v37 = vadd.f32 %v5268_v55, %v1809_v34  ;;  %v3689_v39 = vunpack.c.l.bf16 %v3868_v25  ;;  %v1847_v43 = vadd.f32 %v5268_v55, %v1810_v33 }
  0xee   : > { %v1896_v42 = vpack.c.bf16 %v1877_v30, %v1876_v22  ;;  %v2765_v17 = vmax.f32 %v2733_v31, 0.0  ;;  %v2698_v44 = vmul.f32 %v3814_v35, %v5164_v4  ;;  %v2734_v2 = vadd.f32 %v5173_v13, %v2697_v38 }
  0xef   : > { %v1878_v45 = vmax.f32 %v1846_v37, 0.0  ;;  %v3690_v46 = vunpack.c.h.bf16 %v3868_v25  ;;  %v1811_v48 = vmul.f32 %v5259_v47, %v3689_v39  ;;  %v1879_v51 = vmax.f32 %v1847_v43, 0.0 }
  0xf0   : > { %4158 = vmatprep.mubr.bf16.mxu1 %v1896_v42  ;;  %v2784_v50 = vpack.c.bf16 %v2765_v17, %v2764_v36  ;;  %v2735_v11 = vadd.f32 %v5173_v13, %v2698_v44  ;;  %v3817_v52 = vunpack.c.l.bf16 %v3900_v40  ;;  %v2766_v53 = vmax.f32 %v2734_v2, 0.0 }
  0xf1   : > { %v1812_v54 = vmul.f32 %v5259_v47, %v3690_v46  ;;  %v1848_v56 = vadd.f32 %v5268_v55, %v1811_v48  ;;  %v3818_v57 = vunpack.c.h.bf16 %v3900_v40  ;;  %v1897_v59 = vpack.c.bf16 %v1879_v51, %v1878_v45 }
  0xf2   : > { %4254 = vmatprep.mubr.bf16.mxu0 %v2784_v50  ;;  %v2767_v60 = vmax.f32 %v2735_v11, 0.0  ;;  %v2699_v61 = vmul.f32 %v3817_v52, %v5164_v4  ;;  %v3693_v62 = vunpack.c.l.bf16 %v3869_v49  ;;  %v3694_v3 = vunpack.c.h.bf16 %v3869_v49 }
  0xf3   : > { %v1849_v63 = vadd.f32 %v5268_v55, %v1812_v54  ;;  %v1880_v0 = vmax.f32 %v1848_v56, 0.0  ;;  %v2700_v1 = vmul.f32 %v3818_v57, %v5164_v4  ;;  %4159 = vmatmul.mubr.bf16.gmra.mrb[24].mxu1 %v1897_v59  ;;  %v3821_v8 = vunpack.c.l.bf16 %v3901_v58 }
  0xf4   : > { %v2785_v5 = vpack.c.bf16 %v2767_v60, %v2766_v53  ;;  %v2736_v6 = vadd.f32 %v5173_v13, %v2699_v61  ;;  %v1813_v7 = vmul.f32 %v5259_v47, %v3693_v62  ;;  %v1814_v10 = vmul.f32 %v5259_v47, %v3694_v3 }
  0xf5   : > { %v1881_v9 = vmax.f32 %v1849_v63, 0.0  ;;  %v2737_v21 = vadd.f32 %v5173_v13, %v2700_v1  ;;  %v3822_v29 = vunpack.c.h.bf16 %v3901_v58  ;;  %v2701_v15 = vmul.f32 %v3821_v8, %v5164_v4 }
  0xf6   : > { %4255 = vmatmul.mubr.bf16.gmra.mrb[24].mxu0 %v2785_v5  ;;  %v2768_v12 = vmax.f32 %v2736_v6, 0.0  ;;  %v1850_v14 = vadd.f32 %v5268_v55, %v1813_v7  ;;  %v1851_v32 = vadd.f32 %v5268_v55, %v1814_v10 }
  0xf7   : > { %v1898_v41 = vpack.c.bf16 %v1881_v9, %v1880_v0  ;;  %v2769_v16 = vmax.f32 %v2737_v21, 0.0  ;;  %v2702_v18 = vmul.f32 %v3822_v29, %v5164_v4  ;;  %v2738_v20 = vadd.f32 %v5173_v13, %v2701_v15 }
  0xf8   : > { %v1882_v19 = vmax.f32 %v1850_v14, 0.0  ;;  %v1883_v23 = vmax.f32 %v1851_v32, 0.0 }
  0xf9   : > { %4162 = vmatprep.mubr.bf16.mxu1 %v1898_v41  ;;  %v2786_v22 = vpack.c.bf16 %v2769_v16, %v2768_v12  ;;  %v2739_v47 = vadd.f32 %v5173_v13, %v2702_v18  ;;  %v2770_v24 = vmax.f32 %v2738_v20, 0.0 }
  0xfa   : > { %v1899_v25 = vpack.c.bf16 %v1883_v23, %v1882_v19 }
  0xfb   : > { %4258 = vmatprep.mubr.bf16.mxu0 %v2786_v22  ;;  %v2771_v26 = vmax.f32 %v2739_v47, 0.0 }
  0xfc   : > { %4163 = vmatmul.mubr.bf16.gmra.mrb[28].mxu1 %v1899_v25 }
  0xfd   : > { %v2787_v27 = vpack.c.bf16 %v2771_v26, %v2770_v24 }
  0xff   : > { %4259 = vmatmul.mubr.bf16.gmra.mrb[28].mxu0 %v2787_v27 }
 0x172   : > { %v4088_v34 = vpop.f32.mrb[0].mxu1 }
 0x173   : > { %v1586_v55 = vpop.f32.mrb[1].mxu1 }
 0x174   : > { %v4089_v28 = vpop.f32.mrb[2].mxu1 }
 0x175   : > { %v1589_v4 = vpop.f32.mrb[3].mxu1 }
 0x17a   : > { %v4092_v30 = vpop.f32.mrb[4].mxu1 }
 0x17b   : > { %v1602_v31 = vpop.f32.mrb[5].mxu1 }
 0x17c   : > { %v4093_v33 = vpop.f32.mrb[6].mxu1 }
 0x17d   : > { %v1605_v35 = vpop.f32.mrb[7].mxu1 }
 0x182   : > { %v4096_v36 = vpop.f32.mrb[8].mxu1 }
 0x183   : > { %v1618_v37 = vpop.f32.mrb[9].mxu1 }
 0x184   : > { %v4097_v38 = vpop.f32.mrb[10].mxu1 }
 0x185   : > { %v1621_v13 = vpop.f32.mrb[11].mxu1 }
 0x18a   : > { %v4100_v39 = vpop.f32.mrb[12].mxu1 }
 0x18b   : > { %v1634_v40 = vpop.f32.mrb[13].mxu1 }
 0x18c   : > { %v4101_v42 = vpop.f32.mrb[14].mxu1 }
 0x18d   : > { %v1637_v17 = vpop.f32.mrb[15].mxu1 }
 0x193   : > { %v4232_v43 = vpop.f32.mrb[0].mxu0 }
 0x194   : > { %v5351_v44 = vadd.f32 %v4232_v43, %v4088_v34  ;;  %v2886_v45 = vpop.f32.mrb[1].mxu0 }
 0x195   : > { %v5353_v2 = vadd.f32 %v2886_v45, %v1586_v55  ;;  %v4233_v46 = vpop.f32.mrb[2].mxu0 }
 0x196   : > { %3047 = vst [vmem:[%s5349_s15 + $0x10] sm:$0xff] %v5351_v44  ;;  %v5357_v48 = vadd.f32 %v4233_v46, %v4089_v28  ;;  %v2889_v49 = vpop.f32.mrb[3].mxu0 }
 0x197   : > { %3045 = vst [vmem:[%s5349_s15] sm:$0xff] %v5353_v2  ;;  %v5361_v50 = vadd.f32 %v2889_v49, %v1589_v4 }
 0x198   : > { %3048 = vst [vmem:[%s5349_s15 + $0x18] sm:$0xff] %v5357_v48 }
 0x199   : > { %3046 = vst [vmem:[%s5349_s15 + $0x8] sm:$0xff] %v5361_v50  ;;  %v3077_v51 = vadd.f32 %v5361_v50, %v5353_v2 }
 0x19b   : > { %v3078_v11 = vadd.f32 %v5351_v44, %v3077_v51 }
 0x19c   : > { %v4236_v52 = vpop.f32.mrb[4].mxu0 }
 0x19d   : > { %v5370_v53 = vadd.f32 %v4236_v52, %v4092_v30  ;;  %v2902_v54 = vpop.f32.mrb[5].mxu0  ;;  %v3079_v56 = vadd.f32 %v5357_v48, %v3078_v11 }
 0x19e   : > { %v5373_v57 = vadd.f32 %v2902_v54, %v1602_v31  ;;  %v4237_v58 = vpop.f32.mrb[6].mxu0 }
 0x19f   : > { %3051 = vst [vmem:[%s5349_s15 + $0x30] sm:$0xff] %v5370_v53  ;;  %v5377_v59 = vadd.f32 %v4237_v58, %v4093_v33  ;;  %v2905_v60 = vpop.f32.mrb[7].mxu0 }
 0x1a0   : > { %3049 = vst [vmem:[%s5349_s15 + $0x20] sm:$0xff] %v5373_v57  ;;  %v3080_v61 = vadd.f32 %v5373_v57, %v3079_v56  ;;  %v5382_v62 = vadd.f32 %v2905_v60, %v1605_v35 }
 0x1a1   : > { %3052 = vst [vmem:[%s5349_s15 + $0x38] sm:$0xff] %v5377_v59 }
 0x1a2   : > { %3050 = vst [vmem:[%s5349_s15 + $0x28] sm:$0xff] %v5382_v62  ;;  %v3081_v63 = vadd.f32 %v5382_v62, %v3080_v61 }
 0x1a4   : > { %v3082_v0 = vadd.f32 %v5370_v53, %v3081_v63 }
 0x1a5   : > { %v4240_v1 = vpop.f32.mrb[8].mxu0 }
 0x1a6   : > { %v5390_v3 = vadd.f32 %v4240_v1, %v4096_v36  ;;  %v2918_v5 = vpop.f32.mrb[9].mxu0  ;;  %v3083_v6 = vadd.f32 %v5377_v59, %v3082_v0 }
 0x1a7   : > { %v5393_v7 = vadd.f32 %v2918_v5, %v1618_v37  ;;  %v4241_v8 = vpop.f32.mrb[10].mxu0 }
 0x1a8   : > { %3055 = vst [vmem:[%s5349_s15 + $0x50] sm:$0xff] %v5390_v3  ;;  %v5397_v9 = vadd.f32 %v4241_v8, %v4097_v38  ;;  %v2921_v21 = vpop.f32.mrb[11].mxu0 }
 0x1a9   : > { %3053 = vst [vmem:[%s5349_s15 + $0x40] sm:$0xff] %v5393_v7  ;;  %v3084_v10 = vadd.f32 %v5393_v7, %v3083_v6  ;;  %v5402_v29 = vadd.f32 %v2921_v21, %v1621_v13 }
 0x1aa   : > { %3056 = vst [vmem:[%s5349_s15 + $0x58] sm:$0xff] %v5397_v9 }
 0x1ab   : > { %3054 = vst [vmem:[%s5349_s15 + $0x48] sm:$0xff] %v5402_v29  ;;  %v3085_v12 = vadd.f32 %v5402_v29, %v3084_v10 }
 0x1ad   : > { %v3086_v14 = vadd.f32 %v5390_v3, %v3085_v12 }
 0x1ae   : > { %v4244_v15 = vpop.f32.mrb[12].mxu0 }
 0x1af   : > { %v5410_v41 = vadd.f32 %v4244_v15, %v4100_v39  ;;  %v2934_v16 = vpop.f32.mrb[13].mxu0  ;;  %v3087_v32 = vadd.f32 %v5397_v9, %v3086_v14 }
 0x1b0   : > { %v5413_v18 = vadd.f32 %v2934_v16, %v1634_v40  ;;  %v4245_v19 = vpop.f32.mrb[14].mxu0 }
 0x1b1   : > { %3059 = vst [vmem:[%s5349_s15 + $0x70] sm:$0xff] %v5410_v41  ;;  %v5417_v20 = vadd.f32 %v4245_v19, %v4101_v42  ;;  %v2937_v22 = vpop.f32.mrb[15].mxu0 }
 0x1b2   : > { %3057 = vst [vmem:[%s5349_s15 + $0x60] sm:$0xff] %v5413_v18  ;;  %v3088_v23 = vadd.f32 %v5413_v18, %v3087_v32  ;;  %v5422_v47 = vadd.f32 %v2937_v22, %v1637_v17 }
 0x1b3   : > { %3060 = vst [vmem:[%s5349_s15 + $0x78] sm:$0xff] %v5417_v20 }
 0x1b4   : > { %3058 = vst [vmem:[%s5349_s15 + $0x68] sm:$0xff] %v5422_v47  ;;  %v3089_v24 = vadd.f32 %v5422_v47, %v3088_v23  ;;  %v4152_v25 = vpop.f32.mrb[16].mxu1 }
 0x1b5   : > { %v2062_v27 = vpop.f32.mrb[17].mxu1 }
 0x1b6   : > { %v3090_v26 = vadd.f32 %v5410_v41, %v3089_v24  ;;  %v4153_v55 = vpop.f32.mrb[18].mxu1 }
 0x1b7   : > { %v4248_v34 = vpop.f32.mrb[16].mxu0  ;;  %v2065_v31 = vpop.f32.mrb[19].mxu1 }
 0x1b8   : > { %v5430_v28 = vadd.f32 %v4248_v34, %v4152_v25  ;;  %v2950_v4 = vpop.f32.mrb[17].mxu0  ;;  %v3091_v30 = vadd.f32 %v5417_v20, %v3090_v26 }
 0x1b9   : > { %v5433_v33 = vadd.f32 %v2950_v4, %v2062_v27  ;;  %v4249_v35 = vpop.f32.mrb[18].mxu0 }
 0x1ba   : > { %3063 = vst [vmem:[%s5349_s15 + $0x90] sm:$0xff] %v5430_v28  ;;  %v5437_v36 = vadd.f32 %v4249_v35, %v4153_v55  ;;  %v2953_v37 = vpop.f32.mrb[19].mxu0 }
 0x1bb   : > { %3061 = vst [vmem:[%s5349_s15 + $0x80] sm:$0xff] %v5433_v33  ;;  %v3092_v38 = vadd.f32 %v5433_v33, %v3091_v30  ;;  %v5442_v13 = vadd.f32 %v2953_v37, %v2065_v31 }
 0x1bc   : > { %3064 = vst [vmem:[%s5349_s15 + $0x98] sm:$0xff] %v5437_v36 }
 0x1bd   : > { %3062 = vst [vmem:[%s5349_s15 + $0x88] sm:$0xff] %v5442_v13  ;;  %v3093_v39 = vadd.f32 %v5442_v13, %v3092_v38  ;;  %v4156_v40 = vpop.f32.mrb[20].mxu1 }
 0x1be   : > { %v2078_v17 = vpop.f32.mrb[21].mxu1 }
 0x1bf   : > { %v3094_v42 = vadd.f32 %v5430_v28, %v3093_v39  ;;  %v4157_v45 = vpop.f32.mrb[22].mxu1 }
 0x1c0   : > { %v4252_v43 = vpop.f32.mrb[20].mxu0  ;;  %v2081_v11 = vpop.f32.mrb[23].mxu1 }
 0x1c1   : > { %v5450_v46 = vadd.f32 %v4252_v43, %v4156_v40  ;;  %v2966_v49 = vpop.f32.mrb[21].mxu0  ;;  %v3095_v51 = vadd.f32 %v5437_v36, %v3094_v42 }
 0x1c2   : > { %v5453_v52 = vadd.f32 %v2966_v49, %v2078_v17  ;;  %v4253_v54 = vpop.f32.mrb[22].mxu0 }
 0x1c3   : > { %3067 = vst [vmem:[%s5349_s15 + $0xb0] sm:$0xff] %v5450_v46  ;;  %v5457_v56 = vadd.f32 %v4253_v54, %v4157_v45  ;;  %v2969_v58 = vpop.f32.mrb[23].mxu0 }
 0x1c4   : > { %3065 = vst [vmem:[%s5349_s15 + $0xa0] sm:$0xff] %v5453_v52  ;;  %v3096_v60 = vadd.f32 %v5453_v52, %v3095_v51  ;;  %v5462_v61 = vadd.f32 %v2969_v58, %v2081_v11 }
 0x1c5   : > { %3068 = vst [vmem:[%s5349_s15 + $0xb8] sm:$0xff] %v5457_v56 }
 0x1c6   : > { %3066 = vst [vmem:[%s5349_s15 + $0xa8] sm:$0xff] %v5462_v61  ;;  %v3097_v63 = vadd.f32 %v5462_v61, %v3096_v60  ;;  %v4160_v0 = vpop.f32.mrb[24].mxu1 }
 0x1c7   : > { %v2094_v5 = vpop.f32.mrb[25].mxu1 }
 0x1c8   : > { %v3098_v1 = vadd.f32 %v5450_v46, %v3097_v63  ;;  %v4161_v8 = vpop.f32.mrb[26].mxu1 }
 0x1c9   : > { %v4256_v6 = vpop.f32.mrb[24].mxu0  ;;  %v2097_v14 = vpop.f32.mrb[27].mxu1 }
 0x1ca   : > { %v5470_v21 = vadd.f32 %v4256_v6, %v4160_v0  ;;  %v2982_v10 = vpop.f32.mrb[25].mxu0  ;;  %v3099_v12 = vadd.f32 %v5457_v56, %v3098_v1 }
 0x1cb   : > { %v5473_v15 = vadd.f32 %v2982_v10, %v2094_v5  ;;  %v4257_v16 = vpop.f32.mrb[26].mxu0 }
 0x1cc   : > { %3071 = vst [vmem:[%s5349_s15 + $0xd0] sm:$0xff] %v5470_v21  ;;  %v5477_v32 = vadd.f32 %v4257_v16, %v4161_v8  ;;  %v2985_v19 = vpop.f32.mrb[27].mxu0 }
 0x1cd   : > { %3069 = vst [vmem:[%s5349_s15 + $0xc0] sm:$0xff] %v5473_v15  ;;  %v3100_v22 = vadd.f32 %v5473_v15, %v3099_v12  ;;  %v5482_v23 = vadd.f32 %v2985_v19, %v2097_v14 }
 0x1ce   : > { %3072 = vst [vmem:[%s5349_s15 + $0xd8] sm:$0xff] %v5477_v32 }
 0x1cf   : > { %3070 = vst [vmem:[%s5349_s15 + $0xc8] sm:$0xff] %v5482_v23  ;;  %v3101_v24 = vadd.f32 %v5482_v23, %v3100_v22  ;;  %v4164_v25 = vpop.f32.mrb[28].mxu1 }
 0x1d0   : > { %v2110_v27 = vpop.f32.mrb[29].mxu1 }
 0x1d1   : > { %v3102_v26 = vadd.f32 %v5470_v21, %v3101_v24  ;;  %v4165_v55 = vpop.f32.mrb[30].mxu1 }
 0x1d2   : > { %v4260_v34 = vpop.f32.mrb[28].mxu0  ;;  %v2113_v35 = vpop.f32.mrb[31].mxu1 }
 0x1d3   : > { %v5490_v4 = vadd.f32 %v4260_v34, %v4164_v25  ;;  %v2998_v30 = vpop.f32.mrb[29].mxu0  ;;  %v3103_v31 = vadd.f32 %v5477_v32, %v3102_v26 }
 0x1d4   : > { %v5493_v37 = vadd.f32 %v2998_v30, %v2110_v27  ;;  %v4261_v38 = vpop.f32.mrb[30].mxu0 }
 0x1d5   : > { %3075 = vst [vmem:[%s5349_s15 + $0xf0] sm:$0xff] %v5490_v4  ;;  %v5497_v39 = vadd.f32 %v4261_v38, %v4165_v55  ;;  %v3001_v40 = vpop.f32.mrb[31].mxu0 }
 0x1d6   : > { %3073 = vst [vmem:[%s5349_s15 + $0xe0] sm:$0xff] %v5493_v37  ;;  %v3104_v42 = vadd.f32 %v5493_v37, %v3103_v31  ;;  %v5502_v17 = vadd.f32 %v3001_v40, %v2113_v35 }
 0x1d7   : > { %3076 = vst [vmem:[%s5349_s15 + $0xf8] sm:$0xff] %v5497_v39 }
 0x1d8   : > { %3074 = vst [vmem:[%s5349_s15 + $0xe8] sm:$0xff] %v5502_v17  ;;  %v3105_v43 = vadd.f32 %v5502_v17, %v3104_v42 }
 0x1da   : > { %v3106_v45 = vadd.f32 %v5490_v4, %v3105_v43 }
 0x1dc   : > { %v3107_v49 = vadd.f32 %v5497_v39, %v3106_v45 }
 0x1de   : > { %v3108_v51 = vrot.slane %v3107_v49, 4 }
 0x1e0   : > { %v3109_v11 = vadd.f32 %v3108_v51, %v3107_v49 }
 0x1e2   : > { %v3110_v54 = vrot.slane %v3109_v11, 2 }
 0x1e4   : > { %v3111_v58 = vadd.f32 %v3110_v54, %v3109_v11 }
 0x1e6   : > { %v3112_v60 = vrot.slane %v3111_v58, 1 }
 0x1e8   : > { %v5511_v63 = vadd.f32 %v3112_v60, %v3111_v58 }
 0x1ea   : > { %v5514_v0 = vmul.f32 0.00390625, %v5511_v63 }
 0x1ec   : > { %v3115_v1 = vsub.f32 %v5353_v2, %v5514_v0  ;;  %v3116_v5 = vsub.f32 %v5361_v50, %v5514_v0  ;;  %v3117_v6 = vsub.f32 %v5351_v44, %v5514_v0  ;;  %v3118_v12 = vsub.f32 %v5357_v48, %v5514_v0 }
 0x1ed   : > { %v3119_v14 = vsub.f32 %v5373_v57, %v5514_v0  ;;  %v3120_v22 = vsub.f32 %v5382_v62, %v5514_v0  ;;  %v3121_v50 = vsub.f32 %v5370_v53, %v5514_v0  ;;  %v3122_v26 = vsub.f32 %v5377_v59, %v5514_v0 }
 0x1ee   : > { %v3147_v8 = vmul.f32 %v3115_v1, %v3115_v1  ;;  %v3148_v10 = vmul.f32 %v3116_v5, %v3116_v5  ;;  %v3149_v16 = vmul.f32 %v3117_v6, %v3117_v6  ;;  %v3150_v2 = vmul.f32 %v3118_v12, %v3118_v12 }
 0x1ef   : > { %v3151_v25 = vmul.f32 %v3119_v14, %v3119_v14  ;;  %v3152_v27 = vmul.f32 %v3120_v22, %v3120_v22  ;;  %v3123_v57 = vsub.f32 %v5393_v7, %v5514_v0  ;;  %v3153_v34 = vmul.f32 %v3121_v50, %v3121_v50 }
 0x1f0   : > { %v3179_v19 = vadd.f32 %v3148_v10, %v3147_v8  ;;  %v3124_v62 = vsub.f32 %v5402_v29, %v5514_v0  ;;  %v3154_v30 = vmul.f32 %v3122_v26, %v3122_v26  ;;  %v3125_v53 = vsub.f32 %v5390_v3, %v5514_v0 }
 0x1f1   : > { %v3155_v35 = vmul.f32 %v3123_v57, %v3123_v57  ;;  %v3126_v59 = vsub.f32 %v5397_v9, %v5514_v0  ;;  %v3127_v7 = vsub.f32 %v5413_v18, %v5514_v0  ;;  %v3128_v29 = vsub.f32 %v5422_v47, %v5514_v0 }
 0x1f2   : > { %v3180_v24 = vadd.f32 %v3179_v19, %v3149_v16  ;;  %v3156_v40 = vmul.f32 %v3124_v62, %v3124_v62  ;;  %v3157_v43 = vmul.f32 %v3125_v53, %v3125_v53  ;;  %v3129_v3 = vsub.f32 %v5410_v41, %v5514_v0 }
 0x1f3   : > { %v3158_v49 = vmul.f32 %v3126_v59, %v3126_v59  ;;  %v3159_v11 = vmul.f32 %v3127_v7, %v3127_v7  ;;  %v3130_v9 = vsub.f32 %v5417_v20, %v5514_v0  ;;  %v3160_v58 = vmul.f32 %v3128_v29, %v3128_v29 }
 0x1f4   : > { %v3181_v44 = vadd.f32 %v3180_v24, %v3150_v2  ;;  %v3131_v18 = vsub.f32 %v5433_v33, %v5514_v0  ;;  %v3161_v1 = vmul.f32 %v3129_v3, %v3129_v3  ;;  %v3132_v47 = vsub.f32 %v5442_v13, %v5514_v0 }
 0x1f5   : > { %v3162_v6 = vmul.f32 %v3130_v9, %v3130_v9  ;;  %v3133_v41 = vsub.f32 %v5430_v28, %v5514_v0  ;;  %v3134_v20 = vsub.f32 %v5437_v36, %v5514_v0  ;;  %v3135_v33 = vsub.f32 %v5453_v52, %v5514_v0 }
 0x1f6   : > { %v3182_v48 = vadd.f32 %v3181_v44, %v3151_v25  ;;  %v3163_v10 = vmul.f32 %v3131_v18, %v3131_v18  ;;  %v3164_v14 = vmul.f32 %v3132_v47, %v3132_v47  ;;  %v3136_v13 = vsub.f32 %v5462_v61, %v5514_v0 }
 0x1f7   : > { %v3165_v19 = vmul.f32 %v3133_v41, %v3133_v41  ;;  %v3166_v2 = vmul.f32 %v3134_v20, %v3134_v20  ;;  %v3137_v28 = vsub.f32 %v5450_v46, %v5514_v0  ;;  %v3167_v50 = vmul.f32 %v3135_v33, %v3135_v33 }
 0x1f8   : > { %v3183_v55 = vadd.f32 %v3182_v48, %v3152_v27  ;;  %v3138_v36 = vsub.f32 %v5457_v56, %v5514_v0  ;;  %v3168_v44 = vmul.f32 %v3136_v13, %v3136_v13  ;;  %v3139_v52 = vsub.f32 %v5473_v15, %v5514_v0 }
 0x1f9   : > { %v3169_v27 = vmul.f32 %v3137_v28, %v3137_v28  ;;  %v3140_v61 = vsub.f32 %v5482_v23, %v5514_v0  ;;  %v3141_v46 = vsub.f32 %v5470_v21, %v5514_v0  ;;  %v3142_v56 = vsub.f32 %v5477_v32, %v5514_v0 }
 0x1fa   : > { %v3184_v31 = vadd.f32 %v3183_v55, %v3153_v34  ;;  %v3170_v57 = vmul.f32 %v3138_v36, %v3138_v36  ;;  %v3171_v55 = vmul.f32 %v3139_v52, %v3139_v52  ;;  %v3143_v15 = vsub.f32 %v5493_v37, %v5514_v0 }
 0x1fb   : > { %v3173_v53 = vmul.f32 %v3141_v46, %v3141_v46  ;;  %v3144_v23 = vsub.f32 %v5502_v17, %v5514_v0  ;;  %v3145_v21 = vsub.f32 %v5490_v4, %v5514_v0  ;;  %v3146_v32 = vsub.f32 %v5497_v39, %v5514_v0 }
 0x1fc   : > { %v3185_v38 = vadd.f32 %v3184_v31, %v3154_v30  ;;  %v3172_v30 = vmul.f32 %v3140_v61, %v3140_v61 }
 0x1fd   : > { %v3176_v7 = vmul.f32 %v3144_v23, %v3144_v23  ;;  %v3177_v37 = vmul.f32 %v3145_v21, %v3145_v21  ;;  %v3178_v29 = vmul.f32 %v3146_v32, %v3146_v32 }
 0x1fe   : > { %v3186_v42 = vadd.f32 %v3185_v38, %v3155_v35  ;;  %v3174_v38 = vmul.f32 %v3142_v56, %v3142_v56 }
 0x200   : > { %v3187_v45 = vadd.f32 %v3186_v42, %v3156_v40  ;;  %v3175_v40 = vmul.f32 %v3143_v15, %v3143_v15 }
 0x202   : > { %v3188_v51 = vadd.f32 %v3187_v45, %v3157_v43 }
 0x204   : > { %v3189_v54 = vadd.f32 %v3188_v51, %v3158_v49 }
 0x206   : > { %v3190_v60 = vadd.f32 %v3189_v54, %v3159_v11 }
 0x208   : > { %v3191_v5 = vadd.f32 %v3190_v60, %v3160_v58 }
 0x20a   : > { %v3192_v8 = vadd.f32 %v3191_v5, %v3161_v1 }
 0x20c   : > { %v3193_v12 = vadd.f32 %v3192_v8, %v3162_v6 }
 0x20e   : > { %v3194_v16 = vadd.f32 %v3193_v12, %v3163_v10 }
 0x210   : > { %v3195_v22 = vadd.f32 %v3194_v16, %v3164_v14 }
 0x212   : > { %v3196_v24 = vadd.f32 %v3195_v22, %v3165_v19 }
 0x214   : > { %v3197_v25 = vadd.f32 %v3196_v24, %v3166_v2 }
 0x216   : > { %v3198_v26 = vadd.f32 %v3197_v25, %v3167_v50 }
 0x218   : > { %v3199_v48 = vadd.f32 %v3198_v26, %v3168_v44 }
 0x21a   : > { %v3200_v34 = vadd.f32 %v3199_v48, %v3169_v27 }
 0x21c   : > { %v3201_v62 = vadd.f32 %v3200_v34, %v3170_v57 }
 0x21e   : > { %v3202_v31 = vadd.f32 %v3201_v62, %v3171_v55 }
 0x220   : > { %v3203_v35 = vadd.f32 %v3202_v31, %v3172_v30 }
 0x222   : > { %v3204_v59 = vadd.f32 %v3203_v35, %v3173_v53 }
 0x224   : > { %v3205_v42 = vadd.f32 %v3204_v59, %v3174_v38 }
 0x226   : > { %v3206_v43 = vadd.f32 %v3205_v42, %v3175_v40 }
 0x228   : > { %v3207_v45 = vadd.f32 %v3206_v43, %v3176_v7 }
 0x22a   : > { %v3208_v49 = vadd.f32 %v3207_v45, %v3177_v37 }
 0x22c   : > { %v3209_v51 = vadd.f32 %v3208_v49, %v3178_v29 }
 0x22e   : > { %v3210_v17 = vrot.slane %v3209_v51, 4 }
 0x230   : > { %v3211_v3 = vadd.f32 %v3210_v17, %v3209_v51 }
 0x232   : > { %v3212_v11 = vrot.slane %v3211_v3, 2 }
 0x234   : > { %v3213_v54 = vadd.f32 %v3212_v11, %v3211_v3 }
 0x236   : > { %v3214_v4 = vrot.slane %v3213_v54, 1 }
 0x238   : > { %v3215_v39 = vadd.f32 %v3214_v4, %v3213_v54 }
 0x23a   : > { %v3217_v0 = vsel %vm3216_vm0, %v5511_v63, %v3215_v39 }
 0x23b   : > { %3218 = vst [vmem:[%s888_s6] sm:$0x3] %v3217_v0 }
 0x23c PF: > { %p12_p10 = scmp.ge.s32.totalorder %s4550_s19, 4   ;;  %s5601_s15 = smov %s4500_s16 }
 0x23d   : > { %s5602_s16 = smov %s4559_s22  ;;  %s5603_s17 = smov %s4550_s19 }
 0x23e   :  { %14 = sbr.rel (!%p12_p10) target bundleno = 2 (0x2), region = 124 }

// kernel: aspp_forward.3
= control target key start
LH: loop header
LB: loop body
LE: loop exit
PB: predicated region body
PF: predicated region fallthrough
CT: control target
= control target key end

     0   :  { %s9787_s15 = smov 0   ;;  %s9789_s16 = smov 0   ;;  %s12892_s0 = inlined_call_operand.vmem [shape: bf16[2,52,16,128], index: 0, kind: input, shape index: {}]   ;;  %s12893_s1 = inlined_call_operand.vmem [shape: bf16[128,128], index: 1, kind: input, shape index: {}]   ;;  %s12894_s2 = inlined_call_operand.vmem [shape: bf16[1536,384], index: 2, kind: input, shape index: {}]   ;;  %s12895_s3 = inlined_call_operand.vmem [shape: bf16[5,512,128], index: 3, kind: output, shape index: {0}]   ;;  %s12896_s4 = inlined_call_operand.vmem [shape: f32[2,2,10,128], index: 4, kind: output, shape index: {1}]  }
   0x1   :  { %s9791_s17 = smov 0   ;;  %s9793_s18 = smov 0  }
   0x2   :  { %s9795_s19 = smov 0   ;;  %s9797_s20 = smov 0  }
   0x3   :  { %s9799_s21 = smov 0  }
   0x4 LB: > { %s24_s22 = sadd.s32 1, %s9751_s19  ;;  %s27_s23 = sadd.s32 1, %s9755_s20  ;;  %s9759_s21 = sphi %s9799_s21, %s15_s21   ;;  %s9755_s20 = sphi %s9797_s20, %s13120_s20   ;;  %s9751_s19 = sphi %s9795_s19, %s13119_s19   ;;  %s9747_s18 = sphi %s9793_s18, %s13118_s18   ;;  %s9743_s17 = sphi %s9791_s17, %s13117_s17   ;;  %s9739_s16 = sphi %s9789_s16, %s13116_s16   ;;  %s9735_s15 = sphi %s9787_s15, %s13115_s15  }
   0x5   : > { %p25_p0 = scmp.ge.s32.totalorder %s24_s22, 2  ;;  %s7618_s24 = sadd.s32 4294967295, %s9759_s21  }
   0x6   : > { %s7620_s25 = sshll.u32 %s9755_s20, 1  ;;  %p116_p1 = scmp.ne.s32.totalorder %s9739_s16, %s9735_s15 }
   0x7   : > { %s13122_s22 = smov (%p25_p0, %s24_s22), 0  ;;  %s13124_s23 = smov (!%p25_p0, %s27_s23), %s9755_s20 }
   0x8   : > { %s100_s26 = sadd.s32 %s9751_s19, %s7620_s25  ;;  %p29_p2 = scmp.ge.s32.totalorder %s13124_s23, 2 }
   0x9   : > { %p117_p3 = scmp.eq.s32.totalorder %s7618_s24, 3  ;;  %p7623_p4 = scmp.ge.s32.totalorder %s9759_s21, 1 }
   0xa   : > { %p183_p5 = scmp.lt.s32.totalorder %s9759_s21, 5  ;;  %s13126_s23 = smov (%p29_p2, %s13124_s23), 0 }
   0xb   : > { %p9836_p6 = por %p117_p3, %p116_p1  ;;  %s7621_s28 = sshll.u32 %s13126_s23, 1 }
   0xc   : > { %p184_p7 = pnand %p7623_p4, %p183_p5  ;;  %s102_s29 = sadd.s32 %s7621_s28, %s13122_s22 }
   0xd   : > { %s103_s30 = ssub.s32 %s100_s26, %s102_s29  ;;  %s106_s5 = sadd.s32 1, %s9739_s16 }
   0xe   : > { %p104_p8 = scmp.eq.s32.totalorder %s103_s30, 0  ;;  %187 = sbr.rel (%p184_p7) target bundleno = 879 (0x36f), region = 32 }
  0x10   : > { %s9844_s6 = scalar_select %p104_p8, %s9739_s16, %s106_s5  }
  0x15   : > { %v9201_v0 = vld [vmem:[%s12893_s1] sm:$0xff]   ;;  %p217_p9 = scmp.lt.s32.totalorder %s9747_s18, 1  ;;  %v9202_v1 = vld [vmem:[%s12894_s2 + $0x8] ss:$12 sps:$4 sm:$0xff]   ;;  %v9207_v6 = vld [vmem:[%s12893_s1 + $0x18] sm:$0xff]   ;;  %s8268_s14 = sshll.u32 %s9743_s17, 6 }
  0x16   : > { %8758 = vmatprep.subr.bf16.mxu1 %v9201_v0  ;;  %v9203_v2 = vld [vmem:[%s12893_s1 + $0x8] sm:$0xff]   ;;  %8790 = vmatprep.subr.bf16.mxu0 %v9202_v1  ;;  %v9205_v4 = vld [vmem:[%s12893_s1 + $0x10] sm:$0xff]   ;;  %v9206_v5 = vld [vmem:[%s12894_s2 + $0x38] ss:$12 sps:$4 sm:$0xff]   ;;  %v12906_v58 = vmov 0   ;;  %s203_s28 = sand.u32 1, %s9735_s15  }
  0x17   : > { %s9857_s13 = scalar_select %p217_p9, %s9747_s18, 1  ;;  %8759 = vmatpush3.bf16.msra.mxu1 %v9201_v0  ;;  %v9204_v3 = vld [vmem:[%s12894_s2 + $0x20] ss:$12 sps:$4 sm:$0xff]   ;;  %8791 = vmatpush3.bf16.msra.mxu0 %v9202_v1  ;;  %v9208_v7 = vld [vmem:[%s12894_s2 + $0x50] ss:$12 sps:$4 sm:$0xff]   ;;  %vm1171_vm0 = vcmask 1046528  }
  0x18   : > { %8760 = vmatprep.subr.bf16.mxu1 %v9203_v2  ;;  %8792 = vmatprep.subr.bf16.mxu0 %v9204_v3  ;;  %v9209_v8 = vld [vmem:[%s12893_s1 + $0x20] sm:$0xff]   ;;  %v9210_v9 = vld [vmem:[%s12894_s2 + $0x68] ss:$12 sps:$4 sm:$0xff]   ;;  %v9215_v16 = vld [vmem:[%s12893_s1 + $0x38] sm:$0xff]   ;;  %vm1074_vm1 = vcmask 1040384   ;;  %vm3006_vm2 = vcmask 1045504  }
  0x19   : > { %s9143_s30 = smul.u32 416, %s9857_s13  ;;  %v9211_v10 = vld [vmem:[%s12893_s1 + $0x28] sm:$0xff]   ;;  %v9213_v14 = vld [vmem:[%s12893_s1 + $0x30] sm:$0xff]   ;;  %v9214_v15 = vld [vmem:[%s12894_s2 + $0x98] ss:$12 sps:$4 sm:$0xff]   ;;  %vm3103_vm3 = vcmask 1041408  }
  0x1a   : > { %v9212_v11 = vld [vmem:[%s12894_s2 + $0x80] ss:$12 sps:$4 sm:$0xff]   ;;  %v9216_v17 = vld [vmem:[%s12894_s2 + $0xb0] ss:$12 sps:$4 sm:$0xff]   ;;  %v9224_v21 = vld [vmem:[%s12894_s2 + $0x188] ss:$12 sps:$4 sm:$0xff]  }
  0x1b   : > { %8761 = vmatpush3.bf16.msra.mxu1 %v9203_v2  ;;  %8793 = vmatpush3.bf16.msra.mxu0 %v9204_v3  ;;  %s221_s12 = scalar_lea.vmem %s12892_s0, %s9143_s30  ;;  %v9222_v19 = vld [vmem:[%s12894_s2 + $0x4] ss:$12 sps:$4 sm:$0xff]   ;;  %v9220_v20 = vld [vmem:[%s12894_s2] ss:$12 sps:$4 sm:$0xff]   ;;  %v9227_v23 = vld [vmem:[%s12894_s2 + $0x1c] ss:$12 sps:$4 sm:$0xff]  }
  0x1c   : > { %8762 = vmatprep.subr.bf16.mxu1 %v9205_v4  ;;  %8794 = vmatprep.subr.bf16.mxu0 %v9206_v5  ;;  %s9885_s29 = scalar_lea.vmem %s221_s12, %s8268_s14  ;;  %v9228_v24 = vld [vmem:[%s12894_s2 + $0x1a0] ss:$12 sps:$4 sm:$0xff]   ;;  %v9225_v27 = vld [vmem:[%s12894_s2 + $0x18] ss:$12 sps:$4 sm:$0xff]   ;;  %v9232_v31 = vld [vmem:[%s12894_s2 + $0x30] ss:$12 sps:$4 sm:$0xff]  }
  0x1d   : > { %v9894_v12 = vld [vmem:[%s9885_s29 + $0x90] sm:$0xff]   ;;  %v9897_v13 = vld [vmem:[%s9885_s29 + $0x88] sm:$0xff]   ;;  %v9914_v18 = vld [vmem:[%s9885_s29 + $0x98] sm:$0xff]   ;;  %s10413_s30 = smul.u32 320, %s203_s28  ;;  %vm4930_vm4 = vcmask 1043456   ;;  %p227_p10 = scmp.lt.s32.totalorder %s9743_s17, 1 }
  0x1e   : > { %8774 = vmatprep.mubr.bf16.mxu1 %v9894_v12  ;;  %8806 = vmatprep.mubr.bf16.mxu0 %v9897_v13  ;;  %v9926_v22 = vld [vmem:[%s9885_s29 + $0x90] sm:$0xff]   ;;  %v9935_v25 = vld [vmem:[%s9885_s29 + $0xa0] sm:$0xff]   ;;  %v9939_v26 = vld [vmem:[%s9885_s29 + $0x98] sm:$0xff]   ;;  %s7626_s11 = sshll.u32 %s9857_s13, 2  ;;  %vm7087_vm5 = vcmask 1042432   ;;  %vm7090_vm6 = vcmask 1044480  }
  0x1f   : > { %8763 = vmatpush3.bf16.msra.mxu1 %v9205_v4  ;;  %8795 = vmatpush3.bf16.msra.mxu0 %v9206_v5  ;;  %v9234_v28 = vld [vmem:[%s12894_s2 + $0x34] ss:$12 sps:$4 sm:$0xff]   ;;  %v9950_v29 = vld [vmem:[%s9885_s29 + $0xa8] sm:$0xff]   ;;  %v9236_v30 = vld [vmem:[%s12894_s2 + $0x1b8] ss:$12 sps:$4 sm:$0xff]   ;;  %s10449_s14 = scalar_lea.vmem [#allocation2], %s10413_s30 }
  0x20   : > { %8764 = vmatprep.subr.bf16.mxu1 %v9207_v6  ;;  %8796 = vmatprep.subr.bf16.mxu0 %v9208_v7  ;;  %v9960_v32 = vld [vmem:[%s9885_s29 + $0xa0] sm:$0xff]   ;;  %v9239_v33 = vld [vmem:[%s12894_s2 + $0x4c] ss:$12 sps:$4 sm:$0xff]   ;;  %v9240_v34 = vld [vmem:[%s12894_s2 + $0x1d0] ss:$12 sps:$4 sm:$0xff]   ;;  %s8263_s28 = sshll.u32 (%p9836_p6), %s9747_s18, 1 }
  0x21   : > { %v9969_v35 = vld [vmem:[%s9885_s29 + $0xb0] sm:$0xff]   ;;  %v9973_v36 = vld [vmem:[%s9885_s29 + $0xa8] sm:$0xff]   ;;  %v9980_v38 = vld [vmem:[%s9885_s29 + $0xb8] sm:$0xff]   ;;  %s7114_s27 = sadd.s32 (%p9836_p6), %s9743_s17, %s8263_s28 }
  0x22   : > { %v9237_v37 = vld [vmem:[%s12894_s2 + $0x48] ss:$12 sps:$4 sm:$0xff]   ;;  %v9246_v39 = vld [vmem:[%s12894_s2 + $0x64] ss:$12 sps:$4 sm:$0xff]   ;;  %v9244_v41 = vld [vmem:[%s12894_s2 + $0x60] ss:$12 sps:$4 sm:$0xff]  }
  0x23   : > { %8765 = vmatpush3.bf16.msra.mxu1 %v9207_v6  ;;  %8797 = vmatpush3.bf16.msra.mxu0 %v9208_v7  ;;  %v9248_v40 = vld [vmem:[%s12894_s2 + $0x1e8] ss:$12 sps:$4 sm:$0xff]   ;;  %v9252_v44 = vld [vmem:[%s12894_s2 + $0x200] ss:$12 sps:$4 sm:$0xff]   ;;  %v10007_v46 = vld [vmem:[%s9885_s29 + $0xb8] sm:$0xff]   ;;  %s8358_s5 = sshll.u32 (%p9836_p6), %s7114_s27, 6 }
  0x24   : > { %8766 = vmatprep.subr.bf16.mxu1 %v9209_v8  ;;  %8798 = vmatprep.subr.bf16.mxu0 %v9210_v9  ;;  %v9994_v42 = vld [vmem:[%s9885_s29 + $0xb0] sm:$0xff]   ;;  %v9251_v43 = vld [vmem:[%s12894_s2 + $0x7c] ss:$12 sps:$4 sm:$0xff]   ;;  %v10003_v45 = vld [vmem:[%s9885_s29 + $0xc0] sm:$0xff]   ;;  %s12798_s8 = scalar_lea.vmem (%p9836_p6), %s12895_s3, %s8358_s5 }
  0x25   : > { %v9249_v47 = vld [vmem:[%s12894_s2 + $0x78] ss:$12 sps:$4 sm:$0xff]   ;;  %v10014_v48 = vld [vmem:[%s9885_s29 + $0xc8] sm:$0xff]   ;;  %v9258_v49 = vld [vmem:[%s12894_s2 + $0x94] ss:$12 sps:$4 sm:$0xff]  }
  0x26   : > { %v9260_v50 = vld [vmem:[%s12894_s2 + $0x218] ss:$12 sps:$4 sm:$0xff]   ;;  %v9256_v51 = vld [vmem:[%s12894_s2 + $0x90] ss:$12 sps:$4 sm:$0xff]   ;;  %v9261_v56 = vld [vmem:[%s12894_s2 + $0xa8] ss:$12 sps:$4 sm:$0xff]  }
  0x27   : > { %8767 = vmatpush3.bf16.msra.mxu1 %v9209_v8  ;;  %8799 = vmatpush3.bf16.msra.mxu0 %v9210_v9  ;;  %v10028_v52 = vld [vmem:[%s9885_s29 + $0xc0] sm:$0xff]   ;;  %v9263_v53 = vld [vmem:[%s12894_s2 + $0xac] ss:$12 sps:$4 sm:$0xff]   ;;  %v9264_v54 = vld [vmem:[%s12894_s2 + $0x230] ss:$12 sps:$4 sm:$0xff]  }
  0x28   : > { %8768 = vmatprep.subr.bf16.mxu1 %v9211_v10  ;;  %8800 = vmatprep.subr.bf16.mxu0 %v9212_v11  ;;  %v9265_v55 = vld [vmem:[%s9885_s29 + $0x98] sm:$0xff]   ;;  %v9268_v57 = vld [vmem:[%s12894_s2 + $0xc4] ss:$12 sps:$4 sm:$0xff]   ;;  %v9266_v60 = vld [vmem:[%s12894_s2 + $0xc0] ss:$12 sps:$4 sm:$0xff]  }
  0x29   : > { %v9272_v59 = vld [vmem:[%s12894_s2 + $0x244] ss:$12 sps:$4 sm:$0xff]   ;;  %v9270_v62 = vld [vmem:[%s12894_s2 + $0x240] ss:$12 sps:$4 sm:$0xff]   ;;  %v9275_v63 = vld [vmem:[%s12894_s2 + $0x25c] ss:$12 sps:$4 sm:$0xff]  }
  0x2a   : > { %v9269_v61 = vld [vmem:[%s9885_s29 + $0xa0] sm:$0xff]   ;;  %v9276_v0 = vld [vmem:[%s9885_s29 + $0xa8] sm:$0xff]   ;;  %v9280_v6 = vld [vmem:[%s9885_s29 + $0xb0] sm:$0xff]  }
  0x2b   : > { %8769 = vmatpush3.bf16.msra.mxu1 %v9211_v10  ;;  %8801 = vmatpush3.bf16.msra.mxu0 %v9212_v11  ;;  %v9279_v1 = vld [vmem:[%s12894_s2 + $0xdc] ss:$12 sps:$4 sm:$0xff]   ;;  %v9277_v2 = vld [vmem:[%s12894_s2 + $0xd8] ss:$12 sps:$4 sm:$0xff]   ;;  %v9290_v4 = vld [vmem:[%s12894_s2 + $0xf4] ss:$12 sps:$4 sm:$0xff]  }
  0x2c   : > { %8770 = vmatprep.subr.bf16.mxu1 %v9213_v14  ;;  %8802 = vmatprep.subr.bf16.mxu0 %v9214_v15  ;;  %v9273_v3 = vld [vmem:[%s12894_s2 + $0x258] ss:$12 sps:$4 sm:$0xff]   ;;  %v9283_v5 = vld [vmem:[%s12894_s2 + $0x274] ss:$12 sps:$4 sm:$0xff]   ;;  %v9281_v7 = vld [vmem:[%s12894_s2 + $0x270] ss:$12 sps:$4 sm:$0xff]  }
  0x2d   : > { %v9286_v8 = vld [vmem:[%s12894_s2 + $0x28c] ss:$12 sps:$4 sm:$0xff]   ;;  %v9288_v10 = vld [vmem:[%s12894_s2 + $0xf0] ss:$12 sps:$4 sm:$0xff]  }
  0x2e   : > { %v9287_v9 = vld [vmem:[%s9885_s29 + $0xb8] sm:$0xff]  }
  0x2f   : > { %8771 = vmatpush3.bf16.msra.mxu1 %v9213_v14  ;;  %8803 = vmatpush3.bf16.msra.mxu0 %v9214_v15  ;;  %v9301_v11 = vld [vmem:[%s12894_s2 + $0x10c] ss:$12 sps:$4 sm:$0xff]   ;;  %v9294_v14 = vld [vmem:[%s12894_s2 + $0x2a4] ss:$12 sps:$4 sm:$0xff]  }
  0x30   : > { %8772 = vmatprep.subr.bf16.mxu1 %v9215_v16  ;;  %8804 = vmatprep.subr.bf16.mxu0 %v9216_v17  ;;  %v9291_v15 = vld [vmem:[%s9885_s29 + $0xc0] sm:$0xff]  }
  0x33   : > { %8773 = vmatpush3.bf16.msra.mxu1 %v9215_v16  ;;  %8805 = vmatpush3.bf16.msra.mxu0 %v9216_v17  ;;  %v9299_v16 = vld [vmem:[%s12894_s2 + $0x108] ss:$12 sps:$4 sm:$0xff]   ;;  %v9292_v17 = vld [vmem:[%s12894_s2 + $0x2a0] ss:$12 sps:$4 sm:$0xff]  }
  0x34   : > { %848 = vmatprep.subr.bf16.mxu1 %v9222_v19  ;;  %8854 = vmatprep.subr.bf16.mxu0 %v9224_v21  ;;  %v9311_v19 = vld [vmem:[%s12894_s2 + $0x124] ss:$12 sps:$4 sm:$0xff]  }
  0x36   : > { %8775 = vmatmul.mubr.bf16.vlgmr.msra.gmra.mrb[0].mxu1 %v9914_v18  ;;  %8807 = vmatmul.mubr.bf16.vlgmr.msra.gmra.mrb[0].mxu0 %v9926_v22 }
  0x37   : > { %849 = vmatpush1.bf16.msra.mxu1 %v9220_v20  ;;  %8855 = vmatpush3.bf16.msra.mxu0 %v9224_v21  ;;  %v9297_v20 = vld [vmem:[%s12894_s2 + $0x2bc] ss:$12 sps:$4 sm:$0xff]  }
  0x38   : > { %850 = vmatprep.subr.bf16.mxu1 %v9227_v23  ;;  %8856 = vmatprep.subr.bf16.mxu0 %v9228_v24  ;;  %v9298_v21 = vld [vmem:[%s9885_s29 + $0xc8] sm:$0xff]  }
  0x39   : > { %8778 = vmatprep.mubr.bf16.mxu1 %v9935_v25  ;;  %8810 = vmatprep.mubr.bf16.mxu0 %v9939_v26  ;;  %v9316_v23 = vld [vmem:[%s12894_s2 + $0x13c] ss:$12 sps:$4 sm:$0xff]  }
  0x3b   : > { %851 = vmatpush1.bf16.msra.mxu1 %v9225_v27  ;;  %8857 = vmatpush3.bf16.msra.mxu0 %v9228_v24  ;;  %v9295_v24 = vld [vmem:[%s12894_s2 + $0x2b8] ss:$12 sps:$4 sm:$0xff]   ;;  %v9302_v27 = vld [vmem:[%s9885_s29 + $0xd0] sm:$0xff]  }
  0x3c   : > { %852 = vmatprep.subr.bf16.mxu1 %v9234_v28  ;;  %8858 = vmatprep.subr.bf16.mxu0 %v9236_v30  ;;  %v9314_v28 = vld [vmem:[%s12894_s2 + $0x138] ss:$12 sps:$4 sm:$0xff]  }
  0x3e   : > { %8779 = vmatmul.mubr.bf16.gmra.mrb[4].mxu1 %v9950_v29  ;;  %8811 = vmatmul.mubr.bf16.gmra.mrb[4].mxu0 %v9960_v32 }
  0x3f   : > { %853 = vmatpush1.bf16.msra.mxu1 %v9232_v31  ;;  %8859 = vmatpush3.bf16.msra.mxu0 %v9236_v30  ;;  %v9321_v30 = vld [vmem:[%s12894_s2 + $0x154] ss:$12 sps:$4 sm:$0xff]   ;;  %v9303_v31 = vld [vmem:[%s12894_s2 + $0x2d0] ss:$12 sps:$4 sm:$0xff]  }
  0x40   : > { %854 = vmatprep.subr.bf16.mxu1 %v9239_v33  ;;  %8860 = vmatprep.subr.bf16.mxu0 %v9240_v34  ;;  %v9308_v33 = vld [vmem:[%s12894_s2 + $0x2ec] ss:$12 sps:$4 sm:$0xff]  }
  0x41   : > { %8782 = vmatprep.mubr.bf16.mxu1 %v9969_v35  ;;  %8814 = vmatprep.mubr.bf16.mxu0 %v9973_v36 }
  0x43   : > { %855 = vmatpush1.bf16.msra.mxu1 %v9237_v37  ;;  %8861 = vmatpush3.bf16.msra.mxu0 %v9240_v34  ;;  %v9319_v34 = vld [vmem:[%s12894_s2 + $0x150] ss:$12 sps:$4 sm:$0xff]   ;;  %v9326_v37 = vld [vmem:[%s12894_s2 + $0x16c] ss:$12 sps:$4 sm:$0xff]  }
  0x44   : > { %856 = vmatprep.subr.bf16.mxu1 %v9246_v39  ;;  %8862 = vmatprep.subr.bf16.mxu0 %v9248_v40  ;;  %v9306_v39 = vld [vmem:[%s12894_s2 + $0x2e8] ss:$12 sps:$4 sm:$0xff]  }
  0x46   : > { %8783 = vmatmul.mubr.bf16.gmra.mrb[8].mxu1 %v9980_v38  ;;  %8815 = vmatmul.mubr.bf16.gmra.mrb[8].mxu0 %v9994_v42 }
  0x47   : > { %857 = vmatpush1.bf16.msra.mxu1 %v9244_v41  ;;  %8863 = vmatpush3.bf16.msra.mxu0 %v9248_v40  ;;  %v9313_v40 = vld [vmem:[%s12894_s2 + $0x308] ss:$12 sps:$4 sm:$0xff]  }
  0x48   : > { %858 = vmatprep.subr.bf16.mxu1 %v9251_v43  ;;  %8864 = vmatprep.subr.bf16.mxu0 %v9252_v44  ;;  %v9329_v41 = vld [vmem:[%s12894_s2 + $0xc8] ss:$12 sps:$4 sm:$0xff]   ;;  %v9312_v43 = vld [vmem:[%s9885_s29 + $0x60] sm:$0xff]  }
  0x49   : > { %8786 = vmatprep.mubr.bf16.mxu1 %v10003_v45  ;;  %8818 = vmatprep.mubr.bf16.mxu0 %v10007_v46 }
  0x4b   : > { %859 = vmatpush1.bf16.msra.mxu1 %v9249_v47  ;;  %8865 = vmatpush3.bf16.msra.mxu0 %v9252_v44  ;;  %v9318_v44 = vld [vmem:[%s12894_s2 + $0x320] ss:$12 sps:$4 sm:$0xff]   ;;  %v9323_v47 = vld [vmem:[%s12894_s2 + $0x338] ss:$12 sps:$4 sm:$0xff]  }
  0x4c   : > { %860 = vmatprep.subr.bf16.mxu1 %v9258_v49  ;;  %8866 = vmatprep.subr.bf16.mxu0 %v9260_v50  ;;  %v9317_v49 = vld [vmem:[%s9885_s29 + $0x68] sm:$0xff]  }
  0x4e   : > { %8787 = vmatmul.mubr.bf16.gmra.mrb[12].mxu1 %v10014_v48  ;;  %8819 = vmatmul.mubr.bf16.gmra.mrb[12].mxu0 %v10028_v52 }
  0x4f   : > { %861 = vmatpush1.bf16.msra.mxu1 %v9256_v51  ;;  %8867 = vmatpush3.bf16.msra.mxu0 %v9260_v50  ;;  %v9331_v50 = vld [vmem:[%s12894_s2 + $0x368] ss:$12 sps:$4 sm:$0xff]  }
  0x50   : > { %862 = vmatprep.subr.bf16.mxu1 %v9263_v53  ;;  %8868 = vmatprep.subr.bf16.mxu0 %v9264_v54  ;;  %v9322_v51 = vld [vmem:[%s9885_s29 + $0x70] sm:$0xff]   ;;  %v9334_v53 = vld [vmem:[%s12894_s2 + $0x380] ss:$12 sps:$4 sm:$0xff]  }
  0x51   : > { %880 = vmatprep.mubr.bf16.mxu1 %v12906_v58  ;;  %8870 = vmatprep.mubr.bf16.mxu0 %v9265_v55  ;;  %v9340_v55 = vld [vmem:[%s12894_s2 + $0x3b0] ss:$12 sps:$4 sm:$0xff]  }
  0x53   : > { %863 = vmatpush1.bf16.msra.mxu1 %v9261_v56  ;;  %8869 = vmatpush3.bf16.msra.mxu0 %v9264_v54  ;;  %v9327_v54 = vld [vmem:[%s9885_s29 + $0x78] sm:$0xff]   ;;  %v9330_v56 = vld [vmem:[%s9885_s29 + $0x80] sm:$0xff]  }
  0x54   : > { %1396 = vmatprep.subr.bf16.mxu1 %v9268_v57  ;;  %2780 = vmatprep.subr.bf16.mxu0 %v9272_v59  ;;  %v9332_v57 = vld [vmem:[%s12894_s2 + $0xe0] ss:$12 sps:$4 sm:$0xff]  }
  0x55   : > { %v9333_v59 = vld [vmem:[%s9885_s29 + $0x88] sm:$0xff]  }
  0x56   : > { %881 = vmatmul.mubr.bf16.vlgmr.msra.gmra.mrb[16].mxu1 %v9897_v13  ;;  %8871 = vmatmul.mubr.bf16.vlgmr.msra.gmra.mrb[16].mxu0 %v9269_v61  ;;  %v9284_v13 = vld [vmem:[%s12894_s2 + $0x288] ss:$12 sps:$4 sm:$0xff]  }
  0x57   : > { %1397 = vmatpush1.bf16.msra.mxu1 %v9266_v60  ;;  %2781 = vmatpush1.bf16.msra.mxu0 %v9270_v62  ;;  %v9338_v60 = vld [vmem:[%s12894_s2 + $0x110] ss:$12 sps:$4 sm:$0xff]   ;;  %v9355_v62 = vld [vmem:[%s12894_s2 + $0x158] ss:$12 sps:$4 sm:$0xff]  }
  0x58   : > { %890 = vmatprep.mubr.bf16.mxu1 %v12906_v58  ;;  %2782 = vmatprep.subr.bf16.mxu0 %v9275_v63  ;;  %v9336_v61 = vld [vmem:[%s9885_s29 + $0x90] sm:$0xff]   ;;  %v9339_v63 = vld [vmem:[%s9885_s29 + $0x98] sm:$0xff]  }
  0x59   : > { %8874 = vmatprep.mubr.bf16.mxu0 %v9276_v0  ;;  %1398 = vmatprep.subr.bf16.mxu1 %v9279_v1  ;;  %v9362_v0 = vld [vmem:[%s12894_s2 + $0x170] ss:$12 sps:$4 sm:$0xff]  }
  0x5a   : > { %v9641_v1 = vld [vmem:[%s9885_s29 + $0x90] sm:$0xff]  }
  0x5b   : > { %1399 = vmatpush1.bf16.msra.mxu1 %v9277_v2  ;;  %2783 = vmatpush1.bf16.msra.mxu0 %v9273_v3  ;;  %v9371_v2 = vld [vmem:[%s12894_s2 + $0x184] ss:$12 sps:$4 sm:$0xff]   ;;  %v9342_v3 = vld [vmem:[%s12894_s2 + $0x3c0] ss:$12 sps:$4 sm:$0xff]  }
  0x5c   : > { %1400 = vmatprep.subr.bf16.mxu1 %v9290_v4  ;;  %2784 = vmatprep.subr.bf16.mxu0 %v9283_v5  ;;  %v9347_v4 = vld [vmem:[%s12894_s2 + $0x3dc] ss:$12 sps:$4 sm:$0xff]  }
  0x5d   : > { %v9642_v5 = vld [vmem:[%s9885_s29 + $0x98] sm:$0xff]  }
  0x5e   : > { %891 = vmatmul.mubr.bf16.gmra.mrb[20].mxu1 %v9926_v22  ;;  %8875 = vmatmul.mubr.bf16.gmra.mrb[20].mxu0 %v9280_v6  ;;  %v9309_v22 = vld [vmem:[%s12894_s2 + $0x120] ss:$12 sps:$4 sm:$0xff]   ;;  %v9345_v6 = vld [vmem:[%s12894_s2 + $0x3d8] ss:$12 sps:$4 sm:$0xff]  }
  0x5f   : > { %900 = vmatprep.mubr.bf16.mxu1 %v12906_v58  ;;  %2785 = vmatpush1.bf16.msra.mxu0 %v9281_v7  ;;  %v9351_v7 = vld [vmem:[%s12894_s2 + $0x3f4] ss:$12 sps:$4 sm:$0xff]  }
  0x60   : > { %8878 = vmatprep.mubr.bf16.mxu0 %v9287_v9  ;;  %2786 = vmatprep.subr.bf16.mxu0 %v9286_v8  ;;  %v9349_v8 = vld [vmem:[%s12894_s2 + $0x3f0] ss:$12 sps:$4 sm:$0xff]   ;;  %v9354_v9 = vld [vmem:[%s12894_s2 + $0x40c] ss:$12 sps:$4 sm:$0xff]  }
  0x61   : > { %1401 = vmatpush1.bf16.msra.mxu1 %v9288_v10  ;;  %v9358_v10 = vld [vmem:[%s12894_s2 + $0x424] ss:$12 sps:$4 sm:$0xff]  }
  0x62   : > { %1402 = vmatprep.subr.bf16.mxu1 %v9301_v11  ;;  %v9356_v11 = vld [vmem:[%s12894_s2 + $0x420] ss:$12 sps:$4 sm:$0xff]  }
  0x63   : > { %2787 = vmatpush1.bf16.msra.mxu0 %v9284_v13  ;;  %v9365_v13 = vld [vmem:[%s12894_s2 + $0x454] ss:$12 sps:$4 sm:$0xff]  }
  0x64   : > { %2788 = vmatprep.subr.bf16.mxu0 %v9294_v14  ;;  %v9368_v14 = vld [vmem:[%s12894_s2 + $0x46c] ss:$12 sps:$4 sm:$0xff]  }
  0x65   : > { %1403 = vmatpush1.bf16.msra.mxu1 %v9299_v16  ;;  %v9372_v16 = vld [vmem:[%s9885_s29 + $0xc0] sm:$0xff]  }
  0x66   : > { %901 = vmatmul.mubr.bf16.gmra.mrb[24].mxu1 %v9939_v26  ;;  %1404 = vmatprep.subr.bf16.mxu1 %v9311_v19  ;;  %v9305_v26 = vld [vmem:[%s12894_s2 + $0x2d4] ss:$12 sps:$4 sm:$0xff]   ;;  %v9373_v19 = vld [vmem:[%s12894_s2 + $0x198] ss:$12 sps:$4 sm:$0xff]  }
  0x67   : > { %8879 = vmatmul.mubr.bf16.gmra.mrb[24].mxu0 %v9291_v15  ;;  %910 = vmatprep.mubr.bf16.mxu1 %v12906_v58  ;;  %v9369_v15 = vld [vmem:[%s12894_s2 + $0x180] ss:$12 sps:$4 sm:$0xff]  }
  0x68   : > { %2789 = vmatpush1.bf16.msra.mxu0 %v9292_v17  ;;  %8882 = vmatprep.mubr.bf16.mxu0 %v9298_v21  ;;  %v9376_v17 = vld [vmem:[%s12894_s2 + $0x488] ss:$12 sps:$4 sm:$0xff]  }
  0x69   : > { %2790 = vmatprep.subr.bf16.mxu0 %v9297_v20  ;;  %1405 = vmatpush1.bf16.msra.mxu1 %v9309_v22  ;;  %v9384_v20 = vld [vmem:[%s12894_s2 + $0x4a0] ss:$12 sps:$4 sm:$0xff]  }
  0x6a   : > { %1406 = vmatprep.subr.bf16.mxu1 %v9316_v23  ;;  %v9379_v21 = vld [vmem:[%s12894_s2 + $0x1b4] ss:$12 sps:$4 sm:$0xff]   ;;  %v9377_v23 = vld [vmem:[%s12894_s2 + $0x1b0] ss:$12 sps:$4 sm:$0xff]  }
  0x6b   : > { %v9643_v22 = vld [vmem:[%s9885_s29 + $0xa0] sm:$0xff]  }
  0x6c   : > { %2791 = vmatpush1.bf16.msra.mxu0 %v9295_v24  ;;  %v9380_v24 = vld [vmem:[%s9885_s29 + $0xc8] sm:$0xff]  }
  0x6d   : > { %2792 = vmatprep.subr.bf16.mxu0 %v9305_v26  ;;  %1407 = vmatpush1.bf16.msra.mxu1 %v9314_v28  ;;  %v9383_v26 = vld [vmem:[%s12894_s2 + $0x1cc] ss:$12 sps:$4 sm:$0xff]   ;;  %v9400_v28 = vld [vmem:[%s12894_s2 + $0x4d0] ss:$12 sps:$4 sm:$0xff]  }
  0x6e   : > { %911 = vmatmul.mubr.bf16.gmra.mrb[28].mxu1 %v9960_v32  ;;  %1408 = vmatprep.subr.bf16.mxu1 %v9321_v30  ;;  %v9324_v32 = vld [vmem:[%s12894_s2 + $0x168] ss:$12 sps:$4 sm:$0xff]  }
  0x6f   : > { %8883 = vmatmul.mubr.bf16.gmra.mrb[28].mxu0 %v9302_v27  ;;  %920 = vmatprep.mubr.bf16.mxu1 %v12906_v58  ;;  %v9392_v27 = vld [vmem:[%s12894_s2 + $0x4b8] ss:$12 sps:$4 sm:$0xff]   ;;  %v9381_v30 = vld [vmem:[%s12894_s2 + $0x1c8] ss:$12 sps:$4 sm:$0xff]  }
  0x70   : > { %2793 = vmatpush1.bf16.msra.mxu0 %v9303_v31  ;;  %2812 = vmatprep.mubr.bf16.mxu0 %v12906_v58  ;;  %v9644_v31 = vld [vmem:[%s9885_s29 + $0xa8] sm:$0xff]  }
  0x71   : > { %2794 = vmatprep.subr.bf16.mxu0 %v9308_v33  ;;  %1409 = vmatpush1.bf16.msra.mxu1 %v9319_v34  ;;  %v9387_v33 = vld [vmem:[%s12894_s2 + $0x1e4] ss:$12 sps:$4 sm:$0xff]  }
  0x72   : > { %1410 = vmatprep.subr.bf16.mxu1 %v9326_v37  ;;  %v9645_v34 = vld [vmem:[%s9885_s29 + $0xb0] sm:$0xff]  }
  0x73   : > { %v9403_v37 = vld [vmem:[%s12894_s2 + $0x4e8] ss:$12 sps:$4 sm:$0xff]  }
  0x74   : > { %2795 = vmatpush1.bf16.msra.mxu0 %v9306_v39  ;;  %v9385_v39 = vld [vmem:[%s12894_s2 + $0x1e0] ss:$12 sps:$4 sm:$0xff]  }
  0x75   : > { %8918 = vmatprep.subr.bf16.mxu0 %v9313_v40  ;;  %1411 = vmatpush1.bf16.msra.mxu1 %v9324_v32  ;;  %v9391_v32 = vld [vmem:[%s12894_s2 + $0x1fc] ss:$12 sps:$4 sm:$0xff]  }
  0x76   : > { %921 = vmatmul.mubr.bf16.gmra.mrb[32].mxu1 %v9973_v36  ;;  %8822 = vmatprep.subr.bf16.mxu1 %v9329_v41  ;;  %v9328_v36 = vld [vmem:[%s12894_s2 + $0x350] ss:$12 sps:$4 sm:$0xff]  }
  0x77   : > { %2813 = vmatmul.mubr.bf16.vlgmr.msra.gmra.mrb[32].mxu0 %v9312_v43  ;;  %930 = vmatprep.mubr.bf16.mxu1 %v12906_v58  ;;  %v9646_v43 = vld [vmem:[%s9885_s29 + $0xb8] sm:$0xff]  }
  0x78   : > { %8919 = vmatpush3.bf16.msra.mxu0 %v9313_v40  ;;  %2822 = vmatprep.mubr.bf16.mxu0 %v12906_v58  ;;  %v9388_v40 = vld [vmem:[%s9885_s29 + $0xd0] sm:$0xff]  }
  0x79   : > { %8920 = vmatprep.subr.bf16.mxu0 %v9318_v44 }
  0x7c   : > { %8921 = vmatpush3.bf16.msra.mxu0 %v9318_v44  ;;  %v9406_v44 = vld [vmem:[%s12894_s2 + $0x500] ss:$12 sps:$4 sm:$0xff]  }
  0x7d   : > { %8922 = vmatprep.subr.bf16.mxu0 %v9323_v47 }
  0x7e   : > { %931 = vmatmul.mubr.bf16.gmra.mrb[36].mxu1 %v9994_v42  ;;  %v9337_v42 = vld [vmem:[%s12894_s2 + $0x398] ss:$12 sps:$4 sm:$0xff]  }
  0x7f   : > { %2823 = vmatmul.mubr.bf16.gmra.mrb[36].mxu0 %v9317_v49  ;;  %940 = vmatprep.mubr.bf16.mxu1 %v12906_v58  ;;  %v9647_v49 = vld [vmem:[%s9885_s29 + $0xc0] sm:$0xff]  }
  0x80   : > { %2832 = vmatprep.mubr.bf16.mxu0 %v12906_v58  ;;  %8923 = vmatpush3.bf16.msra.mxu0 %v9323_v47  ;;  %v9395_v47 = vld [vmem:[%s12894_s2 + $0x214] ss:$12 sps:$4 sm:$0xff]  }
  0x81   : > { %8924 = vmatprep.subr.bf16.mxu0 %v9328_v36 }
  0x84   : > { %8925 = vmatpush3.bf16.msra.mxu0 %v9328_v36  ;;  %v9393_v36 = vld [vmem:[%s12894_s2 + $0x210] ss:$12 sps:$4 sm:$0xff]  }
  0x85   : > { %8926 = vmatprep.subr.bf16.mxu0 %v9331_v50 }
  0x86   : > { %941 = vmatmul.mubr.bf16.gmra.mrb[40].mxu1 %v10007_v46  ;;  %v9344_v46 = vld [vmem:[%s12894_s2 + $0x3c4] ss:$12 sps:$4 sm:$0xff]  }
  0x87   : > { %2833 = vmatmul.mubr.bf16.gmra.mrb[40].mxu0 %v9322_v51  ;;  %950 = vmatprep.mubr.bf16.mxu1 %v12906_v58  ;;  %v9409_v51 = vld [vmem:[%s12894_s2 + $0x518] ss:$12 sps:$4 sm:$0xff]  }
  0x88   : > { %2842 = vmatprep.mubr.bf16.mxu0 %v12906_v58  ;;  %8927 = vmatpush3.bf16.msra.mxu0 %v9331_v50  ;;  %v9396_v50 = vld [vmem:[%s9885_s29 + $0xd8] sm:$0xff]  }
  0x89   : > { %8928 = vmatprep.subr.bf16.mxu0 %v9334_v53 }
  0x8c   : > { %8929 = vmatpush3.bf16.msra.mxu0 %v9334_v53  ;;  %v9399_v53 = vld [vmem:[%s12894_s2 + $0x22c] ss:$12 sps:$4 sm:$0xff]  }
  0x8d   : > { %8930 = vmatprep.subr.bf16.mxu0 %v9337_v42 }
  0x8e   : > { %951 = vmatmul.mubr.bf16.gmra.mrb[44].mxu1 %v10028_v52  ;;  %v9335_v52 = vld [vmem:[%s12894_s2 + $0xf8] ss:$12 sps:$4 sm:$0xff]  }
  0x8f   : > { %2843 = vmatmul.mubr.bf16.gmra.mrb[44].mxu0 %v9327_v54  ;;  %1428 = vmatprep.mubr.bf16.mxu1 %v12906_v58  ;;  %v9397_v54 = vld [vmem:[%s12894_s2 + $0x228] ss:$12 sps:$4 sm:$0xff]  }
  0x90   : > { %2852 = vmatprep.mubr.bf16.mxu0 %v12906_v58  ;;  %8931 = vmatpush3.bf16.msra.mxu0 %v9337_v42  ;;  %v9412_v42 = vld [vmem:[%s12894_s2 + $0x530] ss:$12 sps:$4 sm:$0xff]  }
  0x91   : > { %8932 = vmatprep.subr.bf16.mxu0 %v9340_v55 }
  0x94   : > { %8933 = vmatpush3.bf16.msra.mxu0 %v9340_v55  ;;  %v9648_v55 = vld [vmem:[%s9885_s29 + $0xc8] sm:$0xff]  }
  0x95   : > { %3942 = vmatprep.subr.bf16.mxu0 %v9344_v46  ;;  %v9401_v46 = vld [vmem:[%s12894_s2 + $0x248] ss:$12 sps:$4 sm:$0xff]  }
  0x96   : > { %1429 = vmatmul.mubr.bf16.vlgmr.msra.gmra.mrb[48].mxu1 %v9894_v12  ;;  %v9341_v12 = vld [vmem:[%s12894_s2 + $0x128] ss:$12 sps:$4 sm:$0xff]  }
  0x97   : > { %2853 = vmatmul.mubr.bf16.gmra.mrb[48].mxu0 %v9330_v56  ;;  %8823 = vmatpush3.bf16.msra.mxu1 %v9329_v41  ;;  %v9389_v41 = vld [vmem:[%s12894_s2 + $0x1f8] ss:$12 sps:$4 sm:$0xff]  }
  0x98   : > { %1438 = vmatprep.mubr.bf16.mxu1 %v12906_v58  ;;  %2862 = vmatprep.mubr.bf16.mxu0 %v12906_v58  ;;  %v9402_v56 = vld [vmem:[%s9885_s29 + $0xe0] sm:$0xff]  }
  0x99   : > { %8824 = vmatprep.subr.bf16.mxu1 %v9332_v57 }
  0x9b   : > { %8825 = vmatpush3.bf16.msra.mxu1 %v9332_v57  ;;  %v9418_v57 = vld [vmem:[%s12894_s2 + $0x544] ss:$12 sps:$4 sm:$0xff]  }
  0x9c   : > { %8826 = vmatprep.subr.bf16.mxu1 %v9335_v52 }
  0x9e   : > { %1439 = vmatmul.mubr.bf16.gmra.mrb[52].mxu1 %v9914_v18  ;;  %v9348_v18 = vld [vmem:[%s12894_s2 + $0x140] ss:$12 sps:$4 sm:$0xff]  }
  0x9f   : > { %2863 = vmatmul.mubr.bf16.gmra.mrb[52].mxu0 %v9333_v59  ;;  %1448 = vmatprep.mubr.bf16.mxu1 %v12906_v58  ;;  %v9649_v59 = vld [vmem:[%s9885_s29 + $0x98] sm:$0xff]  }
  0xa0   : > { %2872 = vmatprep.mubr.bf16.mxu0 %v12906_v58  ;;  %8827 = vmatpush3.bf16.msra.mxu1 %v9335_v52  ;;  %v9404_v52 = vld [vmem:[%s12894_s2 + $0x260] ss:$12 sps:$4 sm:$0xff]  }
  0xa1   : > { %8828 = vmatprep.subr.bf16.mxu1 %v9338_v60 }
  0xa4   : > { %8829 = vmatpush3.bf16.msra.mxu1 %v9338_v60  ;;  %v9407_v60 = vld [vmem:[%s12894_s2 + $0x278] ss:$12 sps:$4 sm:$0xff]  }
  0xa5   : > { %8830 = vmatprep.subr.bf16.mxu1 %v9341_v12 }
  0xa6   : > { %1449 = vmatmul.mubr.bf16.gmra.mrb[56].mxu1 %v9935_v25 }
  0xa7   : > { %2873 = vmatmul.mubr.bf16.gmra.mrb[56].mxu0 %v9336_v61  ;;  %1458 = vmatprep.mubr.bf16.mxu1 %v12906_v58  ;;  %v9410_v61 = vld [vmem:[%s12894_s2 + $0x290] ss:$12 sps:$4 sm:$0xff]  }
  0xa8   : > { %2882 = vmatprep.mubr.bf16.mxu0 %v12906_v58  ;;  %8831 = vmatpush3.bf16.msra.mxu1 %v9341_v12  ;;  %v9405_v12 = vld [vmem:[%s9885_s29 + $0xe8] sm:$0xff]  }
  0xa9   : > { %8832 = vmatprep.subr.bf16.mxu1 %v9348_v18 }
  0xac   : > { %8833 = vmatpush3.bf16.msra.mxu1 %v9348_v18  ;;  %v9650_v18 = vld [vmem:[%s9885_s29 + $0xa0] sm:$0xff]  }
  0xad   : > { %8834 = vmatprep.subr.bf16.mxu1 %v9355_v62 }
  0xae   : > { %1459 = vmatmul.mubr.bf16.gmra.mrb[60].mxu1 %v9950_v29 }
  0xaf   : > { %2883 = vmatmul.mubr.bf16.gmra.mrb[60].mxu0 %v9339_v63  ;;  %1468 = vmatprep.mubr.bf16.mxu1 %v12906_v58  ;;  %v9408_v63 = vld [vmem:[%s9885_s29 + $0xf0] sm:$0xff]  }
  0xb0   : > { %8934 = vmatprep.mubr.bf16.mxu0 %v9641_v1  ;;  %8835 = vmatpush3.bf16.msra.mxu1 %v9355_v62  ;;  %v9414_v62 = vld [vmem:[%s12894_s2 + $0x2a8] ss:$12 sps:$4 sm:$0xff]  }
  0xb1   : > { %8836 = vmatprep.subr.bf16.mxu1 %v9362_v0 }
  0xb4   : > { %8837 = vmatpush3.bf16.msra.mxu1 %v9362_v0  ;;  %v9423_v0 = vld [vmem:[%s12894_s2 + $0x2c0] ss:$12 sps:$4 sm:$0xff]  }
  0xb5   : > { %2010 = vmatprep.subr.bf16.mxu1 %v9371_v2 }
  0xb6   : > { %1469 = vmatmul.mubr.bf16.gmra.mrb[64].mxu1 %v9969_v35 }
  0xb7   : > { %8935 = vmatmul.mubr.bf16.vlgmr.msra.gmra.mrb[64].mxu0 %v9642_v5  ;;  %1478 = vmatprep.mubr.bf16.mxu1 %v12906_v58 }
  0xb8   : > { %3943 = vmatpush1.bf16.msra.mxu0 %v9342_v3  ;;  %8938 = vmatprep.mubr.bf16.mxu0 %v9935_v25  ;;  %v9352_v25 = vld [vmem:[%s12894_s2 + $0x408] ss:$12 sps:$4 sm:$0xff]   ;;  %v9432_v3 = vld [vmem:[%s12894_s2 + $0x2d8] ss:$12 sps:$4 sm:$0xff]  }
  0xb9   : > { %3944 = vmatprep.subr.bf16.mxu0 %v9347_v4 }
  0xbc   : > { %3945 = vmatpush1.bf16.msra.mxu0 %v9345_v6 }
  0xbd   : > { %3946 = vmatprep.subr.bf16.mxu0 %v9351_v7 }
  0xbe   : > { %1479 = vmatmul.mubr.bf16.gmra.mrb[68].mxu1 %v9980_v38 }
  0xbf   : > { %8939 = vmatmul.mubr.bf16.gmra.mrb[68].mxu0 %v9950_v29  ;;  %1488 = vmatprep.mubr.bf16.mxu1 %v12906_v58  ;;  %v9361_v29 = vld [vmem:[%s12894_s2 + $0x43c] ss:$12 sps:$4 sm:$0xff]  }
  0xc0   : > { %3947 = vmatpush1.bf16.msra.mxu0 %v9349_v8  ;;  %8942 = vmatprep.mubr.bf16.mxu0 %v9969_v35  ;;  %v9359_v35 = vld [vmem:[%s12894_s2 + $0x438] ss:$12 sps:$4 sm:$0xff]  }
  0xc1   : > { %3948 = vmatprep.subr.bf16.mxu0 %v9354_v9  ;;  %v9411_v9 = vld [vmem:[%s9885_s29 + $0xf8] sm:$0xff]  }
  0xc4   : > { %3949 = vmatpush1.bf16.msra.mxu0 %v9352_v25 }
  0xc5   : > { %3950 = vmatprep.subr.bf16.mxu0 %v9358_v10 }
  0xc6   : > { %1489 = vmatmul.mubr.bf16.gmra.mrb[72].mxu1 %v10003_v45 }
  0xc7   : > { %8943 = vmatmul.mubr.bf16.gmra.mrb[72].mxu0 %v9980_v38  ;;  %1498 = vmatprep.mubr.bf16.mxu1 %v12906_v58  ;;  %v9363_v38 = vld [vmem:[%s12894_s2 + $0x450] ss:$12 sps:$4 sm:$0xff]  }
  0xc8   : > { %3951 = vmatpush1.bf16.msra.mxu0 %v9356_v11  ;;  %8946 = vmatprep.mubr.bf16.mxu0 %v10003_v45  ;;  %v9366_v45 = vld [vmem:[%s12894_s2 + $0x468] ss:$12 sps:$4 sm:$0xff]  }
  0xc9   : > { %3952 = vmatprep.subr.bf16.mxu0 %v9361_v29 }
  0xcc   : > { %3953 = vmatpush1.bf16.msra.mxu0 %v9359_v35  ;;  %v9413_v35 = vld [vmem:[%s9885_s29 + $0x30] sm:$0xff]  }
  0xcd   : > { %3954 = vmatprep.subr.bf16.mxu0 %v9365_v13 }
  0xce   : > { %1499 = vmatmul.mubr.bf16.gmra.mrb[76].mxu1 %v10014_v48 }
  0xcf   : > { %8947 = vmatmul.mubr.bf16.gmra.mrb[76].mxu0 %v10014_v48  ;;  %8838 = vmatprep.mubr.bf16.mxu1 %v9641_v1  ;;  %v9375_v48 = vld [vmem:[%s12894_s2 + $0x19c] ss:$12 sps:$4 sm:$0xff]  }
  0xd0   : > { %3955 = vmatpush1.bf16.msra.mxu0 %v9363_v38  ;;  %3974 = vmatprep.mubr.bf16.mxu0 %v12906_v58  ;;  %v9651_v1 = vld [vmem:[%s9885_s29 + $0xa8] sm:$0xff]  }
  0xd1   : > { %3956 = vmatprep.subr.bf16.mxu0 %v9368_v14 }
  0xd4   : > { %3957 = vmatpush1.bf16.msra.mxu0 %v9366_v45 }
  0xd5   : > { %8982 = vmatprep.subr.bf16.mxu0 %v9376_v17 }
  0xd6   : > { %8839 = vmatmul.mubr.bf16.vlgmr.msra.gmra.mrb[80].mxu1 %v9642_v5 }
  0xd7   : > { %3975 = vmatmul.mubr.bf16.vlgmr.msra.gmra.mrb[80].mxu0 %v9372_v16  ;;  %2011 = vmatpush1.bf16.msra.mxu1 %v9369_v15  ;;  %v9441_v15 = vld [vmem:[%s12894_s2 + $0x2f0] ss:$12 sps:$4 sm:$0xff]  }
  0xd8   : > { %2012 = vmatprep.subr.bf16.mxu1 %v9375_v48  ;;  %8983 = vmatpush3.bf16.msra.mxu0 %v9376_v17  ;;  %v9652_v17 = vld [vmem:[%s9885_s29 + $0xb0] sm:$0xff]  }
  0xd9   : > { %8842 = vmatprep.mubr.bf16.mxu1 %v9643_v22  ;;  %3984 = vmatprep.mubr.bf16.mxu0 %v12906_v58 }
  0xda   : > { %8984 = vmatprep.subr.bf16.mxu0 %v9384_v20 }
  0xdb   : > { %2013 = vmatpush1.bf16.msra.mxu1 %v9373_v19 }
  0xdc   : > { %2014 = vmatprep.subr.bf16.mxu1 %v9379_v21  ;;  %8985 = vmatpush3.bf16.msra.mxu0 %v9384_v20 }
  0xdd   : > { %8986 = vmatprep.subr.bf16.mxu0 %v9392_v27 }
  0xde   : > { %8843 = vmatmul.mubr.bf16.gmra.mrb[84].mxu1 %v9644_v31 }
  0xdf   : > { %3985 = vmatmul.mubr.bf16.gmra.mrb[84].mxu0 %v9380_v24  ;;  %2015 = vmatpush1.bf16.msra.mxu1 %v9377_v23  ;;  %v9451_v23 = vld [vmem:[%s12894_s2 + $0x304] ss:$12 sps:$4 sm:$0xff]  }
  0xe0   : > { %2016 = vmatprep.subr.bf16.mxu1 %v9383_v26  ;;  %8846 = vmatprep.mubr.bf16.mxu1 %v9645_v34 }
  0xe1   : > { %3994 = vmatprep.mubr.bf16.mxu0 %v12906_v58  ;;  %8987 = vmatpush3.bf16.msra.mxu0 %v9392_v27 }
  0xe2   : > { %8988 = vmatprep.subr.bf16.mxu0 %v9400_v28 }
  0xe3   : > { %2017 = vmatpush1.bf16.msra.mxu1 %v9381_v30 }
  0xe4   : > { %2018 = vmatprep.subr.bf16.mxu1 %v9387_v33  ;;  %v9415_v33 = vld [vmem:[%s9885_s29 + $0x38] sm:$0xff]  }
  0xe5   : > { %8989 = vmatpush3.bf16.msra.mxu0 %v9400_v28 }
  0xe6   : > { %8847 = vmatmul.mubr.bf16.gmra.mrb[88].mxu1 %v9646_v43  ;;  %8990 = vmatprep.subr.bf16.mxu0 %v9403_v37 }
  0xe7   : > { %3995 = vmatmul.mubr.bf16.gmra.mrb[88].mxu0 %v9388_v40  ;;  %2019 = vmatpush1.bf16.msra.mxu1 %v9385_v39 }
  0xe8   : > { %2020 = vmatprep.subr.bf16.mxu1 %v9391_v32  ;;  %8850 = vmatprep.mubr.bf16.mxu1 %v9647_v49  ;;  %v9416_v32 = vld [vmem:[%s12894_s2 + $0x540] ss:$12 sps:$4 sm:$0xff]  }
  0xe9   : > { %4004 = vmatprep.mubr.bf16.mxu0 %v12906_v58  ;;  %8991 = vmatpush3.bf16.msra.mxu0 %v9403_v37 }
  0xea   : > { %8992 = vmatprep.subr.bf16.mxu0 %v9406_v44 }
  0xeb   : > { %2021 = vmatpush1.bf16.msra.mxu1 %v9389_v41  ;;  %v9422_v41 = vld [vmem:[%s9885_s29 + $0x40] sm:$0xff]  }
  0xec   : > { %2022 = vmatprep.subr.bf16.mxu1 %v9395_v47 }
  0xed   : > { %8993 = vmatpush3.bf16.msra.mxu0 %v9406_v44 }
  0xee   : > { %8851 = vmatmul.mubr.bf16.gmra.mrb[92].mxu1 %v9648_v55  ;;  %8994 = vmatprep.subr.bf16.mxu0 %v9409_v51 }
  0xef   : > { %4005 = vmatmul.mubr.bf16.gmra.mrb[92].mxu0 %v9396_v50  ;;  %2023 = vmatpush1.bf16.msra.mxu1 %v9393_v36  ;;  %v9421_v36 = vld [vmem:[%s12894_s2 + $0x55c] ss:$12 sps:$4 sm:$0xff]  }
  0xf0   : > { %2024 = vmatprep.subr.bf16.mxu1 %v9399_v53  ;;  %2042 = vmatprep.mubr.bf16.mxu1 %v12906_v58 }
  0xf1   : > { %4014 = vmatprep.mubr.bf16.mxu0 %v12906_v58  ;;  %8995 = vmatpush3.bf16.msra.mxu0 %v9409_v51  ;;  %v9653_v51 = vld [vmem:[%s9885_s29 + $0xb8] sm:$0xff]  }
  0xf2   : > { %8996 = vmatprep.subr.bf16.mxu0 %v9412_v42 }
  0xf3   : > { %2025 = vmatpush1.bf16.msra.mxu1 %v9397_v54  ;;  %v9419_v54 = vld [vmem:[%s12894_s2 + $0x558] ss:$12 sps:$4 sm:$0xff]  }
  0xf4   : > { %8886 = vmatprep.subr.bf16.mxu1 %v9401_v46 }
  0xf5   : > { %8997 = vmatpush3.bf16.msra.mxu0 %v9412_v42 }
  0xf6   : > { %2043 = vmatmul.mubr.bf16.vlgmr.msra.gmra.mrb[96].mxu1 %v9649_v59  ;;  %5171 = vmatprep.subr.bf16.mxu0 %v9418_v57  ;;  %v9427_v57 = vld [vmem:[%s12894_s2 + $0x574] ss:$12 sps:$4 sm:$0xff]  }
  0xf7   : > { %4015 = vmatmul.mubr.bf16.gmra.mrb[96].mxu0 %v9402_v56  ;;  %8887 = vmatpush3.bf16.msra.mxu1 %v9401_v46 }
  0xf8   : > { %2052 = vmatprep.mubr.bf16.mxu1 %v12906_v58  ;;  %4024 = vmatprep.mubr.bf16.mxu0 %v12906_v58 }
  0xf9   : > { %8888 = vmatprep.subr.bf16.mxu1 %v9404_v52 }
  0xfb   : > { %8889 = vmatpush3.bf16.msra.mxu1 %v9404_v52 }
  0xfc   : > { %8890 = vmatprep.subr.bf16.mxu1 %v9407_v60 }
  0xfe   : > { %2053 = vmatmul.mubr.bf16.gmra.mrb[100].mxu1 %v9650_v18 }
  0xff   : > { %4025 = vmatmul.mubr.bf16.gmra.mrb[100].mxu0 %v9405_v12  ;;  %2062 = vmatprep.mubr.bf16.mxu1 %v12906_v58 }
 0x100   : > { %4034 = vmatprep.mubr.bf16.mxu0 %v12906_v58  ;;  %8891 = vmatpush3.bf16.msra.mxu1 %v9407_v60 }
 0x101   : > { %8892 = vmatprep.subr.bf16.mxu1 %v9410_v61 }
 0x104   : > { %8893 = vmatpush3.bf16.msra.mxu1 %v9410_v61 }
 0x105   : > { %8894 = vmatprep.subr.bf16.mxu1 %v9414_v62 }
 0x106   : > { %2063 = vmatmul.mubr.bf16.gmra.mrb[104].mxu1 %v9651_v1 }
 0x107   : > { %4035 = vmatmul.mubr.bf16.gmra.mrb[104].mxu0 %v9408_v63  ;;  %2072 = vmatprep.mubr.bf16.mxu1 %v12906_v58 }
 0x108   : > { %4044 = vmatprep.mubr.bf16.mxu0 %v12906_v58  ;;  %8895 = vmatpush3.bf16.msra.mxu1 %v9414_v62  ;;  %v9424_v62 = vld [vmem:[%s9885_s29 + $0x48] sm:$0xff]  }
 0x109   : > { %v10421_v2 = vpop.f32.mrb[0].mxu1  ;;  %8896 = vmatprep.subr.bf16.mxu1 %v9423_v0  ;;  %v8808_v5 = vpop.f32.mrb[0].mxu0 }
 0x10a   : > { %v10426_v4 = vpop.f32.mrb[1].mxu1  ;;  %v1175_v7 = vrot.slane %v8808_v5, 1  ;;  %v995_v8 = vpop.f32.mrb[1].mxu0  ;;  %v9425_v5 = vld [vmem:[%s12894_s2 + $0x570] ss:$12 sps:$4 sm:$0xff]  }
 0x10b   : > { %v10428_v6 = vpop.f32.mrb[2].mxu1  ;;  %v1172_v11 = vrot.slane %v995_v8, 1  ;;  %v10435_v29 = vpop.f32.mrb[2].mxu0 }
 0x10c   : > { %v8367_v25 = vpack.c.bf16 %v10428_v6, %v10421_v2  ;;  %v10433_v10 = vpop.f32.mrb[3].mxu1  ;;  %8897 = vmatpush3.bf16.msra.mxu1 %v9423_v0  ;;  %v1176_v14 = vrot.slane %v10435_v29, 1  ;;  %v10443_v45 = vpop.f32.mrb[3].mxu0 }
 0x10d   : > { %v8362_v13 = vpack.c.bf16 %v10433_v10, %v10426_v4  ;;  %v545_v38 = vadd.f32 %v10433_v10, %v10426_v4  ;;  %8898 = vmatprep.subr.bf16.mxu1 %v9432_v3  ;;  %v1173_v16 = vrot.slane %v10443_v45, 1 }
 0x10e   : > { %8559 = vst [vmem:[%s10449_s14 + $0x8] sm:$0xff] %v8367_v25   ;;  %2073 = vmatmul.mubr.bf16.gmra.mrb[108].mxu1 %v9652_v17  ;;  %v10460_v19 = vsel %vm1171_vm0, %v1175_v7, %v1176_v14  ;;  %v9431_v7 = vld [vmem:[%s9885_s29 + $0x50] sm:$0xff]  }
 0x10f   : > { %8363 = vst [vmem:[%s10449_s14] sm:$0xff] %v8362_v13   ;;  %v546_v48 = vadd.f32 %v10421_v2, %v545_v38  ;;  %4045 = vmatmul.mubr.bf16.gmra.mrb[108].mxu0 %v9411_v9  ;;  %2082 = vmatprep.mubr.bf16.mxu1 %v12906_v58  ;;  %v10465_v20 = vsel %vm1171_vm0, %v1172_v11, %v1173_v16  ;;  %v9654_v38 = vld [vmem:[%s9885_s29 + $0xc0] sm:$0xff]  }
 0x110   : > { %8998 = vmatprep.mubr.bf16.mxu0 %v9413_v35  ;;  %8899 = vmatpush3.bf16.msra.mxu1 %v9432_v3  ;;  %v9430_v35 = vld [vmem:[%s12894_s2 + $0x58c] ss:$12 sps:$4 sm:$0xff]  }
 0x111   : > { %v10467_v21 = vpop.f32.mrb[4].mxu1  ;;  %v547_v22 = vadd.f32 %v10428_v6, %v546_v48  ;;  %8900 = vmatprep.subr.bf16.mxu1 %v9441_v15  ;;  %v8812_v27 = vpop.f32.mrb[4].mxu0  ;;  %v9428_v48 = vld [vmem:[%s12894_s2 + $0x588] ss:$12 sps:$4 sm:$0xff]  }
 0x112   : > { %v10473_v24 = vpop.f32.mrb[5].mxu1  ;;  %v1181_v30 = vrot.slane %v8812_v27, 1  ;;  %v1011_v31 = vpop.f32.mrb[5].mxu0 }
 0x113   : > { %v548_v26 = vadd.f32 %v547_v22, %v10473_v24  ;;  %v10476_v28 = vpop.f32.mrb[6].mxu1  ;;  %v1178_v39 = vrot.slane %v1011_v31, 1  ;;  %v10483_v40 = vpop.f32.mrb[6].mxu0 }
 0x114   : > { %v8377_v34 = vpack.c.bf16 %v10476_v28, %v10467_v21  ;;  %v10481_v37 = vpop.f32.mrb[7].mxu1  ;;  %8901 = vmatpush3.bf16.msra.mxu1 %v9441_v15  ;;  %v12905_v47 = vrot.slane %v10483_v40, 1  ;;  %v10493_v49 = vpop.f32.mrb[7].mxu0 }
 0x115   : > { %v8372_v43 = vpack.c.bf16 %v10481_v37, %v10473_v24  ;;  %v549_v44 = vadd.f32 %v548_v26, %v10481_v37  ;;  %3328 = vmatprep.subr.bf16.mxu1 %v9451_v23  ;;  %v1179_v50 = vrot.slane %v10493_v49, 1  ;;  %v9436_v26 = vld [vmem:[%s12894_s2 + $0x5a4] ss:$12 sps:$4 sm:$0xff]  }
 0x116   : > { %8561 = vst [vmem:[%s10449_s14 + $0x18] sm:$0xff] %v8377_v34   ;;  %2083 = vmatmul.mubr.bf16.gmra.mrb[112].mxu1 %v9653_v51  ;;  %v10507_v42 = vsel %vm1171_vm0, %v1181_v30, %v12905_v47 }
 0x117   : > { %8560 = vst [vmem:[%s10449_s14 + $0x10] sm:$0xff] %v8372_v43   ;;  %v550_v53 = vadd.f32 %v10467_v21, %v549_v44  ;;  %8999 = vmatmul.mubr.bf16.vlgmr.msra.gmra.mrb[112].mxu0 %v9415_v33  ;;  %2092 = vmatprep.mubr.bf16.mxu1 %v12906_v58  ;;  %v10515_v55 = vsel %vm1171_vm0, %v1178_v39, %v1179_v50 }
 0x118   : > { %5172 = vmatpush1.bf16.msra.mxu0 %v9416_v32  ;;  %9002 = vmatprep.mubr.bf16.mxu0 %v9422_v41  ;;  %v9433_v41 = vld [vmem:[%s9885_s29 + $0x58] sm:$0xff]  }
 0x119   : > { %v10517_v46 = vpop.f32.mrb[8].mxu1  ;;  %v551_v56 = vadd.f32 %v10476_v28, %v550_v53  ;;  %5173 = vmatprep.subr.bf16.mxu0 %v9421_v36  ;;  %v8816_v59 = vpop.f32.mrb[8].mxu0  ;;  %v9434_v53 = vld [vmem:[%s12894_s2 + $0x5a0] ss:$12 sps:$4 sm:$0xff]  }
 0x11a   : > { %v10523_v52 = vpop.f32.mrb[9].mxu1  ;;  %v1187_v61 = vrot.slane %v8816_v59, 1  ;;  %v1027_v18 = vpop.f32.mrb[9].mxu0 }
 0x11b   : > { %v552_v60 = vadd.f32 %v551_v56, %v10523_v52  ;;  %v10526_v12 = vpop.f32.mrb[10].mxu1  ;;  %v1184_v1 = vrot.slane %v1027_v18, 1  ;;  %v10533_v3 = vpop.f32.mrb[10].mxu0 }
 0x11c   : > { %v8387_v63 = vpack.c.bf16 %v10526_v12, %v10517_v46  ;;  %5174 = vmatpush1.bf16.msra.mxu0 %v9419_v54  ;;  %v10531_v0 = vpop.f32.mrb[11].mxu1  ;;  %v12901_v25 = vrot.slane %v10533_v3, 1  ;;  %v10543_v11 = vpop.f32.mrb[11].mxu0  ;;  %v9440_v54 = vld [vmem:[%s9885_s29 + $0x60] sm:$0xff]  }
 0x11d   : > { %v8382_v8 = vpack.c.bf16 %v10531_v0, %v10523_v52  ;;  %v553_v9 = vadd.f32 %v552_v60, %v10531_v0  ;;  %5175 = vmatprep.subr.bf16.mxu0 %v9427_v57  ;;  %v12904_v13 = vrot.slane %v10543_v11, 1 }
 0x11e   : > { %8563 = vst [vmem:[%s10449_s14 + $0x28] sm:$0xff] %v8387_v63   ;;  %2093 = vmatmul.mubr.bf16.gmra.mrb[116].mxu1 %v9654_v38  ;;  %v10557_v17 = vsel %vm1171_vm0, %v1187_v61, %v12901_v25  ;;  %v9439_v61 = vld [vmem:[%s12894_s2 + $0x5bc] ss:$12 sps:$4 sm:$0xff]  }
 0x11f   : > { %8562 = vst [vmem:[%s10449_s14 + $0x20] sm:$0xff] %v8382_v8   ;;  %v554_v15 = vadd.f32 %v10517_v46, %v553_v9  ;;  %9003 = vmatmul.mubr.bf16.gmra.mrb[116].mxu0 %v9424_v62  ;;  %2102 = vmatprep.mubr.bf16.mxu1 %v12906_v58  ;;  %v10565_v22 = vsel %vm1171_vm0, %v1184_v1, %v12904_v13  ;;  %v9655_v62 = vld [vmem:[%s9885_s29 + $0xc8] sm:$0xff]  }
 0x120   : > { %5176 = vmatpush1.bf16.msra.mxu0 %v9425_v5  ;;  %9006 = vmatprep.mubr.bf16.mxu0 %v9431_v7  ;;  %v9437_v5 = vld [vmem:[%s12894_s2 + $0x5b8] ss:$12 sps:$4 sm:$0xff]  }
 0x121   : > { %v10567_v23 = vpop.f32.mrb[12].mxu1  ;;  %v555_v27 = vadd.f32 %v10526_v12, %v554_v15  ;;  %5177 = vmatprep.subr.bf16.mxu0 %v9430_v35  ;;  %v8820_v31 = vpop.f32.mrb[12].mxu0  ;;  %v9445_v35 = vld [vmem:[%s12894_s2 + $0x5d4] ss:$12 sps:$4 sm:$0xff]  }
 0x122   : > { %v10573_v30 = vpop.f32.mrb[13].mxu1  ;;  %v1193_v39 = vrot.slane %v8820_v31, 1  ;;  %v1043_v32 = vpop.f32.mrb[13].mxu0 }
 0x123   : > { %v556_v33 = vadd.f32 %v555_v27, %v10573_v30  ;;  %v10576_v34 = vpop.f32.mrb[14].mxu1  ;;  %v1190_v36 = vrot.slane %v1043_v32, 1  ;;  %v10583_v51 = vpop.f32.mrb[14].mxu0 }
 0x124   : > { %v8397_v43 = vpack.c.bf16 %v10576_v34, %v10567_v23  ;;  %5178 = vmatpush1.bf16.msra.mxu0 %v9428_v48  ;;  %v10581_v44 = vpop.f32.mrb[15].mxu1  ;;  %v12899_v59 = vrot.slane %v10583_v51, 1  ;;  %v10593_v60 = vpop.f32.mrb[15].mxu0 }
 0x125   : > { %v8392_v56 = vpack.c.bf16 %v10581_v44, %v10573_v30  ;;  %v557_v57 = vadd.f32 %v556_v33, %v10581_v44  ;;  %5179 = vmatprep.subr.bf16.mxu0 %v9436_v26  ;;  %v12900_v18 = vrot.slane %v10593_v60, 1  ;;  %v9442_v33 = vld [vmem:[%s9885_s29 + $0x68] sm:$0xff]  }
 0x126   : > { %8565 = vst [vmem:[%s10449_s14 + $0x38] sm:$0xff] %v8397_v43   ;;  %2103 = vmatmul.mubr.bf16.gmra.mrb[120].mxu1 %v9655_v62  ;;  %v10607_v1 = vsel %vm1171_vm0, %v1193_v39, %v12899_v59  ;;  %v9443_v39 = vld [vmem:[%s12894_s2 + $0x5d0] ss:$12 sps:$4 sm:$0xff]  }
 0x127   : > { %8564 = vst [vmem:[%s10449_s14 + $0x30] sm:$0xff] %v8392_v56   ;;  %v558_v63 = vadd.f32 %v10567_v23, %v557_v57  ;;  %9007 = vmatmul.mubr.bf16.gmra.mrb[120].mxu0 %v9433_v41  ;;  %2112 = vmatprep.mubr.bf16.mxu1 %v12906_v58  ;;  %v10615_v7 = vsel %vm1171_vm0, %v1190_v36, %v12900_v18 }
 0x128   : > { %5180 = vmatpush1.bf16.msra.mxu0 %v9434_v53  ;;  %9010 = vmatprep.mubr.bf16.mxu0 %v9440_v54 }
 0x129   : > { %v559_v8 = vadd.f32 %v10576_v34, %v558_v63  ;;  %v882_v9 = vpop.f32.mrb[16].mxu1  ;;  %5181 = vmatprep.subr.bf16.mxu0 %v9439_v61  ;;  %v8872_v48 = vpop.f32.mrb[16].mxu0  ;;  %v9448_v63 = vld [vmem:[%s12894_s2 + $0x5ec] ss:$12 sps:$4 sm:$0xff]  }
 0x12a   : > { %v1075_v38 = vrot.slane %v882_v9, 7  ;;  %v884_v15 = vpop.f32.mrb[17].mxu1  ;;  %v2157_v31 = vpop.f32.mrb[17].mxu0  ;;  %v2335_v43 = vrot.slane %v8872_v48, 1  ;;  %v9656_v48 = vld [vmem:[%s9885_s29 + $0xd0] sm:$0xff]  }
 0x12b   : > { %v560_v27 = vrot.slane %v559_v8, 4  ;;  %v886_v26 = vpop.f32.mrb[18].mxu1  ;;  %v2332_v53 = vrot.slane %v2157_v31, 1  ;;  %v10626_v54 = vpop.f32.mrb[18].mxu0 }
 0x12c   : > { %v1115_v32 = vsel %vm1074_vm1, 0.0, %v1075_v38  ;;  %v1076_v41 = vrot.slane %v886_v26, 7  ;;  %5182 = vmatpush1.bf16.msra.mxu0 %v9437_v5  ;;  %v888_v36 = vpop.f32.mrb[19].mxu1  ;;  %12937 = vst [vmem:[#allocation3_spill] sm:$0xff] %v10626_v54  ;;  %v12897_v61 = vrot.slane %v10626_v54, 1  ;;  %v10629_v62 = vpop.f32.mrb[19].mxu0 }
 0x12d   : > { %v561_v56 = vadd.f32 %v560_v27, %v559_v8  ;;  %v1139_v57 = vadd.f32 %v1115_v32, %v884_v15  ;;  %5183 = vmatprep.subr.bf16.mxu0 %v9445_v35  ;;  %v12898_v5 = vrot.slane %v10629_v62, 1  ;;  %v9657_v15 = vld [vmem:[%s9885_s29 + $0x60] sm:$0xff]   ;;  %v1212_v35 = vsel %vm1171_vm0, %v1173_v16, 0.0 }
 0x12e   : > { %v1077_v9 = vsel %vm1074_vm1, %v1075_v38, %v1076_v41  ;;  %2113 = vmatmul.mubr.bf16.gmra.mrb[124].mxu1 %v9656_v48  ;;  %v9446_v38 = vld [vmem:[%s12894_s2 + $0x5e8] ss:$12 sps:$4 sm:$0xff]   ;;  %v10656_v27 = vsel %vm1171_vm0, %v2335_v43, %v12897_v61 }
 0x12f   : > { %v562_v26 = vrot.slane %v561_v56, 2  ;;  %v10638_v31 = vadd.f32 %v10465_v20, %v1139_v57  ;;  %v1140_v8 = vadd.f32 %v1077_v9, %v888_v36  ;;  %9011 = vmatmul.mubr.bf16.gmra.mrb[124].mxu0 %v9442_v33  ;;  %8902 = vmatprep.mubr.bf16.mxu1 %v9657_v15  ;;  %v10651_v20 = vsel %vm1171_vm0, %v2332_v53, %v12898_v5  ;;  %v9449_v53 = vld [vmem:[%s12894_s2 + $0x300] ss:$12 sps:$4 sm:$0xff]  }
 0x130   : > { %5184 = vmatpush1.bf16.msra.mxu0 %v9443_v39  ;;  %5203 = vmatprep.mubr.bf16.mxu0 %v12906_v58  ;;  %v9455_v39 = vld [vmem:[%s12894_s2 + $0x608] ss:$12 sps:$4 sm:$0xff]  }
 0x131   : > { %v563_v45 = vadd.f32 %v562_v26, %v561_v56  ;;  %v10658_v33 = vadd.f32 %v1212_v35, %v1140_v8  ;;  %v892_v16 = vpop.f32.mrb[20].mxu1  ;;  %5185 = vmatprep.subr.bf16.mxu0 %v9448_v63  ;;  %v8876_v36 = vpop.f32.mrb[20].mxu0  ;;  %v9454_v56 = vld [vmem:[%s12894_s2 + $0x31c] ss:$12 sps:$4 sm:$0xff]  }
 0x132   : > { %v1078_v32 = vrot.slane %v892_v16, 7  ;;  %v894_v41 = vpop.f32.mrb[21].mxu1  ;;  %v2173_v43 = vpop.f32.mrb[21].mxu0  ;;  %v2341_v26 = vrot.slane %v8876_v36, 1 }
 0x133   : > { %v564_v57 = vrot.slane %v563_v45, 1  ;;  %v896_v9 = vpop.f32.mrb[22].mxu1  ;;  %v2338_v15 = vrot.slane %v2173_v43, 1  ;;  %v10670_v35 = vpop.f32.mrb[22].mxu0 }
 0x134   : > { %v1116_v63 = vsel %vm1074_vm1, 0.0, %v1078_v32  ;;  %v1079_v48 = vrot.slane %v896_v9, 7  ;;  %5186 = vmatpush1.bf16.msra.mxu0 %v9446_v38  ;;  %v898_v8 = vpop.f32.mrb[23].mxu1  ;;  %12938 = vst [vmem:[#allocation4_spill] sm:$0xff] %v10670_v35  ;;  %v12902_v5 = vrot.slane %v10670_v35, 1  ;;  %v10675_v59 = vpop.f32.mrb[23].mxu0 }
 0x135   : > { %v10672_v16 = vadd.f32 %v564_v57, %v563_v45  ;;  %v1141_v61 = vadd.f32 %v1116_v63, %v894_v41  ;;  %12940 = vst [vmem:[#allocation6_spill] sm:$0xff] %v10675_v59  ;;  %9046 = vmatprep.subr.bf16.mxu0 %v9455_v39  ;;  %v12903_v25 = vrot.slane %v10675_v59, 1  ;;  %v9658_v9 = vld [vmem:[%s9885_s29 + $0x68] sm:$0xff]   ;;  %v10685_v57 = vld [vmem:[%s9885_s29 + $0x90] sm:$0xff]  }
 0x136   : > { %v1080_v18 = vsel %vm1074_vm1, %v1078_v32, %v1079_v48  ;;  %8903 = vmatmul.mubr.bf16.vlgmr.msra.gmra.mrb[128].mxu1 %v9658_v9  ;;  %v9452_v32 = vld [vmem:[%s12894_s2 + $0x318] ss:$12 sps:$4 sm:$0xff]   ;;  %v9458_v41 = vld [vmem:[%s12894_s2 + $0x334] ss:$12 sps:$4 sm:$0xff]  }
 0x137   : > { %12939 = vst [vmem:[#allocation5_spill] sm:$0xff] %v10672_v16  ;;  %v566_v38 = vmul.f32 0.0078125, %v10672_v16  ;;  %v10682_v36 = vadd.f32 %v10460_v19, %v1141_v61  ;;  %v1142_v45 = vadd.f32 %v1080_v18, %v898_v8  ;;  %5204 = vmatmul.mubr.bf16.vlgmr.msra.gmra.mrb[128].mxu0 %v10685_v57  ;;  %3329 = vmatpush1.bf16.msra.mxu1 %v9449_v53  ;;  %v9660_v63 = vld [vmem:[%s9885_s29 + $0x70] sm:$0xff]   ;;  %v9462_v48 = vld [vmem:[%s12894_s2 + $0x620] ss:$12 sps:$4 sm:$0xff]  }
 0x138   : > { %3330 = vmatprep.subr.bf16.mxu1 %v9454_v56  ;;  %9047 = vmatpush3.bf16.msra.mxu0 %v9455_v39  ;;  %v10697_v19 = vsel %vm1171_vm0, %v2338_v15, %v12903_v25  ;;  %v10702_v18 = vsel %vm1171_vm0, %v2341_v26, %v12902_v5 }
 0x139   : > { %12941 = vst [vmem:[#allocation7_spill] sm:$0xff] %v10697_v19  ;;  %12942 = vst [vmem:[#allocation8_spill] sm:$0xff] %v10702_v18  ;;  %v567_v61 = vsub.f32 %v10426_v4, %v566_v38  ;;  %v568_v53 = vsub.f32 %v10433_v10, %v566_v38  ;;  %v569_v39 = vsub.f32 %v10421_v2, %v566_v38  ;;  %v10708_v56 = vpop.f32.mrb[24].mxu1  ;;  %8906 = vmatprep.mubr.bf16.mxu1 %v9660_v63 }
 0x13a   : > { %v570_v43 = vsub.f32 %v10428_v6, %v566_v38  ;;  %v571_v8 = vsub.f32 %v10473_v24, %v566_v38  ;;  %v572_v26 = vsub.f32 %v10481_v37, %v566_v38  ;;  %v10717_v4 = vsub.f32 %v10467_v21, %v566_v38  ;;  %v904_v2 = vpop.f32.mrb[25].mxu1  ;;  %v10722_v6 = vpop.f32.mrb[24].mxu0  ;;  %5212 = vmatprep.mubr.bf16.mxu0 %v12906_v58 }
 0x13b   : > { %v10720_v10 = vsub.f32 %v10476_v28, %v566_v38  ;;  %v10726_v15 = vsub.f32 %v10523_v52, %v566_v38  ;;  %v10729_v9 = vsub.f32 %v10531_v0, %v566_v38  ;;  %v10732_v24 = vsub.f32 %v10517_v46, %v566_v38  ;;  %v906_v37 = vpop.f32.mrb[26].mxu1  ;;  %3331 = vmatpush1.bf16.msra.mxu1 %v9452_v32  ;;  %v10737_v28 = vpop.f32.mrb[25].mxu0  ;;  %v9456_v32 = vld [vmem:[%s12894_s2 + $0x330] ss:$12 sps:$4 sm:$0xff]  }
 0x13c   : > { %v10735_v21 = vsub.f32 %v10526_v12, %v566_v38  ;;  %v10740_v63 = vsub.f32 %v10573_v30, %v566_v38  ;;  %v10743_v52 = vsub.f32 %v10581_v44, %v566_v38  ;;  %v10746_v0 = vsub.f32 %v10567_v23, %v566_v38  ;;  %v908_v12 = vpop.f32.mrb[27].mxu1  ;;  %v10751_v5 = vpop.f32.mrb[26].mxu0  ;;  %3332 = vmatprep.subr.bf16.mxu1 %v9458_v41  ;;  %v9461_v23 = vld [vmem:[%s12894_s2 + $0x34c] ss:$12 sps:$4 sm:$0xff]  }
 0x13d   : > { %v10749_v46 = vsub.f32 %v10576_v34, %v566_v38  ;;  %v583_v25 = vmul.f32 %v567_v61, %v567_v61  ;;  %v584_v30 = vmul.f32 %v568_v53, %v568_v53  ;;  %v10756_v13 = vpop.f32.mrb[27].mxu0  ;;  %9048 = vmatprep.subr.bf16.mxu0 %v9462_v48  ;;  %v9661_v44 = vld [vmem:[%s9885_s29 + $0x78] sm:$0xff]   ;;  %v1213_v41 = vsel %vm1171_vm0, %v1176_v14, 0.0  ;;  %v9465_v14 = vld [vmem:[%s12894_s2 + $0x364] ss:$12 sps:$4 sm:$0xff]  }
 0x13e   : > { %8907 = vmatmul.mubr.bf16.gmra.mrb[132].mxu1 %v9661_v44  ;;  %v10763_v34 = vld [vmem:[%s9885_s29 + $0x98] sm:$0xff]   ;;  %v1214_v61 = vsel %vm1171_vm0, %v1179_v50, 0.0  ;;  %v585_v53 = vmul.f32 %v569_v39, %v569_v39  ;;  %v586_v47 = vmul.f32 %v570_v43, %v570_v43  ;;  %v9459_v44 = vld [vmem:[%s12894_s2 + $0x348] ss:$12 sps:$4 sm:$0xff]   ;;  %v10778_v16 = vadd.f32 %v1213_v41, %v1142_v45  ;;  %9049 = vmatpush3.bf16.msra.mxu0 %v9462_v48  ;;  %v9663_v45 = vld [vmem:[%s9885_s29 + $0x80] sm:$0xff]  }
 0x13f   : > { %5213 = vmatmul.mubr.bf16.gmra.mrb[132].mxu0 %v10763_v34  ;;  %v9469_v38 = vld [vmem:[%s12894_s2 + $0x638] ss:$12 sps:$4 sm:$0xff]   ;;  %3333 = vmatpush1.bf16.msra.mxu1 %v9456_v32  ;;  %v599_v58 = vadd.f32 %v584_v30, %v583_v25  ;;  %v1081_v35 = vrot.slane %v10708_v56, 7  ;;  %v1082_v29 = vrot.slane %v906_v37, 7  ;;  %v587_v49 = vmul.f32 %v571_v8, %v571_v8  ;;  %v9476_v48 = vld [vmem:[%s12894_s2 + $0x650] ss:$12 sps:$4 sm:$0xff]  }
 0x140   : > { %3334 = vmatprep.subr.bf16.mxu1 %v9461_v23  ;;  %v588_v50 = vmul.f32 %v572_v26, %v572_v26  ;;  %v2347_v39 = vrot.slane %v10722_v6, 1  ;;  %v2344_v43 = vrot.slane %v10737_v28, 1  ;;  %8910 = vmatprep.mubr.bf16.mxu1 %v9663_v45  ;;  %v12943_v56 = vmov 0  }
 0x141   : > { %v912_v18 = vpop.f32.mrb[28].mxu1  ;;  %5221 = vmatprep.mubr.bf16.mxu0 %v12943_v56  ;;  %v600_v37 = vadd.f32 %v599_v58, %v585_v53  ;;  %v1117_v30 = vsel %vm1074_vm1, 0.0, %v1081_v35  ;;  %v1083_v8 = vsel %vm1074_vm1, %v1081_v35, %v1082_v29  ;;  %9050 = vmatprep.subr.bf16.mxu0 %v9469_v38  ;;  %v12914_v45 = vrot.slane %v10756_v13, 1  ;;  %v9463_v58 = vld [vmem:[%s12894_s2 + $0x360] ss:$12 sps:$4 sm:$0xff]  }
 0x142   : > { %v914_v32 = vpop.f32.mrb[29].mxu1  ;;  %v10786_v25 = vpop.f32.mrb[28].mxu0  ;;  %v1084_v26 = vrot.slane %v912_v18, 7  ;;  %v1143_v28 = vadd.f32 %v1117_v30, %v904_v2  ;;  %v1144_v41 = vadd.f32 %v1083_v8, %v908_v12  ;;  %9051 = vmatpush3.bf16.msra.mxu0 %v9469_v38  ;;  %v9664_v8 = vld [vmem:[%s9885_s29 + $0x88] sm:$0xff]  }
 0x143   : > { %v916_v6 = vpop.f32.mrb[30].mxu1  ;;  %v2205_v23 = vpop.f32.mrb[29].mxu0  ;;  %3335 = vmatpush1.bf16.msra.mxu1 %v9459_v44  ;;  %v601_v35 = vadd.f32 %v600_v37, %v586_v47  ;;  %v2353_v2 = vrot.slane %v10786_v25, 1  ;;  %v9468_v44 = vld [vmem:[%s12894_s2 + $0x37c] ss:$12 sps:$4 sm:$0xff]   ;;  %9052 = vmatprep.subr.bf16.mxu0 %v9476_v48 }
 0x144   : > { %v918_v19 = vpop.f32.mrb[31].mxu1  ;;  %v10797_v54 = vpop.f32.mrb[30].mxu0  ;;  %v1118_v18 = vsel %vm1074_vm1, 0.0, %v1084_v26  ;;  %v1085_v53 = vrot.slane %v916_v6, 7  ;;  %3336 = vmatprep.subr.bf16.mxu1 %v9465_v14  ;;  %v10810_v29 = vadd.f32 %v10515_v55, %v1143_v28  ;;  %v10812_v30 = vadd.f32 %v1214_v61, %v1144_v41  ;;  %v9478_v14 = vld [vmem:[%s12894_s2 + $0x668] ss:$12 sps:$4 sm:$0xff]  }
 0x145   : > { %v10804_v12 = vpop.f32.mrb[31].mxu0  ;;  %v1145_v47 = vadd.f32 %v1118_v18, %v914_v32  ;;  %v2350_v37 = vrot.slane %v2205_v23, 1  ;;  %v602_v25 = vadd.f32 %v601_v35, %v587_v49  ;;  %v12912_v59 = vrot.slane %v10797_v54, 1  ;;  %v10822_v55 = vld [vmem:[%s9885_s29 + $0xa0] sm:$0xff]   ;;  %v9666_v61 = vld [vmem:[%s9885_s29 + $0x90] sm:$0xff]  }
 0x146   : > { %8911 = vmatmul.mubr.bf16.gmra.mrb[136].mxu1 %v9664_v8  ;;  %v1086_v6 = vsel %vm1074_vm1, %v1084_v26, %v1085_v53  ;;  %v12913_v38 = vrot.slane %v10804_v12, 1  ;;  %v9466_v49 = vld [vmem:[%s12894_s2 + $0x378] ss:$12 sps:$4 sm:$0xff]   ;;  %v10836_v26 = vsel %vm1171_vm0, %v2344_v43, %v12914_v45  ;;  %v12944_v28 = vrot.slane %v10483_v40, 1  ;;  %v9472_v35 = vld [vmem:[%s12894_s2 + $0x394] ss:$12 sps:$4 sm:$0xff]   ;;  %9053 = vmatpush3.bf16.msra.mxu0 %v9476_v48 }
 0x147   : > { %5222 = vmatmul.mubr.bf16.gmra.mrb[136].mxu0 %v10822_v55  ;;  %8914 = vmatprep.mubr.bf16.mxu1 %v9666_v61  ;;  %v10827_v32 = vadd.f32 %v10507_v42, %v1145_v47  ;;  %v1146_v23 = vadd.f32 %v1086_v6, %v918_v19  ;;  %v589_v42 = vmul.f32 %v10717_v4, %v10717_v4  ;;  %v12945_v18 = vrot.slane %v10751_v5, 1  ;;  %v9480_v4 = vld [vmem:[%s12894_s2 + $0x680] ss:$12 sps:$4 sm:$0xff]  }
 0x148   : > { %3337 = vmatpush1.bf16.msra.mxu1 %v9463_v58  ;;  %5230 = vmatprep.mubr.bf16.mxu0 %v12943_v56  ;;  %v1215_v41 = vsel %vm1171_vm0, %v12944_v28, 0.0  ;;  %v603_v19 = vadd.f32 %v602_v25, %v588_v50  ;;  %v10859_v50 = vsel %vm1171_vm0, %v2350_v37, %v12913_v38  ;;  %v590_v48 = vmul.f32 %v10720_v10, %v10720_v10 }
 0x149   : > { %v922_v58 = vpop.f32.mrb[32].mxu1  ;;  %3338 = vmatprep.subr.bf16.mxu1 %v9468_v44  ;;  %v10849_v43 = vsel %vm1171_vm0, %v2347_v39, %v12945_v18  ;;  %v10851_v53 = vadd.f32 %v1215_v41, %v1146_v23  ;;  %9054 = vmatprep.subr.bf16.mxu0 %v9478_v14  ;;  %v10864_v39 = vsel %vm1171_vm0, %v2353_v2, %v12912_v59  ;;  %v9470_v2 = vld [vmem:[%s12894_s2 + $0x390] ss:$12 sps:$4 sm:$0xff]  }
 0x14a   : > { %v1087_v40 = vrot.slane %v922_v58, 7  ;;  %v2814_v47 = vpop.f32.mrb[32].mxu0  ;;  %v924_v8 = vpop.f32.mrb[33].mxu1  ;;  %v604_v44 = vadd.f32 %v603_v19, %v589_v42  ;;  %v591_v23 = vmul.f32 %v10726_v15, %v10726_v15  ;;  %v9475_v15 = vld [vmem:[%s12894_s2 + $0x3ac] ss:$12 sps:$4 sm:$0xff]   ;;  %9055 = vmatpush3.bf16.msra.mxu0 %v9478_v14  ;;  %v12946_v14 = vrot.slane %v10543_v11, 1 }
 0x14b   : > { %v3007_v25 = vrot.slane %v2814_v47, 2  ;;  %v2816_v6 = vpop.f32.mrb[33].mxu0  ;;  %v926_v61 = vpop.f32.mrb[34].mxu1  ;;  %9056 = vmatprep.subr.bf16.mxu0 %v9480_v4  ;;  %v9477_v11 = vld [vmem:[%s12894_s2 + $0x3c8] ss:$12 sps:$4 sm:$0xff]  }
 0x14c   : > { %v1119_v28 = vsel %vm1074_vm1, 0.0, %v1087_v40  ;;  %v1088_v41 = vrot.slane %v926_v61, 7  ;;  %v2818_v37 = vpop.f32.mrb[34].mxu0  ;;  %3339 = vmatpush1.bf16.msra.mxu1 %v9466_v49  ;;  %v928_v58 = vpop.f32.mrb[35].mxu1  ;;  %v605_v18 = vadd.f32 %v604_v44, %v590_v48  ;;  %v592_v49 = vmul.f32 %v10729_v9, %v10729_v9  ;;  %v9667_v48 = vld [vmem:[%s9885_s29 + $0x98] sm:$0xff]  }
 0x14d   : > { %v1147_v10 = vadd.f32 %v1119_v28, %v924_v8  ;;  %v3047_v42 = vsel %vm3006_vm2, 0.0, %v3007_v25  ;;  %v3008_v19 = vrot.slane %v2818_v37, 2  ;;  %v2820_v47 = vpop.f32.mrb[35].mxu0  ;;  %3340 = vmatprep.subr.bf16.mxu1 %v9472_v35  ;;  %v10889_v37 = vld [vmem:[%s9885_s29 + $0xa8] sm:$0xff]   ;;  %v9482_v9 = vld [vmem:[%s12894_s2 + $0x698] ss:$12 sps:$4 sm:$0xff]  }
 0x14e   : > { %v10880_v61 = vadd.f32 %v3047_v42, %v2816_v6  ;;  %v1089_v59 = vsel %vm1074_vm1, %v1087_v40, %v1088_v41  ;;  %8915 = vmatmul.mubr.bf16.gmra.mrb[140].mxu1 %v9667_v48  ;;  %v606_v8 = vadd.f32 %v605_v18, %v591_v23  ;;  %v1216_v40 = vsel %vm1171_vm0, %v12946_v14, 0.0  ;;  %9057 = vmatpush3.bf16.msra.mxu0 %v9480_v4 }
 0x14f   : > { %v10885_v44 = vadd.f32 %v10565_v22, %v1147_v10  ;;  %v1148_v35 = vadd.f32 %v1089_v59, %v928_v58  ;;  %v3009_v28 = vsel %vm3006_vm2, %v3007_v25, %v3008_v19  ;;  %5231 = vmatmul.mubr.bf16.gmra.mrb[140].mxu0 %v10889_v37  ;;  %v9473_v22 = vld [vmem:[%s12894_s2 + $0x3a8] ss:$12 sps:$4 sm:$0xff]   ;;  %3360 = vmatprep.mubr.bf16.mxu1 %v12943_v56 }
 0x150   : > { %v10898_v6 = vadd.f32 %v3009_v28, %v2820_v47  ;;  %3341 = vmatpush1.bf16.msra.mxu1 %v9470_v2  ;;  %v593_v59 = vmul.f32 %v10732_v24, %v10732_v24  ;;  %v607_v25 = vadd.f32 %v606_v8, %v592_v49  ;;  %5239 = vmatprep.mubr.bf16.mxu0 %v12943_v56 }
 0x151   : > { %v10906_v23 = vadd.f32 %v1216_v40, %v1148_v35  ;;  %v932_v41 = vpop.f32.mrb[36].mxu1  ;;  %3342 = vmatprep.subr.bf16.mxu1 %v9475_v15  ;;  %v594_v10 = vmul.f32 %v10735_v21, %v10735_v21  ;;  %9058 = vmatprep.subr.bf16.mxu0 %v9482_v9  ;;  %v595_v15 = vmul.f32 %v10740_v63, %v10740_v63 }
 0x152   : > { %v1090_v58 = vrot.slane %v932_v41, 7  ;;  %v2824_v2 = vpop.f32.mrb[36].mxu0  ;;  %v934_v18 = vpop.f32.mrb[37].mxu1  ;;  %v608_v42 = vadd.f32 %v607_v25, %v593_v59  ;;  %v596_v59 = vmul.f32 %v10743_v52, %v10743_v52  ;;  %9059 = vmatpush3.bf16.msra.mxu0 %v9482_v9  ;;  %v9484_v41 = vld [vmem:[%s12894_s2 + $0x6b0] ss:$12 sps:$4 sm:$0xff]  }
 0x153   : > { %v3010_v24 = vrot.slane %v2824_v2, 2  ;;  %v2826_v19 = vpop.f32.mrb[37].mxu0  ;;  %v936_v47 = vpop.f32.mrb[38].mxu1  ;;  %v10940_v9 = vld [vmem:[%s9885_s29 + $0xb0] sm:$0xff]   ;;  %9060 = vmatprep.subr.bf16.mxu0 %v9484_v41 }
 0x154   : > { %v1120_v49 = vsel %vm1074_vm1, 0.0, %v1090_v58  ;;  %v1091_v48 = vrot.slane %v936_v47, 7  ;;  %v2828_v8 = vpop.f32.mrb[38].mxu0  ;;  %3343 = vmatpush1.bf16.msra.mxu1 %v9473_v22  ;;  %v938_v35 = vpop.f32.mrb[39].mxu1  ;;  %v609_v28 = vadd.f32 %v608_v42, %v594_v10  ;;  %v9479_v22 = vld [vmem:[%s12894_s2 + $0x3e0] ss:$12 sps:$4 sm:$0xff]  }
 0x155   : > { %v1149_v14 = vadd.f32 %v1120_v49, %v934_v18  ;;  %v3048_v4 = vsel %vm3006_vm2, 0.0, %v3010_v24  ;;  %v3011_v40 = vrot.slane %v2828_v8, 2  ;;  %v2830_v21 = vpop.f32.mrb[39].mxu0  ;;  %8950 = vmatprep.subr.bf16.mxu1 %v9477_v11 }
 0x156   : > { %v10920_v25 = vadd.f32 %v3048_v4, %v2826_v19  ;;  %v1092_v63 = vsel %vm1074_vm1, %v1090_v58, %v1091_v48  ;;  %v610_v2 = vadd.f32 %v609_v28, %v595_v15  ;;  %v12947_v58 = vrot.slane %v10533_v3, 1  ;;  %v9481_v15 = vld [vmem:[%s12894_s2 + $0x3f8] ss:$12 sps:$4 sm:$0xff]   ;;  %9061 = vmatpush3.bf16.msra.mxu0 %v9484_v41 }
 0x157   : > { %v10930_v18 = vadd.f32 %v10557_v17, %v1149_v14  ;;  %v1150_v10 = vadd.f32 %v1092_v63, %v938_v35  ;;  %v3012_v52 = vsel %vm3006_vm2, %v3010_v24, %v3011_v40  ;;  %3361 = vmatmul.mubr.bf16.vlgmr.msra.gmra.mrb[144].mxu1 %v10685_v57  ;;  %5240 = vmatmul.mubr.bf16.gmra.mrb[144].mxu0 %v10940_v9  ;;  %v9490_v17 = vld [vmem:[%s12894_s2 + $0x6c4] ss:$12 sps:$4 sm:$0xff]  }
 0x158   : > { %v1217_v42 = vsel %vm1171_vm0, %v12947_v58, 0.0  ;;  %v10937_v19 = vadd.f32 %v3012_v52, %v2830_v21  ;;  %8951 = vmatpush3.bf16.msra.mxu1 %v9477_v11  ;;  %v597_v24 = vmul.f32 %v10746_v0, %v10746_v0  ;;  %v611_v47 = vadd.f32 %v610_v2, %v596_v59  ;;  %3370 = vmatprep.mubr.bf16.mxu1 %v12943_v56 }
 0x159   : > { %v10948_v57 = vadd.f32 %v1217_v42, %v1150_v10  ;;  %v942_v3 = vpop.f32.mrb[40].mxu1  ;;  %5248 = vmatprep.mubr.bf16.mxu0 %v12943_v56  ;;  %8952 = vmatprep.subr.bf16.mxu1 %v9479_v22  ;;  %v598_v0 = vmul.f32 %v10749_v46, %v10749_v46  ;;  %v9483_v42 = vld [vmem:[%s12894_s2 + $0x410] ss:$12 sps:$4 sm:$0xff]  }
 0x15a   : > { %v1093_v11 = vrot.slane %v942_v3, 7  ;;  %v2834_v49 = vpop.f32.mrb[40].mxu0  ;;  %v944_v48 = vpop.f32.mrb[41].mxu1  ;;  %v612_v8 = vadd.f32 %v611_v47, %v597_v24  ;;  %6330 = vmatprep.subr.bf16.mxu0 %v9490_v17  ;;  %v12949_v47 = vrot.slane %v10593_v60, 1  ;;  %v9486_v60 = vld [vmem:[%s12894_s2 + $0x428] ss:$12 sps:$4 sm:$0xff]  }
 0x15b   : > { %v3013_v35 = vrot.slane %v2834_v49, 2  ;;  %v2836_v28 = vpop.f32.mrb[41].mxu0  ;;  %v946_v14 = vpop.f32.mrb[42].mxu1 }
 0x15c   : > { %v1121_v4 = vsel %vm1074_vm1, 0.0, %v1093_v11  ;;  %v1094_v40 = vrot.slane %v946_v14, 7  ;;  %v2838_v21 = vpop.f32.mrb[42].mxu0  ;;  %v948_v59 = vpop.f32.mrb[43].mxu1  ;;  %8953 = vmatpush3.bf16.msra.mxu1 %v9479_v22  ;;  %v10958_v63 = vadd.f32 %v612_v8, %v598_v0  ;;  %v1218_v3 = vsel %vm1171_vm0, %v12949_v47, 0.0 }
 0x15d   : > { %v1151_v2 = vadd.f32 %v1121_v4, %v944_v48  ;;  %v3049_v10 = vsel %vm3006_vm2, 0.0, %v3013_v35  ;;  %v3014_v52 = vrot.slane %v2838_v21, 2  ;;  %v2840_v46 = vpop.f32.mrb[43].mxu0  ;;  %8954 = vmatprep.subr.bf16.mxu1 %v9481_v15  ;;  %v10978_v48 = vld [vmem:[%s9885_s29 + $0xb8] sm:$0xff]  }
 0x15e   : > { %12948 = vst [vmem:[#allocation9_spill] sm:$0xff] %v10958_v63  ;;  %v10961_v58 = vadd.f32 %v3049_v10, %v2836_v28  ;;  %v1095_v41 = vsel %vm1074_vm1, %v1093_v11, %v1094_v40 }
 0x15f   : > { %v10968_v22 = vadd.f32 %v10615_v7, %v1151_v2  ;;  %v1152_v17 = vadd.f32 %v1095_v41, %v948_v59  ;;  %v3015_v24 = vsel %vm3006_vm2, %v3013_v35, %v3014_v52  ;;  %3371 = vmatmul.mubr.bf16.gmra.mrb[148].mxu1 %v10763_v34  ;;  %5249 = vmatmul.mubr.bf16.gmra.mrb[148].mxu0 %v10978_v48 }
 0x160   : > { %v10975_v49 = vadd.f32 %v3015_v24, %v2840_v46  ;;  %3380 = vmatprep.mubr.bf16.mxu1 %v12943_v56  ;;  %5257 = vmatprep.mubr.bf16.mxu0 %v12943_v56 }
 0x161   : > { %v10982_v11 = vadd.f32 %v1218_v3, %v1152_v17  ;;  %v952_v7 = vpop.f32.mrb[44].mxu1  ;;  %8955 = vmatpush3.bf16.msra.mxu1 %v9481_v15  ;;  %v9495_v17 = vld [vmem:[%s12894_s2 + $0x440] ss:$12 sps:$4 sm:$0xff]  }
 0x162   : > { %v1096_v0 = vrot.slane %v952_v7, 7  ;;  %v2844_v34 = vpop.f32.mrb[44].mxu0  ;;  %v954_v8 = vpop.f32.mrb[45].mxu1  ;;  %8956 = vmatprep.subr.bf16.mxu1 %v9483_v42  ;;  %v12950_v7 = vrot.slane %v10583_v51, 1 }
 0x163   : > { %v3016_v35 = vrot.slane %v2844_v34, 2  ;;  %v2846_v28 = vpop.f32.mrb[45].mxu0  ;;  %v956_v14 = vpop.f32.mrb[46].mxu1 }
 0x164   : > { %v1122_v4 = vsel %vm1074_vm1, 0.0, %v1096_v0  ;;  %v1097_v40 = vrot.slane %v956_v14, 7  ;;  %v2848_v21 = vpop.f32.mrb[46].mxu0  ;;  %v958_v59 = vpop.f32.mrb[47].mxu1 }
 0x165   : > { %v1153_v2 = vadd.f32 %v1122_v4, %v954_v8  ;;  %v3050_v15 = vsel %vm3006_vm2, 0.0, %v3016_v35  ;;  %v3017_v10 = vrot.slane %v2848_v21, 2  ;;  %v2850_v52 = vpop.f32.mrb[47].mxu0  ;;  %8957 = vmatpush3.bf16.msra.mxu1 %v9483_v42  ;;  %v1219_v42 = vsel %vm1171_vm0, %v12950_v7, 0.0 }
 0x166   : > { %v10990_v46 = vadd.f32 %v3050_v15, %v2846_v28  ;;  %v1098_v41 = vsel %vm1074_vm1, %v1096_v0, %v1097_v40  ;;  %8958 = vmatprep.subr.bf16.mxu1 %v9486_v60  ;;  %v11007_v0 = vld [vmem:[%s9885_s29 + $0xc0] sm:$0xff]  }
 0x167   : > { %v10997_v24 = vadd.f32 %v10607_v1, %v1153_v2  ;;  %v1154_v47 = vadd.f32 %v1098_v41, %v958_v59  ;;  %v3018_v3 = vsel %vm3006_vm2, %v3016_v35, %v3017_v10  ;;  %3381 = vmatmul.mubr.bf16.gmra.mrb[152].mxu1 %v10822_v55  ;;  %5258 = vmatmul.mubr.bf16.gmra.mrb[152].mxu0 %v11007_v0  ;;  %v9504_v28 = vld [vmem:[%s12894_s2 + $0x458] ss:$12 sps:$4 sm:$0xff]  }
 0x168   : > { %v11004_v34 = vadd.f32 %v3018_v3, %v2850_v52  ;;  %3390 = vmatprep.mubr.bf16.mxu1 %v12943_v56  ;;  %5266 = vmatprep.mubr.bf16.mxu0 %v12943_v56 }
 0x169   : > { %v11011_v8 = vadd.f32 %v1219_v42, %v1154_v47  ;;  %v1430_v1 = vpop.f32.mrb[48].mxu1  ;;  %8959 = vmatpush3.bf16.msra.mxu1 %v9486_v60  ;;  %v9485_v47 = vld [vmem:[%s9885_s29 + $0xf0] sm:$0xff]  }
 0x16a   : > { %v1622_v35 = vrot.slane %v1430_v1, 7  ;;  %v2854_v55 = vpop.f32.mrb[48].mxu0  ;;  %v1432_v51 = vpop.f32.mrb[49].mxu1  ;;  %8960 = vmatprep.subr.bf16.mxu1 %v9495_v17  ;;  %v9513_v42 = vld [vmem:[%s12894_s2 + $0x470] ss:$12 sps:$4 sm:$0xff]  }
 0x16b   : > { %v3019_v14 = vrot.slane %v2854_v55, 2  ;;  %v2856_v4 = vpop.f32.mrb[49].mxu0  ;;  %v1434_v40 = vpop.f32.mrb[50].mxu1 }
 0x16c   : > { %v1662_v21 = vsel %vm1074_vm1, 0.0, %v1622_v35  ;;  %v1623_v59 = vrot.slane %v1434_v40, 7  ;;  %v2858_v2 = vpop.f32.mrb[50].mxu0  ;;  %v1436_v15 = vpop.f32.mrb[51].mxu1 }
 0x16d   : > { %v1670_v60 = vadd.f32 %v1662_v21, %v10638_v31  ;;  %v3051_v10 = vsel %vm3006_vm2, 0.0, %v3019_v14  ;;  %v3020_v52 = vrot.slane %v2858_v2, 2  ;;  %v2860_v41 = vpop.f32.mrb[51].mxu0  ;;  %8961 = vmatpush3.bf16.msra.mxu1 %v9495_v17  ;;  %v11035_v17 = vld [vmem:[%s9885_s29 + $0xc8] sm:$0xff]  }
 0x16e   : > { %v11021_v3 = vadd.f32 %v3051_v10, %v2856_v4  ;;  %v1624_v7 = vsel %vm1074_vm1, %v1622_v35, %v1623_v59  ;;  %8962 = vmatprep.subr.bf16.mxu1 %v9504_v28 }
 0x16f   : > { %v11027_v1 = vadd.f32 %v1670_v60, %v1432_v51  ;;  %v1671_v55 = vadd.f32 %v1624_v7, %v10658_v33  ;;  %v3021_v31 = vsel %vm3006_vm2, %v3019_v14, %v3020_v52  ;;  %3391 = vmatmul.mubr.bf16.gmra.mrb[156].mxu1 %v10889_v37  ;;  %5267 = vmatmul.mubr.bf16.gmra.mrb[156].mxu0 %v11035_v17  ;;  %v9523_v37 = vld [vmem:[%s12894_s2 + $0x484] ss:$12 sps:$4 sm:$0xff]  }
 0x170   : > { %v11032_v40 = vadd.f32 %v3021_v31, %v2860_v41  ;;  %3400 = vmatprep.mubr.bf16.mxu1 %v12943_v56  ;;  %9062 = vmatprep.mubr.bf16.mxu0 %v9485_v47  ;;  %v9487_v41 = vld [vmem:[%s9885_s29 + $0xf8] sm:$0xff]   ;;  %v9488_v31 = vld [vmem:[%s12894_s2 + $0x6c0] ss:$12 sps:$4 sm:$0xff]  }
 0x171   : > { %v11039_v35 = vadd.f32 %v1671_v55, %v1436_v15  ;;  %v1440_v4 = vpop.f32.mrb[52].mxu1  ;;  %8963 = vmatpush3.bf16.msra.mxu1 %v9504_v28 }
 0x172   : > { %v1625_v51 = vrot.slane %v1440_v4, 7  ;;  %v2864_v33 = vpop.f32.mrb[52].mxu0  ;;  %v1442_v21 = vpop.f32.mrb[53].mxu1  ;;  %8964 = vmatprep.subr.bf16.mxu1 %v9513_v42  ;;  %v9494_v4 = vld [vmem:[%s9885_s29 + $0x100] sm:$0xff]  }
 0x173   : > { %v3022_v14 = vrot.slane %v2864_v33, 2  ;;  %v2866_v59 = vpop.f32.mrb[53].mxu0  ;;  %v1444_v2 = vpop.f32.mrb[54].mxu1 }
 0x174   : > { %v1663_v60 = vsel %vm1074_vm1, 0.0, %v1625_v51  ;;  %v1626_v15 = vrot.slane %v1444_v2, 7  ;;  %v2868_v10 = vpop.f32.mrb[54].mxu0  ;;  %v1446_v52 = vpop.f32.mrb[55].mxu1  ;;  %v9493_v2 = vld [vmem:[%s12894_s2 + $0x6dc] ss:$12 sps:$4 sm:$0xff]  }
 0x175   : > { %v1672_v28 = vadd.f32 %v1663_v60, %v10682_v36  ;;  %v3052_v47 = vsel %vm3006_vm2, 0.0, %v3022_v14  ;;  %v3023_v7 = vrot.slane %v2868_v10, 2  ;;  %v2870_v55 = vpop.f32.mrb[55].mxu0  ;;  %8965 = vmatpush3.bf16.msra.mxu1 %v9513_v42 }
 0x176   : > { %v11052_v33 = vadd.f32 %v3052_v47, %v2866_v59  ;;  %v1627_v38 = vsel %vm1074_vm1, %v1625_v51, %v1626_v15  ;;  %4712 = vmatprep.subr.bf16.mxu1 %v9523_v37 }
 0x177   : > { %v11058_v36 = vadd.f32 %v1672_v28, %v1442_v21  ;;  %v1673_v60 = vadd.f32 %v1627_v38, %v10778_v16  ;;  %v3024_v10 = vsel %vm3006_vm2, %v3022_v14, %v3023_v7  ;;  %3401 = vmatmul.mubr.bf16.gmra.mrb[160].mxu1 %v10940_v9  ;;  %9063 = vmatmul.mubr.bf16.vlgmr.msra.gmra.mrb[160].mxu0 %v9487_v41  ;;  %v9491_v21 = vld [vmem:[%s12894_s2 + $0x6d8] ss:$12 sps:$4 sm:$0xff]   ;;  %v9499_v9 = vld [vmem:[%s12894_s2 + $0x6f4] ss:$12 sps:$4 sm:$0xff]   ;;  %v9496_v7 = vld [vmem:[%s9885_s29 + $0x108] sm:$0xff]  }
 0x178   : > { %v11063_v45 = vadd.f32 %v3024_v10, %v2870_v55  ;;  %3410 = vmatprep.mubr.bf16.mxu1 %v12943_v56  ;;  %6331 = vmatpush1.bf16.msra.mxu0 %v9488_v31  ;;  %v9503_v10 = vld [vmem:[%s9885_s29 + $0x110] sm:$0xff]  }
 0x179   : > { %v11066_v42 = vadd.f32 %v1673_v60, %v1446_v52  ;;  %v1450_v51 = vpop.f32.mrb[56].mxu1  ;;  %9066 = vmatprep.mubr.bf16.mxu0 %v9494_v4  ;;  %6332 = vmatprep.subr.bf16.mxu0 %v9493_v2  ;;  %v9497_v60 = vld [vmem:[%s12894_s2 + $0x6f0] ss:$12 sps:$4 sm:$0xff]  }
 0x17a   : > { %v1628_v16 = vrot.slane %v1450_v51, 7  ;;  %v2874_v38 = vpop.f32.mrb[56].mxu0  ;;  %v1452_v37 = vpop.f32.mrb[57].mxu1 }
 0x17b   : > { %v3025_v14 = vrot.slane %v2874_v38, 2  ;;  %v2876_v59 = vpop.f32.mrb[57].mxu0  ;;  %v1454_v15 = vpop.f32.mrb[58].mxu1 }
 0x17c   : > { %v1664_v52 = vsel %vm1074_vm1, 0.0, %v1628_v16  ;;  %v1629_v41 = vrot.slane %v1454_v15, 7  ;;  %v2878_v28 = vpop.f32.mrb[58].mxu0  ;;  %v1456_v47 = vpop.f32.mrb[59].mxu1  ;;  %6333 = vmatpush1.bf16.msra.mxu0 %v9491_v21  ;;  %v9502_v15 = vld [vmem:[%s12894_s2 + $0x70c] ss:$12 sps:$4 sm:$0xff]  }
 0x17d   : > { %v1674_v55 = vadd.f32 %v1664_v52, %v10810_v29  ;;  %v3053_v31 = vsel %vm3006_vm2, 0.0, %v3025_v14  ;;  %v3026_v4 = vrot.slane %v2878_v28, 2  ;;  %v2880_v2 = vpop.f32.mrb[59].mxu0  ;;  %6334 = vmatprep.subr.bf16.mxu0 %v9499_v9 }
 0x17e   : > { %v11082_v51 = vadd.f32 %v3053_v31, %v2876_v59  ;;  %v1630_v38 = vsel %vm1074_vm1, %v1628_v16, %v1629_v41 }
 0x17f   : > { %v11088_v29 = vadd.f32 %v1674_v55, %v1452_v37  ;;  %v1675_v52 = vadd.f32 %v1630_v38, %v10812_v30  ;;  %v3027_v21 = vsel %vm3006_vm2, %v3025_v14, %v3026_v4  ;;  %3411 = vmatmul.mubr.bf16.gmra.mrb[164].mxu1 %v10978_v48  ;;  %9067 = vmatmul.mubr.bf16.gmra.mrb[164].mxu0 %v9496_v7  ;;  %v9500_v37 = vld [vmem:[%s12894_s2 + $0x708] ss:$12 sps:$4 sm:$0xff]   ;;  %v9508_v48 = vld [vmem:[%s12894_s2 + $0x724] ss:$12 sps:$4 sm:$0xff]  }
 0x180   : > { %v11093_v28 = vadd.f32 %v3027_v21, %v2880_v2  ;;  %3420 = vmatprep.mubr.bf16.mxu1 %v12943_v56  ;;  %6335 = vmatpush1.bf16.msra.mxu0 %v9497_v60  ;;  %v9505_v60 = vld [vmem:[%s9885_s29 + $0x118] sm:$0xff]   ;;  %v9506_v21 = vld [vmem:[%s12894_s2 + $0x720] ss:$12 sps:$4 sm:$0xff]  }
 0x181   : > { %v11096_v59 = vadd.f32 %v1675_v52, %v1456_v47  ;;  %v1460_v16 = vpop.f32.mrb[60].mxu1  ;;  %9070 = vmatprep.mubr.bf16.mxu0 %v9503_v10  ;;  %6336 = vmatprep.subr.bf16.mxu0 %v9502_v15 }
 0x182   : > { %v1631_v30 = vrot.slane %v1460_v16, 7  ;;  %v2884_v9 = vpop.f32.mrb[60].mxu0  ;;  %v1462_v14 = vpop.f32.mrb[61].mxu1  ;;  %v9512_v16 = vld [vmem:[%s9885_s29 + $0x120] sm:$0xff]  }
 0x183   : > { %v3028_v41 = vrot.slane %v2884_v9, 2  ;;  %v2886_v47 = vpop.f32.mrb[61].mxu0  ;;  %v1464_v7 = vpop.f32.mrb[62].mxu1 }
 0x184   : > { %v1665_v55 = vsel %vm1074_vm1, 0.0, %v1631_v30  ;;  %v1632_v31 = vrot.slane %v1464_v7, 7  ;;  %v2888_v4 = vpop.f32.mrb[62].mxu0  ;;  %v1466_v2 = vpop.f32.mrb[63].mxu1  ;;  %6337 = vmatpush1.bf16.msra.mxu0 %v9500_v37  ;;  %v9511_v7 = vld [vmem:[%s12894_s2 + $0x73c] ss:$12 sps:$4 sm:$0xff]  }
 0x185   : > { %v1676_v10 = vadd.f32 %v1665_v55, %v10827_v32  ;;  %v3054_v38 = vsel %vm3006_vm2, 0.0, %v3028_v41  ;;  %v3029_v52 = vrot.slane %v2888_v4, 2  ;;  %v2890_v15 = vpop.f32.mrb[63].mxu0  ;;  %6338 = vmatprep.subr.bf16.mxu0 %v9508_v48 }
 0x186   : > { %v11112_v9 = vadd.f32 %v3054_v38, %v2886_v47  ;;  %v1633_v63 = vsel %vm1074_vm1, %v1631_v30, %v1632_v31 }
 0x187   : > { %v11118_v32 = vadd.f32 %v1676_v10, %v1462_v14  ;;  %v1677_v55 = vadd.f32 %v1633_v63, %v10851_v53  ;;  %v3030_v37 = vsel %vm3006_vm2, %v3028_v41, %v3029_v52  ;;  %3421 = vmatmul.mubr.bf16.gmra.mrb[168].mxu1 %v11007_v0  ;;  %9071 = vmatmul.mubr.bf16.gmra.mrb[168].mxu0 %v9505_v60  ;;  %v9509_v14 = vld [vmem:[%s12894_s2 + $0x738] ss:$12 sps:$4 sm:$0xff]   ;;  %v9517_v0 = vld [vmem:[%s12894_s2 + $0x754] ss:$12 sps:$4 sm:$0xff]  }
 0x188   : > { %12951 = vst [vmem:[#allocation10_spill] sm:$0xff] %v11112_v9  ;;  %v11123_v4 = vadd.f32 %v3030_v37, %v2890_v15  ;;  %3430 = vmatprep.mubr.bf16.mxu1 %v12943_v56  ;;  %6339 = vmatpush1.bf16.msra.mxu0 %v9506_v21  ;;  %v9514_v21 = vld [vmem:[%s9885_s29 + $0x128] sm:$0xff]   ;;  %v9515_v37 = vld [vmem:[%s12894_s2 + $0x750] ss:$12 sps:$4 sm:$0xff]  }
 0x189   : > { %v11126_v47 = vadd.f32 %v1677_v55, %v1466_v2  ;;  %v1470_v30 = vpop.f32.mrb[64].mxu1  ;;  %9074 = vmatprep.mubr.bf16.mxu0 %v9512_v16  ;;  %6340 = vmatprep.subr.bf16.mxu0 %v9511_v7 }
 0x18a   : > { %v1634_v53 = vrot.slane %v1470_v30, 7  ;;  %v1472_v63 = vpop.f32.mrb[65].mxu1  ;;  %v8936_v48 = vpop.f32.mrb[64].mxu0 }
 0x18b   : > { %v1474_v41 = vpop.f32.mrb[66].mxu1  ;;  %v3653_v31 = vrot.slane %v8936_v48, 6  ;;  %v3475_v2 = vpop.f32.mrb[65].mxu0 }
 0x18c   : > { %v1666_v60 = vsel %vm1074_vm1, 0.0, %v1634_v53  ;;  %v1635_v10 = vrot.slane %v1474_v41, 7  ;;  %v1476_v38 = vpop.f32.mrb[67].mxu1  ;;  %v3650_v52 = vrot.slane %v3475_v2, 6  ;;  %v11135_v15 = vpop.f32.mrb[66].mxu0  ;;  %6341 = vmatpush1.bf16.msra.mxu0 %v9509_v14 }
 0x18d   : > { %12952 = vst [vmem:[#allocation11_spill] sm:$0xff] %v11135_v15  ;;  %v1678_v16 = vadd.f32 %v1666_v60, %v10885_v44  ;;  %v12916_v7 = vrot.slane %v11135_v15, 6  ;;  %v11140_v55 = vpop.f32.mrb[67].mxu0  ;;  %6342 = vmatprep.subr.bf16.mxu0 %v9517_v0  ;;  %v9520_v41 = vld [vmem:[%s12894_s2 + $0x76c] ss:$12 sps:$4 sm:$0xff]  }
 0x18e   : > { %12953 = vst [vmem:[#allocation12_spill] sm:$0xff] %v11140_v55  ;;  %v1636_v30 = vsel %vm1074_vm1, %v1634_v53, %v1635_v10  ;;  %v12917_v48 = vrot.slane %v11140_v55, 6  ;;  %v9673_v53 = vld [vmem:[%s9885_s29 + $0xc0] sm:$0xff]   ;;  %v9527_v15 = vld [vmem:[%s12894_s2 + $0x49c] ss:$12 sps:$4 sm:$0xff]  }
 0x18f   : > { %v11150_v2 = vadd.f32 %v1678_v16, %v1472_v63  ;;  %v1679_v44 = vadd.f32 %v1636_v30, %v10906_v23  ;;  %3431 = vmatmul.mubr.bf16.gmra.mrb[172].mxu1 %v11035_v17  ;;  %v11157_v14 = vsel %vm3103_vm3, %v3653_v31, %v12916_v7  ;;  %9075 = vmatmul.mubr.bf16.gmra.mrb[172].mxu0 %v9514_v21  ;;  %v9518_v23 = vld [vmem:[%s12894_s2 + $0x768] ss:$12 sps:$4 sm:$0xff]  }
 0x190   : > { %12954 = vst [vmem:[#allocation13_spill] sm:$0xff] %v11157_v14  ;;  %8966 = vmatprep.mubr.bf16.mxu1 %v9673_v53  ;;  %v11163_v0 = vsel %vm3103_vm3, %v3650_v52, %v12917_v48  ;;  %6343 = vmatpush1.bf16.msra.mxu0 %v9515_v37  ;;  %v9530_v52 = vld [vmem:[%s12894_s2 + $0x784] ss:$12 sps:$4 sm:$0xff]   ;;  %v9521_v37 = vld [vmem:[%s12894_s2 + $0x480] ss:$12 sps:$4 sm:$0xff]  }
 0x191   : > { %12955 = vst [vmem:[#allocation14_spill] sm:$0xff] %v11163_v0  ;;  %v11165_v60 = vadd.f32 %v1679_v44, %v1476_v38  ;;  %v1480_v63 = vpop.f32.mrb[68].mxu1  ;;  %6362 = vmatprep.mubr.bf16.mxu0 %v12943_v56  ;;  %6344 = vmatprep.subr.bf16.mxu0 %v9520_v41  ;;  %v9524_v41 = vld [vmem:[%s9885_s29] sm:$0xff]  }
 0x192   : > { %v1637_v17 = vrot.slane %v1480_v63, 7  ;;  %v1482_v31 = vpop.f32.mrb[69].mxu1  ;;  %v8940_v10 = vpop.f32.mrb[68].mxu0 }
 0x193   : > { %v1484_v21 = vpop.f32.mrb[70].mxu1  ;;  %v3659_v38 = vrot.slane %v8940_v10, 6  ;;  %v3491_v16 = vpop.f32.mrb[69].mxu0 }
 0x194   : > { %v1667_v30 = vsel %vm1074_vm1, 0.0, %v1637_v17  ;;  %v1638_v44 = vrot.slane %v1484_v21, 7  ;;  %v1486_v53 = vpop.f32.mrb[71].mxu1  ;;  %v3656_v63 = vrot.slane %v3491_v16, 6  ;;  %v11178_v7 = vpop.f32.mrb[70].mxu0  ;;  %6345 = vmatpush1.bf16.msra.mxu0 %v9518_v23  ;;  %v9674_v23 = vld [vmem:[%s9885_s29 + $0xc8] sm:$0xff]  }
 0x195   : > { %12956 = vst [vmem:[#allocation15_spill] sm:$0xff] %v11178_v7  ;;  %v1680_v48 = vadd.f32 %v1667_v30, %v10930_v18  ;;  %v12920_v14 = vrot.slane %v11178_v7, 6  ;;  %v11183_v10 = vpop.f32.mrb[71].mxu0  ;;  %v9528_v21 = vld [vmem:[%s12894_s2 + $0x780] ss:$12 sps:$4 sm:$0xff]   ;;  %6539 = vmatprep.subr.bf16.mxu0 %v9530_v52 }
 0x196   : > { %12957 = vst [vmem:[#allocation16_spill] sm:$0xff] %v11183_v10  ;;  %v1639_v16 = vsel %vm1074_vm1, %v1637_v17, %v1638_v44  ;;  %v12921_v0 = vrot.slane %v11183_v10, 6  ;;  %v9540_v30 = vld [vmem:[%s12894_s2 + $0x79c] ss:$12 sps:$4 sm:$0xff]   ;;  %v9533_v52 = vld [vmem:[%s12894_s2 + $0x4b4] ss:$12 sps:$4 sm:$0xff]  }
 0x197   : > { %v11193_v55 = vadd.f32 %v1680_v48, %v1482_v31  ;;  %v1681_v18 = vadd.f32 %v1639_v16, %v10948_v57  ;;  %8967 = vmatmul.mubr.bf16.vlgmr.msra.gmra.mrb[176].mxu1 %v9674_v23  ;;  %v11203_v9 = vsel %vm3103_vm3, %v3659_v38, %v12920_v14  ;;  %6363 = vmatmul.mubr.bf16.vlgmr.msra.gmra.mrb[176].mxu0 %v9524_v41  ;;  %v9525_v48 = vld [vmem:[%s12894_s2 + $0x498] ss:$12 sps:$4 sm:$0xff]   ;;  %v9675_v16 = vld [vmem:[%s9885_s29 + $0xd0] sm:$0xff]   ;;  %v9534_v7 = vld [vmem:[%s9885_s29 + $0x8] sm:$0xff]  }
 0x198   : > { %12958 = vst [vmem:[#allocation17_spill] sm:$0xff] %v11203_v9  ;;  %4713 = vmatpush1.bf16.msra.mxu1 %v9521_v37  ;;  %v11211_v57 = vsel %vm3103_vm3, %v3656_v63, %v12921_v0  ;;  %6540 = vmatpush1.bf16.msra.mxu0 %v9528_v21  ;;  %v9538_v38 = vld [vmem:[%s12894_s2 + $0x798] ss:$12 sps:$4 sm:$0xff]  }
 0x199   : > { %12959 = vst [vmem:[#allocation18_spill] sm:$0xff] %v11211_v57  ;;  %v11213_v17 = vadd.f32 %v1681_v18, %v1486_v53  ;;  %v1490_v31 = vpop.f32.mrb[72].mxu1  ;;  %4714 = vmatprep.subr.bf16.mxu1 %v9527_v15  ;;  %8970 = vmatprep.mubr.bf16.mxu1 %v9675_v16  ;;  %v9550_v15 = vld [vmem:[%s12894_s2 + $0x7b4] ss:$12 sps:$4 sm:$0xff]   ;;  %v9531_v18 = vld [vmem:[%s12894_s2 + $0x4b0] ss:$12 sps:$4 sm:$0xff]  }
 0x19a   : > { %v1640_v37 = vrot.slane %v1490_v31, 7  ;;  %v1492_v44 = vpop.f32.mrb[73].mxu1  ;;  %v8944_v41 = vpop.f32.mrb[72].mxu0  ;;  %6370 = vmatprep.mubr.bf16.mxu0 %v12943_v56  ;;  %6541 = vmatprep.subr.bf16.mxu0 %v9540_v30  ;;  %v9537_v30 = vld [vmem:[%s12894_s2 + $0x4cc] ss:$12 sps:$4 sm:$0xff]  }
 0x19b   : > { %v1494_v53 = vpop.f32.mrb[74].mxu1  ;;  %v3665_v63 = vrot.slane %v8944_v41, 6  ;;  %v3507_v21 = vpop.f32.mrb[73].mxu0 }
 0x19c   : > { %v1668_v23 = vsel %vm1074_vm1, 0.0, %v1640_v37  ;;  %v1641_v31 = vrot.slane %v1494_v53, 7  ;;  %4715 = vmatpush1.bf16.msra.mxu1 %v9525_v48  ;;  %v1496_v14 = vpop.f32.mrb[75].mxu1  ;;  %v3662_v16 = vrot.slane %v3507_v21, 6  ;;  %v11230_v0 = vpop.f32.mrb[74].mxu0  ;;  %6542 = vmatpush1.bf16.msra.mxu0 %v9538_v38 }
 0x19d   : > { %12960 = vst [vmem:[#allocation19_spill] sm:$0xff] %v11230_v0  ;;  %v1682_v9 = vadd.f32 %v1668_v23, %v10968_v22  ;;  %v12924_v41 = vrot.slane %v11230_v0, 6  ;;  %v11235_v10 = vpop.f32.mrb[75].mxu0  ;;  %4716 = vmatprep.subr.bf16.mxu1 %v9533_v52  ;;  %v9548_v21 = vld [vmem:[%s12894_s2 + $0x7b0] ss:$12 sps:$4 sm:$0xff]   ;;  %6543 = vmatprep.subr.bf16.mxu0 %v9550_v15 }
 0x19e   : > { %12961 = vst [vmem:[#allocation20_spill] sm:$0xff] %v11235_v10  ;;  %v1642_v48 = vsel %vm1074_vm1, %v1640_v37, %v1641_v31  ;;  %v12925_v53 = vrot.slane %v11235_v10, 6  ;;  %v9676_v52 = vld [vmem:[%s9885_s29 + $0xd8] sm:$0xff]   ;;  %v9677_v31 = vld [vmem:[%s9885_s29 + $0xe0] sm:$0xff]  }
 0x19f   : > { %v11245_v22 = vadd.f32 %v1682_v9, %v1492_v44  ;;  %v1683_v23 = vadd.f32 %v1642_v48, %v10982_v11  ;;  %8971 = vmatmul.mubr.bf16.gmra.mrb[180].mxu1 %v9676_v52  ;;  %v9560_v38 = vld [vmem:[%s12894_s2 + $0x7cc] ss:$12 sps:$4 sm:$0xff]   ;;  %v11255_v37 = vsel %vm3103_vm3, %v3665_v63, %v12924_v41  ;;  %6371 = vmatmul.mubr.bf16.gmra.mrb[180].mxu0 %v9534_v7  ;;  %v9535_v9 = vld [vmem:[%s12894_s2 + $0x4c8] ss:$12 sps:$4 sm:$0xff]   ;;  %v9543_v7 = vld [vmem:[%s12894_s2 + $0x4e4] ss:$12 sps:$4 sm:$0xff]  }
 0x1a0   : > { %12962 = vst [vmem:[#allocation21_spill] sm:$0xff] %v11255_v37  ;;  %4717 = vmatpush1.bf16.msra.mxu1 %v9531_v18  ;;  %v11263_v11 = vsel %vm3103_vm3, %v3662_v16, %v12925_v53  ;;  %8974 = vmatprep.mubr.bf16.mxu1 %v9677_v31  ;;  %v9541_v16 = vld [vmem:[%s12894_s2 + $0x4e0] ss:$12 sps:$4 sm:$0xff]   ;;  %v9544_v37 = vld [vmem:[%s9885_s29 + $0x10] sm:$0xff]  }
 0x1a1   : > { %12963 = vst [vmem:[#allocation22_spill] sm:$0xff] %v11263_v11  ;;  %v11265_v44 = vadd.f32 %v1683_v23, %v1496_v14  ;;  %v1500_v15 = vpop.f32.mrb[76].mxu1  ;;  %4718 = vmatprep.subr.bf16.mxu1 %v9537_v30  ;;  %6378 = vmatprep.mubr.bf16.mxu0 %v12943_v56  ;;  %v9558_v14 = vld [vmem:[%s12894_s2 + $0x7c8] ss:$12 sps:$4 sm:$0xff]  }
 0x1a2   : > { %v1643_v63 = vrot.slane %v1500_v15, 7  ;;  %v1502_v18 = vpop.f32.mrb[77].mxu1  ;;  %v8948_v48 = vpop.f32.mrb[76].mxu0  ;;  %6544 = vmatpush1.bf16.msra.mxu0 %v9548_v21  ;;  %v9565_v15 = vld [vmem:[%s12894_s2 + $0x7e4] ss:$12 sps:$4 sm:$0xff]  }
 0x1a3   : > { %v1504_v30 = vpop.f32.mrb[78].mxu1  ;;  %v3671_v23 = vrot.slane %v8948_v48, 6  ;;  %v3523_v52 = vpop.f32.mrb[77].mxu0  ;;  %6545 = vmatprep.subr.bf16.mxu0 %v9560_v38  ;;  %v9547_v38 = vld [vmem:[%s12894_s2 + $0x4fc] ss:$12 sps:$4 sm:$0xff]  }
 0x1a4   : > { %v1669_v31 = vsel %vm1074_vm1, 0.0, %v1643_v63  ;;  %v1644_v41 = vrot.slane %v1504_v30, 7  ;;  %4719 = vmatpush1.bf16.msra.mxu1 %v9535_v9  ;;  %v1506_v53 = vpop.f32.mrb[79].mxu1  ;;  %v3668_v0 = vrot.slane %v3523_v52, 6  ;;  %v11282_v21 = vpop.f32.mrb[78].mxu0  ;;  %v9678_v48 = vld [vmem:[%s9885_s29 + $0xe8] sm:$0xff]  }
 0x1a5   : > { %12964 = vst [vmem:[#allocation23_spill] sm:$0xff] %v11282_v21  ;;  %v1684_v10 = vadd.f32 %v1669_v31, %v10997_v24  ;;  %v11287_v11 = vpop.f32.mrb[79].mxu0  ;;  %4720 = vmatprep.subr.bf16.mxu1 %v9543_v7  ;;  %v9563_v52 = vld [vmem:[%s12894_s2 + $0x7e0] ss:$12 sps:$4 sm:$0xff]   ;;  %v9570_v7 = vld [vmem:[%s12894_s2 + $0x7fc] ss:$12 sps:$4 sm:$0xff]  }
 0x1a6   : > { %12965 = vst [vmem:[#allocation24_spill] sm:$0xff] %v11287_v11  ;;  %v1645_v30 = vsel %vm1074_vm1, %v1643_v63, %v1644_v41  ;;  %v12928_v9 = vrot.slane %v11287_v11, 6  ;;  %6546 = vmatpush1.bf16.msra.mxu0 %v9558_v14  ;;  %v12966_v41 = vrot.slane %v11282_v21, 6 }
 0x1a7   : > { %v11297_v24 = vadd.f32 %v1684_v10, %v1502_v18  ;;  %v1685_v31 = vadd.f32 %v1645_v30, %v11011_v8  ;;  %8975 = vmatmul.mubr.bf16.gmra.mrb[184].mxu1 %v9678_v48  ;;  %6547 = vmatprep.subr.bf16.mxu0 %v9565_v15  ;;  %v9545_v10 = vld [vmem:[%s12894_s2 + $0x4f8] ss:$12 sps:$4 sm:$0xff]   ;;  %v9679_v15 = vld [vmem:[%s9885_s29 + $0xf0] sm:$0xff]  }
 0x1a8   : > { %v11307_v63 = vsel %vm3103_vm3, %v3671_v23, %v12966_v41  ;;  %6379 = vmatmul.mubr.bf16.gmra.mrb[184].mxu0 %v9544_v37  ;;  %4721 = vmatpush1.bf16.msra.mxu1 %v9541_v16  ;;  %v11315_v8 = vsel %vm3103_vm3, %v3668_v0, %v12928_v9  ;;  %v9553_v37 = vld [vmem:[%s12894_s2 + $0x514] ss:$12 sps:$4 sm:$0xff]   ;;  %v9551_v0 = vld [vmem:[%s12894_s2 + $0x510] ss:$12 sps:$4 sm:$0xff]  }
 0x1a9   : > { %12967 = vst [vmem:[#allocation25_spill] sm:$0xff] %v11307_v63  ;;  %12968 = vst [vmem:[#allocation26_spill] sm:$0xff] %v11315_v8  ;;  %v11317_v18 = vadd.f32 %v1685_v31, %v1506_v53  ;;  %v8840_v14 = vpop.f32.mrb[80].mxu1  ;;  %4722 = vmatprep.subr.bf16.mxu1 %v9547_v38  ;;  %8978 = vmatprep.mubr.bf16.mxu1 %v9679_v15  ;;  %v9568_v53 = vld [vmem:[%s12894_s2 + $0x7f8] ss:$12 sps:$4 sm:$0xff]  }
 0x1aa   : > { %v1543_v16 = vpop.f32.mrb[81].mxu1  ;;  %v11323_v23 = vpop.f32.mrb[80].mxu0  ;;  %6386 = vmatprep.mubr.bf16.mxu0 %v12943_v56  ;;  %6548 = vmatpush1.bf16.msra.mxu0 %v9563_v52  ;;  %v9575_v31 = vld [vmem:[%s12894_s2 + $0x814] ss:$12 sps:$4 sm:$0xff]   ;;  %v1721_v41 = vrot.slane %v8840_v14, 1  ;;  %v9554_v52 = vld [vmem:[%s9885_s29 + $0x18] sm:$0xff]  }
 0x1ab   : > { %v8841_v48 = vpop.f32.mrb[82].mxu1  ;;  %v11333_v30 = vpop.f32.mrb[81].mxu0  ;;  %6549 = vmatprep.subr.bf16.mxu0 %v9570_v7  ;;  %v1718_v63 = vrot.slane %v1543_v16, 1  ;;  %v9557_v7 = vld [vmem:[%s12894_s2 + $0x52c] ss:$12 sps:$4 sm:$0xff]  }
 0x1ac   : > { %12969 = vst [vmem:[#allocation27_spill] sm:$0xff] %v11333_v30  ;;  %v1722_v15 = vrot.slane %v8841_v48, 1  ;;  %4723 = vmatpush1.bf16.msra.mxu1 %v9545_v10  ;;  %v1546_v9 = vpop.f32.mrb[83].mxu1  ;;  %v3980_v21 = vpop.f32.mrb[82].mxu0  ;;  %v9573_v10 = vld [vmem:[%s12894_s2 + $0x810] ss:$12 sps:$4 sm:$0xff]  }
 0x1ad   : > { %v1719_v11 = vrot.slane %v1546_v9, 1  ;;  %v4169_v8 = vrot.slane %v3980_v21, 2  ;;  %v11339_v57 = vpop.f32.mrb[83].mxu0  ;;  %4724 = vmatprep.subr.bf16.mxu1 %v9553_v37  ;;  %v12971_v37 = vrot.slane %v11323_v23, 2 }
 0x1ae   : > { %12970 = vst [vmem:[#allocation28_spill] sm:$0xff] %v11339_v57  ;;  %v1723_v38 = vsel %vm1171_vm0, %v1721_v41, %v1722_v15  ;;  %v1759_v14 = vsel %vm1171_vm0, %v1722_v15, 0.0  ;;  %6550 = vmatpush1.bf16.msra.mxu0 %v9568_v53  ;;  %v9680_v41 = vld [vmem:[%s9885_s29 + $0xf8] sm:$0xff]  }
 0x1af   : > { %v11350_v16 = vadd.f32 %v1759_v14, %v11066_v42  ;;  %v1720_v21 = vsel %vm1171_vm0, %v1718_v63, %v1719_v11  ;;  %v1758_v9 = vsel %vm1171_vm0, %v1719_v11, 0.0  ;;  %v11357_v48 = vsel %vm3006_vm2, %v12971_v37, %v4169_v8  ;;  %8979 = vmatmul.mubr.bf16.gmra.mrb[188].mxu1 %v9680_v41  ;;  %6551 = vmatprep.subr.bf16.mxu0 %v9575_v31  ;;  %v9580_v53 = vld [vmem:[%s12894_s2 + $0x82c] ss:$12 sps:$4 sm:$0xff]   ;;  %v9555_v42 = vld [vmem:[%s12894_s2 + $0x528] ss:$12 sps:$4 sm:$0xff]   ;;  %v9562_v37 = vld [vmem:[%s9885_s29 + $0x20] sm:$0xff]  }
 0x1b0   : > { %12972 = vst [vmem:[#allocation29_spill] sm:$0xff] %v11357_v48  ;;  %v11364_v15 = vadd.f32 %v1758_v9, %v11039_v35  ;;  %6387 = vmatmul.mubr.bf16.gmra.mrb[188].mxu0 %v9554_v52  ;;  %4725 = vmatpush1.bf16.msra.mxu1 %v9551_v0  ;;  %v11370_v11 = vadd.f32 %v1720_v21, %v11027_v1  ;;  %v9561_v35 = vld [vmem:[%s12894_s2 + $0x548] ss:$12 sps:$4 sm:$0xff]  }
 0x1b1   : > { %v11373_v63 = vadd.f32 %v1723_v38, %v11058_v36  ;;  %v8844_v8 = vpop.f32.mrb[84].mxu1  ;;  %4726 = vmatprep.subr.bf16.mxu1 %v9557_v7  ;;  %4744 = vmatprep.mubr.bf16.mxu1 %v12943_v56  ;;  %v9578_v1 = vld [vmem:[%s12894_s2 + $0x828] ss:$12 sps:$4 sm:$0xff]   ;;  %v9584_v7 = vld [vmem:[%s12894_s2 + $0x844] ss:$12 sps:$4 sm:$0xff]  }
 0x1b2   : > { %v1559_v0 = vpop.f32.mrb[85].mxu1  ;;  %v11379_v31 = vpop.f32.mrb[84].mxu0  ;;  %6394 = vmatprep.mubr.bf16.mxu0 %v12943_v56  ;;  %6552 = vmatpush1.bf16.msra.mxu0 %v9573_v10  ;;  %v1727_v14 = vrot.slane %v8844_v8, 1  ;;  %v9566_v8 = vld [vmem:[%s12894_s2 + $0x560] ss:$12 sps:$4 sm:$0xff]  }
 0x1b3   : > { %v8845_v36 = vpop.f32.mrb[86].mxu1  ;;  %v11386_v52 = vpop.f32.mrb[85].mxu0  ;;  %6553 = vmatprep.subr.bf16.mxu0 %v9580_v53  ;;  %v1724_v41 = vrot.slane %v1559_v0, 1 }
 0x1b4   : > { %12973 = vst [vmem:[#allocation30_spill] sm:$0xff] %v11386_v52  ;;  %v1728_v21 = vrot.slane %v8845_v36, 1  ;;  %4727 = vmatpush1.bf16.msra.mxu1 %v9555_v42  ;;  %v1562_v9 = vpop.f32.mrb[87].mxu1  ;;  %v3990_v10 = vpop.f32.mrb[86].mxu0 }
 0x1b5   : > { %v1725_v57 = vrot.slane %v1562_v9, 1  ;;  %v4172_v48 = vrot.slane %v3990_v10, 2  ;;  %v11392_v30 = vpop.f32.mrb[87].mxu0  ;;  %9014 = vmatprep.subr.bf16.mxu1 %v9561_v35  ;;  %v12975_v9 = vrot.slane %v11379_v31, 2 }
 0x1b6   : > { %12974 = vst [vmem:[#allocation31_spill] sm:$0xff] %v11392_v30  ;;  %v1729_v38 = vsel %vm1171_vm0, %v1727_v14, %v1728_v21  ;;  %v1761_v53 = vsel %vm1171_vm0, %v1728_v21, 0.0  ;;  %6554 = vmatpush1.bf16.msra.mxu0 %v9578_v1  ;;  %v9681_v14 = vld [vmem:[%s9885_s29 + $0x30] sm:$0xff]  }
 0x1b7   : > { %v11400_v42 = vadd.f32 %v1761_v53, %v11126_v47  ;;  %v1726_v36 = vsel %vm1171_vm0, %v1724_v41, %v1725_v57  ;;  %v1760_v0 = vsel %vm1171_vm0, %v1725_v57, 0.0  ;;  %v11407_v10 = vsel %vm3006_vm2, %v12975_v9, %v4172_v48  ;;  %4745 = vmatmul.mubr.bf16.vlgmr.msra.gmra.mrb[192].mxu1 %v9681_v14  ;;  %6816 = vmatprep.subr.bf16.mxu0 %v9584_v7  ;;  %v9571_v48 = vld [vmem:[%s12894_s2 + $0x578] ss:$12 sps:$4 sm:$0xff]  }
 0x1b8   : > { %12976 = vst [vmem:[#allocation32_spill] sm:$0xff] %v11407_v10  ;;  %v11411_v21 = vadd.f32 %v1760_v0, %v11096_v59  ;;  %6395 = vmatmul.mubr.bf16.gmra.mrb[192].mxu0 %v9562_v37  ;;  %9015 = vmatpush3.bf16.msra.mxu1 %v9561_v35  ;;  %v11414_v47 = vadd.f32 %v1726_v36, %v11088_v29  ;;  %v9567_v36 = vld [vmem:[%s9885_s29 + $0x28] sm:$0xff]  }
 0x1b9   : > { %v11417_v1 = vadd.f32 %v1729_v38, %v11118_v32  ;;  %v8848_v57 = vpop.f32.mrb[88].mxu1  ;;  %4753 = vmatprep.mubr.bf16.mxu1 %v12943_v56  ;;  %6402 = vmatprep.mubr.bf16.mxu0 %v12943_v56 }
 0x1ba   : > { %v1575_v59 = vpop.f32.mrb[89].mxu1  ;;  %v11424_v7 = vpop.f32.mrb[88].mxu0  ;;  %9016 = vmatprep.subr.bf16.mxu1 %v9566_v8  ;;  %v1733_v32 = vrot.slane %v8848_v57, 1  ;;  %v9576_v57 = vld [vmem:[%s12894_s2 + $0x590] ss:$12 sps:$4 sm:$0xff]  }
 0x1bb   : > { %12977 = vst [vmem:[#allocation33_spill] sm:$0xff] %v11424_v7  ;;  %v8849_v35 = vpop.f32.mrb[90].mxu1  ;;  %v11427_v37 = vpop.f32.mrb[89].mxu0  ;;  %v1730_v0 = vrot.slane %v1575_v59, 1  ;;  %v12980_v59 = vrot.slane %v11424_v7, 2 }
 0x1bc   : > { %12978 = vst [vmem:[#allocation34_spill] sm:$0xff] %v11427_v37  ;;  %v1734_v38 = vrot.slane %v8849_v35, 1  ;;  %v1578_v41 = vpop.f32.mrb[91].mxu1  ;;  %v4000_v53 = vpop.f32.mrb[90].mxu0  ;;  %9017 = vmatpush3.bf16.msra.mxu1 %v9566_v8 }
 0x1bd   : > { %v1731_v9 = vrot.slane %v1578_v41, 1  ;;  %v4175_v14 = vrot.slane %v4000_v53, 2  ;;  %v11430_v30 = vpop.f32.mrb[91].mxu0  ;;  %9018 = vmatprep.subr.bf16.mxu1 %v9571_v48  ;;  %v9682_v53 = vld [vmem:[%s9885_s29 + $0x38] sm:$0xff]  }
 0x1be   : > { %12979 = vst [vmem:[#allocation35_spill] sm:$0xff] %v11430_v30  ;;  %v1735_v10 = vsel %vm1171_vm0, %v1733_v32, %v1734_v38  ;;  %v1763_v52 = vsel %vm1171_vm0, %v1734_v38, 0.0 }
 0x1bf   : > { %v11438_v35 = vadd.f32 %v1763_v52, %v11213_v17  ;;  %v1732_v29 = vsel %vm1171_vm0, %v1730_v0, %v1731_v9  ;;  %v1762_v8 = vsel %vm1171_vm0, %v1731_v9, 0.0  ;;  %v11445_v41 = vsel %vm3006_vm2, %v12980_v59, %v4175_v14  ;;  %4754 = vmatmul.mubr.bf16.gmra.mrb[196].mxu1 %v9682_v53  ;;  %v9572_v59 = vld [vmem:[%s9885_s29 + $0x30] sm:$0xff]  }
 0x1c0   : > { %12981 = vst [vmem:[#allocation36_spill] sm:$0xff] %v11445_v41  ;;  %v11449_v32 = vadd.f32 %v1762_v8, %v11165_v60  ;;  %6403 = vmatmul.mubr.bf16.gmra.mrb[196].mxu0 %v9567_v36  ;;  %4762 = vmatprep.mubr.bf16.mxu1 %v12943_v56  ;;  %v11453_v17 = vadd.f32 %v1732_v29, %v11150_v2  ;;  %v9581_v60 = vld [vmem:[%s12894_s2 + $0x5a8] ss:$12 sps:$4 sm:$0xff]  }
 0x1c1   : > { %v11456_v52 = vadd.f32 %v1735_v10, %v11193_v55  ;;  %v8852_v38 = vpop.f32.mrb[92].mxu1  ;;  %6410 = vmatprep.mubr.bf16.mxu0 %v12943_v56  ;;  %9019 = vmatpush3.bf16.msra.mxu1 %v9571_v48 }
 0x1c2   : > { %v1591_v0 = vpop.f32.mrb[93].mxu1  ;;  %v11459_v9 = vpop.f32.mrb[92].mxu0  ;;  %9020 = vmatprep.subr.bf16.mxu1 %v9576_v57  ;;  %v1739_v14 = vrot.slane %v8852_v38, 1  ;;  %v9585_v38 = vld [vmem:[%s12894_s2 + $0x5c0] ss:$12 sps:$4 sm:$0xff]  }
 0x1c3   : > { %12982 = vst [vmem:[#allocation37_spill] sm:$0xff] %v11459_v9  ;;  %v8853_v36 = vpop.f32.mrb[94].mxu1  ;;  %v11465_v29 = vpop.f32.mrb[93].mxu0  ;;  %v1736_v48 = vrot.slane %v1591_v0, 1 }
 0x1c4   : > { %12983 = vst [vmem:[#allocation38_spill] sm:$0xff] %v11465_v29  ;;  %v1740_v55 = vrot.slane %v8853_v36, 1  ;;  %v1594_v10 = vpop.f32.mrb[95].mxu1  ;;  %v4010_v8 = vpop.f32.mrb[94].mxu0 }
 0x1c5   : > { %v1737_v53 = vrot.slane %v1594_v10, 1  ;;  %v4178_v30 = vrot.slane %v4010_v8, 2  ;;  %v11468_v41 = vpop.f32.mrb[95].mxu0  ;;  %9021 = vmatpush3.bf16.msra.mxu1 %v9576_v57  ;;  %v12985_v10 = vrot.slane %v11459_v9, 2 }
 0x1c6   : > { %12984 = vst [vmem:[#allocation39_spill] sm:$0xff] %v11468_v41  ;;  %v1741_v37 = vsel %vm1171_vm0, %v1739_v14, %v1740_v55  ;;  %v1765_v7 = vsel %vm1171_vm0, %v1740_v55, 0.0  ;;  %9022 = vmatprep.subr.bf16.mxu1 %v9581_v60  ;;  %v9683_v14 = vld [vmem:[%s9885_s29 + $0x40] sm:$0xff]  }
 0x1c7   : > { %v11476_v36 = vadd.f32 %v1765_v7, %v11317_v18  ;;  %v1738_v2 = vsel %vm1171_vm0, %v1736_v48, %v1737_v53  ;;  %v1764_v0 = vsel %vm1171_vm0, %v1737_v53, 0.0  ;;  %v11483_v57 = vsel %vm3006_vm2, %v12985_v10, %v4178_v30  ;;  %4763 = vmatmul.mubr.bf16.gmra.mrb[200].mxu1 %v9683_v14  ;;  %v9577_v10 = vld [vmem:[%s9885_s29 + $0x38] sm:$0xff]  }
 0x1c8   : > { %12986 = vst [vmem:[#allocation40_spill] sm:$0xff] %v11483_v57  ;;  %v11487_v55 = vadd.f32 %v1764_v0, %v11265_v44  ;;  %6411 = vmatmul.mubr.bf16.gmra.mrb[200].mxu0 %v9572_v59  ;;  %4771 = vmatprep.mubr.bf16.mxu1 %v12943_v56  ;;  %v11491_v18 = vadd.f32 %v1738_v2, %v11245_v22  ;;  %v9589_v44 = vld [vmem:[%s12894_s2 + $0x5d8] ss:$12 sps:$4 sm:$0xff]   ;;  %v9593_v22 = vld [vmem:[%s12894_s2 + $0x5f0] ss:$12 sps:$4 sm:$0xff]  }
 0x1c9   : > { %v11494_v7 = vadd.f32 %v1741_v37, %v11297_v24  ;;  %v2044_v8 = vpop.f32.mrb[96].mxu1  ;;  %6418 = vmatprep.mubr.bf16.mxu0 %v12943_v56  ;;  %9023 = vmatpush3.bf16.msra.mxu1 %v9581_v60 }
 0x1ca   : > { %v2236_v30 = vrot.slane %v2044_v8, 7  ;;  %v2046_v48 = vpop.f32.mrb[97].mxu1  ;;  %v11497_v53 = vpop.f32.mrb[96].mxu0  ;;  %9024 = vmatprep.subr.bf16.mxu1 %v9585_v38 }
 0x1cb   : > { %v2048_v59 = vpop.f32.mrb[98].mxu1  ;;  %v11503_v2 = vpop.f32.mrb[97].mxu0 }
 0x1cc   : > { %12987 = vst [vmem:[#allocation41_spill] sm:$0xff] %v11503_v2  ;;  %v2276_v24 = vsel %vm1074_vm1, 0.0, %v2236_v30  ;;  %v2237_v37 = vrot.slane %v2048_v59, 7  ;;  %v2050_v0 = vpop.f32.mrb[99].mxu1  ;;  %v4020_v60 = vpop.f32.mrb[98].mxu0  ;;  %v12989_v59 = vrot.slane %v11497_v53, 2 }
 0x1cd   : > { %v2284_v14 = vadd.f32 %v2276_v24, %v11370_v11  ;;  %v4181_v8 = vrot.slane %v4020_v60, 2  ;;  %v11508_v41 = vpop.f32.mrb[99].mxu0  ;;  %9025 = vmatpush3.bf16.msra.mxu1 %v9585_v38  ;;  %v9684_v11 = vld [vmem:[%s9885_s29 + $0x48] sm:$0xff]  }
 0x1ce   : > { %12988 = vst [vmem:[#allocation42_spill] sm:$0xff] %v11508_v41  ;;  %v2238_v57 = vsel %vm1074_vm1, %v2236_v30, %v2237_v37  ;;  %9026 = vmatprep.subr.bf16.mxu1 %v9589_v44 }
 0x1cf   : > { %v2300_v2 = vadd.f32 %v2284_v14, %v2046_v48  ;;  %v2285_v29 = vadd.f32 %v2238_v57, %v11364_v15  ;;  %v11518_v9 = vsel %vm3006_vm2, %v12989_v59, %v4181_v8  ;;  %4772 = vmatmul.mubr.bf16.gmra.mrb[204].mxu1 %v9684_v11  ;;  %v12991_v15 = vrot.slane %v10629_v62, 1 }
 0x1d0   : > { %12990 = vst [vmem:[#allocation43_spill] sm:$0xff] %v11518_v9  ;;  %6419 = vmatmul.mubr.bf16.gmra.mrb[204].mxu0 %v9577_v10  ;;  %4780 = vmatprep.mubr.bf16.mxu1 %v12943_v56  ;;  %v9599_v10 = vld [vmem:[%s12894_s2 + $0x604] ss:$12 sps:$4 sm:$0xff]  }
 0x1d1   : > { %v11523_v38 = vadd.f32 %v10651_v20, %v2300_v2  ;;  %v2301_v30 = vadd.f32 %v2285_v29, %v2050_v0  ;;  %v2054_v24 = vpop.f32.mrb[100].mxu1  ;;  %6571 = vmatprep.mubr.bf16.mxu0 %v12943_v56  ;;  %9027 = vmatpush3.bf16.msra.mxu1 %v9589_v44  ;;  %v2372_v57 = vsel %vm1171_vm0, %v12991_v15, 0.0 }
 0x1d2   : > { %v2239_v48 = vrot.slane %v2054_v24, 7  ;;  %v2056_v37 = vpop.f32.mrb[101].mxu1  ;;  %v11529_v60 = vpop.f32.mrb[100].mxu0  ;;  %9028 = vmatprep.subr.bf16.mxu1 %v9593_v22  ;;  %v9582_v24 = vld [vmem:[%s12894_s2 + $0x840] ss:$12 sps:$4 sm:$0xff]  }
 0x1d3   : > { %12992 = vst [vmem:[#allocation44_spill] sm:$0xff] %v11529_v60  ;;  %v11534_v20 = vadd.f32 %v2372_v57, %v2301_v30  ;;  %v2058_v29 = vpop.f32.mrb[102].mxu1  ;;  %v11536_v2 = vpop.f32.mrb[101].mxu0 }
 0x1d4   : > { %12993 = vst [vmem:[#allocation45_spill] sm:$0xff] %v11536_v2  ;;  %v2277_v44 = vsel %vm1074_vm1, 0.0, %v2239_v48  ;;  %v2240_v62 = vrot.slane %v2058_v29, 7  ;;  %v2060_v14 = vpop.f32.mrb[103].mxu1  ;;  %v4030_v8 = vpop.f32.mrb[102].mxu0 }
 0x1d5   : > { %v8402_v59 = vpack.c.bf16 %v11534_v20, %v11523_v38  ;;  %v2286_v11 = vadd.f32 %v2277_v44, %v11373_v63  ;;  %v11543_v30 = vpop.f32.mrb[103].mxu0  ;;  %9029 = vmatpush3.bf16.msra.mxu1 %v9593_v22  ;;  %v4184_v57 = vrot.slane %v4030_v8, 2  ;;  %v9588_v29 = vld [vmem:[%s12894_s2 + $0x85c] ss:$12 sps:$4 sm:$0xff]   ;;  %v9685_v63 = vld [vmem:[%s9885_s29 + $0x50] sm:$0xff]   ;;  %v12995_v44 = vrot.slane %v11529_v60, 2 }
 0x1d6   : > { %12994 = vst [vmem:[#allocation46_spill] sm:$0xff] %v11543_v30  ;;  %v2241_v15 = vsel %vm1074_vm1, %v2239_v48, %v2240_v62  ;;  %5705 = vmatprep.subr.bf16.mxu1 %v9599_v10  ;;  %v11561_v22 = vld [vmem:[%s9885_s29 + $0x90] sm:$0xff]   ;;  %v12997_v62 = vld [vmem:[#allocation3_spill] sm:$0xff] }
 0x1d7   : > { %8566 = vst [vmem:[%s10449_s14 + $0x40] sm:$0xff] %v8402_v59   ;;  %v2302_v0 = vadd.f32 %v2286_v11, %v2056_v37  ;;  %v2287_v2 = vadd.f32 %v2241_v15, %v11350_v16  ;;  %4781 = vmatmul.mubr.bf16.gmra.mrb[208].mxu1 %v9685_v63  ;;  %v11558_v30 = vsel %vm3006_vm2, %v12995_v44, %v4184_v57  ;;  %v9586_v16 = vld [vmem:[%s12894_s2 + $0x858] ss:$12 sps:$4 sm:$0xff]   ;;  %v12998_v8 = vrot.slane %v12997_v62, 1 }
 0x1d8   : > { %12996 = vst [vmem:[#allocation47_spill] sm:$0xff] %v11558_v30  ;;  %6572 = vmatmul.mubr.bf16.vlgmr.msra.gmra.mrb[176].mxu0 %v11561_v22  ;;  %4789 = vmatprep.mubr.bf16.mxu1 %v12943_v56 }
 0x1d9   : > { %v11566_v48 = vadd.f32 %v10656_v27, %v2302_v0  ;;  %v2303_v10 = vadd.f32 %v2287_v2, %v2060_v14  ;;  %v2064_v37 = vpop.f32.mrb[104].mxu1  ;;  %6817 = vmatpush1.bf16.msra.mxu0 %v9582_v24  ;;  %6579 = vmatprep.mubr.bf16.mxu0 %v12943_v56  ;;  %v2373_v59 = vsel %vm1171_vm0, %v12998_v8, 0.0  ;;  %v9592_v27 = vld [vmem:[%s12894_s2 + $0x874] ss:$12 sps:$4 sm:$0xff]   ;;  %v2477_v2 = vadd.f32 %v11534_v20, %v11523_v38 }
 0x1da   : > { %v2242_v11 = vrot.slane %v2064_v37, 7  ;;  %v2066_v15 = vpop.f32.mrb[105].mxu1  ;;  %v11575_v57 = vpop.f32.mrb[104].mxu0  ;;  %6818 = vmatprep.subr.bf16.mxu0 %v9588_v29 }
 0x1db   : > { %12999 = vst [vmem:[#allocation3_spill] sm:$0xff] %v11575_v57  ;;  %v11582_v0 = vadd.f32 %v2373_v59, %v2303_v10  ;;  %v2068_v14 = vpop.f32.mrb[106].mxu1  ;;  %v11584_v24 = vpop.f32.mrb[105].mxu0  ;;  %v2478_v8 = vadd.f32 %v2477_v2, %v11566_v48  ;;  %v9596_v2 = vld [vmem:[%s12894_s2 + $0x88c] ss:$12 sps:$4 sm:$0xff]  }
 0x1dc   : > { %13000 = vst [vmem:[#allocation48_spill] sm:$0xff] %v11584_v24  ;;  %v2278_v63 = vsel %vm1074_vm1, 0.0, %v2242_v11  ;;  %v2243_v44 = vrot.slane %v2068_v14, 7  ;;  %v2070_v29 = vpop.f32.mrb[107].mxu1  ;;  %v4040_v62 = vpop.f32.mrb[106].mxu0 }
 0x1dd   : > { %v8407_v30 = vpack.c.bf16 %v11582_v0, %v11566_v48  ;;  %v2288_v10 = vadd.f32 %v2278_v63, %v11414_v47  ;;  %v11592_v59 = vpop.f32.mrb[107].mxu0  ;;  %6819 = vmatpush1.bf16.msra.mxu0 %v9586_v16  ;;  %v9590_v14 = vld [vmem:[%s12894_s2 + $0x870] ss:$12 sps:$4 sm:$0xff]   ;;  %v4187_v24 = vrot.slane %v4040_v62, 2  ;;  %v13002_v16 = vrot.slane %v11575_v57, 2 }
 0x1de   : > { %13001 = vst [vmem:[#allocation49_spill] sm:$0xff] %v11592_v59  ;;  %v2244_v37 = vsel %vm1074_vm1, %v2242_v11, %v2243_v44  ;;  %6820 = vmatprep.subr.bf16.mxu0 %v9592_v27  ;;  %v9687_v47 = vld [vmem:[%s9885_s29 + $0x58] sm:$0xff]   ;;  %v2479_v11 = vadd.f32 %v2478_v8, %v11582_v0  ;;  %v13004_v27 = vld [vmem:[#allocation7_spill] sm:$0xff] }
 0x1df   : > { %8567 = vst [vmem:[%s10449_s14 + $0x48] sm:$0xff] %v8407_v30   ;;  %v2304_v60 = vadd.f32 %v2288_v10, %v2066_v15  ;;  %v2289_v41 = vadd.f32 %v2244_v37, %v11411_v21  ;;  %4790 = vmatmul.mubr.bf16.gmra.mrb[212].mxu1 %v9687_v47  ;;  %v11607_v63 = vsel %vm3006_vm2, %v13002_v16, %v4187_v24  ;;  %v11610_v59 = vld [vmem:[%s9885_s29 + $0x98] sm:$0xff]   ;;  %v9594_v24 = vld [vmem:[%s12894_s2 + $0x888] ss:$12 sps:$4 sm:$0xff]  }
 0x1e0   : > { %13003 = vst [vmem:[#allocation50_spill] sm:$0xff] %v11607_v63  ;;  %6580 = vmatmul.mubr.bf16.gmra.mrb[180].mxu0 %v11610_v59  ;;  %4798 = vmatprep.mubr.bf16.mxu1 %v12943_v56  ;;  %v13005_v44 = vld [vmem:[#allocation6_spill] sm:$0xff] }
 0x1e1   : > { %v11616_v30 = vadd.f32 %v13004_v27, %v2304_v60  ;;  %v2305_v15 = vadd.f32 %v2289_v41, %v2070_v29  ;;  %v2074_v21 = vpop.f32.mrb[108].mxu1  ;;  %6587 = vmatprep.mubr.bf16.mxu0 %v12943_v56  ;;  %6821 = vmatpush1.bf16.msra.mxu0 %v9590_v14  ;;  %v13006_v37 = vrot.slane %v13005_v44, 1  ;;  %v9605_v41 = vld [vmem:[%s12894_s2 + $0x8a4] ss:$12 sps:$4 sm:$0xff]   ;;  %v9614_v57 = vld [vmem:[%s12894_s2 + $0x8bc] ss:$12 sps:$4 sm:$0xff]  }
 0x1e2   : > { %v2245_v10 = vrot.slane %v2074_v21, 7  ;;  %v2076_v47 = vpop.f32.mrb[109].mxu1  ;;  %v11625_v16 = vpop.f32.mrb[108].mxu0  ;;  %6822 = vmatprep.subr.bf16.mxu0 %v9596_v2 }
 0x1e3   : > { %v2374_v62 = vsel %vm1171_vm0, %v13006_v37, 0.0  ;;  %v2480_v60 = vadd.f32 %v2479_v11, %v11616_v30  ;;  %v2078_v8 = vpop.f32.mrb[110].mxu1  ;;  %v11633_v14 = vpop.f32.mrb[109].mxu0 }
 0x1e4   : > { %v11631_v29 = vadd.f32 %v2374_v62, %v2305_v15  ;;  %13007 = vst [vmem:[#allocation7_spill] sm:$0xff] %v11633_v14  ;;  %v2279_v27 = vsel %vm1074_vm1, 0.0, %v2245_v10  ;;  %v2246_v44 = vrot.slane %v2078_v8, 7  ;;  %v2080_v37 = vpop.f32.mrb[111].mxu1  ;;  %v4050_v2 = vpop.f32.mrb[110].mxu0 }
 0x1e5   : > { %v2290_v15 = vadd.f32 %v2279_v27, %v11417_v1  ;;  %v11641_v62 = vpop.f32.mrb[111].mxu0  ;;  %6823 = vmatpush1.bf16.msra.mxu0 %v9594_v24  ;;  %v9603_v8 = vld [vmem:[%s12894_s2 + $0x8a0] ss:$12 sps:$4 sm:$0xff]   ;;  %v4190_v14 = vrot.slane %v4050_v2, 2  ;;  %v13009_v24 = vrot.slane %v11625_v16, 2 }
 0x1e6   : > { %v8412_v63 = vpack.c.bf16 %v11631_v29, %v11616_v30  ;;  %v2481_v11 = vadd.f32 %v2480_v60, %v11631_v29  ;;  %13008 = vst [vmem:[#allocation6_spill] sm:$0xff] %v11641_v62  ;;  %v2247_v21 = vsel %vm1074_vm1, %v2245_v10, %v2246_v44  ;;  %6824 = vmatprep.subr.bf16.mxu0 %v9605_v41  ;;  %v9689_v1 = vld [vmem:[%s9885_s29 + $0x60] sm:$0xff]   ;;  %v13011_v10 = vld [vmem:[#allocation8_spill] sm:$0xff] }
 0x1e7   : > { %v2306_v9 = vadd.f32 %v2290_v15, %v2076_v47  ;;  %v2291_v60 = vadd.f32 %v2247_v21, %v11400_v42  ;;  %4799 = vmatmul.mubr.bf16.gmra.mrb[216].mxu1 %v9689_v1  ;;  %v11656_v27 = vsel %vm3006_vm2, %v13009_v24, %v4190_v14  ;;  %v11659_v62 = vld [vmem:[%s9885_s29 + $0xa0] sm:$0xff]   ;;  %v13012_v14 = vld [vmem:[#allocation4_spill] sm:$0xff] }
 0x1e8   : > { %8568 = vst [vmem:[%s10449_s14 + $0x50] sm:$0xff] %v8412_v63   ;;  %13010 = vst [vmem:[#allocation51_spill] sm:$0xff] %v11656_v27  ;;  %6588 = vmatmul.mubr.bf16.gmra.mrb[184].mxu0 %v11659_v62  ;;  %4807 = vmatprep.mubr.bf16.mxu1 %v12943_v56  ;;  %v9612_v42 = vld [vmem:[%s12894_s2 + $0x8b8] ss:$12 sps:$4 sm:$0xff]   ;;  %v13013_v44 = vrot.slane %v13012_v14, 1  ;;  %v9691_v27 = vld [vmem:[%s9885_s29 + $0x68] sm:$0xff]  }
 0x1e9   : > { %v11664_v41 = vadd.f32 %v13011_v10, %v2306_v9  ;;  %v2307_v63 = vadd.f32 %v2291_v60, %v2080_v37  ;;  %v2084_v47 = vpop.f32.mrb[112].mxu1  ;;  %6595 = vmatprep.mubr.bf16.mxu0 %v12943_v56  ;;  %6825 = vmatpush1.bf16.msra.mxu0 %v9603_v8  ;;  %v9623_v9 = vld [vmem:[%s12894_s2 + $0x8d4] ss:$12 sps:$4 sm:$0xff]  }
 0x1ea   : > { %v2375_v21 = vsel %vm1171_vm0, %v13013_v44, 0.0  ;;  %v2248_v2 = vrot.slane %v2084_v47, 7  ;;  %v2086_v15 = vpop.f32.mrb[113].mxu1  ;;  %v9000_v1 = vpop.f32.mrb[112].mxu0  ;;  %6826 = vmatprep.subr.bf16.mxu0 %v9614_v57 }
 0x1eb   : > { %v2482_v37 = vadd.f32 %v2481_v11, %v11664_v41  ;;  %v11677_v60 = vadd.f32 %v2375_v21, %v2307_v63  ;;  %v2088_v8 = vpop.f32.mrb[114].mxu1  ;;  %v4851_v24 = vpop.f32.mrb[113].mxu0  ;;  %v9621_v21 = vld [vmem:[%s12894_s2 + $0x8d0] ss:$12 sps:$4 sm:$0xff]  }
 0x1ec   : > { %v2280_v10 = vsel %vm1074_vm1, 0.0, %v2248_v2  ;;  %v2249_v14 = vrot.slane %v2088_v8, 7  ;;  %v2090_v44 = vpop.f32.mrb[115].mxu1  ;;  %v11680_v47 = vpop.f32.mrb[114].mxu0  ;;  %v9632_v24 = vld [vmem:[%s12894_s2 + $0x8ec] ss:$12 sps:$4 sm:$0xff]  }
 0x1ed   : > { %13014 = vst [vmem:[#allocation8_spill] sm:$0xff] %v11680_v47  ;;  %v8417_v57 = vpack.c.bf16 %v11677_v60, %v11664_v41  ;;  %v2483_v1 = vadd.f32 %v2482_v37, %v11677_v60  ;;  %v2292_v11 = vadd.f32 %v2280_v10, %v11453_v17  ;;  %v11686_v63 = vpop.f32.mrb[115].mxu0  ;;  %6827 = vmatpush1.bf16.msra.mxu0 %v9612_v42  ;;  %v11699_v17 = vld [vmem:[%s9885_s29 + $0xa8] sm:$0xff]  }
 0x1ee   : > { %v2250_v8 = vsel %vm1074_vm1, %v2248_v2, %v2249_v14  ;;  %6828 = vmatprep.subr.bf16.mxu0 %v9623_v9 }
 0x1ef   : > { %8569 = vst [vmem:[%s10449_s14 + $0x58] sm:$0xff] %v8417_v57   ;;  %v2308_v47 = vadd.f32 %v2292_v11, %v2086_v15  ;;  %v2293_v37 = vadd.f32 %v2250_v8, %v11449_v32  ;;  %4808 = vmatmul.mubr.bf16.gmra.mrb[220].mxu1 %v9691_v27  ;;  %v9630_v32 = vld [vmem:[%s12894_s2 + $0x8e8] ss:$12 sps:$4 sm:$0xff]   ;;  %v13015_v27 = vrot.slane %v10756_v13, 1  ;;  %v9597_v13 = vld [vmem:[%s12894_s2 + $0x600] ss:$12 sps:$4 sm:$0xff]  }
 0x1f0   : > { %6596 = vmatmul.mubr.bf16.gmra.mrb[188].mxu0 %v11699_v17  ;;  %9030 = vmatprep.mubr.bf16.mxu1 %v11561_v22 }
 0x1f1   : > { %v11704_v42 = vadd.f32 %v10836_v26, %v2308_v47  ;;  %v2309_v2 = vadd.f32 %v2293_v37, %v2090_v44  ;;  %v2094_v9 = vpop.f32.mrb[116].mxu1  ;;  %6603 = vmatprep.mubr.bf16.mxu0 %v12943_v56  ;;  %6829 = vmatpush1.bf16.msra.mxu0 %v9621_v21  ;;  %v2376_v15 = vsel %vm1171_vm0, %v13015_v27, 0.0  ;;  %v9602_v27 = vld [vmem:[%s12894_s2 + $0x61c] ss:$12 sps:$4 sm:$0xff]  }
 0x1f2   : > { %v2251_v10 = vrot.slane %v2094_v9, 7  ;;  %v2096_v14 = vpop.f32.mrb[117].mxu1  ;;  %v9004_v57 = vpop.f32.mrb[116].mxu0  ;;  %6830 = vmatprep.subr.bf16.mxu0 %v9632_v24 }
 0x1f3   : > { %v2484_v26 = vadd.f32 %v2483_v1, %v11704_v42  ;;  %v11714_v22 = vadd.f32 %v2376_v15, %v2309_v2  ;;  %v2098_v44 = vpop.f32.mrb[118].mxu1  ;;  %v4865_v47 = vpop.f32.mrb[117].mxu0 }
 0x1f4   : > { %v2281_v11 = vsel %vm1074_vm1, 0.0, %v2251_v10  ;;  %v2252_v21 = vrot.slane %v2098_v44, 7  ;;  %v2100_v8 = vpop.f32.mrb[119].mxu1  ;;  %v11717_v37 = vpop.f32.mrb[118].mxu0  ;;  %v9693_v47 = vld [vmem:[%s9885_s29 + $0xb0] sm:$0xff]  }
 0x1f5   : > { %13016 = vst [vmem:[#allocation4_spill] sm:$0xff] %v11717_v37  ;;  %v8422_v24 = vpack.c.bf16 %v11714_v22, %v11704_v42  ;;  %v2485_v1 = vadd.f32 %v2484_v26, %v11714_v22  ;;  %v2294_v2 = vadd.f32 %v2281_v11, %v11456_v52  ;;  %v11726_v9 = vpop.f32.mrb[119].mxu0  ;;  %6831 = vmatpush1.bf16.msra.mxu0 %v9630_v32  ;;  %v9600_v52 = vld [vmem:[%s12894_s2 + $0x618] ss:$12 sps:$4 sm:$0xff]  }
 0x1f6   : > { %13017 = vst [vmem:[#allocation52_spill] sm:$0xff] %v11726_v9  ;;  %v2253_v15 = vsel %vm1074_vm1, %v2251_v10, %v2252_v21 }
 0x1f7   : > { %8570 = vst [vmem:[%s10449_s14 + $0x60] sm:$0xff] %v8422_v24   ;;  %v2310_v57 = vadd.f32 %v2294_v2, %v2096_v14  ;;  %v2295_v44 = vadd.f32 %v2253_v15, %v11438_v35  ;;  %9031 = vmatmul.mubr.bf16.vlgmr.msra.gmra.mrb[224].mxu1 %v11610_v59  ;;  %v9608_v35 = vld [vmem:[%s12894_s2 + $0x634] ss:$12 sps:$4 sm:$0xff]   ;;  %v13018_v59 = vrot.slane %v10751_v5, 1 }
 0x1f8   : > { %6604 = vmatmul.mubr.bf16.gmra.mrb[192].mxu0 %v9693_v47  ;;  %5706 = vmatpush1.bf16.msra.mxu1 %v9597_v13 }
 0x1f9   : > { %v11740_v26 = vadd.f32 %v10849_v43, %v2310_v57  ;;  %v2311_v11 = vadd.f32 %v2295_v44, %v2100_v8  ;;  %v2104_v32 = vpop.f32.mrb[120].mxu1  ;;  %5707 = vmatprep.subr.bf16.mxu1 %v9602_v27  ;;  %9034 = vmatprep.mubr.bf16.mxu1 %v11659_v62  ;;  %v2377_v10 = vsel %vm1171_vm0, %v13018_v59, 0.0  ;;  %v9606_v57 = vld [vmem:[%s12894_s2 + $0x630] ss:$12 sps:$4 sm:$0xff]  }
 0x1fa   : > { %v2254_v14 = vrot.slane %v2104_v32, 7  ;;  %v2106_v21 = vpop.f32.mrb[121].mxu1  ;;  %v9008_v13 = vpop.f32.mrb[120].mxu0  ;;  %6611 = vmatprep.mubr.bf16.mxu0 %v12943_v56 }
 0x1fb   : > { %v2486_v43 = vadd.f32 %v2485_v1, %v11740_v26  ;;  %v11751_v8 = vadd.f32 %v2377_v10, %v2311_v11  ;;  %v2108_v24 = vpop.f32.mrb[122].mxu1  ;;  %v4879_v62 = vpop.f32.mrb[121].mxu0 }
 0x1fc   : > { %v2282_v2 = vsel %vm1074_vm1, 0.0, %v2254_v14  ;;  %v2255_v27 = vrot.slane %v2108_v24, 7  ;;  %5708 = vmatpush1.bf16.msra.mxu1 %v9600_v52  ;;  %v2110_v5 = vpop.f32.mrb[123].mxu1  ;;  %v11754_v15 = vpop.f32.mrb[122].mxu0  ;;  %v9611_v52 = vld [vmem:[%s12894_s2 + $0x64c] ss:$12 sps:$4 sm:$0xff]  }
 0x1fd   : > { %13019 = vst [vmem:[#allocation53_spill] sm:$0xff] %v11754_v15  ;;  %v8427_v1 = vpack.c.bf16 %v11751_v8, %v11740_v26  ;;  %v2487_v44 = vadd.f32 %v2486_v43, %v11751_v8  ;;  %v2296_v11 = vadd.f32 %v2282_v2, %v11491_v18  ;;  %v11763_v32 = vpop.f32.mrb[123].mxu0  ;;  %5709 = vmatprep.subr.bf16.mxu1 %v9608_v35  ;;  %v9694_v24 = vld [vmem:[%s9885_s29 + $0xb8] sm:$0xff]   ;;  %v9609_v18 = vld [vmem:[%s12894_s2 + $0x648] ss:$12 sps:$4 sm:$0xff]  }
 0x1fe   : > { %13020 = vst [vmem:[#allocation54_spill] sm:$0xff] %v11763_v32  ;;  %v2256_v59 = vsel %vm1074_vm1, %v2254_v14, %v2255_v27 }
 0x1ff   : > { %8571 = vst [vmem:[%s10449_s14 + $0x68] sm:$0xff] %v8427_v1   ;;  %v2312_v10 = vadd.f32 %v2296_v11, %v2106_v21  ;;  %v2297_v13 = vadd.f32 %v2256_v59, %v11487_v55  ;;  %9035 = vmatmul.mubr.bf16.gmra.mrb[228].mxu1 %v11699_v17  ;;  %v9617_v55 = vld [vmem:[%s12894_s2 + $0x664] ss:$12 sps:$4 sm:$0xff]   ;;  %v13021_v17 = vrot.slane %v10804_v12, 1  ;;  %v9615_v59 = vld [vmem:[%s12894_s2 + $0x660] ss:$12 sps:$4 sm:$0xff]  }
 0x200   : > { %6612 = vmatmul.mubr.bf16.gmra.mrb[196].mxu0 %v9694_v24  ;;  %5710 = vmatpush1.bf16.msra.mxu1 %v9606_v57 }
 0x201   : > { %v11777_v35 = vadd.f32 %v10859_v50, %v2312_v10  ;;  %v2313_v43 = vadd.f32 %v2297_v13, %v2110_v5  ;;  %v2114_v62 = vpop.f32.mrb[124].mxu1  ;;  %5711 = vmatprep.subr.bf16.mxu1 %v9611_v52  ;;  %9038 = vmatprep.mubr.bf16.mxu1 %v9693_v47  ;;  %v2378_v14 = vsel %vm1171_vm0, %v13021_v17, 0.0 }
 0x202   : > { %v2257_v21 = vrot.slane %v2114_v62, 7  ;;  %v2116_v2 = vpop.f32.mrb[125].mxu1  ;;  %v9012_v27 = vpop.f32.mrb[124].mxu0  ;;  %6619 = vmatprep.mubr.bf16.mxu0 %v12943_v56 }
 0x203   : > { %v2488_v50 = vadd.f32 %v2487_v44, %v11777_v35  ;;  %v11787_v57 = vadd.f32 %v2378_v14, %v2313_v43  ;;  %v2118_v5 = vpop.f32.mrb[126].mxu1  ;;  %v4893_v47 = vpop.f32.mrb[125].mxu0  ;;  %v9695_v27 = vld [vmem:[%s9885_s29 + $0xc0] sm:$0xff]  }
 0x204   : > { %v2283_v1 = vsel %vm1074_vm1, 0.0, %v2257_v21  ;;  %v2258_v11 = vrot.slane %v2118_v5, 7  ;;  %5712 = vmatpush1.bf16.msra.mxu1 %v9609_v18  ;;  %v2120_v12 = vpop.f32.mrb[127].mxu1  ;;  %v11790_v52 = vpop.f32.mrb[126].mxu0  ;;  %v9620_v18 = vld [vmem:[%s12894_s2 + $0x67c] ss:$12 sps:$4 sm:$0xff]  }
 0x205   : > { %13022 = vst [vmem:[#allocation55_spill] sm:$0xff] %v11790_v52  ;;  %v8432_v44 = vpack.c.bf16 %v11787_v57, %v11777_v35  ;;  %v2489_v10 = vadd.f32 %v2488_v50, %v11787_v57  ;;  %v2298_v13 = vadd.f32 %v2283_v1, %v11494_v7  ;;  %v11799_v43 = vpop.f32.mrb[127].mxu0  ;;  %5713 = vmatprep.subr.bf16.mxu1 %v9617_v55  ;;  %v9618_v7 = vld [vmem:[%s12894_s2 + $0x678] ss:$12 sps:$4 sm:$0xff]  }
 0x206   : > { %13023 = vst [vmem:[#allocation56_spill] sm:$0xff] %v11799_v43  ;;  %v2259_v62 = vsel %vm1074_vm1, %v2257_v21, %v2258_v11  ;;  %v9626_v21 = vld [vmem:[%s12894_s2 + $0x694] ss:$12 sps:$4 sm:$0xff]  }
 0x207   : > { %8572 = vst [vmem:[%s10449_s14 + $0x70] sm:$0xff] %v8432_v44   ;;  %v2314_v17 = vadd.f32 %v2298_v13, %v2116_v2  ;;  %v2299_v14 = vadd.f32 %v2259_v62, %v11476_v36  ;;  %9039 = vmatmul.mubr.bf16.gmra.mrb[232].mxu1 %v9694_v24  ;;  %v13024_v36 = vrot.slane %v10797_v54, 1 }
 0x208   : > { %6620 = vmatmul.mubr.bf16.gmra.mrb[200].mxu0 %v9695_v27  ;;  %5714 = vmatpush1.bf16.msra.mxu1 %v9615_v59 }
 0x209   : > { %v11812_v55 = vadd.f32 %v10864_v39, %v2314_v17  ;;  %v2315_v50 = vadd.f32 %v2299_v14, %v2120_v12  ;;  %v8904_v5 = vpop.f32.mrb[128].mxu1  ;;  %5715 = vmatprep.subr.bf16.mxu1 %v9620_v18  ;;  %9042 = vmatprep.mubr.bf16.mxu1 %v9695_v27  ;;  %v2379_v24 = vsel %vm1171_vm0, %v13024_v36, 0.0  ;;  %v9624_v18 = vld [vmem:[%s12894_s2 + $0x690] ss:$12 sps:$4 sm:$0xff]  }
 0x20a   : > { %v2927_v2 = vpop.f32.mrb[129].mxu1  ;;  %v11820_v47 = vpop.f32.mrb[128].mxu0  ;;  %6627 = vmatprep.mubr.bf16.mxu0 %v12943_v56  ;;  %v3107_v59 = vrot.slane %v8904_v5, 6 }
 0x20b   : > { %v2490_v39 = vadd.f32 %v2489_v10, %v11812_v55  ;;  %v11824_v1 = vadd.f32 %v2379_v24, %v2315_v50  ;;  %v8905_v11 = vpop.f32.mrb[130].mxu1  ;;  %v11826_v12 = vpop.f32.mrb[129].mxu0  ;;  %v3104_v17 = vrot.slane %v2927_v2, 6 }
 0x20c   : > { %v3108_v44 = vrot.slane %v8905_v11, 6  ;;  %5716 = vmatpush1.bf16.msra.mxu1 %v9618_v7  ;;  %v2930_v13 = vpop.f32.mrb[131].mxu1  ;;  %v5209_v54 = vpop.f32.mrb[130].mxu0  ;;  %v9629_v7 = vld [vmem:[%s12894_s2 + $0x6ac] ss:$12 sps:$4 sm:$0xff]  }
 0x20d   : > { %v8437_v62 = vpack.c.bf16 %v11824_v1, %v11812_v55  ;;  %v2491_v10 = vadd.f32 %v2490_v39, %v11824_v1  ;;  %v3105_v14 = vrot.slane %v2930_v13, 6  ;;  %v11834_v27 = vpop.f32.mrb[131].mxu0  ;;  %5717 = vmatprep.subr.bf16.mxu1 %v9626_v21  ;;  %v9696_v11 = vld [vmem:[%s9885_s29 + $0xc8] sm:$0xff]  }
 0x20e   : > { %v3109_v50 = vsel %vm3103_vm3, %v3107_v59, %v3108_v44  ;;  %v3145_v5 = vsel %vm3103_vm3, %v3108_v44, 0.0  ;;  %v9627_v59 = vld [vmem:[%s12894_s2 + $0x6a8] ss:$12 sps:$4 sm:$0xff]  }
 0x20f   : > { %8573 = vst [vmem:[%s10449_s14 + $0x78] sm:$0xff] %v8437_v62   ;;  %v2492_v36 = vrot.slane %v2491_v10, 4  ;;  %v11843_v24 = vadd.f32 %v3145_v5, %v10937_v19  ;;  %v3106_v39 = vsel %vm3103_vm3, %v3104_v17, %v3105_v14  ;;  %v3144_v2 = vsel %vm3103_vm3, %v3105_v14, 0.0  ;;  %9043 = vmatmul.mubr.bf16.gmra.mrb[236].mxu1 %v9696_v11 }
 0x210   : > { %v11849_v21 = vadd.f32 %v3144_v2, %v10898_v6  ;;  %6628 = vmatmul.mubr.bf16.gmra.mrb[204].mxu0 %v9696_v11  ;;  %5718 = vmatpush1.bf16.msra.mxu1 %v9624_v18  ;;  %v11855_v44 = vadd.f32 %v3106_v39, %v10880_v61  ;;  %v11858_v19 = vadd.f32 %v3109_v50, %v10920_v25 }
 0x211   : > { %v2493_v13 = vadd.f32 %v2492_v36, %v2491_v10  ;;  %v8908_v54 = vpop.f32.mrb[132].mxu1  ;;  %5719 = vmatprep.subr.bf16.mxu1 %v9629_v7  ;;  %5737 = vmatprep.mubr.bf16.mxu1 %v12943_v56  ;;  %v9633_v10 = vld [vmem:[%s9885_s29 + $0x120] sm:$0xff]  }
 0x212   : > { %v2943_v6 = vpop.f32.mrb[133].mxu1  ;;  %v11861_v62 = vpop.f32.mrb[132].mxu0  ;;  %6848 = vmatprep.mubr.bf16.mxu0 %v12943_v56  ;;  %v3113_v61 = vrot.slane %v8908_v54, 6 }
 0x213   : > { %v2494_v18 = vrot.slane %v2493_v13, 2  ;;  %v8909_v17 = vpop.f32.mrb[134].mxu1  ;;  %v11864_v14 = vpop.f32.mrb[133].mxu0  ;;  %v3110_v7 = vrot.slane %v2943_v6, 6 }
 0x214   : > { %13025 = vst [vmem:[#allocation57_spill] sm:$0xff] %v11864_v14  ;;  %v3114_v5 = vrot.slane %v8909_v17, 6  ;;  %5720 = vmatpush1.bf16.msra.mxu1 %v9627_v59  ;;  %v2946_v25 = vpop.f32.mrb[135].mxu1  ;;  %v5218_v50 = vpop.f32.mrb[134].mxu0  ;;  %v9697_v17 = vld [vmem:[%s9885_s29 + $0xf0] sm:$0xff]  }
 0x215   : > { %v2495_v36 = vadd.f32 %v2494_v18, %v2493_v13  ;;  %v3111_v39 = vrot.slane %v2946_v25, 6  ;;  %v11867_v2 = vpop.f32.mrb[135].mxu0 }
 0x216   : > { %13026 = vst [vmem:[#allocation58_spill] sm:$0xff] %v11867_v2  ;;  %v3115_v11 = vsel %vm3103_vm3, %v3113_v61, %v3114_v5  ;;  %v3147_v52 = vsel %vm3103_vm3, %v3114_v5, 0.0 }
 0x217   : > { %v2496_v43 = vrot.slane %v2495_v36, 1  ;;  %v11872_v15 = vadd.f32 %v3147_v52, %v11004_v34  ;;  %v3112_v54 = vsel %vm3103_vm3, %v3110_v7, %v3111_v39  ;;  %v3146_v59 = vsel %vm3103_vm3, %v3111_v39, 0.0  ;;  %5738 = vmatmul.mubr.bf16.vlgmr.msra.gmra.mrb[240].mxu1 %v9697_v17 }
 0x218   : > { %v11878_v13 = vadd.f32 %v3146_v59, %v10975_v49  ;;  %6849 = vmatmul.mubr.bf16.vlgmr.msra.gmra.mrb[176].mxu0 %v9633_v10  ;;  %5746 = vmatprep.mubr.bf16.mxu1 %v12943_v56  ;;  %v11882_v6 = vadd.f32 %v3112_v54, %v10961_v58  ;;  %v11885_v18 = vadd.f32 %v3115_v11, %v10990_v46  ;;  %v13028_v49 = vld [vmem:[#allocation5_spill] sm:$0xff]  ;;  %v9634_v46 = vld [vmem:[%s9885_s29 + $0x128] sm:$0xff]  }
 0x219   : > { %v2497_v34 = vadd.f32 %v2496_v43, %v2495_v36  ;;  %v8912_v52 = vpop.f32.mrb[136].mxu1  ;;  %6856 = vmatprep.mubr.bf16.mxu0 %v12943_v56 }
 0x21a   : > { %v2959_v61 = vpop.f32.mrb[137].mxu1  ;;  %v11888_v5 = vpop.f32.mrb[136].mxu0 }
 0x21b   : > { %13027 = vst [vmem:[#allocation59_spill] sm:$0xff] %v11888_v5  ;;  %v2498_v25 = vmul.f32 0.0078125, %v2497_v34  ;;  %v11892_v50 = vsel %vm1074_vm1, %v13028_v49, %v2497_v34  ;;  %v8913_v10 = vpop.f32.mrb[138].mxu1  ;;  %v11894_v7 = vpop.f32.mrb[137].mxu0 }
 0x21c   : > { %13029 = vst [vmem:[#allocation5_spill] sm:$0xff] %v11892_v50  ;;  %13030 = vst [vmem:[#allocation60_spill] sm:$0xff] %v11894_v7  ;;  %v2962_v58 = vpop.f32.mrb[139].mxu1  ;;  %v5227_v39 = vpop.f32.mrb[138].mxu0 }
 0x21d   : > { %v2499_v43 = vsub.f32 %v11523_v38, %v2498_v25  ;;  %v2500_v36 = vsub.f32 %v11534_v20, %v2498_v25  ;;  %v2502_v11 = vsub.f32 %v11582_v0, %v2498_v25  ;;  %v11900_v54 = vpop.f32.mrb[139].mxu0  ;;  %v2503_v59 = vsub.f32 %v11616_v30, %v2498_v25  ;;  %v9698_v30 = vld [vmem:[%s9885_s29 + $0xf8] sm:$0xff]  }
 0x21e   : > { %13031 = vst [vmem:[#allocation61_spill] sm:$0xff] %v11900_v54  ;;  %v2504_v17 = vsub.f32 %v11631_v29, %v2498_v25  ;;  %v11905_v34 = vsub.f32 %v11664_v41, %v2498_v25  ;;  %v11908_v49 = vsub.f32 %v11677_v60, %v2498_v25  ;;  %v11911_v39 = vsub.f32 %v11704_v42, %v2498_v25 }
 0x21f   : > { %v11914_v38 = vsub.f32 %v11714_v22, %v2498_v25  ;;  %v11917_v20 = vsub.f32 %v11740_v26, %v2498_v25  ;;  %v11920_v0 = vsub.f32 %v11751_v8, %v2498_v25  ;;  %5747 = vmatmul.mubr.bf16.gmra.mrb[244].mxu1 %v9698_v30  ;;  %v11924_v29 = vsub.f32 %v11777_v35, %v2498_v25 }
 0x220   : > { %v11927_v41 = vsub.f32 %v11787_v57, %v2498_v25  ;;  %v11930_v60 = vsub.f32 %v11812_v55, %v2498_v25  ;;  %v11933_v42 = vsub.f32 %v11824_v1, %v2498_v25  ;;  %6857 = vmatmul.mubr.bf16.gmra.mrb[180].mxu0 %v9634_v46  ;;  %v2501_v22 = vsub.f32 %v11566_v48, %v2498_v25  ;;  %v9635_v48 = vld [vmem:[%s9885_s29 + $0x130] sm:$0xff]  }
 0x221   : > { %v2515_v26 = vmul.f32 %v2499_v43, %v2499_v43  ;;  %v2516_v8 = vmul.f32 %v2500_v36, %v2500_v36  ;;  %v3120_v54 = vrot.slane %v8913_v10, 6  ;;  %v8916_v30 = vpop.f32.mrb[140].mxu1  ;;  %5755 = vmatprep.mubr.bf16.mxu1 %v12943_v56  ;;  %6864 = vmatprep.mubr.bf16.mxu0 %v12943_v56  ;;  %v3119_v57 = vrot.slane %v8912_v52, 6 }
 0x222   : > { %v2975_v35 = vpop.f32.mrb[141].mxu1  ;;  %v11937_v32 = vpop.f32.mrb[140].mxu0  ;;  %v3116_v1 = vrot.slane %v2959_v61, 6  ;;  %v2517_v25 = vmul.f32 %v2501_v22, %v2501_v22  ;;  %v2519_v5 = vmul.f32 %v2503_v59, %v2503_v59  ;;  %v3117_v2 = vrot.slane %v2962_v58, 6 }
 0x223   : > { %13032 = vst [vmem:[#allocation62_spill] sm:$0xff] %v11937_v32  ;;  %v8917_v55 = vpop.f32.mrb[142].mxu1  ;;  %v11940_v37 = vpop.f32.mrb[141].mxu0  ;;  %v2531_v43 = vadd.f32 %v2516_v8, %v2515_v26  ;;  %v3121_v10 = vsel %vm3103_vm3, %v3119_v57, %v3120_v54  ;;  %v3149_v36 = vsel %vm3103_vm3, %v3120_v54, 0.0  ;;  %v2518_v32 = vmul.f32 %v2502_v11, %v2502_v11 }
 0x224   : > { %13033 = vst [vmem:[#allocation63_spill] sm:$0xff] %v11940_v37  ;;  %v2978_v46 = vpop.f32.mrb[143].mxu1  ;;  %v5236_v50 = vpop.f32.mrb[142].mxu0  ;;  %v11948_v52 = vadd.f32 %v3149_v36, %v11063_v45  ;;  %v3125_v61 = vrot.slane %v8916_v30, 6  ;;  %v3126_v9 = vrot.slane %v8917_v55, 6  ;;  %v3118_v22 = vsel %vm3103_vm3, %v3116_v1, %v3117_v2 }
 0x225   : > { %v11945_v7 = vpop.f32.mrb[143].mxu0  ;;  %v2532_v37 = vadd.f32 %v2531_v43, %v2517_v25  ;;  %v3123_v14 = vrot.slane %v2978_v46, 6  ;;  %v9699_v50 = vld [vmem:[%s9885_s29 + $0x100] sm:$0xff]   ;;  %v3148_v26 = vsel %vm3103_vm3, %v3117_v2, 0.0  ;;  %v3122_v8 = vrot.slane %v2975_v35, 6  ;;  %v9636_v46 = vld [vmem:[%s9885_s29 + $0x138] sm:$0xff]  }
 0x226   : > { %v11955_v11 = vadd.f32 %v3121_v10, %v11052_v33  ;;  %v11958_v58 = vadd.f32 %v3148_v26, %v11032_v40  ;;  %v3127_v54 = vsel %vm3103_vm3, %v3125_v61, %v3126_v9  ;;  %v3151_v59 = vsel %vm3103_vm3, %v3126_v9, 0.0 }
 0x227   : > { %5756 = vmatmul.mubr.bf16.gmra.mrb[248].mxu1 %v9699_v50  ;;  %v2533_v45 = vadd.f32 %v2532_v37, %v2518_v32  ;;  %v2520_v30 = vmul.f32 %v2504_v17, %v2504_v17  ;;  %v11964_v2 = vadd.f32 %v3151_v59, %v11123_v4  ;;  %v3124_v35 = vsel %vm3103_vm3, %v3122_v8, %v3123_v14  ;;  %v9700_v8 = vld [vmem:[%s9885_s29 + $0x108] sm:$0xff]  }
 0x228   : > { %6865 = vmatmul.mubr.bf16.gmra.mrb[184].mxu0 %v9635_v48  ;;  %5764 = vmatprep.mubr.bf16.mxu1 %v12943_v56  ;;  %v3150_v33 = vsel %vm3103_vm3, %v3123_v14, 0.0  ;;  %v11974_v9 = vadd.f32 %v3118_v22, %v11021_v3  ;;  %v11980_v48 = vadd.f32 %v3124_v35, %v11082_v51  ;;  %v13034_v14 = vld [vmem:[#allocation10_spill] sm:$0xff]  ;;  %v2522_v51 = vmul.f32 %v11908_v49, %v11908_v49  ;;  %v13035_v59 = vld [vmem:[#allocation12_spill] sm:$0xff] }
 0x229   : > { %6872 = vmatprep.mubr.bf16.mxu0 %v12943_v56  ;;  %v2534_v37 = vadd.f32 %v2533_v45, %v2519_v5  ;;  %v11969_v40 = vadd.f32 %v3150_v33, %v11093_v28  ;;  %v11983_v5 = vadd.f32 %v3127_v54, %v13034_v14  ;;  %v2521_v28 = vmul.f32 %v11905_v34, %v11905_v34  ;;  %v13037_v35 = vld [vmem:[#allocation14_spill] sm:$0xff] }
 0x22a   : > { %v3362_v57 = vpop.f32.mrb[144].mxu1  ;;  %v11971_v1 = vpop.f32.mrb[144].mxu0  ;;  %v2523_v54 = vmul.f32 %v11911_v39, %v11911_v39  ;;  %v13036_v49 = vrot.slane %v13035_v59, 6  ;;  %v2526_v59 = vmul.f32 %v11920_v0, %v11920_v0  ;;  %v13042_v0 = vld [vmem:[#allocation11_spill] sm:$0xff] }
 0x22b   : > { %v3554_v32 = vrot.slane %v3362_v57, 2  ;;  %v3364_v55 = vpop.f32.mrb[145].mxu1  ;;  %v11976_v4 = vpop.f32.mrb[145].mxu0  ;;  %v2535_v25 = vadd.f32 %v2534_v37, %v2520_v30 }
 0x22c   : > { %v3366_v17 = vpop.f32.mrb[146].mxu1  ;;  %v5245_v36 = vpop.f32.mrb[146].mxu0  ;;  %v3690_v30 = vsel %vm3103_vm3, %v13036_v49, 0.0 }
 0x22d   : > { %v3594_v43 = vsel %vm3006_vm2, 0.0, %v3554_v32  ;;  %v3555_v10 = vrot.slane %v3366_v17, 2  ;;  %v3368_v3 = vpop.f32.mrb[147].mxu1  ;;  %v11989_v50 = vpop.f32.mrb[147].mxu0  ;;  %v2536_v22 = vadd.f32 %v2535_v25, %v2521_v28 }
 0x22e   : > { %v3602_v61 = vadd.f32 %v3594_v43, %v11855_v44 }
 0x22f   : > { %v3556_v26 = vsel %vm3006_vm2, %v3554_v32, %v3555_v10  ;;  %5765 = vmatmul.mubr.bf16.gmra.mrb[252].mxu1 %v9700_v8  ;;  %v2537_v44 = vadd.f32 %v2536_v22, %v2522_v51 }
 0x230   : > { %v3618_v45 = vadd.f32 %v3602_v61, %v3364_v55  ;;  %v3603_v34 = vadd.f32 %v3556_v26, %v11849_v21  ;;  %6873 = vmatmul.mubr.bf16.gmra.mrb[188].mxu0 %v9636_v46  ;;  %5773 = vmatprep.mubr.bf16.mxu1 %v12943_v56  ;;  %v13038_v21 = vrot.slane %v11323_v23, 2  ;;  %v2524_v55 = vmul.f32 %v11914_v38, %v11914_v38  ;;  %v13039_v26 = vld [vmem:[#allocation27_spill] sm:$0xff] }
 0x231   : > { %6880 = vmatprep.mubr.bf16.mxu0 %v12943_v56  ;;  %v2538_v39 = vadd.f32 %v2537_v44, %v2523_v54  ;;  %v2525_v23 = vmul.f32 %v11917_v20, %v11917_v20 }
 0x232   : > { %v3698_v33 = vadd.f32 %v13037_v35, %v3618_v45  ;;  %v3619_v57 = vadd.f32 %v3603_v34, %v3368_v3  ;;  %v3372_v37 = vpop.f32.mrb[148].mxu1  ;;  %v4208_v32 = vsel %vm3006_vm2, 0.0, %v13038_v21  ;;  %v12009_v14 = vpop.f32.mrb[148].mxu0  ;;  %v9637_v3 = vld [vmem:[%s9885_s29 + $0x140] sm:$0xff]   ;;  %v13040_v45 = vld [vmem:[#allocation29_spill] sm:$0xff] }
 0x233   : > { %v3557_v17 = vrot.slane %v3372_v37, 2  ;;  %v3374_v46 = vpop.f32.mrb[149].mxu1  ;;  %v12011_v10 = vpop.f32.mrb[149].mxu0  ;;  %v2539_v36 = vadd.f32 %v2538_v39, %v2524_v55  ;;  %v13044_v39 = vld [vmem:[#allocation13_spill] sm:$0xff] }
 0x234   : > { %v4216_v28 = vadd.f32 %v4208_v32, %v3698_v33  ;;  %v3699_v25 = vadd.f32 %v3690_v30, %v3619_v57  ;;  %v3376_v43 = vpop.f32.mrb[150].mxu1  ;;  %v5254_v22 = vpop.f32.mrb[150].mxu0  ;;  %v9701_v30 = vld [vmem:[%s9885_s29 + $0x110] sm:$0xff]   ;;  %v13041_v57 = vld [vmem:[#allocation28_spill] sm:$0xff]  ;;  %v13043_v32 = vrot.slane %v13042_v0, 6  ;;  %v9702_v0 = vld [vmem:[%s9885_s29 + $0x118] sm:$0xff]  }
 0x235   : > { %v3595_v61 = vsel %vm3006_vm2, 0.0, %v3557_v17  ;;  %v3558_v51 = vrot.slane %v3376_v43, 2  ;;  %v3378_v38 = vpop.f32.mrb[151].mxu1  ;;  %v12022_v44 = vpop.f32.mrb[151].mxu0  ;;  %v2540_v49 = vadd.f32 %v2539_v36, %v2525_v23  ;;  %v2528_v43 = vmul.f32 %v11927_v41, %v11927_v41 }
 0x236   : > { %v12018_v8 = vadd.f32 %v4216_v28, %v13039_v26  ;;  %v4217_v34 = vadd.f32 %v13040_v45, %v3699_v25  ;;  %v3604_v54 = vadd.f32 %v3595_v61, %v11858_v19  ;;  %v2527_v19 = vmul.f32 %v11924_v29, %v11924_v29 }
 0x237   : > { %v3559_v20 = vsel %vm3006_vm2, %v3557_v17, %v3558_v51  ;;  %5774 = vmatmul.mubr.bf16.gmra.mrb[0].mxu1 %v9701_v30  ;;  %v2541_v21 = vadd.f32 %v2540_v49, %v2526_v59  ;;  %v3691_v55 = vsel %vm3103_vm3, %v13043_v32, 0.0  ;;  %v13045_v28 = vrot.slane %v11379_v31, 2  ;;  %v13046_v49 = vld [vmem:[#allocation30_spill] sm:$0xff]  ;;  %v13047_v30 = vld [vmem:[#allocation32_spill] sm:$0xff] }
 0x238   : > { %v3620_v35 = vadd.f32 %v3604_v54, %v3374_v46  ;;  %v3605_v33 = vadd.f32 %v3559_v20, %v11843_v24  ;;  %6881 = vmatmul.mubr.bf16.gmra.mrb[192].mxu0 %v9637_v3  ;;  %5782 = vmatprep.mubr.bf16.mxu1 %v12943_v56  ;;  %v12031_v37 = vadd.f32 %v4217_v34, %v13041_v57 }
 0x239   : > { %6888 = vmatprep.mubr.bf16.mxu0 %v12943_v56  ;;  %v4209_v25 = vsel %vm3006_vm2, 0.0, %v13045_v28  ;;  %v2542_v29 = vadd.f32 %v2541_v21, %v2527_v19  ;;  %v2529_v31 = vmul.f32 %v11930_v60, %v11930_v60  ;;  %v2530_v19 = vmul.f32 %v11933_v42, %v11933_v42  ;;  %v13050_v42 = vld [vmem:[#allocation18_spill] sm:$0xff] }
 0x23a   : > { %v3700_v17 = vadd.f32 %v13044_v39, %v3620_v35  ;;  %v3621_v24 = vadd.f32 %v3605_v33, %v3378_v38  ;;  %v3382_v46 = vpop.f32.mrb[152].mxu1  ;;  %v12045_v36 = vpop.f32.mrb[152].mxu0  ;;  %v9638_v38 = vld [vmem:[%s9885_s29 + $0x148] sm:$0xff]   ;;  %v13048_v39 = vld [vmem:[#allocation31_spill] sm:$0xff] }
 0x23b   : > { %v3560_v3 = vrot.slane %v3382_v46, 2  ;;  %v3384_v23 = vpop.f32.mrb[153].mxu1  ;;  %v12047_v26 = vpop.f32.mrb[153].mxu0  ;;  %v2543_v45 = vadd.f32 %v2542_v29, %v2528_v43 }
 0x23c   : > { %v4218_v61 = vadd.f32 %v4209_v25, %v3700_v17  ;;  %v3701_v51 = vadd.f32 %v3691_v55, %v3621_v24  ;;  %v3386_v22 = vpop.f32.mrb[154].mxu1  ;;  %v5263_v59 = vpop.f32.mrb[154].mxu0  ;;  %v13051_v25 = vld [vmem:[#allocation16_spill] sm:$0xff] }
 0x23d   : > { %v3596_v34 = vsel %vm3006_vm2, 0.0, %v3560_v3  ;;  %v3561_v54 = vrot.slane %v3386_v22, 2  ;;  %v3388_v41 = vpop.f32.mrb[155].mxu1  ;;  %v12058_v57 = vpop.f32.mrb[155].mxu0  ;;  %v2544_v21 = vadd.f32 %v2543_v45, %v2529_v31  ;;  %v13052_v43 = vrot.slane %v13051_v25, 6 }
 0x23e   : > { %v12054_v20 = vadd.f32 %v4218_v61, %v13046_v49  ;;  %v4219_v35 = vadd.f32 %v13047_v30, %v3701_v51  ;;  %v3606_v33 = vadd.f32 %v3596_v34, %v11882_v6 }
 0x23f   : > { %v3562_v60 = vsel %vm3006_vm2, %v3560_v3, %v3561_v54  ;;  %5783 = vmatmul.mubr.bf16.gmra.mrb[4].mxu1 %v9702_v0  ;;  %v12069_v6 = vadd.f32 %v2544_v21, %v2530_v19  ;;  %v3692_v29 = vsel %vm3103_vm3, %v13052_v43, 0.0  ;;  %v9639_v54 = vld [vmem:[%s9885_s29 + $0x150] sm:$0xff]   ;;  %v13056_v19 = vld [vmem:[#allocation36_spill] sm:$0xff] }
 0x240   : > { %v3622_v32 = vadd.f32 %v3606_v33, %v3384_v23  ;;  %v3607_v55 = vadd.f32 %v3562_v60, %v11878_v13  ;;  %6889 = vmatmul.mubr.bf16.gmra.mrb[196].mxu0 %v9638_v38  ;;  %5791 = vmatprep.mubr.bf16.mxu1 %v12943_v56  ;;  %v12067_v17 = vadd.f32 %v4219_v35, %v13048_v39  ;;  %v13053_v13 = vld [vmem:[#allocation33_spill] sm:$0xff]  ;;  %v13055_v35 = vld [vmem:[#allocation34_spill] sm:$0xff] }
 0x241   : > { %13049 = vst [vmem:[#allocation10_spill] sm:$0xff] %v12069_v6  ;;  %6896 = vmatprep.mubr.bf16.mxu0 %v12943_v56  ;;  %v13054_v3 = vrot.slane %v13053_v13, 2  ;;  %v13108_v6 = vld [vmem:[#allocation63_spill] sm:$0xff] }
 0x242   : > { %v3702_v24 = vadd.f32 %v13050_v42, %v3622_v32  ;;  %v3623_v46 = vadd.f32 %v3607_v55, %v3388_v41  ;;  %v3392_v28 = vpop.f32.mrb[156].mxu1  ;;  %v12079_v22 = vpop.f32.mrb[156].mxu0  ;;  %v9703_v55 = vld [vmem:[%s9885_s29 + $0x120] sm:$0xff]  }
 0x243   : > { %v4210_v23 = vsel %vm3006_vm2, 0.0, %v13054_v3  ;;  %v3563_v61 = vrot.slane %v3392_v28, 2  ;;  %v3394_v51 = vpop.f32.mrb[157].mxu1  ;;  %v12081_v34 = vpop.f32.mrb[157].mxu0  ;;  %v13058_v28 = vld [vmem:[#allocation17_spill] sm:$0xff] }
 0x244   : > { %v4220_v38 = vadd.f32 %v4210_v23, %v3702_v24  ;;  %v3703_v31 = vadd.f32 %v3692_v29, %v3623_v46  ;;  %v3396_v45 = vpop.f32.mrb[158].mxu1  ;;  %v5272_v30 = vpop.f32.mrb[158].mxu0  ;;  %v13057_v24 = vld [vmem:[#allocation35_spill] sm:$0xff]  ;;  %v13061_v23 = vld [vmem:[#allocation37_spill] sm:$0xff] }
 0x245   : > { %v3597_v41 = vsel %vm3006_vm2, 0.0, %v3563_v61  ;;  %v3564_v59 = vrot.slane %v3396_v45, 2  ;;  %v3398_v49 = vpop.f32.mrb[159].mxu1  ;;  %v12090_v0 = vpop.f32.mrb[159].mxu0  ;;  %v13059_v29 = vld [vmem:[#allocation15_spill] sm:$0xff] }
 0x246   : > { %v12086_v33 = vadd.f32 %v4220_v38, %v13055_v35  ;;  %v4221_v21 = vadd.f32 %v13056_v19, %v3703_v31  ;;  %v3608_v60 = vadd.f32 %v3597_v41, %v11885_v18  ;;  %v13060_v13 = vrot.slane %v13059_v29, 6 }
 0x247   : > { %v3565_v32 = vsel %vm3006_vm2, %v3563_v61, %v3564_v59  ;;  %5792 = vmatmul.mubr.bf16.gmra.mrb[8].mxu1 %v9703_v55  ;;  %v13062_v61 = vrot.slane %v13061_v23, 2  ;;  %v9640_v59 = vld [vmem:[%s9885_s29 + $0x158] sm:$0xff]  }
 0x248   : > { %v3624_v39 = vadd.f32 %v3608_v60, %v3394_v51  ;;  %v3609_v42 = vadd.f32 %v3565_v32, %v11872_v15  ;;  %6897 = vmatmul.mubr.bf16.gmra.mrb[200].mxu0 %v9639_v54  ;;  %5800 = vmatprep.mubr.bf16.mxu1 %v12943_v56  ;;  %v12097_v46 = vadd.f32 %v4221_v21, %v13057_v24  ;;  %v3693_v3 = vsel %vm3103_vm3, %v13060_v13, 0.0  ;;  %v13063_v21 = vld [vmem:[#allocation38_spill] sm:$0xff]  ;;  %v13064_v32 = vld [vmem:[#allocation40_spill] sm:$0xff] }
 0x249   : > { %6904 = vmatprep.mubr.bf16.mxu0 %v12943_v56  ;;  %v4211_v15 = vsel %vm3006_vm2, 0.0, %v13062_v61  ;;  %v13066_v13 = vld [vmem:[#allocation22_spill] sm:$0xff] }
 0x24a   : > { %v3704_v18 = vadd.f32 %v13058_v28, %v3624_v39  ;;  %v3625_v25 = vadd.f32 %v3609_v42, %v3398_v49  ;;  %v3402_v43 = vpop.f32.mrb[160].mxu1  ;;  %v9064_v31 = vpop.f32.mrb[160].mxu0  ;;  %v9704_v28 = vld [vmem:[%s9885_s29 + $0x128] sm:$0xff]   ;;  %s228_s29 = scalar_select %p227_p10, %s9743_s17, 1 }
 0x24b   : > { %v3566_v51 = vrot.slane %v3402_v43, 2  ;;  %v3404_v38 = vpop.f32.mrb[161].mxu1  ;;  %v5844_v56 = vpop.f32.mrb[161].mxu0  ;;  %v13065_v43 = vld [vmem:[#allocation39_spill] sm:$0xff] }
 0x24c   : > { %v4222_v45 = vadd.f32 %v4211_v15, %v3704_v18  ;;  %v3705_v54 = vadd.f32 %v3693_v3, %v3625_v25  ;;  %v3406_v41 = vpop.f32.mrb[162].mxu1  ;;  %v12109_v19 = vpop.f32.mrb[162].mxu0  ;;  %v13067_v15 = vld [vmem:[#allocation20_spill] sm:$0xff]  ;;  %s7625_s10 = sshll.u32 %s228_s29, 1 }
 0x24d   : > { %v3598_v49 = vsel %vm3006_vm2, 0.0, %v3566_v51  ;;  %v3567_v30 = vrot.slane %v3406_v41, 2  ;;  %v3408_v35 = vpop.f32.mrb[163].mxu1  ;;  %v12116_v42 = vpop.f32.mrb[163].mxu0  ;;  %v13068_v31 = vrot.slane %v13067_v15, 6  ;;  %s231_s13 = sadd.s32 %s7626_s11, %s7625_s10 }
 0x24e   : > { %v12112_v60 = vadd.f32 %v4222_v45, %v13063_v21  ;;  %v4223_v55 = vadd.f32 %v13064_v32, %v3705_v54  ;;  %v3610_v39 = vadd.f32 %v3598_v49, %v11974_v9  ;;  %v13069_v45 = vrot.slane %v11497_v53, 2  ;;  %s7627_s12 = sshll.u32 %s231_s13, 3 }
 0x24f   : > { %v3568_v24 = vsel %vm3006_vm2, %v3566_v51, %v3567_v30  ;;  %5801 = vmatmul.mubr.bf16.gmra.mrb[12].mxu1 %v9704_v28  ;;  %v3694_v9 = vsel %vm3103_vm3, %v13068_v31, 0.0  ;;  %s12737_s26 = scalar_lea.vmem %s12896_s4, %s7627_s12 }
 0x250   : > { %v3626_v18 = vadd.f32 %v3610_v39, %v3404_v38  ;;  %v3611_v25 = vadd.f32 %v3568_v24, %v11958_v58  ;;  %6905 = vmatmul.mubr.bf16.gmra.mrb[204].mxu0 %v9640_v59  ;;  %v12122_v29 = vadd.f32 %v4223_v55, %v13065_v43  ;;  %v4212_v51 = vsel %vm3006_vm2, 0.0, %v13069_v45  ;;  %v13070_v55 = vld [vmem:[#allocation41_spill] sm:$0xff]  ;;  %v13071_v24 = vld [vmem:[#allocation43_spill] sm:$0xff] }
 0x251   : > { %v13074_v45 = vld [vmem:[#allocation19_spill] sm:$0xff] }
 0x252   : > { %v3706_v3 = vadd.f32 %v13066_v13, %v3626_v18  ;;  %v3627_v23 = vadd.f32 %v3611_v25, %v3408_v35  ;;  %v3412_v61 = vpop.f32.mrb[164].mxu1  ;;  %v9068_v41 = vpop.f32.mrb[164].mxu0 }
 0x253   : > { %v3569_v54 = vrot.slane %v3412_v61, 2  ;;  %v3414_v38 = vpop.f32.mrb[165].mxu1  ;;  %v5858_v49 = vpop.f32.mrb[165].mxu0  ;;  %v13073_v61 = vld [vmem:[#allocation21_spill] sm:$0xff] }
 0x254   : > { %v4224_v58 = vadd.f32 %v4212_v51, %v3706_v3  ;;  %v3707_v56 = vadd.f32 %v3694_v9, %v3627_v23  ;;  %v3416_v59 = vpop.f32.mrb[166].mxu1  ;;  %v12132_v32 = vpop.f32.mrb[166].mxu0  ;;  %v13072_v3 = vld [vmem:[#allocation42_spill] sm:$0xff]  ;;  %v13075_v51 = vrot.slane %v13074_v45, 6 }
 0x255   : > { %v3599_v30 = vsel %vm3006_vm2, 0.0, %v3569_v54  ;;  %v3570_v21 = vrot.slane %v3416_v59, 2  ;;  %v3418_v35 = vpop.f32.mrb[167].mxu1  ;;  %v12139_v18 = vpop.f32.mrb[167].mxu0  ;;  %v13080_v45 = vld [vmem:[#allocation46_spill] sm:$0xff] }
 0x256   : > { %v12135_v39 = vadd.f32 %v4224_v58, %v13070_v55  ;;  %v4225_v53 = vadd.f32 %v13071_v24, %v3707_v56  ;;  %v3612_v28 = vadd.f32 %v3599_v30, %v11955_v11  ;;  %v3695_v41 = vsel %vm3103_vm3, %v13075_v51, 0.0  ;;  %v13076_v58 = vld [vmem:[#allocation44_spill] sm:$0xff] }
 0x257   : > { %v3571_v25 = vsel %vm3006_vm2, %v3569_v54, %v3570_v21  ;;  %v13077_v11 = vrot.slane %v13076_v58, 2 }
 0x258   : > { %v3628_v43 = vadd.f32 %v3612_v28, %v3414_v38  ;;  %v3613_v13 = vadd.f32 %v3571_v25, %v11948_v52  ;;  %v12144_v23 = vadd.f32 %v4225_v53, %v13072_v3  ;;  %v13078_v28 = vld [vmem:[#allocation45_spill] sm:$0xff] }
 0x259   : > { %v4213_v56 = vsel %vm3006_vm2, 0.0, %v13077_v11 }
 0x25a   : > { %v3708_v15 = vadd.f32 %v13073_v61, %v3628_v43  ;;  %v3629_v31 = vadd.f32 %v3613_v13, %v3418_v35  ;;  %v3422_v9 = vpop.f32.mrb[168].mxu1  ;;  %v9072_v38 = vpop.f32.mrb[168].mxu0  ;;  %v13079_v43 = vld [vmem:[#allocation47_spill] sm:$0xff] }
 0x25b   : > { %v3572_v59 = vrot.slane %v3422_v9, 2  ;;  %v3424_v54 = vpop.f32.mrb[169].mxu1  ;;  %v5872_v21 = vpop.f32.mrb[169].mxu0  ;;  %v13082_v38 = vld [vmem:[#allocation24_spill] sm:$0xff] }
 0x25c   : > { %v4226_v49 = vadd.f32 %v4213_v56, %v3708_v15  ;;  %v3709_v52 = vadd.f32 %v3695_v41, %v3629_v31  ;;  %v3426_v30 = vpop.f32.mrb[170].mxu1  ;;  %v12154_v53 = vpop.f32.mrb[170].mxu0  ;;  %v13081_v41 = vld [vmem:[#allocation26_spill] sm:$0xff] }
 0x25d   : > { %v3600_v55 = vsel %vm3006_vm2, 0.0, %v3572_v59  ;;  %v3573_v24 = vrot.slane %v3426_v30, 2  ;;  %v3428_v35 = vpop.f32.mrb[171].mxu1  ;;  %v12161_v61 = vpop.f32.mrb[171].mxu0  ;;  %v13084_v30 = vld [vmem:[#allocation3_spill] sm:$0xff] }
 0x25e   : > { %v12157_v25 = vadd.f32 %v4226_v49, %v13078_v28  ;;  %v4227_v13 = vadd.f32 %v13079_v43, %v3709_v52  ;;  %v3614_v3 = vadd.f32 %v3600_v55, %v11980_v48  ;;  %v13083_v49 = vrot.slane %v13082_v38, 6 }
 0x25f   : > { %v3574_v15 = vsel %vm3006_vm2, %v3572_v59, %v3573_v24  ;;  %v13085_v48 = vrot.slane %v13084_v30, 2 }
 0x260   : > { %v3630_v31 = vadd.f32 %v3614_v3, %v3424_v54  ;;  %v3615_v9 = vadd.f32 %v3574_v15, %v11969_v40  ;;  %v12166_v51 = vadd.f32 %v4227_v13, %v13080_v45  ;;  %v3696_v52 = vsel %vm3103_vm3, %v13083_v49, 0.0  ;;  %v13087_v45 = vld [vmem:[#allocation50_spill] sm:$0xff] }
 0x261   : > { %v4214_v21 = vsel %vm3006_vm2, 0.0, %v13085_v48  ;;  %v13089_v48 = vld [vmem:[#allocation25_spill] sm:$0xff] }
 0x262   : > { %v3710_v58 = vadd.f32 %v13081_v41, %v3630_v31  ;;  %v3631_v11 = vadd.f32 %v3615_v9, %v3428_v35  ;;  %v3432_v56 = vpop.f32.mrb[172].mxu1  ;;  %v9076_v54 = vpop.f32.mrb[172].mxu0  ;;  %v13086_v31 = vld [vmem:[#allocation48_spill] sm:$0xff] }
 0x263   : > { %v3575_v55 = vrot.slane %v3432_v56, 2  ;;  %v3434_v59 = vpop.f32.mrb[173].mxu1  ;;  %v5886_v43 = vpop.f32.mrb[173].mxu0 }
 0x264   : > { %v4228_v24 = vadd.f32 %v4214_v21, %v3710_v58  ;;  %v3711_v40 = vadd.f32 %v3696_v52, %v3631_v11  ;;  %v3436_v28 = vpop.f32.mrb[174].mxu1  ;;  %v12176_v15 = vpop.f32.mrb[174].mxu0  ;;  %v13088_v52 = vld [vmem:[#allocation49_spill] sm:$0xff] }
 0x265   : > { %v3601_v13 = vsel %vm3006_vm2, 0.0, %v3575_v55  ;;  %v3576_v3 = vrot.slane %v3436_v28, 2  ;;  %v3438_v35 = vpop.f32.mrb[175].mxu1  ;;  %v12183_v56 = vpop.f32.mrb[175].mxu0 }
 0x266   : > { %v12179_v9 = vadd.f32 %v4228_v24, %v13086_v31  ;;  %v4229_v41 = vadd.f32 %v13087_v45, %v3711_v40  ;;  %v3616_v38 = vadd.f32 %v3601_v13, %v11983_v5  ;;  %v13090_v24 = vld [vmem:[#allocation23_spill] sm:$0xff]  ;;  %v13092_v5 = vrot.slane %v11625_v16, 2 }
 0x267   : > { %v3577_v58 = vsel %vm3006_vm2, %v3575_v55, %v3576_v3  ;;  %v13091_v43 = vrot.slane %v13090_v24, 6 }
 0x268   : > { %v3632_v11 = vadd.f32 %v3616_v38, %v3434_v59  ;;  %v3617_v49 = vadd.f32 %v3577_v58, %v11964_v2  ;;  %v12188_v30 = vadd.f32 %v4229_v41, %v13088_v52  ;;  %v4215_v13 = vsel %vm3006_vm2, 0.0, %v13092_v5  ;;  %v13093_v38 = vld [vmem:[#allocation7_spill] sm:$0xff]  ;;  %v13095_v5 = vld [vmem:[#allocation6_spill] sm:$0xff] }
 0x269   : > { %v3697_v40 = vsel %vm3103_vm3, %v13091_v43, 0.0 }
 0x26a   : > { %v3712_v21 = vadd.f32 %v13089_v48, %v3632_v11  ;;  %v3633_v54 = vadd.f32 %v3617_v49, %v3438_v35  ;;  %v8968_v28 = vpop.f32.mrb[176].mxu1  ;;  %v13094_v35 = vld [vmem:[#allocation51_spill] sm:$0xff] }
 0x26b   : > { %v4089_v31 = vpop.f32.mrb[177].mxu1  ;;  %v4267_v2 = vrot.slane %v8968_v28, 6 }
 0x26c   : > { %v4230_v55 = vadd.f32 %v4215_v13, %v3712_v21  ;;  %v3713_v59 = vadd.f32 %v3697_v40, %v3633_v54  ;;  %v8969_v3 = vpop.f32.mrb[178].mxu1  ;;  %v4264_v49 = vrot.slane %v4089_v31, 6 }
 0x26d   : > { %v4268_v45 = vrot.slane %v8969_v3, 6  ;;  %v4092_v41 = vpop.f32.mrb[179].mxu1 }
 0x26e   : > { %v12198_v58 = vadd.f32 %v4230_v55, %v13093_v38  ;;  %v4231_v11 = vadd.f32 %v13094_v35, %v3713_v59  ;;  %v4265_v52 = vrot.slane %v4092_v41, 6 }
 0x26f   : > { %v4269_v48 = vsel %vm3103_vm3, %v4267_v2, %v4268_v45  ;;  %v4305_v16 = vsel %vm3103_vm3, %v4268_v45, 0.0 }
 0x270   : > { %v12204_v21 = vadd.f32 %v4269_v48, %v12054_v20  ;;  %v12207_v54 = vadd.f32 %v4305_v16, %v12067_v17  ;;  %v4266_v28 = vsel %vm3103_vm3, %v4264_v49, %v4265_v52  ;;  %v4304_v24 = vsel %vm3103_vm3, %v4265_v52, 0.0 }
 0x271   : > { %v12212_v43 = vadd.f32 %v4266_v28, %v12018_v8  ;;  %v12215_v40 = vadd.f32 %v4304_v24, %v12031_v37  ;;  %v12218_v13 = vadd.f32 %v4231_v11, %v13095_v5 }
 0x272   : > { %v8447_v20 = vpack.c.bf16 %v12207_v54, %v12204_v21  ;;  %v8972_v31 = vpop.f32.mrb[180].mxu1 }
 0x273   : > { %v8442_v17 = vpack.c.bf16 %v12215_v40, %v12212_v43  ;;  %v4409_v55 = vadd.f32 %v12215_v40, %v12212_v43  ;;  %v4105_v59 = vpop.f32.mrb[181].mxu1  ;;  %v4273_v3 = vrot.slane %v8972_v31, 6 }
 0x274   : > { %8575 = vst [vmem:[%s10449_s14 + $0x88] sm:$0xff] %v8447_v20   ;;  %v8973_v8 = vpop.f32.mrb[182].mxu1  ;;  %v4270_v41 = vrot.slane %v4105_v59, 6 }
 0x275   : > { %8574 = vst [vmem:[%s10449_s14 + $0x80] sm:$0xff] %v8442_v17   ;;  %v4410_v37 = vadd.f32 %v4409_v55, %v12204_v21  ;;  %v4274_v2 = vrot.slane %v8973_v8, 6  ;;  %v4108_v45 = vpop.f32.mrb[183].mxu1 }
 0x276   : > { %v4271_v38 = vrot.slane %v4108_v45, 6 }
 0x277   : > { %v4275_v35 = vsel %vm3103_vm3, %v4273_v3, %v4274_v2  ;;  %v4307_v11 = vsel %vm3103_vm3, %v4274_v2, 0.0  ;;  %v4411_v49 = vadd.f32 %v4410_v37, %v12207_v54 }
 0x278   : > { %v12233_v52 = vadd.f32 %v4275_v35, %v12112_v60  ;;  %v12236_v48 = vadd.f32 %v4307_v11, %v12122_v29  ;;  %v4272_v16 = vsel %vm3103_vm3, %v4270_v41, %v4271_v38  ;;  %v4306_v28 = vsel %vm3103_vm3, %v4271_v38, 0.0 }
 0x279   : > { %v12241_v24 = vadd.f32 %v4272_v16, %v12086_v33  ;;  %v12244_v5 = vadd.f32 %v4306_v28, %v12097_v46 }
 0x27a   : > { %v8457_v20 = vpack.c.bf16 %v12236_v48, %v12233_v52  ;;  %v8976_v31 = vpop.f32.mrb[184].mxu1 }
 0x27b   : > { %v8452_v60 = vpack.c.bf16 %v12244_v5, %v12241_v24  ;;  %v4412_v29 = vadd.f32 %v4411_v49, %v12241_v24  ;;  %v4121_v17 = vpop.f32.mrb[185].mxu1  ;;  %v4279_v33 = vrot.slane %v8976_v31, 6 }
 0x27c   : > { %8577 = vst [vmem:[%s10449_s14 + $0x98] sm:$0xff] %v8457_v20   ;;  %v8977_v55 = vpop.f32.mrb[186].mxu1  ;;  %v4276_v46 = vrot.slane %v4121_v17, 6 }
 0x27d   : > { %8576 = vst [vmem:[%s10449_s14 + $0x90] sm:$0xff] %v8452_v60   ;;  %v4413_v59 = vadd.f32 %v4412_v29, %v12244_v5  ;;  %v4280_v8 = vrot.slane %v8977_v55, 6  ;;  %v4124_v37 = vpop.f32.mrb[187].mxu1 }
 0x27e   : > { %v4277_v3 = vrot.slane %v4124_v37, 6 }
 0x27f   : > { %v4414_v2 = vadd.f32 %v4413_v59, %v12233_v52  ;;  %v4281_v45 = vsel %vm3103_vm3, %v4279_v33, %v4280_v8  ;;  %v4309_v41 = vsel %vm3103_vm3, %v4280_v8, 0.0  ;;  %v4971_v33 = vrot.slane %v11686_v63, 4 }
 0x280   : > { %v12258_v38 = vadd.f32 %v4281_v45, %v12157_v25  ;;  %v12261_v35 = vadd.f32 %v4309_v41, %v12166_v51  ;;  %v4278_v11 = vsel %vm3103_vm3, %v4276_v46, %v4277_v3  ;;  %v4308_v49 = vsel %vm3103_vm3, %v4277_v3, 0.0 }
 0x281   : > { %v12266_v16 = vadd.f32 %v4278_v11, %v12135_v39  ;;  %v12269_v28 = vadd.f32 %v4308_v49, %v12144_v23  ;;  %v4415_v20 = vadd.f32 %v4414_v2, %v12236_v48 }
 0x282   : > { %v8467_v31 = vpack.c.bf16 %v12261_v35, %v12258_v38  ;;  %v8980_v25 = vpop.f32.mrb[188].mxu1 }
 0x283   : > { %v8462_v51 = vpack.c.bf16 %v12269_v28, %v12266_v16  ;;  %v4416_v60 = vadd.f32 %v4415_v20, %v12266_v16  ;;  %v4137_v29 = vpop.f32.mrb[189].mxu1  ;;  %v4285_v55 = vrot.slane %v8980_v25, 6 }
 0x284   : > { %8579 = vst [vmem:[%s10449_s14 + $0xa8] sm:$0xff] %v8467_v31   ;;  %v8981_v17 = vpop.f32.mrb[190].mxu1  ;;  %v4282_v8 = vrot.slane %v4137_v29, 6 }
 0x285   : > { %8578 = vst [vmem:[%s10449_s14 + $0xa0] sm:$0xff] %v8462_v51   ;;  %v4417_v39 = vadd.f32 %v4416_v60, %v12269_v28  ;;  %v4286_v23 = vrot.slane %v8981_v17, 6  ;;  %v4140_v59 = vpop.f32.mrb[191].mxu1  ;;  %v5373_v51 = vrot.slane %v11820_v47, 4 }
 0x286   : > { %v4283_v37 = vrot.slane %v4140_v59, 6 }
 0x287   : > { %v4418_v46 = vadd.f32 %v4417_v39, %v12258_v38  ;;  %v4287_v3 = vsel %vm3103_vm3, %v4285_v55, %v4286_v23  ;;  %v4311_v2 = vsel %vm3103_vm3, %v4286_v23, 0.0 }
 0x288   : > { %v12285_v45 = vadd.f32 %v4287_v3, %v12198_v58  ;;  %v12288_v41 = vadd.f32 %v4311_v2, %v12218_v13  ;;  %v4284_v11 = vsel %vm3103_vm3, %v4282_v8, %v4283_v37  ;;  %v4310_v63 = vsel %vm3103_vm3, %v4283_v37, 0.0  ;;  %v13096_v8 = vld [vmem:[#allocation8_spill] sm:$0xff] }
 0x289   : > { %v12293_v49 = vadd.f32 %v4284_v11, %v12179_v9  ;;  %v12296_v20 = vadd.f32 %v4310_v63, %v12188_v30  ;;  %v4419_v31 = vadd.f32 %v4418_v46, %v12261_v35  ;;  %v4987_v13 = vsel %vm4930_vm4, %v4971_v33, 0.0 }
 0x28a   : > { %v8477_v58 = vpack.c.bf16 %v12288_v41, %v12285_v45  ;;  %v4746_v25 = vpop.f32.mrb[192].mxu1  ;;  %v4972_v37 = vrot.slane %v13096_v8, 4  ;;  %v5389_v46 = vsel %vm4930_vm4, 0.0, %v5373_v51 }
 0x28b   : > { %v8472_v60 = vpack.c.bf16 %v12296_v20, %v12293_v49  ;;  %v4420_v29 = vadd.f32 %v4419_v31, %v12293_v49  ;;  %v4914_v9 = vrot.slane %v4746_v25, 4  ;;  %v4748_v17 = vpop.f32.mrb[193].mxu1 }
 0x28c   : > { %8581 = vst [vmem:[%s10449_s14 + $0xb8] sm:$0xff] %v8477_v58   ;;  %v4995_v30 = vadd.f32 %v4987_v13, %v4748_v17  ;;  %v4750_v39 = vpop.f32.mrb[194].mxu1  ;;  %v5374_v58 = vrot.slane %v11861_v62, 4 }
 0x28d   : > { %8580 = vst [vmem:[%s10449_s14 + $0xb0] sm:$0xff] %v8472_v60   ;;  %v4421_v55 = vadd.f32 %v4420_v29, %v12296_v20  ;;  %v4751_v23 = vpop.f32.mrb[195].mxu1  ;;  %v4931_v59 = vsel %vm4930_vm4, 0.0, %v4914_v9  ;;  %v4988_v60 = vsel %vm4930_vm4, %v4972_v37, 0.0  ;;  %v13097_v39 = vld [vmem:[#allocation57_spill] sm:$0xff] }
 0x28e   : > { %v12311_v33 = vadd.f32 %v11826_v12, %v4995_v30  ;;  %v4948_v47 = vadd.f32 %v4931_v59, %v4751_v23  ;;  %v13098_v59 = vld [vmem:[#allocation52_spill] sm:$0xff] }
 0x28f   : > { %v4422_v3 = vadd.f32 %v4421_v55, %v12285_v45 }
 0x290   : > { %v5398_v2 = vadd.f32 %v5389_v46, %v4948_v47  ;;  %v5390_v47 = vsel %vm4930_vm4, 0.0, %v5374_v58 }
 0x291   : > { %v4423_v11 = vadd.f32 %v4422_v3, %v12288_v41 }
 0x292   : > { %v4755_v63 = vpop.f32.mrb[196].mxu1  ;;  %v12318_v31 = vadd.f32 %v5398_v2, %v11834_v27  ;;  %v4973_v27 = vrot.slane %v13098_v59, 4  ;;  %v13099_v2 = vld [vmem:[#allocation58_spill] sm:$0xff] }
 0x293   : > { %v4424_v25 = vrot.slane %v4423_v11, 4  ;;  %v4915_v13 = vrot.slane %v4755_v63, 4  ;;  %v4757_v12 = vpop.f32.mrb[197].mxu1  ;;  %v13100_v63 = vld [vmem:[#allocation59_spill] sm:$0xff] }
 0x294   : > { %v4997_v29 = vadd.f32 %v4988_v60, %v4757_v12  ;;  %v4759_v9 = vpop.f32.mrb[198].mxu1  ;;  %v4989_v60 = vsel %vm4930_vm4, %v4973_v27, 0.0 }
 0x295   : > { %v4425_v17 = vadd.f32 %v4424_v25, %v4423_v11  ;;  %v4760_v51 = vpop.f32.mrb[199].mxu1  ;;  %v4932_v30 = vsel %vm4930_vm4, 0.0, %v4915_v13  ;;  %v5375_v11 = vrot.slane %v13100_v63, 4 }
 0x296   : > { %v12324_v55 = vadd.f32 %v13097_v39, %v4997_v29  ;;  %v4950_v23 = vadd.f32 %v4932_v30, %v4760_v51  ;;  %v13101_v39 = vld [vmem:[#allocation60_spill] sm:$0xff] }
 0x297   : > { %v4426_v62 = vrot.slane %v4425_v17, 2  ;;  %v5391_v59 = vsel %vm4930_vm4, 0.0, %v5375_v11 }
 0x298   : > { %v5400_v8 = vadd.f32 %v5390_v47, %v4950_v23 }
 0x299   : > { %v4427_v46 = vadd.f32 %v4426_v62, %v4425_v17  ;;  %v13102_v62 = vld [vmem:[#allocation5_spill] sm:$0xff] }
 0x29a   : > { %v4764_v3 = vpop.f32.mrb[200].mxu1  ;;  %v12329_v37 = vadd.f32 %v5400_v8, %v13099_v2 }
 0x29b   : > { %v4428_v25 = vrot.slane %v4427_v46, 1  ;;  %v4916_v12 = vrot.slane %v4764_v3, 4  ;;  %v4766_v13 = vpop.f32.mrb[201].mxu1  ;;  %v13104_v3 = vld [vmem:[#allocation4_spill] sm:$0xff] }
 0x29c   : > { %v4999_v29 = vadd.f32 %v4989_v60, %v4766_v13  ;;  %v4768_v9 = vpop.f32.mrb[202].mxu1  ;;  %v4974_v2 = vrot.slane %v13104_v3, 4 }
 0x29d   : > { %v4429_v51 = vadd.f32 %v4428_v25, %v4427_v46  ;;  %v4769_v30 = vpop.f32.mrb[203].mxu1  ;;  %v4933_v58 = vsel %vm4930_vm4, 0.0, %v4916_v12 }
 0x29e   : > { %v12335_v23 = vadd.f32 %v13101_v39, %v4999_v29  ;;  %v4952_v17 = vadd.f32 %v4933_v58, %v4769_v30  ;;  %v13105_v58 = vld [vmem:[#allocation54_spill] sm:$0xff] }
 0x29f   : > { %v4430_v47 = vmul.f32 0.0078125, %v4429_v51  ;;  %v12340_v8 = vsel %vm3103_vm3, %v13102_v62, %v4429_v51  ;;  %v13106_v39 = vld [vmem:[#allocation62_spill] sm:$0xff] }
 0x2a0   : > { %13103 = vst [vmem:[#allocation12_spill] sm:$0xff] %v12340_v8  ;;  %v5402_v27 = vadd.f32 %v5391_v59, %v4952_v17  ;;  %v5376_v17 = vrot.slane %v13106_v39, 4  ;;  %v13107_v8 = vld [vmem:[#allocation61_spill] sm:$0xff] }
 0x2a1   : > { %v4431_v63 = vsub.f32 %v12212_v43, %v4430_v47  ;;  %v4432_v46 = vsub.f32 %v12215_v40, %v4430_v47  ;;  %v4433_v25 = vsub.f32 %v12204_v21, %v4430_v47  ;;  %v4434_v12 = vsub.f32 %v12207_v54, %v4430_v47 }
 0x2a2   : > { %v4435_v13 = vsub.f32 %v12241_v24, %v4430_v47  ;;  %v4436_v11 = vsub.f32 %v12244_v5, %v4430_v47  ;;  %v4437_v60 = vsub.f32 %v12233_v52, %v4430_v47  ;;  %v4438_v29 = vsub.f32 %v12236_v48, %v4430_v47  ;;  %v4773_v9 = vpop.f32.mrb[204].mxu1 }
 0x2a3   : > { %v4439_v51 = vsub.f32 %v12266_v16, %v4430_v47  ;;  %v12353_v30 = vsub.f32 %v12269_v28, %v4430_v47  ;;  %v12356_v43 = vsub.f32 %v12258_v38, %v4430_v47  ;;  %v12359_v21 = vsub.f32 %v12261_v35, %v4430_v47  ;;  %v4775_v54 = vpop.f32.mrb[205].mxu1 }
 0x2a4   : > { %v12362_v40 = vsub.f32 %v12293_v49, %v4430_v47  ;;  %v12365_v52 = vsub.f32 %v12296_v20, %v4430_v47  ;;  %v12368_v48 = vsub.f32 %v12285_v45, %v4430_v47  ;;  %v12371_v24 = vsub.f32 %v12288_v41, %v4430_v47  ;;  %v4777_v5 = vpop.f32.mrb[206].mxu1 }
 0x2a5   : > { %v4447_v16 = vmul.f32 %v4431_v63, %v4431_v63  ;;  %v4448_v38 = vmul.f32 %v4432_v46, %v4432_v46  ;;  %v4778_v28 = vpop.f32.mrb[207].mxu1  ;;  %v4975_v35 = vrot.slane %v13105_v58, 4  ;;  %v4449_v59 = vmul.f32 %v4433_v25, %v4433_v25 }
 0x2a6   : > { %v4990_v49 = vsel %vm4930_vm4, %v4974_v2, 0.0  ;;  %v4917_v20 = vrot.slane %v4773_v9, 4  ;;  %v12377_v45 = vadd.f32 %v5402_v27, %v13107_v8  ;;  %v5377_v41 = vrot.slane %v11971_v1, 4 }
 0x2a7   : > { %v4463_v62 = vadd.f32 %v4448_v38, %v4447_v16  ;;  %v5001_v3 = vadd.f32 %v4990_v49, %v4775_v54  ;;  %v4450_v47 = vmul.f32 %v4434_v12, %v4434_v12  ;;  %v4991_v63 = vsel %vm4930_vm4, %v4975_v35, 0.0  ;;  %v13109_v49 = vld [vmem:[#allocation53_spill] sm:$0xff] }
 0x2a8   : > { %v4934_v25 = vsel %vm4930_vm4, 0.0, %v4917_v20  ;;  %v5392_v8 = vsel %vm4930_vm4, 0.0, %v5376_v17  ;;  %v4451_v27 = vmul.f32 %v4435_v13, %v4435_v13  ;;  %v4976_v35 = vrot.slane %v13109_v49, 4 }
 0x2a9   : > { %v4464_v46 = vadd.f32 %v4463_v62, %v4449_v59  ;;  %v12382_v58 = vadd.f32 %v13108_v6, %v5001_v3  ;;  %v4954_v16 = vadd.f32 %v4934_v25, %v4778_v28  ;;  %v5393_v20 = vsel %vm4930_vm4, 0.0, %v5377_v41 }
 0x2aa   : > { %v4782_v5 = vpop.f32.mrb[208].mxu1  ;;  %v4452_v3 = vmul.f32 %v4436_v11, %v4436_v11  ;;  %v4453_v13 = vmul.f32 %v4437_v60, %v4437_v60 }
 0x2ab   : > { %v4918_v39 = vrot.slane %v4782_v5, 4  ;;  %v4784_v2 = vpop.f32.mrb[209].mxu1  ;;  %v4465_v38 = vadd.f32 %v4464_v46, %v4450_v47  ;;  %v5404_v59 = vadd.f32 %v5392_v8, %v4954_v16  ;;  %v4992_v46 = vsel %vm4930_vm4, %v4976_v35, 0.0 }
 0x2ac   : > { %v5003_v9 = vadd.f32 %v4991_v63, %v4784_v2  ;;  %v4786_v54 = vpop.f32.mrb[210].mxu1 }
 0x2ad   : > { %v4787_v1 = vpop.f32.mrb[211].mxu1  ;;  %v4935_v12 = vsel %vm4930_vm4, 0.0, %v4918_v39  ;;  %v4466_v28 = vadd.f32 %v4465_v38, %v4451_v27  ;;  %v12393_v63 = vadd.f32 %v5404_v59, %v11945_v7  ;;  %v4454_v39 = vmul.f32 %v4438_v29, %v4438_v29  ;;  %v13110_v27 = vld [vmem:[#allocation56_spill] sm:$0xff] }
 0x2ae   : > { %v12389_v6 = vadd.f32 %v11976_v4, %v5003_v9  ;;  %v4956_v62 = vadd.f32 %v4935_v12, %v4787_v1  ;;  %v5378_v4 = vrot.slane %v12009_v14, 4  ;;  %v4455_v54 = vmul.f32 %v4439_v51, %v4439_v51 }
 0x2af   : > { %v4467_v17 = vadd.f32 %v4466_v28, %v4452_v3  ;;  %v4977_v38 = vrot.slane %v13110_v27, 4  ;;  %v4456_v14 = vmul.f32 %v12353_v30, %v12353_v30  ;;  %v4457_v51 = vmul.f32 %v12356_v43, %v12356_v43 }
 0x2b0   : > { %v5406_v5 = vadd.f32 %v5393_v20, %v4956_v62  ;;  %v5394_v12 = vsel %vm4930_vm4, 0.0, %v5378_v4  ;;  %v4458_v3 = vmul.f32 %v12359_v21, %v12359_v21  ;;  %v4459_v43 = vmul.f32 %v12362_v40, %v12362_v40 }
 0x2b1   : > { %v4468_v2 = vadd.f32 %v4467_v17, %v4453_v13  ;;  %v4993_v62 = vsel %vm4930_vm4, %v4977_v38, 0.0  ;;  %v4461_v40 = vmul.f32 %v12368_v48, %v12368_v48 }
 0x2b2   : > { %v4791_v47 = vpop.f32.mrb[212].mxu1  ;;  %v12397_v25 = vadd.f32 %v5406_v5, %v11989_v50 }
 0x2b3   : > { %v4919_v16 = vrot.slane %v4791_v47, 4  ;;  %v4793_v41 = vpop.f32.mrb[213].mxu1  ;;  %v4469_v8 = vadd.f32 %v4468_v2, %v4454_v39  ;;  %v13111_v39 = vld [vmem:[#allocation55_spill] sm:$0xff] }
 0x2b4   : > { %v5005_v11 = vadd.f32 %v4992_v46, %v4793_v41  ;;  %v4795_v9 = vpop.f32.mrb[214].mxu1 }
 0x2b5   : > { %v4796_v7 = vpop.f32.mrb[215].mxu1  ;;  %v4936_v60 = vsel %vm4930_vm4, 0.0, %v4919_v16  ;;  %v4470_v29 = vadd.f32 %v4469_v8, %v4455_v54  ;;  %v4460_v16 = vmul.f32 %v12365_v52, %v12365_v52 }
 0x2b6   : > { %v12403_v1 = vadd.f32 %v12011_v10, %v5005_v11  ;;  %v4958_v50 = vadd.f32 %v4936_v60, %v4796_v7  ;;  %v5379_v10 = vrot.slane %v12045_v36, 4  ;;  %v4462_v60 = vmul.f32 %v12371_v24, %v12371_v24 }
 0x2b7   : > { %v4471_v35 = vadd.f32 %v4470_v29, %v4456_v14 }
 0x2b8   : > { %v5408_v49 = vadd.f32 %v5394_v12, %v4958_v50  ;;  %v5395_v21 = vsel %vm4930_vm4, 0.0, %v5379_v10 }
 0x2b9   : > { %v4472_v28 = vadd.f32 %v4471_v35, %v4457_v51 }
 0x2ba   : > { %v4800_v59 = vpop.f32.mrb[216].mxu1  ;;  %v12412_v20 = vadd.f32 %v5408_v49, %v12022_v44  ;;  %v4978_v44 = vrot.slane %v13111_v39, 4 }
 0x2bb   : > { %v4920_v5 = vrot.slane %v4800_v59, 4  ;;  %v4802_v30 = vpop.f32.mrb[217].mxu1  ;;  %v4473_v47 = vadd.f32 %v4472_v28, %v4458_v3 }
 0x2bc   : > { %v5007_v13 = vadd.f32 %v4993_v62, %v4802_v30  ;;  %v4804_v17 = vpop.f32.mrb[218].mxu1  ;;  %v4994_v8 = vsel %vm4930_vm4, %v4978_v44, 0.0 }
 0x2bd   : > { %v4805_v46 = vpop.f32.mrb[219].mxu1  ;;  %v4937_v4 = vsel %vm4930_vm4, 0.0, %v4920_v5  ;;  %v4474_v41 = vadd.f32 %v4473_v47, %v4459_v43 }
 0x2be   : > { %v12422_v2 = vadd.f32 %v12047_v26, %v5007_v13  ;;  %v4960_v36 = vadd.f32 %v4937_v4, %v4805_v46  ;;  %v5380_v26 = vrot.slane %v12079_v22, 4 }
 0x2bf   : > { %v4475_v9 = vadd.f32 %v4474_v41, %v4460_v16 }
 0x2c0   : > { %v5410_v11 = vadd.f32 %v5395_v21, %v4960_v36 }
 0x2c1   : > { %v4476_v27 = vadd.f32 %v4475_v9, %v4461_v40 }
 0x2c2   : > { %v4809_v54 = vpop.f32.mrb[220].mxu1  ;;  %v12431_v7 = vadd.f32 %v5410_v11, %v12058_v57  ;;  %v5396_v57 = vsel %vm4930_vm4, 0.0, %v5380_v26 }
 0x2c3   : > { %v4921_v38 = vrot.slane %v4809_v54, 4  ;;  %v4811_v52 = vpop.f32.mrb[221].mxu1  ;;  %v12436_v14 = vadd.f32 %v4476_v27, %v4462_v60 }
 0x2c4   : > { %v5009_v50 = vadd.f32 %v4994_v8, %v4811_v52  ;;  %v4813_v12 = vpop.f32.mrb[222].mxu1 }
 0x2c5   : > { %v4814_v48 = vpop.f32.mrb[223].mxu1  ;;  %v4938_v29 = vsel %vm4930_vm4, 0.0, %v4921_v38 }
 0x2c6   : > { %v5427_v49 = vadd.f32 %v12081_v34, %v5009_v50  ;;  %v4962_v51 = vadd.f32 %v4938_v29, %v4814_v48  ;;  %v5971_v29 = vrot.slane %v12116_v42, 4 }
 0x2c8   : > { %v5412_v35 = vadd.f32 %v5396_v57, %v4962_v51 }
 0x2ca   : > { %v9032_v22 = vpop.f32.mrb[224].mxu1  ;;  %v12442_v59 = vadd.f32 %v5412_v35, %v12090_v0 }
 0x2cb   : > { %v5310_v24 = vpop.f32.mrb[225].mxu1 }
 0x2cc   : > { %v9033_v62 = vpop.f32.mrb[226].mxu1 }
 0x2cd   : > { %v5438_v10 = vrot.slane %v9033_v62, 4  ;;  %v5312_v3 = vpop.f32.mrb[227].mxu1 }
 0x2ce   : > { %v5437_v28 = vrot.slane %v5312_v3, 4 }
 0x2cf   : > { %v5454_v5 = vsel %vm4930_vm4, %v5438_v10, 0.0  ;;  %v5987_v10 = vsel %vm4930_vm4, %v5971_v29, 0.0 }
 0x2d0   : > { %v5453_v30 = vsel %vm4930_vm4, %v5437_v28, 0.0  ;;  %v5463_v13 = vadd.f32 %v5454_v5, %v12324_v55 }
 0x2d1   : > { %v5461_v34 = vadd.f32 %v5453_v30, %v12311_v33 }
 0x2d2   : > { %v9036_v17 = vpop.f32.mrb[228].mxu1 }
 0x2d3   : > { %v5324_v43 = vpop.f32.mrb[229].mxu1 }
 0x2d4   : > { %v9037_v47 = vpop.f32.mrb[230].mxu1  ;;  %v5972_v43 = vrot.slane %v12109_v19, 4 }
 0x2d5   : > { %v5440_v46 = vrot.slane %v9037_v47, 4  ;;  %v5326_v4 = vpop.f32.mrb[231].mxu1 }
 0x2d6   : > { %v5439_v0 = vrot.slane %v5326_v4, 4 }
 0x2d7   : > { %v5456_v39 = vsel %vm4930_vm4, %v5440_v46, 0.0 }
 0x2d8   : > { %v5455_v44 = vsel %vm4930_vm4, %v5439_v0, 0.0  ;;  %v12451_v36 = vadd.f32 %v5456_v39, %v12382_v58 }
 0x2d9   : > { %v12454_v21 = vadd.f32 %v5455_v44, %v12335_v23 }
 0x2da   : > { %v9040_v16 = vpop.f32.mrb[232].mxu1 }
 0x2db   : > { %v5338_v55 = vpop.f32.mrb[233].mxu1 }
 0x2dc   : > { %v9041_v41 = vpop.f32.mrb[234].mxu1  ;;  %v5988_v55 = vsel %vm4930_vm4, %v5972_v43, 0.0 }
 0x2dd   : > { %v5442_v33 = vrot.slane %v9041_v41, 4  ;;  %v5340_v11 = vpop.f32.mrb[235].mxu1 }
 0x2de   : > { %v5441_v40 = vrot.slane %v5340_v11, 4 }
 0x2df   : > { %v5458_v9 = vsel %vm4930_vm4, %v5442_v33, 0.0 }
 0x2e0   : > { %v5457_v54 = vsel %vm4930_vm4, %v5441_v40, 0.0  ;;  %v12459_v8 = vadd.f32 %v5458_v9, %v12403_v1 }
 0x2e1   : > { %v12462_v26 = vadd.f32 %v5457_v54, %v12389_v6 }
 0x2e2   : > { %v9044_v58 = vpop.f32.mrb[236].mxu1 }
 0x2e3   : > { %v5352_v60 = vpop.f32.mrb[237].mxu1 }
 0x2e4   : > { %v9045_v23 = vpop.f32.mrb[238].mxu1 }
 0x2e5   : > { %v5444_v27 = vrot.slane %v9045_v23, 4  ;;  %v5354_v38 = vpop.f32.mrb[239].mxu1 }
 0x2e6   : > { %v5443_v52 = vrot.slane %v5354_v38, 4 }
 0x2e7   : > { %v5460_v50 = vsel %vm4930_vm4, %v5444_v27, 0.0  ;;  %v5973_v27 = vrot.slane %v12139_v18, 4 }
 0x2e8   : > { %v5459_v12 = vsel %vm4930_vm4, %v5443_v52, 0.0  ;;  %v12466_v48 = vadd.f32 %v5460_v50, %v5427_v49 }
 0x2e9   : > { %v12470_v1 = vadd.f32 %v5459_v12, %v12422_v2 }
 0x2ea   : > { %v5739_v51 = vpop.f32.mrb[240].mxu1 }
 0x2eb   : > { %v5907_v6 = vrot.slane %v5739_v51, 4  ;;  %v6850_v57 = vpop.f32.mrb[176].mxu0  ;;  %v5741_v35 = vpop.f32.mrb[241].mxu1 }
 0x2ec   : > { %v5947_v22 = vadd.f32 %v5741_v35, %v5461_v34  ;;  %v12472_v24 = vpop.f32.mrb[177].mxu0  ;;  %v5743_v62 = vpop.f32.mrb[242].mxu1  ;;  %v5989_v35 = vsel %vm4930_vm4, %v5973_v27, 0.0 }
 0x2ed   : > { %v5923_v3 = vsel %vm4930_vm4, 0.0, %v5907_v6  ;;  %v6853_v49 = vpop.f32.mrb[178].mxu0  ;;  %v5744_v28 = vpop.f32.mrb[243].mxu1 }
 0x2ee   : > { %v12476_v42 = vadd.f32 %v5987_v10, %v5947_v22  ;;  %v5932_v2 = vadd.f32 %v5923_v3, %v12318_v31  ;;  %v12479_v5 = vpop.f32.mrb[179].mxu0 }
 0x2ef   : > { %v8522_v30 = vpack.c.bf16 %v12479_v5, %v12472_v24  ;;  %v7010_v34 = vadd.f32 %v12479_v5, %v12472_v24 }
 0x2f0   : > { %v12485_v17 = vadd.f32 %v5932_v2, %v5744_v28 }
 0x2f1   : > { %8590 = vst [vmem:[%s10449_s14 + $0x100] sm:$0xff] %v8522_v30  }
 0x2f2   : > { %v8482_v47 = vpack.c.bf16 %v12485_v17, %v12476_v42  ;;  %v5748_v46 = vpop.f32.mrb[244].mxu1  ;;  %v6092_v60 = vadd.f32 %v12476_v42, %v12485_v17 }
 0x2f3   : > { %v5908_v4 = vrot.slane %v5748_v46, 4  ;;  %v6858_v0 = vpop.f32.mrb[180].mxu0  ;;  %v5750_v31 = vpop.f32.mrb[245].mxu1 }
 0x2f4   : > { %8582 = vst [vmem:[%s10449_s14 + $0xc0] sm:$0xff] %v8482_v47   ;;  %v5949_v39 = vadd.f32 %v5750_v31, %v5463_v13  ;;  %v12492_v44 = vpop.f32.mrb[181].mxu0  ;;  %v5752_v16 = vpop.f32.mrb[246].mxu1  ;;  %v5974_v47 = vrot.slane %v12132_v32, 4 }
 0x2f5   : > { %v5924_v41 = vsel %vm4930_vm4, 0.0, %v5908_v4  ;;  %v7011_v19 = vadd.f32 %v7010_v34, %v12492_v44  ;;  %v6861_v33 = vpop.f32.mrb[182].mxu0  ;;  %v5753_v11 = vpop.f32.mrb[247].mxu1 }
 0x2f6   : > { %v12497_v40 = vadd.f32 %v5988_v55, %v5949_v39  ;;  %v5934_v9 = vadd.f32 %v5924_v41, %v12329_v37  ;;  %v12500_v54 = vpop.f32.mrb[183].mxu0 }
 0x2f7   : > { %v8527_v13 = vpack.c.bf16 %v12500_v54, %v12492_v44  ;;  %v7012_v58 = vadd.f32 %v7011_v19, %v12500_v54  ;;  %v5990_v19 = vsel %vm4930_vm4, %v5974_v47, 0.0 }
 0x2f8   : > { %v12507_v23 = vadd.f32 %v5934_v9, %v5753_v11  ;;  %v6093_v37 = vadd.f32 %v6092_v60, %v12497_v40 }
 0x2f9   : > { %8591 = vst [vmem:[%s10449_s14 + $0x108] sm:$0xff] %v8527_v13  }
 0x2fa   : > { %v8487_v38 = vpack.c.bf16 %v12507_v23, %v12497_v40  ;;  %v5757_v52 = vpop.f32.mrb[248].mxu1  ;;  %v6094_v3 = vadd.f32 %v6093_v37, %v12507_v23 }
 0x2fb   : > { %v5909_v50 = vrot.slane %v5757_v52, 4  ;;  %v6866_v12 = vpop.f32.mrb[184].mxu0  ;;  %v5759_v29 = vpop.f32.mrb[249].mxu1  ;;  %v5975_v52 = vrot.slane %v12161_v61, 4 }
 0x2fc   : > { %8583 = vst [vmem:[%s10449_s14 + $0xc8] sm:$0xff] %v8487_v38   ;;  %v5951_v51 = vadd.f32 %v5759_v29, %v12454_v21  ;;  %v12516_v6 = vpop.f32.mrb[185].mxu0  ;;  %v5761_v57 = vpop.f32.mrb[250].mxu1 }
 0x2fd   : > { %v5925_v18 = vsel %vm4930_vm4, 0.0, %v5909_v50  ;;  %v7013_v22 = vadd.f32 %v7012_v58, %v12516_v6  ;;  %v6869_v62 = vpop.f32.mrb[186].mxu0  ;;  %v5762_v10 = vpop.f32.mrb[251].mxu1 }
 0x2fe   : > { %v12522_v49 = vadd.f32 %v5989_v35, %v5951_v51  ;;  %v5936_v28 = vadd.f32 %v5925_v18, %v12377_v45  ;;  %v12525_v21 = vpop.f32.mrb[187].mxu0  ;;  %v5991_v62 = vsel %vm4930_vm4, %v5975_v52, 0.0 }
 0x2ff   : > { %v8532_v2 = vpack.c.bf16 %v12525_v21, %v12516_v6  ;;  %v7014_v30 = vadd.f32 %v7013_v22, %v12525_v21 }
 0x300   : > { %v12530_v34 = vadd.f32 %v5936_v28, %v5762_v10  ;;  %v6095_v43 = vadd.f32 %v6094_v3, %v12522_v49 }
 0x301   : > { %8592 = vst [vmem:[%s10449_s14 + $0x110] sm:$0xff] %v8532_v2  }
 0x302   : > { %v8492_v46 = vpack.c.bf16 %v12530_v34, %v12522_v49  ;;  %v6096_v4 = vadd.f32 %v6095_v43, %v12530_v34  ;;  %v5766_v45 = vpop.f32.mrb[252].mxu1 }
 0x303   : > { %v5910_v0 = vrot.slane %v5766_v45, 4  ;;  %v6874_v31 = vpop.f32.mrb[188].mxu0  ;;  %v5768_v39 = vpop.f32.mrb[253].mxu1  ;;  %v5976_v45 = vrot.slane %v12154_v53, 4 }
 0x304   : > { %8584 = vst [vmem:[%s10449_s14 + $0xd0] sm:$0xff] %v8492_v46   ;;  %v5953_v16 = vadd.f32 %v5768_v39, %v12451_v36  ;;  %v12540_v55 = vpop.f32.mrb[189].mxu0  ;;  %v5770_v41 = vpop.f32.mrb[254].mxu1 }
 0x305   : > { %v5926_v32 = vsel %vm4930_vm4, 0.0, %v5910_v0  ;;  %v7015_v33 = vadd.f32 %v7014_v30, %v12540_v55  ;;  %v6877_v11 = vpop.f32.mrb[190].mxu0  ;;  %v5771_v9 = vpop.f32.mrb[255].mxu1 }
 0x306   : > { %v12545_v13 = vadd.f32 %v5990_v19, %v5953_v16  ;;  %v5938_v58 = vadd.f32 %v5926_v32, %v12393_v63  ;;  %v12548_v60 = vpop.f32.mrb[191].mxu0  ;;  %v5992_v11 = vsel %vm4930_vm4, %v5976_v45, 0.0 }
 0x307   : > { %v8537_v36 = vpack.c.bf16 %v12548_v60, %v12540_v55  ;;  %v7016_v27 = vadd.f32 %v7015_v33, %v12548_v60 }
 0x308   : > { %v12553_v38 = vadd.f32 %v5938_v58, %v5771_v9  ;;  %v6097_v37 = vadd.f32 %v6096_v4, %v12545_v13 }
 0x309   : > { %8593 = vst [vmem:[%s10449_s14 + $0x118] sm:$0xff] %v8537_v36  }
 0x30a   : > { %v8497_v50 = vpack.c.bf16 %v12553_v38, %v12545_v13  ;;  %v6098_v12 = vadd.f32 %v6097_v37, %v12553_v38  ;;  %v5775_v63 = vpop.f32.mrb[0].mxu1 }
 0x30b   : > { %v5911_v29 = vrot.slane %v5775_v63, 4  ;;  %v6882_v51 = vpop.f32.mrb[192].mxu0  ;;  %v5777_v57 = vpop.f32.mrb[1].mxu1 }
 0x30c   : > { %8585 = vst [vmem:[%s10449_s14 + $0xd8] sm:$0xff] %v8497_v50   ;;  %v5955_v35 = vadd.f32 %v5777_v57, %v12462_v26  ;;  %v12563_v18 = vpop.f32.mrb[193].mxu0  ;;  %v5779_v22 = vpop.f32.mrb[2].mxu1 }
 0x30d   : > { %v5927_v61 = vsel %vm4930_vm4, 0.0, %v5911_v29  ;;  %v7017_v10 = vadd.f32 %v7016_v27, %v12563_v18  ;;  %v6885_v3 = vpop.f32.mrb[194].mxu0  ;;  %v5780_v28 = vpop.f32.mrb[3].mxu1  ;;  %v5977_v29 = vrot.slane %v12183_v56, 4 }
 0x30e   : > { %v12568_v2 = vadd.f32 %v5991_v62, %v5955_v35  ;;  %v5940_v30 = vadd.f32 %v5927_v61, %v12397_v25  ;;  %v12571_v43 = vpop.f32.mrb[195].mxu0 }
 0x30f   : > { %v8542_v26 = vpack.c.bf16 %v12571_v43, %v12563_v18  ;;  %v7018_v47 = vadd.f32 %v7017_v10, %v12571_v43 }
 0x310   : > { %v12576_v46 = vadd.f32 %v5940_v30, %v5780_v28  ;;  %v6099_v4 = vadd.f32 %v6098_v12, %v12568_v2  ;;  %v5993_v28 = vsel %vm4930_vm4, %v5977_v29, 0.0 }
 0x311   : > { %8594 = vst [vmem:[%s10449_s14 + $0x120] sm:$0xff] %v8542_v26  }
 0x312   : > { %v8502_v0 = vpack.c.bf16 %v12576_v46, %v12568_v2  ;;  %v6100_v31 = vadd.f32 %v6099_v4, %v12576_v46  ;;  %v5784_v25 = vpop.f32.mrb[4].mxu1 }
 0x313   : > { %v5912_v39 = vrot.slane %v5784_v25, 4  ;;  %v6890_v16 = vpop.f32.mrb[196].mxu0  ;;  %v5786_v41 = vpop.f32.mrb[5].mxu1 }
 0x314   : > { %8586 = vst [vmem:[%s10449_s14 + $0xe0] sm:$0xff] %v8502_v0   ;;  %v5957_v19 = vadd.f32 %v5786_v41, %v12459_v8  ;;  %v12586_v32 = vpop.f32.mrb[197].mxu0  ;;  %v5788_v33 = vpop.f32.mrb[6].mxu1  ;;  %v5978_v16 = vrot.slane %v12176_v15, 4 }
 0x315   : > { %v5928_v53 = vsel %vm4930_vm4, 0.0, %v5912_v39  ;;  %v7019_v9 = vadd.f32 %v7018_v47, %v12586_v32  ;;  %v6893_v58 = vpop.f32.mrb[198].mxu0  ;;  %v5789_v36 = vpop.f32.mrb[7].mxu1 }
 0x316   : > { %v12591_v27 = vadd.f32 %v5992_v11, %v5957_v19  ;;  %v5942_v37 = vadd.f32 %v5928_v53, %v12412_v20  ;;  %v12594_v52 = vpop.f32.mrb[199].mxu0 }
 0x317   : > { %v8547_v8 = vpack.c.bf16 %v12594_v52, %v12586_v32  ;;  %v7020_v50 = vadd.f32 %v7019_v9, %v12594_v52 }
 0x318   : > { %v12599_v12 = vadd.f32 %v5942_v37, %v5789_v36  ;;  %v6101_v63 = vadd.f32 %v6100_v31, %v12591_v27  ;;  %v5994_v37 = vsel %vm4930_vm4, %v5978_v16, 0.0 }
 0x319   : > { %8595 = vst [vmem:[%s10449_s14 + $0x128] sm:$0xff] %v8547_v8  }
 0x31a   : > { %v8507_v51 = vpack.c.bf16 %v12599_v12, %v12591_v27  ;;  %v6102_v57 = vadd.f32 %v6101_v63, %v12599_v12  ;;  %v5793_v20 = vpop.f32.mrb[8].mxu1 }
 0x31b   : > { %v5913_v35 = vrot.slane %v5793_v20, 4  ;;  %v6898_v22 = vpop.f32.mrb[200].mxu0  ;;  %v5795_v62 = vpop.f32.mrb[9].mxu1 }
 0x31c   : > { %8587 = vst [vmem:[%s10449_s14 + $0xe8] sm:$0xff] %v8507_v51   ;;  %v5959_v61 = vadd.f32 %v5795_v62, %v12470_v1  ;;  %v12609_v10 = vpop.f32.mrb[201].mxu0  ;;  %v5797_v3 = vpop.f32.mrb[10].mxu1 }
 0x31d   : > { %v5929_v56 = vsel %vm4930_vm4, 0.0, %v5913_v35  ;;  %v7021_v30 = vadd.f32 %v7020_v50, %v12609_v10  ;;  %v6901_v26 = vpop.f32.mrb[202].mxu0  ;;  %v5798_v47 = vpop.f32.mrb[11].mxu1 }
 0x31e   : > { %v12614_v4 = vadd.f32 %v5993_v28, %v5959_v61  ;;  %v5944_v45 = vadd.f32 %v5929_v56, %v12431_v7  ;;  %v12617_v0 = vpop.f32.mrb[203].mxu0  ;;  %v13112_v26 = vld [vmem:[#allocation9_spill] sm:$0xff] }
 0x31f   : > { %v8552_v1 = vpack.c.bf16 %v12617_v0, %v12609_v10  ;;  %v7022_v31 = vadd.f32 %v7021_v30, %v12617_v0 }
 0x320   : > { %v12622_v25 = vadd.f32 %v5944_v45, %v5798_v47  ;;  %v6103_v39 = vadd.f32 %v6102_v57, %v12614_v4  ;;  %v614_v47 = vrot.slane %v13112_v26, 4 }
 0x321   : > { %8596 = vst [vmem:[%s10449_s14 + $0x130] sm:$0xff] %v8552_v1   ;;  %v4478_v1 = vrot.slane %v12436_v14, 4 }
 0x322   : > { %v8512_v41 = vpack.c.bf16 %v12622_v25, %v12614_v4  ;;  %v6104_v19 = vadd.f32 %v6103_v39, %v12622_v25  ;;  %v5802_v7 = vpop.f32.mrb[12].mxu1 }
 0x323   : > { %v5914_v33 = vrot.slane %v5802_v7, 4  ;;  %v6906_v11 = vpop.f32.mrb[204].mxu0  ;;  %v5804_v53 = vpop.f32.mrb[13].mxu1 }
 0x324   : > { %8588 = vst [vmem:[%s10449_s14 + $0xf0] sm:$0xff] %v8512_v41   ;;  %v5961_v9 = vadd.f32 %v5804_v53, %v12466_v48  ;;  %v12632_v58 = vpop.f32.mrb[205].mxu0  ;;  %v5806_v36 = vpop.f32.mrb[14].mxu1 }
 0x325   : > { %v5930_v15 = vsel %vm4930_vm4, 0.0, %v5914_v33  ;;  %v7023_v8 = vadd.f32 %v7022_v31, %v12632_v58  ;;  %v6909_v50 = vpop.f32.mrb[206].mxu0  ;;  %v5807_v63 = vpop.f32.mrb[15].mxu1  ;;  %v4479_v33 = vadd.f32 %v4478_v1, %v12436_v14 }
 0x326   : > { %v6009_v29 = vadd.f32 %v5994_v37, %v5961_v9  ;;  %v5946_v51 = vadd.f32 %v5930_v15, %v12442_v59  ;;  %v12638_v57 = vpop.f32.mrb[207].mxu0  ;;  %v13113_v59 = vld [vmem:[#allocation10_spill] sm:$0xff] }
 0x327   : > { %v8557_v48 = vpack.c.bf16 %v12638_v57, %v12632_v58  ;;  %v7024_v20 = vadd.f32 %v7023_v8, %v12638_v57  ;;  %v2546_v45 = vrot.slane %v13113_v59, 4  ;;  %v4480_v8 = vrot.slane %v4479_v33, 2 }
 0x328   : > { %v5962_v35 = vadd.f32 %v5946_v51, %v5807_v63  ;;  %v6105_v22 = vadd.f32 %v6104_v19, %v6009_v29  ;;  %v615_v19 = vadd.f32 %v614_v47, %v13112_v26 }
 0x329   : > { %8597 = vst [vmem:[%s10449_s14 + $0x138] sm:$0xff] %v8557_v48   ;;  %v7025_v62 = vrot.slane %v7024_v20, 4  ;;  %v2547_v7 = vadd.f32 %v2546_v45, %v13113_v59 }
 0x32a   : > { %v8517_v61 = vpack.c.bf16 %v5962_v35, %v6009_v29  ;;  %v6106_v3 = vadd.f32 %v6105_v22, %v5962_v35  ;;  %v616_v37 = vrot.slane %v615_v19, 2 }
 0x32b   : > { %v7026_v28 = vadd.f32 %v7025_v62, %v7024_v20  ;;  %v2548_v15 = vrot.slane %v2547_v7, 2 }
 0x32c   : > { %8589 = vst [vmem:[%s10449_s14 + $0xf8] sm:$0xff] %v8517_v61   ;;  %v6107_v56 = vrot.slane %v6106_v3, 4 }
 0x32d   : > { %v7027_v30 = vrot.slane %v7026_v28, 2 }
 0x32e   : > { %v6108_v31 = vadd.f32 %v6107_v56, %v6106_v3 }
 0x32f   : > { %v7028_v39 = vadd.f32 %v7027_v30, %v7026_v28 }
 0x330   : > { %v6109_v16 = vrot.slane %v6108_v31, 2 }
 0x331   : > { %v7029_v41 = vrot.slane %v7028_v39, 1 }
 0x332   : > { %v6110_v11 = vadd.f32 %v6109_v16, %v6108_v31 }
 0x333   : > { %v12651_v53 = vadd.f32 %v7029_v41, %v7028_v39 }
 0x334   : > { %v6111_v9 = vrot.slane %v6110_v11, 1 }
 0x335   : > { %v7031_v36 = vmul.f32 0.0078125, %v12651_v53 }
 0x336   : > { %v12654_v50 = vadd.f32 %v6111_v9, %v6110_v11 }
 0x337   : > { %v7032_v63 = vsub.f32 %v12472_v24, %v7031_v36  ;;  %v7033_v51 = vsub.f32 %v12479_v5, %v7031_v36  ;;  %v7034_v48 = vsub.f32 %v12492_v44, %v7031_v36  ;;  %v12660_v14 = vsub.f32 %v12500_v54, %v7031_v36 }
 0x338   : > { %v6113_v20 = vmul.f32 0.0078125, %v12654_v50  ;;  %v12664_v22 = vsub.f32 %v12516_v6, %v7031_v36  ;;  %v12667_v62 = vsub.f32 %v12525_v21, %v7031_v36  ;;  %v12670_v61 = vsub.f32 %v12540_v55, %v7031_v36 }
 0x339   : > { %v12674_v24 = vsub.f32 %v12548_v60, %v7031_v36  ;;  %v12677_v5 = vsub.f32 %v12563_v18, %v7031_v36  ;;  %v12680_v44 = vsub.f32 %v12571_v43, %v7031_v36  ;;  %v12683_v54 = vsub.f32 %v12586_v32, %v7031_v36 }
 0x33a   : > { %v6114_v6 = vsub.f32 %v12476_v42, %v6113_v20  ;;  %v6115_v21 = vsub.f32 %v12485_v17, %v6113_v20  ;;  %v6116_v55 = vsub.f32 %v12497_v40, %v6113_v20  ;;  %v6117_v60 = vsub.f32 %v12507_v23, %v6113_v20 }
 0x33b   : > { %v6118_v3 = vsub.f32 %v12522_v49, %v6113_v20  ;;  %v6119_v18 = vsub.f32 %v12530_v34, %v6113_v20  ;;  %v6120_v43 = vsub.f32 %v12545_v13, %v6113_v20  ;;  %v6121_v28 = vsub.f32 %v12553_v38, %v6113_v20 }
 0x33c   : > { %v6122_v32 = vsub.f32 %v12568_v2, %v6113_v20  ;;  %v6123_v42 = vsub.f32 %v12576_v46, %v6113_v20  ;;  %v12696_v56 = vsub.f32 %v12591_v27, %v6113_v20  ;;  %v12699_v17 = vsub.f32 %v12599_v12, %v6113_v20 }
 0x33d   : > { %v12702_v40 = vsub.f32 %v12614_v4, %v6113_v20  ;;  %v12705_v23 = vsub.f32 %v12622_v25, %v6113_v20  ;;  %v12707_v49 = vsub.f32 %v6009_v29, %v6113_v20  ;;  %v12709_v34 = vsub.f32 %v5962_v35, %v6113_v20 }
 0x33e   : > { %v6130_v13 = vmul.f32 %v6114_v6, %v6114_v6  ;;  %v6131_v38 = vmul.f32 %v6115_v21, %v6115_v21  ;;  %v617_v2 = vadd.f32 %v616_v37, %v615_v19  ;;  %v2549_v46 = vadd.f32 %v2548_v15, %v2547_v7 }
 0x33f   : > { %v4481_v27 = vadd.f32 %v4480_v8, %v4479_v33  ;;  %v6132_v30 = vmul.f32 %v6116_v55, %v6116_v55  ;;  %v12716_v4 = vsub.f32 %v12594_v52, %v7031_v36  ;;  %v12719_v25 = vsub.f32 %v12609_v10, %v7031_v36 }
 0x340   : > { %v6146_v12 = vadd.f32 %v6131_v38, %v6130_v13  ;;  %v12722_v29 = vsub.f32 %v12617_v0, %v7031_v36  ;;  %v618_v35 = vrot.slane %v617_v2, 1  ;;  %v12725_v26 = vsub.f32 %v12632_v58, %v7031_v36 }
 0x341   : > { %v12728_v47 = vsub.f32 %v12638_v57, %v7031_v36  ;;  %v6133_v59 = vmul.f32 %v6117_v60, %v6117_v60  ;;  %v7048_v1 = vmul.f32 %v7032_v63, %v7032_v63  ;;  %v7049_v31 = vmul.f32 %v7033_v51, %v7033_v51  ;;  %v13114_v57 = vld [vmem:[#allocation12_spill] sm:$0xff] }
 0x342   : > { %v6147_v45 = vadd.f32 %v6146_v12, %v6132_v30  ;;  %v2550_v52 = vrot.slane %v2549_v46, 1  ;;  %v4482_v39 = vrot.slane %v4481_v27, 1  ;;  %v6134_v10 = vmul.f32 %v6118_v3, %v6118_v3 }
 0x343   : > { %v6135_v41 = vmul.f32 %v6119_v18, %v6119_v18  ;;  %v619_v0 = vadd.f32 %v618_v35, %v617_v2  ;;  %v7050_v58 = vmul.f32 %v7034_v48, %v7034_v48  ;;  %v7064_v7 = vadd.f32 %v7049_v31, %v7048_v1 }
 0x344   : > { %v6148_v16 = vadd.f32 %v6147_v45, %v6133_v59  ;;  %v7088_v33 = vsel %vm7087_vm5, %v13114_v57, %v12654_v50  ;;  %v2551_v11 = vadd.f32 %v2550_v52, %v2549_v46  ;;  %v4483_v9 = vadd.f32 %v4482_v39, %v4481_v27 }
 0x345   : > { %v6136_v36 = vmul.f32 %v6120_v43, %v6120_v43  ;;  %v7089_v37 = vsel %vm4930_vm4, %v7088_v33, %v12651_v53  ;;  %v7051_v8 = vmul.f32 %v12660_v14, %v12660_v14  ;;  %v7065_v63 = vadd.f32 %v7064_v7, %v7050_v58 }
 0x346   : > { %v6149_v19 = vadd.f32 %v6148_v16, %v6134_v10  ;;  %v7091_v51 = vsel %vm7090_vm6, %v7089_v37, %v619_v0  ;;  %v6137_v48 = vmul.f32 %v6121_v28, %v6121_v28  ;;  %v7052_v6 = vmul.f32 %v12664_v22, %v12664_v22 }
 0x347   : > { %v7092_v50 = vsel %vm3006_vm2, %v7091_v51, %v2551_v11  ;;  %v7066_v53 = vadd.f32 %v7065_v63, %v7051_v8  ;;  %v6138_v55 = vmul.f32 %v6122_v32, %v6122_v32  ;;  %v7053_v3 = vmul.f32 %v12667_v62, %v12667_v62  ;;  %v7141_v8 = vld [vmem:[%s10449_s14 + $0x10] sm:$0xff] (%p9836_p6)   ;;  %v7145_v63 = vld [vmem:[%s10449_s14 + $0x18] sm:$0xff] (%p9836_p6)   ;;  %v7149_v51 = vld [vmem:[%s10449_s14 + $0x20] sm:$0xff] (%p9836_p6)  }
 0x348   : > { %v6150_v15 = vadd.f32 %v6149_v19, %v6135_v41  ;;  %v7093_v21 = vsel %vm1171_vm0, %v7092_v50, %v4483_v9  ;;  %v6139_v14 = vmul.f32 %v6123_v42, %v6123_v42  ;;  %v7054_v28 = vmul.f32 %v12670_v61, %v12670_v61  ;;  %v7157_v50 = vld [vmem:[%s10449_s14 + $0x30] sm:$0xff] (%p9836_p6)   ;;  %7142 = vst [vmem:[%s12798_s8 + $0x10] sm:$0xff] (%p9836_p6), %v7141_v8  }
 0x349   : > { %7095 = vst [vmem:[%s12737_s26] sm:$0xff] %v7093_v21  ;;  %v7067_v18 = vadd.f32 %v7066_v53, %v7052_v6  ;;  %v6140_v38 = vmul.f32 %v12696_v56, %v12696_v56  ;;  %v7055_v2 = vmul.f32 %v12674_v24, %v12674_v24  ;;  %v6141_v32 = vmul.f32 %v12699_v17, %v12699_v17  ;;  %v7165_v6 = vld [vmem:[%s10449_s14 + $0x40] sm:$0xff] (%p9836_p6)   ;;  %v7169_v53 = vld [vmem:[%s10449_s14 + $0x48] sm:$0xff] (%p9836_p6)   ;;  %v7173_v21 = vld [vmem:[%s10449_s14 + $0x50] sm:$0xff] (%p9836_p6)  }
 0x34a   : > { %v6151_v20 = vadd.f32 %v6150_v15, %v6136_v36  ;;  %v7056_v62 = vmul.f32 %v12677_v5, %v12677_v5  ;;  %v6142_v61 = vmul.f32 %v12702_v40, %v12702_v40  ;;  %v7057_v56 = vmul.f32 %v12680_v44, %v12680_v44  ;;  %v7137_v15 = vld [vmem:[%s10449_s14 + $0x8] sm:$0xff] (%p9836_p6)   ;;  %7146 = vst [vmem:[%s12798_s8 + $0x18] sm:$0xff] (%p9836_p6), %v7145_v63  }
 0x34b   : > { %v7068_v13 = vadd.f32 %v7067_v18, %v7053_v3  ;;  %v6143_v24 = vmul.f32 %v12705_v23, %v12705_v23  ;;  %v7058_v17 = vmul.f32 %v12683_v54, %v12683_v54  ;;  %v6144_v5 = vmul.f32 %v12707_v49, %v12707_v49  ;;  %7138 = vst [vmem:[%s12798_s8 + $0x8] sm:$0xff] (%p9836_p6), %v7137_v15   ;;  %v7185_v3 = vld [vmem:[%s10449_s14 + $0x68] sm:$0xff] (%p9836_p6)   ;;  %v7189_v18 = vld [vmem:[%s10449_s14 + $0x70] sm:$0xff] (%p9836_p6)  }
 0x34c   : > { %v6152_v60 = vadd.f32 %v6151_v20, %v6137_v48  ;;  %v7059_v40 = vmul.f32 %v12716_v4, %v12716_v4  ;;  %v6145_v44 = vmul.f32 %v12709_v34, %v12709_v34  ;;  %v7060_v23 = vmul.f32 %v12719_v25, %v12719_v25  ;;  %v7153_v48 = vld [vmem:[%s10449_s14 + $0x28] sm:$0xff] (%p9836_p6)   ;;  %v7161_v20 = vld [vmem:[%s10449_s14 + $0x38] sm:$0xff] (%p9836_p6)   ;;  %7150 = vst [vmem:[%s12798_s8 + $0x20] sm:$0xff] (%p9836_p6), %v7149_v51  }
 0x34d   : > { %v7069_v46 = vadd.f32 %v7068_v13, %v7054_v28  ;;  %v7061_v54 = vmul.f32 %v12722_v29, %v12722_v29  ;;  %v7062_v49 = vmul.f32 %v12725_v26, %v12725_v26  ;;  %v7063_v34 = vmul.f32 %v12728_v47, %v12728_v47  ;;  %v7133_v47 = vld [vmem:[%s10449_s14] sm:$0xff] (%p9836_p6)   ;;  %7154 = vst [vmem:[%s12798_s8 + $0x28] sm:$0xff] (%p9836_p6), %v7153_v48   ;;  %v7201_v28 = vld [vmem:[%s10449_s14 + $0x88] sm:$0xff] (%p9836_p6)   ;;  %v7205_v13 = vld [vmem:[%s10449_s14 + $0x90] sm:$0xff] (%p9836_p6)  }
 0x34e   : > { %v6153_v43 = vadd.f32 %v6152_v60, %v6138_v55  ;;  %v7177_v55 = vld [vmem:[%s10449_s14 + $0x58] sm:$0xff] (%p9836_p6)   ;;  %7134 = vst [vmem:[%s12798_s8] sm:$0xff] (%p9836_p6), %v7133_v47   ;;  %7158 = vst [vmem:[%s12798_s8 + $0x30] sm:$0xff] (%p9836_p6), %v7157_v50   ;;  %v7181_v60 = vld [vmem:[%s10449_s14 + $0x60] sm:$0xff] (%p9836_p6)  }
 0x34f   : > { %v7070_v42 = vadd.f32 %v7069_v46, %v7055_v2  ;;  %7162 = vst [vmem:[%s12798_s8 + $0x38] sm:$0xff] (%p9836_p6), %v7161_v20   ;;  %7166 = vst [vmem:[%s12798_s8 + $0x100] sm:$0xff] (%p9836_p6), %v7165_v6   ;;  %v7217_v2 = vld [vmem:[%s10449_s14 + $0xa8] sm:$0xff] (%p9836_p6)   ;;  %v7221_v46 = vld [vmem:[%s10449_s14 + $0xb0] sm:$0xff] (%p9836_p6)  }
 0x350   : > { %v6154_v22 = vadd.f32 %v6153_v43, %v6139_v14  ;;  %7170 = vst [vmem:[%s12798_s8 + $0x108] sm:$0xff] (%p9836_p6), %v7169_v53   ;;  %7174 = vst [vmem:[%s12798_s8 + $0x110] sm:$0xff] (%p9836_p6), %v7173_v21   ;;  %v7193_v14 = vld [vmem:[%s10449_s14 + $0x78] sm:$0xff] (%p9836_p6)   ;;  %v7197_v43 = vld [vmem:[%s10449_s14 + $0x80] sm:$0xff] (%p9836_p6)  }
 0x351   : > { %v7071_v12 = vadd.f32 %v7070_v42, %v7056_v62  ;;  %7178 = vst [vmem:[%s12798_s8 + $0x118] sm:$0xff] (%p9836_p6), %v7177_v55   ;;  %7182 = vst [vmem:[%s12798_s8 + $0x120] sm:$0xff] (%p9836_p6), %v7181_v60   ;;  %v7233_v62 = vld [vmem:[%s10449_s14 + $0xc8] sm:$0xff] (%p9836_p6)   ;;  %v7237_v42 = vld [vmem:[%s10449_s14 + $0xd0] sm:$0xff] (%p9836_p6)  }
 0x352   : > { %v6155_v27 = vadd.f32 %v6154_v22, %v6140_v38  ;;  %7186 = vst [vmem:[%s12798_s8 + $0x128] sm:$0xff] (%p9836_p6), %v7185_v3   ;;  %7190 = vst [vmem:[%s12798_s8 + $0x130] sm:$0xff] (%p9836_p6), %v7189_v18   ;;  %v7209_v38 = vld [vmem:[%s10449_s14 + $0x98] sm:$0xff] (%p9836_p6)   ;;  %v7213_v22 = vld [vmem:[%s10449_s14 + $0xa0] sm:$0xff] (%p9836_p6)  }
 0x353   : > { %v7072_v59 = vadd.f32 %v7071_v12, %v7057_v56  ;;  %7194 = vst [vmem:[%s12798_s8 + $0x138] sm:$0xff] (%p9836_p6), %v7193_v14   ;;  %7198 = vst [vmem:[%s12798_s8 + $0x200] sm:$0xff] (%p9836_p6), %v7197_v43   ;;  %v7249_v56 = vld [vmem:[%s10449_s14 + $0xe8] sm:$0xff] (%p9836_p6)   ;;  %v7253_v12 = vld [vmem:[%s10449_s14 + $0xf0] sm:$0xff] (%p9836_p6)  }
 0x354   : > { %v6156_v30 = vadd.f32 %v6155_v27, %v6141_v32  ;;  %7202 = vst [vmem:[%s12798_s8 + $0x208] sm:$0xff] (%p9836_p6), %v7201_v28   ;;  %7206 = vst [vmem:[%s12798_s8 + $0x210] sm:$0xff] (%p9836_p6), %v7205_v13   ;;  %v7225_v32 = vld [vmem:[%s10449_s14 + $0xb8] sm:$0xff] (%p9836_p6)   ;;  %v7229_v27 = vld [vmem:[%s10449_s14 + $0xc0] sm:$0xff] (%p9836_p6)  }
 0x355   : > { %v7073_v1 = vadd.f32 %v7072_v59, %v7058_v17  ;;  %7210 = vst [vmem:[%s12798_s8 + $0x218] sm:$0xff] (%p9836_p6), %v7209_v38   ;;  %7214 = vst [vmem:[%s12798_s8 + $0x220] sm:$0xff] (%p9836_p6), %v7213_v22   ;;  %v7265_v17 = vld [vmem:[%s10449_s14 + $0x108] sm:$0xff] (%p9836_p6)   ;;  %v7269_v59 = vld [vmem:[%s10449_s14 + $0x110] sm:$0xff] (%p9836_p6)  }
 0x356   : > { %v6157_v35 = vadd.f32 %v6156_v30, %v6142_v61  ;;  %7218 = vst [vmem:[%s12798_s8 + $0x228] sm:$0xff] (%p9836_p6), %v7217_v2   ;;  %7222 = vst [vmem:[%s12798_s8 + $0x230] sm:$0xff] (%p9836_p6), %v7221_v46   ;;  %v7241_v61 = vld [vmem:[%s10449_s14 + $0xd8] sm:$0xff] (%p9836_p6)   ;;  %v7245_v30 = vld [vmem:[%s10449_s14 + $0xe0] sm:$0xff] (%p9836_p6)  }
 0x357   : > { %v7074_v52 = vadd.f32 %v7073_v1, %v7059_v40  ;;  %7226 = vst [vmem:[%s12798_s8 + $0x238] sm:$0xff] (%p9836_p6), %v7225_v32   ;;  %7230 = vst [vmem:[%s12798_s8 + $0x300] sm:$0xff] (%p9836_p6), %v7229_v27   ;;  %v7281_v40 = vld [vmem:[%s10449_s14 + $0x128] sm:$0xff] (%p9836_p6)   ;;  %v7285_v1 = vld [vmem:[%s10449_s14 + $0x130] sm:$0xff] (%p9836_p6)  }
 0x358   : > { %v6158_v45 = vadd.f32 %v6157_v35, %v6143_v24  ;;  %7234 = vst [vmem:[%s12798_s8 + $0x308] sm:$0xff] (%p9836_p6), %v7233_v62   ;;  %7238 = vst [vmem:[%s12798_s8 + $0x310] sm:$0xff] (%p9836_p6), %v7237_v42   ;;  %v7257_v24 = vld [vmem:[%s10449_s14 + $0xf8] sm:$0xff] (%p9836_p6)   ;;  %v7261_v35 = vld [vmem:[%s10449_s14 + $0x100] sm:$0xff] (%p9836_p6)  }
 0x359   : > { %v7075_v10 = vadd.f32 %v7074_v52, %v7060_v23  ;;  %7242 = vst [vmem:[%s12798_s8 + $0x318] sm:$0xff] (%p9836_p6), %v7241_v61   ;;  %7246 = vst [vmem:[%s12798_s8 + $0x320] sm:$0xff] (%p9836_p6), %v7245_v30  }
 0x35a   : > { %v6159_v31 = vadd.f32 %v6158_v45, %v6144_v5  ;;  %7250 = vst [vmem:[%s12798_s8 + $0x328] sm:$0xff] (%p9836_p6), %v7249_v56   ;;  %7254 = vst [vmem:[%s12798_s8 + $0x330] sm:$0xff] (%p9836_p6), %v7253_v12   ;;  %v7273_v5 = vld [vmem:[%s10449_s14 + $0x118] sm:$0xff] (%p9836_p6)   ;;  %v7277_v45 = vld [vmem:[%s10449_s14 + $0x120] sm:$0xff] (%p9836_p6)  }
 0x35b   : > { %v7076_v41 = vadd.f32 %v7075_v10, %v7061_v54  ;;  %7258 = vst [vmem:[%s12798_s8 + $0x338] sm:$0xff] (%p9836_p6), %v7257_v24   ;;  %7262 = vst [vmem:[%s12798_s8 + $0x400] sm:$0xff] (%p9836_p6), %v7261_v35  }
 0x35c   : > { %v6160_v39 = vadd.f32 %v6159_v31, %v6145_v44  ;;  %7266 = vst [vmem:[%s12798_s8 + $0x408] sm:$0xff] (%p9836_p6), %v7265_v17   ;;  %7270 = vst [vmem:[%s12798_s8 + $0x410] sm:$0xff] (%p9836_p6), %v7269_v59   ;;  %v7289_v44 = vld [vmem:[%s10449_s14 + $0x138] sm:$0xff] (%p9836_p6)  }
 0x35d   : > { %v7077_v0 = vadd.f32 %v7076_v41, %v7062_v49  ;;  %7274 = vst [vmem:[%s12798_s8 + $0x418] sm:$0xff] (%p9836_p6), %v7273_v5   ;;  %7278 = vst [vmem:[%s12798_s8 + $0x420] sm:$0xff] (%p9836_p6), %v7277_v45  }
 0x35e   : > { %v6161_v16 = vrot.slane %v6160_v39, 4  ;;  %7282 = vst [vmem:[%s12798_s8 + $0x428] sm:$0xff] (%p9836_p6), %v7281_v40   ;;  %7286 = vst [vmem:[%s12798_s8 + $0x430] sm:$0xff] (%p9836_p6), %v7285_v1  }
 0x35f   : > { %v7078_v58 = vadd.f32 %v7077_v0, %v7063_v34  ;;  %7290 = vst [vmem:[%s12798_s8 + $0x438] sm:$0xff] (%p9836_p6), %v7289_v44  }
 0x360   : > { %v6162_v4 = vadd.f32 %v6161_v16, %v6160_v39 }
 0x361   : > { %v7079_v7 = vrot.slane %v7078_v58, 4 }
 0x362   : > { %v6163_v19 = vrot.slane %v6162_v4, 2 }
 0x363   : > { %v7080_v57 = vadd.f32 %v7079_v7, %v7078_v58 }
 0x364   : > { %v6164_v25 = vadd.f32 %v6163_v19, %v6162_v4 }
 0x365   : > { %v7081_v11 = vrot.slane %v7080_v57, 2 }
 0x366   : > { %v6165_v33 = vrot.slane %v6164_v25, 1 }
 0x367   : > { %v7082_v29 = vadd.f32 %v7081_v11, %v7080_v57 }
 0x368   : > { %v6166_v9 = vadd.f32 %v6165_v33, %v6164_v25  ;;  %7112 = sbr.rel (!%p9836_p6) target bundleno = 879 (0x36f), region = 36 }
 0x369   : > { %v7083_v36 = vrot.slane %v7082_v29, 1 }
 0x36b   : > { %v7084_v37 = vadd.f32 %v7083_v36, %v7082_v29 }
 0x36d   : > { %v7094_v26 = vsel %vm1074_vm1, %v6166_v9, %v7084_v37 }
 0x36e   : > { %7096 = vst [vmem:[%s12737_s26 + $0x8] sm:$0x3] %v7094_v26 }
 0x36f PF: > { %s15_s21 = sadd.s32 1, %s9759_s21   ;;  %s13115_s15 = smov %s9739_s16 }
 0x370   : > { %p12_p11 = scmp.ge.s32.totalorder %s15_s21, 6   ;;  %s13116_s16 = smov %s9844_s6 }
 0x371   : > { %s13117_s17 = smov %s9751_s19  ;;  %s13118_s18 = smov %s9755_s20 }
 0x372   : > { %s13119_s19 = smov %s13122_s22  ;;  %s13120_s20 = smov %s13126_s23 }
 0x373   :  { %14 = sbr.rel (!%p12_p11) target bundleno = 4 (0x4), region = 128 }

</bundles_post_ra>
